<compile_context>
chip_gen: v7x
topology: tpu7x:2x2x1
jax: 0.10.0
libtpu: 0.0.40
codegen_flags: <defaults>
</compile_context>

<pallas_src>
import jax
import jax.numpy as jnp
import numpy as np
from jax.experimental import pallas as pl
from jax.experimental.pallas import tpu as pltpu


IM_H, IM_W = 16, 16
NPIX = IM_H * IM_W                     # 256 flattened pixels (lane dim)
FC_INPUT_DIM = 2 * NPIX                # 512 (e.g. real+imag k-space, flattened)
FC_HIDDEN_DIM = 256
FC_OUTPUT_DIM = NPIX                   # 256, must equal im_h * im_w
CONV_C = 64
PAD = 128                              # lane gutter on each side (128-aligned)
PADW = NPIX + 2 * PAD                  # 512

OFFS5 = [(kh - 2, kw - 2) for kh in range(5) for kw in range(5)]   # conv1/conv2
OFFS7 = [(kh - 3, kw - 3) for kh in range(7) for kw in range(7)]   # convT
N5, N7 = len(OFFS5), len(OFFS7)        # 25, 49


def _build_masks():
    """(74, 256) float masks: 1 where pixel (h,w) shifted by (dh,dw) is valid."""
    h = np.arange(NPIX) // IM_W
    w = np.arange(NPIX) % IM_W
    rows = []
    for dh, dw in OFFS5 + OFFS7:
        valid = (h + dh >= 0) & (h + dh < IM_H) & (w + dw >= 0) & (w + dw < IM_W)
        rows.append(valid.astype(np.float32))
    return np.stack(rows)


_MASKS = _build_masks()


# ----------------------------- Pallas kernels -------------------------------

def _fc_kernel(x_ref, w1_ref, b1_ref, w2_ref, b2_ref, act1_ref, act2_ref):
    """act1 = tanh(x @ w1 + b1); act2 = tanh(act1 @ w2 + b2)."""
    a1 = jnp.tanh(
        jnp.dot(x_ref[...], w1_ref[...], preferred_element_type=jnp.float32)
        + b1_ref[...])
    act1_ref[...] = a1
    a2 = jnp.tanh(
        jnp.dot(a1, w2_ref[...], preferred_element_type=jnp.float32)
        + b2_ref[...])
    act2_ref[...] = a2


def _conv_kernel(fc_ref, masks_ref, wc1_ref, bc1_ref, wc2_ref, bc2_ref,
                 wc3_ref, bct_ref, o_ref,
                 img_pad_ref, pt_ref, c1_pad_ref, z_pad_ref, col_ref):
    """Fused conv stack for ONE image (grid over the batch).

    Layout: channels on sublanes, flattened pixels (p = h*16+w) on lanes.
      fc_ref   : (1, 1, 256)   act2 row for this image
      masks_ref: (74, 256) f32 validity masks (25 conv taps + 49 convT taps)
      wc1_ref  : (64, 25)  f32 conv1 weights, col = kh*5+kw
      wc2_ref  : (64, 1600) bf16 conv2 weights, col = (kh*5+kw)*64 + cin
      wc3_ref  : (49, 64)  bf16 convT weights (pre-flipped), row = kh*7+kw
      bc1/bc2  : (64, 1)   bct : (1, 1)
      o_ref    : (1, 1, 256) final Cout=1 output row
    Scratch:
      img_pad (1,512) f32, pt (25,256) f32, c1_pad (64,512) f32,
      z_pad (49,512) f32, col (1600,256) bf16
    """
    f32 = jnp.float32

    # Zero only the lane gutters (guards NaN*0 from uninitialised VMEM).  The
    # interiors are fully overwritten every step; masks zero all gutter reads.
    z1 = jnp.zeros((1, PAD), f32)
    zc = jnp.zeros((CONV_C, PAD), f32)
    zz = jnp.zeros((N7, PAD), f32)
    img_pad_ref[:, :PAD] = z1
    img_pad_ref[:, PAD + NPIX:] = z1
    c1_pad_ref[:, :PAD] = zc
    c1_pad_ref[:, PAD + NPIX:] = zc
    z_pad_ref[:, :PAD] = zz
    z_pad_ref[:, PAD + NPIX:] = zz

    # ---- conv1: Conv2d(1,64,5,p=2) + ReLU as (64,25) @ (25,256) on the MXU --
    img_pad_ref[:, PAD:PAD + NPIX] = fc_ref[0, :, :]
    for t, (dh, dw) in enumerate(OFFS5):
        s = dh * IM_W + dw
        pt_ref[t:t + 1, :] = (img_pad_ref[:, PAD + s:PAD + s + NPIX]
                              * masks_ref[t:t + 1, :])
    c1 = jnp.dot(wc1_ref[...], pt_ref[...],
                 preferred_element_type=f32)                       # (64, 256)
    c1 = jnp.maximum(c1 + bc1_ref[...], 0.0)
    c1_pad_ref[:, PAD:PAD + NPIX] = c1

    # ---- conv2: Conv2d(64,64,5,p=2) + ReLU, one big-K im2col matmul ---------
    # col rows = (tap, cin), 256 lane-dense columns; bf16 operands, f32 acc.
    for t, (dh, dw) in enumerate(OFFS5):
        s = dh * IM_W + dw
        patch = (c1_pad_ref[:, PAD + s:PAD + s + NPIX]
                 * masks_ref[t:t + 1, :])                          # (64, 256)
        col_ref[t * CONV_C:(t + 1) * CONV_C, :] = patch.astype(col_ref.dtype)
    c2 = jnp.dot(wc2_ref[...], col_ref[...],
                 preferred_element_type=f32)                       # (64, 256)
    c2 = jnp.maximum(c2 + bc2_ref[...], 0.0)

    # ---- conv3: ConvTranspose2d(64,1,7,s1,p3): contract channels first, then
    #      shift-and-add the 49 tap rows (Cout=1, so no MXU-hostile N=1 dot).
    z = jnp.dot(wc3_ref[...], c2.astype(wc3_ref.dtype),
                preferred_element_type=f32)                        # (49, 256)
    z_pad_ref[:, PAD:PAD + NPIX] = z
    accs = [jnp.zeros((1, NPIX), f32) for _ in range(4)]
    for t, (dh, dw) in enumerate(OFFS7):
        s = dh * IM_W + dw
        term = (z_pad_ref[t:t + 1, PAD + s:PAD + s + NPIX]
                * masks_ref[N5 + t:N5 + t + 1, :])
        accs[t % 4] = accs[t % 4] + term
    out = accs[0] + accs[1] + accs[2] + accs[3] + bct_ref[...]     # (1, 256)
    o_ref[0, :, :] = out.astype(o_ref.dtype)


# ------------------------------- Wrappers ------------------------------------

def fc_forward(x_flat, w1, b1, w2, b2, *, block_b=256):
    B, K = x_flat.shape
    H1, H2 = w1.shape[1], w2.shape[1]
    bb = min(block_b, B)
    return pl.pallas_call(
        _fc_kernel,
        out_shape=(jax.ShapeDtypeStruct((B, H1), jnp.float32),
                   jax.ShapeDtypeStruct((B, H2), jnp.float32)),
        grid_spec=pltpu.PrefetchScalarGridSpec(
            num_scalar_prefetch=0,
            grid=(pl.cdiv(B, bb),),
            in_specs=[
                pl.BlockSpec((bb, K), lambda i: (i, 0)),
                pl.BlockSpec((K, H1), lambda i: (0, 0)),
                pl.BlockSpec((1, H1), lambda i: (0, 0)),
                pl.BlockSpec((H1, H2), lambda i: (0, 0)),
                pl.BlockSpec((1, H2), lambda i: (0, 0)),
            ],
            out_specs=(pl.BlockSpec((bb, H1), lambda i: (i, 0)),
                       pl.BlockSpec((bb, H2), lambda i: (i, 0))),
        ),
        compiler_params=pltpu.CompilerParams(
            dimension_semantics=("parallel",)),
    )(x_flat, w1, b1, w2, b2)


def conv_forward(act2, masks, wc1t, bc1, wc2t, bc2, wc3m, bct):
    B = act2.shape[0]
    act2_3d = act2.reshape(B, 1, NPIX)          # free row-major reshape
    grid_spec = pltpu.PrefetchScalarGridSpec(
        num_scalar_prefetch=0,
        grid=(B,),
        in_specs=[
            pl.BlockSpec((1, 1, NPIX), lambda i: (i, 0, 0)),
            pl.BlockSpec((N5 + N7, NPIX), lambda i: (0, 0)),
            pl.BlockSpec((CONV_C, N5), lambda i: (0, 0)),
            pl.BlockSpec((CONV_C, 1), lambda i: (0, 0)),
            pl.BlockSpec((CONV_C, N5 * CONV_C), lambda i: (0, 0)),
            pl.BlockSpec((CONV_C, 1), lambda i: (0, 0)),
            pl.BlockSpec((N7, CONV_C), lambda i: (0, 0)),
            pl.BlockSpec((1, 1), lambda i: (0, 0)),
        ],
        out_specs=pl.BlockSpec((1, 1, NPIX), lambda i: (i, 0, 0)),
        scratch_shapes=[
            pltpu.VMEM((1, PADW), jnp.float32),                # img_pad
            pltpu.VMEM((N5, NPIX), jnp.float32),               # conv1 im2col
            pltpu.VMEM((CONV_C, PADW), jnp.float32),           # padded c1
            pltpu.VMEM((N7, PADW), jnp.float32),               # padded Z
            pltpu.VMEM((N5 * CONV_C, NPIX), jnp.bfloat16),     # conv2 im2col
        ],
    )
    out3 = pl.pallas_call(
        _conv_kernel,
        out_shape=jax.ShapeDtypeStruct((B, 1, NPIX), jnp.float32),
        grid_spec=grid_spec,
        compiler_params=pltpu.CompilerParams(
            dimension_semantics=("parallel",)),
    )(act2_3d, masks, wc1t, bc1, wc2t, bc2, wc3m, bct)
    return out3.reshape(B, NPIX)


# ----------------------- Model (param setup + forward) -----------------------

def init_params(key):
    """Torch-layout parameters (used by the pure-JAX reference)."""
    ks = jax.random.split(key, 10)

    def u(k, shape, fan_in):
        bound = 1.0 / np.sqrt(fan_in)
        return jax.random.uniform(k, shape, jnp.float32, -bound, bound)

    p = {}
    p["w1"] = u(ks[0], (FC_INPUT_DIM, FC_HIDDEN_DIM), FC_INPUT_DIM)
    p["b1"] = u(ks[1], (1, FC_HIDDEN_DIM), FC_INPUT_DIM)
    p["w2"] = u(ks[2], (FC_HIDDEN_DIM, FC_OUTPUT_DIM), FC_HIDDEN_DIM)
    p["b2"] = u(ks[3], (1, FC_OUTPUT_DIM), FC_HIDDEN_DIM)
    p["wc1_pt"] = u(ks[4], (CONV_C, 1, 5, 5), 1 * 25)
    p["bc1"] = u(ks[5], (CONV_C,), 1 * 25)
    p["wc2_pt"] = u(ks[6], (CONV_C, CONV_C, 5, 5), CONV_C * 25)
    p["bc2"] = u(ks[7], (CONV_C,), CONV_C * 25)
    p["wct_pt"] = u(ks[8], (CONV_C, 1, 7, 7), CONV_C * 49)
    p["bct"] = u(ks[9], (1,), CONV_C * 49)
    return p


def prepare_kernel_params(p):
    """Rearranged (and partly bf16) weights in the layouts the kernels expect."""
    kp = {"w1": p["w1"], "b1": p["b1"], "w2": p["w2"], "b2": p["b2"]}
    # Conv2d(1,64,5): (64,1,5,5) -> (64, 25), col = kh*5+kw.
    kp["wc1t"] = p["wc1_pt"].reshape(CONV_C, N5)
    kp["bc1"] = p["bc1"].reshape(CONV_C, 1)
    # Conv2d(64,64,5): (64,64,5,5) -> (64, 1600), col = (kh*5+kw)*64 + cin.
    kp["wc2t"] = jnp.transpose(p["wc2_pt"], (0, 2, 3, 1)).reshape(
        CONV_C, N5 * CONV_C).astype(jnp.bfloat16)
    kp["bc2"] = p["bc2"].reshape(CONV_C, 1)
    # ConvTranspose2d(64,1,7,s1,p3) == conv with flipped kernel, pad 3:
    # (64,1,7,7) -> flip spatial -> (49, 64), row = kh*7+kw.
    kp["wc3m"] = jnp.transpose(jnp.flip(p["wct_pt"], (2, 3)),
                               (2, 3, 0, 1)).reshape(N7, CONV_C).astype(jnp.bfloat16)
    kp["bct"] = p["bct"].reshape(1, 1)
    kp["masks"] = jnp.asarray(_MASKS)          # (74, 256) f32
    return kp


@jax.jit
def automap_basic_2_forward(x, kparams):
    """Mirrors AUTOMAP_BASIC_2.forward.  x: any shape (B, ...)."""
    B = x.shape[0]
    x_flat = x.reshape(B, -1)                                   # x.view(B, -1)

    act1, act2 = fc_forward(x_flat, kparams["w1"], kparams["b1"],
                            kparams["w2"], kparams["b2"])

    out = conv_forward(act2, kparams["masks"], kparams["wc1t"], kparams["bc1"],
                       kparams["wc2t"], kparams["bc2"],
                       kparams["wc3m"], kparams["bct"])

    c3 = out.reshape(B, 1, IM_H, IM_W)          # NCHW, like the torch module
    fc = act2.reshape(B, 1, IM_H, IM_W)
    output = out                                 # (B, 256)
    return c3, fc, output, act1


# --------------------------- Pure-JAX reference ------------------------------

def _reference_forward(x, p):
    """Full-f32 XLA reference (same parameterization) for correctness checks."""
    B = x.shape[0]
    hi = jax.lax.Precision.HIGHEST
    xf = x.reshape(B, -1)
    a1 = jnp.tanh(jnp.dot(xf, p["w1"], precision=hi) + p["b1"])
    a2 = jnp.tanh(jnp.dot(a1, p["w2"], precision=hi) + p["b2"])
    img = a2.reshape(B, 1, IM_H, IM_W)

    def conv(x_nchw, w_hwio, b, pad):
        y = jax.lax.conv_general_dilated(
            x_nchw, w_hwio, window_strides=(1, 1),
            padding=[(pad, pad), (pad, pad)],
            dimension_numbers=("NCHW", "HWIO", "NCHW"), precision=hi)
        return y + b.reshape(1, -1, 1, 1)

    w1c = jnp.transpose(p["wc1_pt"], (2, 3, 1, 0))                     # (5,5,1,64)
    w2c = jnp.transpose(p["wc2_pt"], (2, 3, 1, 0))                     # (5,5,64,64)
    w3c = jnp.transpose(jnp.flip(p["wct_pt"], (2, 3)), (2, 3, 0, 1))   # (7,7,64,1)
    c1 = jax.nn.relu(conv(img, w1c, p["bc1"], 2))
    c2 = jax.nn.relu(conv(c1, w2c, p["bc2"], 2))
    c3 = conv(c2, w3c, p["bct"], 3)
    return c3, img, c3.reshape(B, -1), a1


# ---------------------------------- Main --------------------------------------

if __name__ == "__main__":
    key = jax.random.PRNGKey(0)
    k_params, k_x = jax.random.split(key)

    params = init_params(k_params)
    kparams = prepare_kernel_params(params)

    # (B, 2, 16, 16) k-space-like input; flattened dim = FC_INPUT_DIM = 512.
    x = jax.random.normal(k_x, (2, 2, IM_H, IM_W), jnp.float32)

    outs = automap_basic_2_forward(x, kparams)
    jax.block_until_ready(outs)
    c3, fc, output, act1 = outs

    assert c3.shape == (2, 1, IM_H, IM_W)
    assert fc.shape == (2, 1, IM_H, IM_W)
    assert output.shape == (2, NPIX)
    assert act1.shape == (2, FC_HIDDEN_DIM)

    # Correctness check against the pure-f32 XLA reference.
    c3_r, fc_r, out_r, act1_r = _reference_forward(x, params)
    # FC path stays f32 in the kernel -> tight tolerance.
    np.testing.assert_allclose(np.asarray(act1), np.asarray(act1_r),
                               rtol=2e-3, atol=2e-3)
    np.testing.assert_allclose(np.asarray(fc), np.asarray(fc_r),
                               rtol=2e-3, atol=2e-3)
    # conv2/conv3 matmuls use bf16 operands (f32 accumulation) per the perf
    # guidance for v6e/v7x -> slightly looser tolerance on the conv outputs.
    np.testing.assert_allclose(np.asarray(c3), np.asarray(c3_r),
                               rtol=5e-3, atol=5e-3)
    np.testing.assert_allclose(np.asarray(output), np.asarray(out_r),
                               rtol=5e-3, atol=5e-3)

    print("KERNEL_OK")
</pallas_src>

<mosaic_0001>
module attributes {stable_mosaic.version = 11 : i64} {
  func.func @_fc_kernel(%arg0: i32, %arg1: memref<2x512xf32, #tpu.memory_space<vmem>>, %arg2: memref<512x256xf32, #tpu.memory_space<vmem>>, %arg3: memref<1x256xf32, #tpu.memory_space<vmem>>, %arg4: memref<256x256xf32, #tpu.memory_space<vmem>>, %arg5: memref<1x256xf32, #tpu.memory_space<vmem>>, %arg6: memref<2x256xf32, #tpu.memory_space<vmem>>, %arg7: memref<2x256xf32, #tpu.memory_space<vmem>>) attributes {dimension_semantics = [#tpu.dimension_semantics<parallel>], iteration_bounds = array<i64: 1>, scalar_prefetch = 0 : i64, scratch_operands = 0 : i64, tpu.core_type = #tpu.core_type<tc>, window_params = [{transform_indices = @transform_0, window_bounds = array<i64: 2, 512>}, {pipeline_mode = #tpu.pipeline_mode<synchronous>, transform_indices = @transform_1, window_bounds = array<i64: 512, 256>}, {pipeline_mode = #tpu.pipeline_mode<synchronous>, transform_indices = @transform_2, window_bounds = array<i64: 1, 256>}, {pipeline_mode = #tpu.pipeline_mode<synchronous>, transform_indices = @transform_3, window_bounds = array<i64: 256, 256>}, {pipeline_mode = #tpu.pipeline_mode<synchronous>, transform_indices = @transform_4, window_bounds = array<i64: 1, 256>}, {transform_indices = @transform_5, window_bounds = array<i64: 2, 256>}, {transform_indices = @transform_6, window_bounds = array<i64: 2, 256>}]} {
    %c0 = arith.constant 0 : index
    %c0_0 = arith.constant 0 : index
    %0 = vector.load %arg1[%c0, %c0_0] : memref<2x512xf32, #tpu.memory_space<vmem>>, vector<2x512xf32>
    %c0_1 = arith.constant 0 : index
    %c0_2 = arith.constant 0 : index
    %1 = vector.load %arg2[%c0_1, %c0_2] : memref<512x256xf32, #tpu.memory_space<vmem>>, vector<512x256xf32>
    %cst = arith.constant dense<0.000000e+00> : vector<2x256xf32>
    %2 = tpu.matmul %0, %1, %cst {dimension_numbers = #tpu.dot_dimension_numbers<[1], [0], [0], [1], [0, 0, 1, 1], [], []>} : vector<2x512xf32>, vector<512x256xf32>, vector<2x256xf32> -> vector<2x256xf32>
    %c0_3 = arith.constant 0 : index
    %c0_4 = arith.constant 0 : index
    %3 = vector.load %arg3[%c0_3, %c0_4] : memref<1x256xf32, #tpu.memory_space<vmem>>, vector<1x256xf32>
    %4 = vector.broadcast %3 : vector<1x256xf32> to vector<2x256xf32>
    %5 = arith.addf %2, %4 : vector<2x256xf32>
    %6 = math.tanh %5 : vector<2x256xf32>
    %c0_5 = arith.constant 0 : index
    %c0_6 = arith.constant 0 : index
    %7 = vector.load %arg6[%c0_5, %c0_6] : memref<2x256xf32, #tpu.memory_space<vmem>>, vector<2x256xf32>
    tpu.vector_store %arg6[%c0_5, %c0_6], %6 {strides = array<i32>} : memref<2x256xf32, #tpu.memory_space<vmem>>, vector<2x256xf32>,
    %c0_7 = arith.constant 0 : index
    %c0_8 = arith.constant 0 : index
    %8 = vector.load %arg4[%c0_7, %c0_8] : memref<256x256xf32, #tpu.memory_space<vmem>>, vector<256x256xf32>
    %cst_9 = arith.constant dense<0.000000e+00> : vector<2x256xf32>
    %9 = tpu.matmul %6, %8, %cst_9 {dimension_numbers = #tpu.dot_dimension_numbers<[1], [0], [0], [1], [0, 0, 1, 1], [], []>} : vector<2x256xf32>, vector<256x256xf32>, vector<2x256xf32> -> vector<2x256xf32>
    %c0_10 = arith.constant 0 : index
    %c0_11 = arith.constant 0 : index
    %10 = vector.load %arg5[%c0_10, %c0_11] : memref<1x256xf32, #tpu.memory_space<vmem>>, vector<1x256xf32>
    %11 = vector.broadcast %10 : vector<1x256xf32> to vector<2x256xf32>
    %12 = arith.addf %9, %11 : vector<2x256xf32>
    %13 = math.tanh %12 : vector<2x256xf32>
    %c0_12 = arith.constant 0 : index
    %c0_13 = arith.constant 0 : index
    %14 = vector.load %arg7[%c0_12, %c0_13] : memref<2x256xf32, #tpu.memory_space<vmem>>, vector<2x256xf32>
    tpu.vector_store %arg7[%c0_12, %c0_13], %13 {strides = array<i32>} : memref<2x256xf32, #tpu.memory_space<vmem>>, vector<2x256xf32>,
    return
  }
  func.func @transform_0(%arg0: i32) -> (i32, i32) {
    %c0_i32 = arith.constant 0 : i32
    %c0_i32_0 = arith.constant 0 : i32
    return %arg0, %c0_i32 : i32, i32
  }
  func.func @transform_1(%arg0: i32) -> (i32, i32) {
    %c0_i32 = arith.constant 0 : i32
    %c0_i32_0 = arith.constant 0 : i32
    %c0_i32_1 = arith.constant 0 : i32
    return %c0_i32, %c0_i32_0 : i32, i32
  }
  func.func @transform_2(%arg0: i32) -> (i32, i32) {
    %c0_i32 = arith.constant 0 : i32
    %c0_i32_0 = arith.constant 0 : i32
    %c0_i32_1 = arith.constant 0 : i32
    return %c0_i32, %c0_i32_0 : i32, i32
  }
  func.func @transform_3(%arg0: i32) -> (i32, i32) {
    %c0_i32 = arith.constant 0 : i32
    %c0_i32_0 = arith.constant 0 : i32
    %c0_i32_1 = arith.constant 0 : i32
    return %c0_i32, %c0_i32_0 : i32, i32
  }
  func.func @transform_4(%arg0: i32) -> (i32, i32) {
    %c0_i32 = arith.constant 0 : i32
    %c0_i32_0 = arith.constant 0 : i32
    %c0_i32_1 = arith.constant 0 : i32
    return %c0_i32, %c0_i32_0 : i32, i32
  }
  func.func @transform_5(%arg0: i32) -> (i32, i32) {
    %c0_i32 = arith.constant 0 : i32
    %c0_i32_0 = arith.constant 0 : i32
    return %arg0, %c0_i32 : i32, i32
  }
  func.func @transform_6(%arg0: i32) -> (i32, i32) {
    %c0_i32 = arith.constant 0 : i32
    %c0_i32_0 = arith.constant 0 : i32
    return %arg0, %c0_i32 : i32, i32
  }
}

module attributes {stable_mosaic.version = 11 : i64} {
  func.func @_conv_kernel(%arg0: i32, %arg1: memref<1x1x256xf32, #tpu.memory_space<vmem>>, %arg2: memref<74x256xf32, #tpu.memory_space<vmem>>, %arg3: memref<64x25xf32, #tpu.memory_space<vmem>>, %arg4: memref<64x1xf32, #tpu.memory_space<vmem>>, %arg5: memref<64x1600xbf16, #tpu.memory_space<vmem>>, %arg6: memref<64x1xf32, #tpu.memory_space<vmem>>, %arg7: memref<49x64xbf16, #tpu.memory_space<vmem>>, %arg8: memref<1x1xf32, #tpu.memory_space<vmem>>, %arg9: memref<1x1x256xf32, #tpu.memory_space<vmem>>, %arg10: memref<1x512xf32, #tpu.memory_space<vmem>>, %arg11: memref<25x256xf32, #tpu.memory_space<vmem>>, %arg12: memref<64x512xf32, #tpu.memory_space<vmem>>, %arg13: memref<49x512xf32, #tpu.memory_space<vmem>>, %arg14: memref<1600x256xbf16, #tpu.memory_space<vmem>>) attributes {dimension_semantics = [#tpu.dimension_semantics<parallel>], iteration_bounds = array<i64: 2>, scalar_prefetch = 0 : i64, scratch_operands = 5 : i64, tpu.core_type = #tpu.core_type<tc>, window_params = [{transform_indices = @transform_0, window_bounds = array<i64: 1, 1, 256>}, {pipeline_mode = #tpu.pipeline_mode<synchronous>, transform_indices = @transform_1, window_bounds = array<i64: 74, 256>}, {pipeline_mode = #tpu.pipeline_mode<synchronous>, transform_indices = @transform_2, window_bounds = array<i64: 64, 25>}, {pipeline_mode = #tpu.pipeline_mode<synchronous>, transform_indices = @transform_3, window_bounds = array<i64: 64, 1>}, {pipeline_mode = #tpu.pipeline_mode<synchronous>, transform_indices = @transform_4, window_bounds = array<i64: 64, 1600>}, {pipeline_mode = #tpu.pipeline_mode<synchronous>, transform_indices = @transform_5, window_bounds = array<i64: 64, 1>}, {pipeline_mode = #tpu.pipeline_mode<synchronous>, transform_indices = @transform_6, window_bounds = array<i64: 49, 64>}, {pipeline_mode = #tpu.pipeline_mode<synchronous>, transform_indices = @transform_7, window_bounds = array<i64: 1, 1>}, {transform_indices = @transform_8, window_bounds = array<i64: 1, 1, 256>}]} {
    %cst = arith.constant 0.000000e+00 : f32
    %0 = vector.broadcast %cst : f32 to vector<1x128xf32>
    %cst_0 = arith.constant 0.000000e+00 : f32
    %1 = vector.broadcast %cst_0 : f32 to vector<64x128xf32>
    %cst_1 = arith.constant 0.000000e+00 : f32
    %2 = vector.broadcast %cst_1 : f32 to vector<49x128xf32>
    %c0 = arith.constant 0 : index
    %c0_2 = arith.constant 0 : index
    %3 = vector.load %arg10[%c0, %c0_2] : memref<1x512xf32, #tpu.memory_space<vmem>>, vector<1x128xf32>
    tpu.vector_store %arg10[%c0, %c0_2], %0 {strides = array<i32>} : memref<1x512xf32, #tpu.memory_space<vmem>>, vector<1x128xf32>,
    %c0_3 = arith.constant 0 : index
    %c384 = arith.constant 384 : index
    %4 = vector.load %arg10[%c0_3, %c384] : memref<1x512xf32, #tpu.memory_space<vmem>>, vector<1x128xf32>
    tpu.vector_store %arg10[%c0_3, %c384], %0 {strides = array<i32>} : memref<1x512xf32, #tpu.memory_space<vmem>>, vector<1x128xf32>,
    %c0_4 = arith.constant 0 : index
    %c0_5 = arith.constant 0 : index
    %5 = vector.load %arg12[%c0_4, %c0_5] : memref<64x512xf32, #tpu.memory_space<vmem>>, vector<64x128xf32>
    tpu.vector_store %arg12[%c0_4, %c0_5], %1 {strides = array<i32>} : memref<64x512xf32, #tpu.memory_space<vmem>>, vector<64x128xf32>,
    %c0_6 = arith.constant 0 : index
    %c384_7 = arith.constant 384 : index
    %6 = vector.load %arg12[%c0_6, %c384_7] : memref<64x512xf32, #tpu.memory_space<vmem>>, vector<64x128xf32>
    tpu.vector_store %arg12[%c0_6, %c384_7], %1 {strides = array<i32>} : memref<64x512xf32, #tpu.memory_space<vmem>>, vector<64x128xf32>,
    %c0_8 = arith.constant 0 : index
    %c0_9 = arith.constant 0 : index
    %7 = vector.load %arg13[%c0_8, %c0_9] : memref<49x512xf32, #tpu.memory_space<vmem>>, vector<49x128xf32>
    tpu.vector_store %arg13[%c0_8, %c0_9], %2 {strides = array<i32>} : memref<49x512xf32, #tpu.memory_space<vmem>>, vector<49x128xf32>,
    %c0_10 = arith.constant 0 : index
    %c384_11 = arith.constant 384 : index
    %8 = vector.load %arg13[%c0_10, %c384_11] : memref<49x512xf32, #tpu.memory_space<vmem>>, vector<49x128xf32>
    tpu.vector_store %arg13[%c0_10, %c384_11], %2 {strides = array<i32>} : memref<49x512xf32, #tpu.memory_space<vmem>>, vector<49x128xf32>,
    %c0_12 = arith.constant 0 : index
    %c0_13 = arith.constant 0 : index
    %c0_14 = arith.constant 0 : index
    %9 = vector.load %arg1[%c0_12, %c0_13, %c0_14] : memref<1x1x256xf32, #tpu.memory_space<vmem>>, vector<1x1x256xf32>
    %10 = vector.shape_cast %9 : vector<1x1x256xf32> to vector<1x256xf32>
    %c0_15 = arith.constant 0 : index
    %c128 = arith.constant 128 : index
    %11 = vector.load %arg10[%c0_15, %c128] : memref<1x512xf32, #tpu.memory_space<vmem>>, vector<1x256xf32>
    tpu.vector_store %arg10[%c0_15, %c128], %10 {strides = array<i32>} : memref<1x512xf32, #tpu.memory_space<vmem>>, vector<1x256xf32>,
    %c0_16 = arith.constant 0 : index
    %c94 = arith.constant 94 : index
    %12 = vector.load %arg10[%c0_16, %c94] : memref<1x512xf32, #tpu.memory_space<vmem>>, vector<1x256xf32>
    %c0_17 = arith.constant 0 : index
    %c0_18 = arith.constant 0 : index
    %13 = vector.load %arg2[%c0_17, %c0_18] : memref<74x256xf32, #tpu.memory_space<vmem>>, vector<1x256xf32>
    %14 = arith.mulf %12, %13 : vector<1x256xf32>
    %c0_19 = arith.constant 0 : index
    %c0_20 = arith.constant 0 : index
    %15 = vector.load %arg11[%c0_19, %c0_20] : memref<25x256xf32, #tpu.memory_space<vmem>>, vector<1x256xf32>
    tpu.vector_store %arg11[%c0_19, %c0_20], %14 {strides = array<i32>} : memref<25x256xf32, #tpu.memory_space<vmem>>, vector<1x256xf32>,
    %c0_21 = arith.constant 0 : index
    %c95 = arith.constant 95 : index
    %16 = vector.load %arg10[%c0_21, %c95] : memref<1x512xf32, #tpu.memory_space<vmem>>, vector<1x256xf32>
    %c1 = arith.constant 1 : index
    %c0_22 = arith.constant 0 : index
    %17 = vector.load %arg2[%c1, %c0_22] : memref<74x256xf32, #tpu.memory_space<vmem>>, vector<1x256xf32>
    %18 = arith.mulf %16, %17 : vector<1x256xf32>
    %c1_23 = arith.constant 1 : index
    %c0_24 = arith.constant 0 : index
    %19 = vector.load %arg11[%c1_23, %c0_24] : memref<25x256xf32, #tpu.memory_space<vmem>>, vector<1x256xf32>
    tpu.vector_store %arg11[%c1_23, %c0_24], %18 {strides = array<i32>} : memref<25x256xf32, #tpu.memory_space<vmem>>, vector<1x256xf32>,
    %c0_25 = arith.constant 0 : index
    %c96 = arith.constant 96 : index
    %20 = vector.load %arg10[%c0_25, %c96] : memref<1x512xf32, #tpu.memory_space<vmem>>, vector<1x256xf32>
    %c2 = arith.constant 2 : index
    %c0_26 = arith.constant 0 : index
    %21 = vector.load %arg2[%c2, %c0_26] : memref<74x256xf32, #tpu.memory_space<vmem>>, vector<1x256xf32>
    %22 = arith.mulf %20, %21 : vector<1x256xf32>
    %c2_27 = arith.constant 2 : index
    %c0_28 = arith.constant 0 : index
    %23 = vector.load %arg11[%c2_27, %c0_28] : memref<25x256xf32, #tpu.memory_space<vmem>>, vector<1x256xf32>
    tpu.vector_store %arg11[%c2_27, %c0_28], %22 {strides = array<i32>} : memref<25x256xf32, #tpu.memory_space<vmem>>, vector<1x256xf32>,
    %c0_29 = arith.constant 0 : index
    %c97 = arith.constant 97 : index
    %24 = vector.load %arg10[%c0_29, %c97] : memref<1x512xf32, #tpu.memory_space<vmem>>, vector<1x256xf32>
    %c3 = arith.constant 3 : index
    %c0_30 = arith.constant 0 : index
    %25 = vector.load %arg2[%c3, %c0_30] : memref<74x256xf32, #tpu.memory_space<vmem>>, vector<1x256xf32>
    %26 = arith.mulf %24, %25 : vector<1x256xf32>
    %c3_31 = arith.constant 3 : index
    %c0_32 = arith.constant 0 : index
    %27 = vector.load %arg11[%c3_31, %c0_32] : memref<25x256xf32, #tpu.memory_space<vmem>>, vector<1x256xf32>
    tpu.vector_store %arg11[%c3_31, %c0_32], %26 {strides = array<i32>} : memref<25x256xf32, #tpu.memory_space<vmem>>, vector<1x256xf32>,
    %c0_33 = arith.constant 0 : index
    %c98 = arith.constant 98 : index
    %28 = vector.load %arg10[%c0_33, %c98] : memref<1x512xf32, #tpu.memory_space<vmem>>, vector<1x256xf32>
    %c4 = arith.constant 4 : index
    %c0_34 = arith.constant 0 : index
    %29 = vector.load %arg2[%c4, %c0_34] : memref<74x256xf32, #tpu.memory_space<vmem>>, vector<1x256xf32>
    %30 = arith.mulf %28, %29 : vector<1x256xf32>
    %c4_35 = arith.constant 4 : index
    %c0_36 = arith.constant 0 : index
    %31 = vector.load %arg11[%c4_35, %c0_36] : memref<25x256xf32, #tpu.memory_space<vmem>>, vector<1x256xf32>
    tpu.vector_store %arg11[%c4_35, %c0_36], %30 {strides = array<i32>} : memref<25x256xf32, #tpu.memory_space<vmem>>, vector<1x256xf32>,
    %c0_37 = arith.constant 0 : index
    %c110 = arith.constant 110 : index
    %32 = vector.load %arg10[%c0_37, %c110] : memref<1x512xf32, #tpu.memory_space<vmem>>, vector<1x256xf32>
    %c5 = arith.constant 5 : index
    %c0_38 = arith.constant 0 : index
    %33 = vector.load %arg2[%c5, %c0_38] : memref<74x256xf32, #tpu.memory_space<vmem>>, vector<1x256xf32>
    %34 = arith.mulf %32, %33 : vector<1x256xf32>
    %c5_39 = arith.constant 5 : index
    %c0_40 = arith.constant 0 : index
    %35 = vector.load %arg11[%c5_39, %c0_40] : memref<25x256xf32, #tpu.memory_space<vmem>>, vector<1x256xf32>
    tpu.vector_store %arg11[%c5_39, %c0_40], %34 {strides = array<i32>} : memref<25x256xf32, #tpu.memory_space<vmem>>, vector<1x256xf32>,
    %c0_41 = arith.constant 0 : index
    %c111 = arith.constant 111 : index
    %36 = vector.load %arg10[%c0_41, %c111] : memref<1x512xf32, #tpu.memory_space<vmem>>, vector<1x256xf32>
    %c6 = arith.constant 6 : index
    %c0_42 = arith.constant 0 : index
    %37 = vector.load %arg2[%c6, %c0_42] : memref<74x256xf32, #tpu.memory_space<vmem>>, vector<1x256xf32>
    %38 = arith.mulf %36, %37 : vector<1x256xf32>
    %c6_43 = arith.constant 6 : index
    %c0_44 = arith.constant 0 : index
    %39 = vector.load %arg11[%c6_43, %c0_44] : memref<25x256xf32, #tpu.memory_space<vmem>>, vector<1x256xf32>
    tpu.vector_store %arg11[%c6_43, %c0_44], %38 {strides = array<i32>} : memref<25x256xf32, #tpu.memory_space<vmem>>, vector<1x256xf32>,
    %c0_45 = arith.constant 0 : index
    %c112 = arith.constant 112 : index
    %40 = vector.load %arg10[%c0_45, %c112] : memref<1x512xf32, #tpu.memory_space<vmem>>, vector<1x256xf32>
    %c7 = arith.constant 7 : index
    %c0_46 = arith.constant 0 : index
    %41 = vector.load %arg2[%c7, %c0_46] : memref<74x256xf32, #tpu.memory_space<vmem>>, vector<1x256xf32>
    %42 = arith.mulf %40, %41 : vector<1x256xf32>
    %c7_47 = arith.constant 7 : index
    %c0_48 = arith.constant 0 : index
    %43 = vector.load %arg11[%c7_47, %c0_48] : memref<25x256xf32, #tpu.memory_space<vmem>>, vector<1x256xf32>
    tpu.vector_store %arg11[%c7_47, %c0_48], %42 {strides = array<i32>} : memref<25x256xf32, #tpu.memory_space<vmem>>, vector<1x256xf32>,
    %c0_49 = arith.constant 0 : index
    %c113 = arith.constant 113 : index
    %44 = vector.load %arg10[%c0_49, %c113] : memref<1x512xf32, #tpu.memory_space<vmem>>, vector<1x256xf32>
    %c8 = arith.constant 8 : index
    %c0_50 = arith.constant 0 : index
    %45 = vector.load %arg2[%c8, %c0_50] : memref<74x256xf32, #tpu.memory_space<vmem>>, vector<1x256xf32>
    %46 = arith.mulf %44, %45 : vector<1x256xf32>
    %c8_51 = arith.constant 8 : index
    %c0_52 = arith.constant 0 : index
    %47 = vector.load %arg11[%c8_51, %c0_52] : memref<25x256xf32, #tpu.memory_space<vmem>>, vector<1x256xf32>
    tpu.vector_store %arg11[%c8_51, %c0_52], %46 {strides = array<i32>} : memref<25x256xf32, #tpu.memory_space<vmem>>, vector<1x256xf32>,
    %c0_53 = arith.constant 0 : index
    %c114 = arith.constant 114 : index
    %48 = vector.load %arg10[%c0_53, %c114] : memref<1x512xf32, #tpu.memory_space<vmem>>, vector<1x256xf32>
    %c9 = arith.constant 9 : index
    %c0_54 = arith.constant 0 : index
    %49 = vector.load %arg2[%c9, %c0_54] : memref<74x256xf32, #tpu.memory_space<vmem>>, vector<1x256xf32>
    %50 = arith.mulf %48, %49 : vector<1x256xf32>
    %c9_55 = arith.constant 9 : index
    %c0_56 = arith.constant 0 : index
    %51 = vector.load %arg11[%c9_55, %c0_56] : memref<25x256xf32, #tpu.memory_space<vmem>>, vector<1x256xf32>
    tpu.vector_store %arg11[%c9_55, %c0_56], %50 {strides = array<i32>} : memref<25x256xf32, #tpu.memory_space<vmem>>, vector<1x256xf32>,
    %c0_57 = arith.constant 0 : index
    %c126 = arith.constant 126 : index
    %52 = vector.load %arg10[%c0_57, %c126] : memref<1x512xf32, #tpu.memory_space<vmem>>, vector<1x256xf32>
    %c10 = arith.constant 10 : index
    %c0_58 = arith.constant 0 : index
    %53 = vector.load %arg2[%c10, %c0_58] : memref<74x256xf32, #tpu.memory_space<vmem>>, vector<1x256xf32>
    %54 = arith.mulf %52, %53 : vector<1x256xf32>
    %c10_59 = arith.constant 10 : index
    %c0_60 = arith.constant 0 : index
    %55 = vector.load %arg11[%c10_59, %c0_60] : memref<25x256xf32, #tpu.memory_space<vmem>>, vector<1x256xf32>
    tpu.vector_store %arg11[%c10_59, %c0_60], %54 {strides = array<i32>} : memref<25x256xf32, #tpu.memory_space<vmem>>, vector<1x256xf32>,
    %c0_61 = arith.constant 0 : index
    %c127 = arith.constant 127 : index
    %56 = vector.load %arg10[%c0_61, %c127] : memref<1x512xf32, #tpu.memory_space<vmem>>, vector<1x256xf32>
    %c11 = arith.constant 11 : index
    %c0_62 = arith.constant 0 : index
    %57 = vector.load %arg2[%c11, %c0_62] : memref<74x256xf32, #tpu.memory_space<vmem>>, vector<1x256xf32>
    %58 = arith.mulf %56, %57 : vector<1x256xf32>
    %c11_63 = arith.constant 11 : index
    %c0_64 = arith.constant 0 : index
    %59 = vector.load %arg11[%c11_63, %c0_64] : memref<25x256xf32, #tpu.memory_space<vmem>>, vector<1x256xf32>
    tpu.vector_store %arg11[%c11_63, %c0_64], %58 {strides = array<i32>} : memref<25x256xf32, #tpu.memory_space<vmem>>, vector<1x256xf32>,
    %c0_65 = arith.constant 0 : index
    %c128_66 = arith.constant 128 : index
    %60 = vector.load %arg10[%c0_65, %c128_66] : memref<1x512xf32, #tpu.memory_space<vmem>>, vector<1x256xf32>
    %c12 = arith.constant 12 : index
    %c0_67 = arith.constant 0 : index
    %61 = vector.load %arg2[%c12, %c0_67] : memref<74x256xf32, #tpu.memory_space<vmem>>, vector<1x256xf32>
    %62 = arith.mulf %60, %61 : vector<1x256xf32>
    %c12_68 = arith.constant 12 : index
    %c0_69 = arith.constant 0 : index
    %63 = vector.load %arg11[%c12_68, %c0_69] : memref<25x256xf32, #tpu.memory_space<vmem>>, vector<1x256xf32>
    tpu.vector_store %arg11[%c12_68, %c0_69], %62 {strides = array<i32>} : memref<25x256xf32, #tpu.memory_space<vmem>>, vector<1x256xf32>,
    %c0_70 = arith.constant 0 : index
    %c129 = arith.constant 129 : index
    %64 = vector.load %arg10[%c0_70, %c129] : memref<1x512xf32, #tpu.memory_space<vmem>>, vector<1x256xf32>
    %c13 = arith.constant 13 : index
    %c0_71 = arith.constant 0 : index
    %65 = vector.load %arg2[%c13, %c0_71] : memref<74x256xf32, #tpu.memory_space<vmem>>, vector<1x256xf32>
    %66 = arith.mulf %64, %65 : vector<1x256xf32>
    %c13_72 = arith.constant 13 : index
    %c0_73 = arith.constant 0 : index
    %67 = vector.load %arg11[%c13_72, %c0_73] : memref<25x256xf32, #tpu.memory_space<vmem>>, vector<1x256xf32>
    tpu.vector_store %arg11[%c13_72, %c0_73], %66 {strides = array<i32>} : memref<25x256xf32, #tpu.memory_space<vmem>>, vector<1x256xf32>,
    %c0_74 = arith.constant 0 : index
    %c130 = arith.constant 130 : index
    %68 = vector.load %arg10[%c0_74, %c130] : memref<1x512xf32, #tpu.memory_space<vmem>>, vector<1x256xf32>
    %c14 = arith.constant 14 : index
    %c0_75 = arith.constant 0 : index
    %69 = vector.load %arg2[%c14, %c0_75] : memref<74x256xf32, #tpu.memory_space<vmem>>, vector<1x256xf32>
    %70 = arith.mulf %68, %69 : vector<1x256xf32>
    %c14_76 = arith.constant 14 : index
    %c0_77 = arith.constant 0 : index
    %71 = vector.load %arg11[%c14_76, %c0_77] : memref<25x256xf32, #tpu.memory_space<vmem>>, vector<1x256xf32>
    tpu.vector_store %arg11[%c14_76, %c0_77], %70 {strides = array<i32>} : memref<25x256xf32, #tpu.memory_space<vmem>>, vector<1x256xf32>,
    %c0_78 = arith.constant 0 : index
    %c142 = arith.constant 142 : index
    %72 = vector.load %arg10[%c0_78, %c142] : memref<1x512xf32, #tpu.memory_space<vmem>>, vector<1x256xf32>
    %c15 = arith.constant 15 : index
    %c0_79 = arith.constant 0 : index
    %73 = vector.load %arg2[%c15, %c0_79] : memref<74x256xf32, #tpu.memory_space<vmem>>, vector<1x256xf32>
    %74 = arith.mulf %72, %73 : vector<1x256xf32>
    %c15_80 = arith.constant 15 : index
    %c0_81 = arith.constant 0 : index
    %75 = vector.load %arg11[%c15_80, %c0_81] : memref<25x256xf32, #tpu.memory_space<vmem>>, vector<1x256xf32>
    tpu.vector_store %arg11[%c15_80, %c0_81], %74 {strides = array<i32>} : memref<25x256xf32, #tpu.memory_space<vmem>>, vector<1x256xf32>,
    %c0_82 = arith.constant 0 : index
    %c143 = arith.constant 143 : index
    %76 = vector.load %arg10[%c0_82, %c143] : memref<1x512xf32, #tpu.memory_space<vmem>>, vector<1x256xf32>
    %c16 = arith.constant 16 : index
    %c0_83 = arith.constant 0 : index
    %77 = vector.load %arg2[%c16, %c0_83] : memref<74x256xf32, #tpu.memory_space<vmem>>, vector<1x256xf32>
    %78 = arith.mulf %76, %77 : vector<1x256xf32>
    %c16_84 = arith.constant 16 : index
    %c0_85 = arith.constant 0 : index
    %79 = vector.load %arg11[%c16_84, %c0_85] : memref<25x256xf32, #tpu.memory_space<vmem>>, vector<1x256xf32>
    tpu.vector_store %arg11[%c16_84, %c0_85], %78 {strides = array<i32>} : memref<25x256xf32, #tpu.memory_space<vmem>>, vector<1x256xf32>,
    %c0_86 = arith.constant 0 : index
    %c144 = arith.constant 144 : index
    %80 = vector.load %arg10[%c0_86, %c144] : memref<1x512xf32, #tpu.memory_space<vmem>>, vector<1x256xf32>
    %c17 = arith.constant 17 : index
    %c0_87 = arith.constant 0 : index
    %81 = vector.load %arg2[%c17, %c0_87] : memref<74x256xf32, #tpu.memory_space<vmem>>, vector<1x256xf32>
    %82 = arith.mulf %80, %81 : vector<1x256xf32>
    %c17_88 = arith.constant 17 : index
    %c0_89 = arith.constant 0 : index
    %83 = vector.load %arg11[%c17_88, %c0_89] : memref<25x256xf32, #tpu.memory_space<vmem>>, vector<1x256xf32>
    tpu.vector_store %arg11[%c17_88, %c0_89], %82 {strides = array<i32>} : memref<25x256xf32, #tpu.memory_space<vmem>>, vector<1x256xf32>,
    %c0_90 = arith.constant 0 : index
    %c145 = arith.constant 145 : index
    %84 = vector.load %arg10[%c0_90, %c145] : memref<1x512xf32, #tpu.memory_space<vmem>>, vector<1x256xf32>
    %c18 = arith.constant 18 : index
    %c0_91 = arith.constant 0 : index
    %85 = vector.load %arg2[%c18, %c0_91] : memref<74x256xf32, #tpu.memory_space<vmem>>, vector<1x256xf32>
    %86 = arith.mulf %84, %85 : vector<1x256xf32>
    %c18_92 = arith.constant 18 : index
    %c0_93 = arith.constant 0 : index
    %87 = vector.load %arg11[%c18_92, %c0_93] : memref<25x256xf32, #tpu.memory_space<vmem>>, vector<1x256xf32>
    tpu.vector_store %arg11[%c18_92, %c0_93], %86 {strides = array<i32>} : memref<25x256xf32, #tpu.memory_space<vmem>>, vector<1x256xf32>,
    %c0_94 = arith.constant 0 : index
    %c146 = arith.constant 146 : index
    %88 = vector.load %arg10[%c0_94, %c146] : memref<1x512xf32, #tpu.memory_space<vmem>>, vector<1x256xf32>
    %c19 = arith.constant 19 : index
    %c0_95 = arith.constant 0 : index
    %89 = vector.load %arg2[%c19, %c0_95] : memref<74x256xf32, #tpu.memory_space<vmem>>, vector<1x256xf32>
    %90 = arith.mulf %88, %89 : vector<1x256xf32>
    %c19_96 = arith.constant 19 : index
    %c0_97 = arith.constant 0 : index
    %91 = vector.load %arg11[%c19_96, %c0_97] : memref<25x256xf32, #tpu.memory_space<vmem>>, vector<1x256xf32>
    tpu.vector_store %arg11[%c19_96, %c0_97], %90 {strides = array<i32>} : memref<25x256xf32, #tpu.memory_space<vmem>>, vector<1x256xf32>,
    %c0_98 = arith.constant 0 : index
    %c158 = arith.constant 158 : index
    %92 = vector.load %arg10[%c0_98, %c158] : memref<1x512xf32, #tpu.memory_space<vmem>>, vector<1x256xf32>
    %c20 = arith.constant 20 : index
    %c0_99 = arith.constant 0 : index
    %93 = vector.load %arg2[%c20, %c0_99] : memref<74x256xf32, #tpu.memory_space<vmem>>, vector<1x256xf32>
    %94 = arith.mulf %92, %93 : vector<1x256xf32>
    %c20_100 = arith.constant 20 : index
    %c0_101 = arith.constant 0 : index
    %95 = vector.load %arg11[%c20_100, %c0_101] : memref<25x256xf32, #tpu.memory_space<vmem>>, vector<1x256xf32>
    tpu.vector_store %arg11[%c20_100, %c0_101], %94 {strides = array<i32>} : memref<25x256xf32, #tpu.memory_space<vmem>>, vector<1x256xf32>,
    %c0_102 = arith.constant 0 : index
    %c159 = arith.constant 159 : index
    %96 = vector.load %arg10[%c0_102, %c159] : memref<1x512xf32, #tpu.memory_space<vmem>>, vector<1x256xf32>
    %c21 = arith.constant 21 : index
    %c0_103 = arith.constant 0 : index
    %97 = vector.load %arg2[%c21, %c0_103] : memref<74x256xf32, #tpu.memory_space<vmem>>, vector<1x256xf32>
    %98 = arith.mulf %96, %97 : vector<1x256xf32>
    %c21_104 = arith.constant 21 : index
    %c0_105 = arith.constant 0 : index
    %99 = vector.load %arg11[%c21_104, %c0_105] : memref<25x256xf32, #tpu.memory_space<vmem>>, vector<1x256xf32>
    tpu.vector_store %arg11[%c21_104, %c0_105], %98 {strides = array<i32>} : memref<25x256xf32, #tpu.memory_space<vmem>>, vector<1x256xf32>,
    %c0_106 = arith.constant 0 : index
    %c160 = arith.constant 160 : index
    %100 = vector.load %arg10[%c0_106, %c160] : memref<1x512xf32, #tpu.memory_space<vmem>>, vector<1x256xf32>
    %c22 = arith.constant 22 : index
    %c0_107 = arith.constant 0 : index
    %101 = vector.load %arg2[%c22, %c0_107] : memref<74x256xf32, #tpu.memory_space<vmem>>, vector<1x256xf32>
    %102 = arith.mulf %100, %101 : vector<1x256xf32>
    %c22_108 = arith.constant 22 : index
    %c0_109 = arith.constant 0 : index
    %103 = vector.load %arg11[%c22_108, %c0_109] : memref<25x256xf32, #tpu.memory_space<vmem>>, vector<1x256xf32>
    tpu.vector_store %arg11[%c22_108, %c0_109], %102 {strides = array<i32>} : memref<25x256xf32, #tpu.memory_space<vmem>>, vector<1x256xf32>,
    %c0_110 = arith.constant 0 : index
    %c161 = arith.constant 161 : index
    %104 = vector.load %arg10[%c0_110, %c161] : memref<1x512xf32, #tpu.memory_space<vmem>>, vector<1x256xf32>
    %c23 = arith.constant 23 : index
    %c0_111 = arith.constant 0 : index
    %105 = vector.load %arg2[%c23, %c0_111] : memref<74x256xf32, #tpu.memory_space<vmem>>, vector<1x256xf32>
    %106 = arith.mulf %104, %105 : vector<1x256xf32>
    %c23_112 = arith.constant 23 : index
    %c0_113 = arith.constant 0 : index
    %107 = vector.load %arg11[%c23_112, %c0_113] : memref<25x256xf32, #tpu.memory_space<vmem>>, vector<1x256xf32>
    tpu.vector_store %arg11[%c23_112, %c0_113], %106 {strides = array<i32>} : memref<25x256xf32, #tpu.memory_space<vmem>>, vector<1x256xf32>,
    %c0_114 = arith.constant 0 : index
    %c162 = arith.constant 162 : index
    %108 = vector.load %arg10[%c0_114, %c162] : memref<1x512xf32, #tpu.memory_space<vmem>>, vector<1x256xf32>
    %c24 = arith.constant 24 : index
    %c0_115 = arith.constant 0 : index
    %109 = vector.load %arg2[%c24, %c0_115] : memref<74x256xf32, #tpu.memory_space<vmem>>, vector<1x256xf32>
    %110 = arith.mulf %108, %109 : vector<1x256xf32>
    %c24_116 = arith.constant 24 : index
    %c0_117 = arith.constant 0 : index
    %111 = vector.load %arg11[%c24_116, %c0_117] : memref<25x256xf32, #tpu.memory_space<vmem>>, vector<1x256xf32>
    tpu.vector_store %arg11[%c24_116, %c0_117], %110 {strides = array<i32>} : memref<25x256xf32, #tpu.memory_space<vmem>>, vector<1x256xf32>,
    %c0_118 = arith.constant 0 : index
    %c0_119 = arith.constant 0 : index
    %112 = vector.load %arg3[%c0_118, %c0_119] : memref<64x25xf32, #tpu.memory_space<vmem>>, vector<64x25xf32>
    %c0_120 = arith.constant 0 : index
    %c0_121 = arith.constant 0 : index
    %113 = vector.load %arg11[%c0_120, %c0_121] : memref<25x256xf32, #tpu.memory_space<vmem>>, vector<25x256xf32>
    %cst_122 = arith.constant dense<0.000000e+00> : vector<64x256xf32>
    %114 = tpu.matmul %112, %113, %cst_122 {dimension_numbers = #tpu.dot_dimension_numbers<[1], [0], [0], [1], [0, 0, 1, 1], [], []>} : vector<64x25xf32>, vector<25x256xf32>, vector<64x256xf32> -> vector<64x256xf32>
    %c0_123 = arith.constant 0 : index
    %c0_124 = arith.constant 0 : index
    %115 = vector.load %arg4[%c0_123, %c0_124] : memref<64x1xf32, #tpu.memory_space<vmem>>, vector<64x1xf32>
    %116 = vector.broadcast %115 : vector<64x1xf32> to vector<64x256xf32>
    %117 = arith.addf %114, %116 : vector<64x256xf32>
    %cst_125 = arith.constant 0.000000e+00 : f32
    %118 = vector.broadcast %cst_125 : f32 to vector<64x256xf32>
    %119 = arith.maximumf %117, %118 : vector<64x256xf32>
    %c0_126 = arith.constant 0 : index
    %c128_127 = arith.constant 128 : index
    %120 = vector.load %arg12[%c0_126, %c128_127] : memref<64x512xf32, #tpu.memory_space<vmem>>, vector<64x256xf32>
    tpu.vector_store %arg12[%c0_126, %c128_127], %119 {strides = array<i32>} : memref<64x512xf32, #tpu.memory_space<vmem>>, vector<64x256xf32>,
    %c0_128 = arith.constant 0 : index
    %c94_129 = arith.constant 94 : index
    %121 = vector.load %arg12[%c0_128, %c94_129] : memref<64x512xf32, #tpu.memory_space<vmem>>, vector<64x256xf32>
    %c0_130 = arith.constant 0 : index
    %c0_131 = arith.constant 0 : index
    %122 = vector.load %arg2[%c0_130, %c0_131] : memref<74x256xf32, #tpu.memory_space<vmem>>, vector<1x256xf32>
    %123 = vector.broadcast %122 : vector<1x256xf32> to vector<64x256xf32>
    %124 = arith.mulf %121, %123 : vector<64x256xf32>
    %125 = arith.truncf %124 : vector<64x256xf32> to vector<64x256xbf16>
    %c0_132 = arith.constant 0 : index
    %c0_133 = arith.constant 0 : index
    %126 = vector.load %arg14[%c0_132, %c0_133] : memref<1600x256xbf16, #tpu.memory_space<vmem>>, vector<64x256xbf16>
    tpu.vector_store %arg14[%c0_132, %c0_133], %125 {strides = array<i32>} : memref<1600x256xbf16, #tpu.memory_space<vmem>>, vector<64x256xbf16>,
    %c0_134 = arith.constant 0 : index
    %c95_135 = arith.constant 95 : index
    %127 = vector.load %arg12[%c0_134, %c95_135] : memref<64x512xf32, #tpu.memory_space<vmem>>, vector<64x256xf32>
    %c1_136 = arith.constant 1 : index
    %c0_137 = arith.constant 0 : index
    %128 = vector.load %arg2[%c1_136, %c0_137] : memref<74x256xf32, #tpu.memory_space<vmem>>, vector<1x256xf32>
    %129 = vector.broadcast %128 : vector<1x256xf32> to vector<64x256xf32>
    %130 = arith.mulf %127, %129 : vector<64x256xf32>
    %131 = arith.truncf %130 : vector<64x256xf32> to vector<64x256xbf16>
    %c64 = arith.constant 64 : index
    %c0_138 = arith.constant 0 : index
    %132 = vector.load %arg14[%c64, %c0_138] : memref<1600x256xbf16, #tpu.memory_space<vmem>>, vector<64x256xbf16>
    tpu.vector_store %arg14[%c64, %c0_138], %131 {strides = array<i32>} : memref<1600x256xbf16, #tpu.memory_space<vmem>>, vector<64x256xbf16>,
    %c0_139 = arith.constant 0 : index
    %c96_140 = arith.constant 96 : index
    %133 = vector.load %arg12[%c0_139, %c96_140] : memref<64x512xf32, #tpu.memory_space<vmem>>, vector<64x256xf32>
    %c2_141 = arith.constant 2 : index
    %c0_142 = arith.constant 0 : index
    %134 = vector.load %arg2[%c2_141, %c0_142] : memref<74x256xf32, #tpu.memory_space<vmem>>, vector<1x256xf32>
    %135 = vector.broadcast %134 : vector<1x256xf32> to vector<64x256xf32>
    %136 = arith.mulf %133, %135 : vector<64x256xf32>
    %137 = arith.truncf %136 : vector<64x256xf32> to vector<64x256xbf16>
    %c128_143 = arith.constant 128 : index
    %c0_144 = arith.constant 0 : index
    %138 = vector.load %arg14[%c128_143, %c0_144] : memref<1600x256xbf16, #tpu.memory_space<vmem>>, vector<64x256xbf16>
    tpu.vector_store %arg14[%c128_143, %c0_144], %137 {strides = array<i32>} : memref<1600x256xbf16, #tpu.memory_space<vmem>>, vector<64x256xbf16>,
    %c0_145 = arith.constant 0 : index
    %c97_146 = arith.constant 97 : index
    %139 = vector.load %arg12[%c0_145, %c97_146] : memref<64x512xf32, #tpu.memory_space<vmem>>, vector<64x256xf32>
    %c3_147 = arith.constant 3 : index
    %c0_148 = arith.constant 0 : index
    %140 = vector.load %arg2[%c3_147, %c0_148] : memref<74x256xf32, #tpu.memory_space<vmem>>, vector<1x256xf32>
    %141 = vector.broadcast %140 : vector<1x256xf32> to vector<64x256xf32>
    %142 = arith.mulf %139, %141 : vector<64x256xf32>
    %143 = arith.truncf %142 : vector<64x256xf32> to vector<64x256xbf16>
    %c192 = arith.constant 192 : index
    %c0_149 = arith.constant 0 : index
    %144 = vector.load %arg14[%c192, %c0_149] : memref<1600x256xbf16, #tpu.memory_space<vmem>>, vector<64x256xbf16>
    tpu.vector_store %arg14[%c192, %c0_149], %143 {strides = array<i32>} : memref<1600x256xbf16, #tpu.memory_space<vmem>>, vector<64x256xbf16>,
    %c0_150 = arith.constant 0 : index
    %c98_151 = arith.constant 98 : index
    %145 = vector.load %arg12[%c0_150, %c98_151] : memref<64x512xf32, #tpu.memory_space<vmem>>, vector<64x256xf32>
    %c4_152 = arith.constant 4 : index
    %c0_153 = arith.constant 0 : index
    %146 = vector.load %arg2[%c4_152, %c0_153] : memref<74x256xf32, #tpu.memory_space<vmem>>, vector<1x256xf32>
    %147 = vector.broadcast %146 : vector<1x256xf32> to vector<64x256xf32>
    %148 = arith.mulf %145, %147 : vector<64x256xf32>
    %149 = arith.truncf %148 : vector<64x256xf32> to vector<64x256xbf16>
    %c256 = arith.constant 256 : index
    %c0_154 = arith.constant 0 : index
    %150 = vector.load %arg14[%c256, %c0_154] : memref<1600x256xbf16, #tpu.memory_space<vmem>>, vector<64x256xbf16>
    tpu.vector_store %arg14[%c256, %c0_154], %149 {strides = array<i32>} : memref<1600x256xbf16, #tpu.memory_space<vmem>>, vector<64x256xbf16>,
    %c0_155 = arith.constant 0 : index
    %c110_156 = arith.constant 110 : index
    %151 = vector.load %arg12[%c0_155, %c110_156] : memref<64x512xf32, #tpu.memory_space<vmem>>, vector<64x256xf32>
    %c5_157 = arith.constant 5 : index
    %c0_158 = arith.constant 0 : index
    %152 = vector.load %arg2[%c5_157, %c0_158] : memref<74x256xf32, #tpu.memory_space<vmem>>, vector<1x256xf32>
    %153 = vector.broadcast %152 : vector<1x256xf32> to vector<64x256xf32>
    %154 = arith.mulf %151, %153 : vector<64x256xf32>
    %155 = arith.truncf %154 : vector<64x256xf32> to vector<64x256xbf16>
    %c320 = arith.constant 320 : index
    %c0_159 = arith.constant 0 : index
    %156 = vector.load %arg14[%c320, %c0_159] : memref<1600x256xbf16, #tpu.memory_space<vmem>>, vector<64x256xbf16>
    tpu.vector_store %arg14[%c320, %c0_159], %155 {strides = array<i32>} : memref<1600x256xbf16, #tpu.memory_space<vmem>>, vector<64x256xbf16>,
    %c0_160 = arith.constant 0 : index
    %c111_161 = arith.constant 111 : index
    %157 = vector.load %arg12[%c0_160, %c111_161] : memref<64x512xf32, #tpu.memory_space<vmem>>, vector<64x256xf32>
    %c6_162 = arith.constant 6 : index
    %c0_163 = arith.constant 0 : index
    %158 = vector.load %arg2[%c6_162, %c0_163] : memref<74x256xf32, #tpu.memory_space<vmem>>, vector<1x256xf32>
    %159 = vector.broadcast %158 : vector<1x256xf32> to vector<64x256xf32>
    %160 = arith.mulf %157, %159 : vector<64x256xf32>
    %161 = arith.truncf %160 : vector<64x256xf32> to vector<64x256xbf16>
    %c384_164 = arith.constant 384 : index
    %c0_165 = arith.constant 0 : index
    %162 = vector.load %arg14[%c384_164, %c0_165] : memref<1600x256xbf16, #tpu.memory_space<vmem>>, vector<64x256xbf16>
    tpu.vector_store %arg14[%c384_164, %c0_165], %161 {strides = array<i32>} : memref<1600x256xbf16, #tpu.memory_space<vmem>>, vector<64x256xbf16>,
    %c0_166 = arith.constant 0 : index
    %c112_167 = arith.constant 112 : index
    %163 = vector.load %arg12[%c0_166, %c112_167] : memref<64x512xf32, #tpu.memory_space<vmem>>, vector<64x256xf32>
    %c7_168 = arith.constant 7 : index
    %c0_169 = arith.constant 0 : index
    %164 = vector.load %arg2[%c7_168, %c0_169] : memref<74x256xf32, #tpu.memory_space<vmem>>, vector<1x256xf32>
    %165 = vector.broadcast %164 : vector<1x256xf32> to vector<64x256xf32>
    %166 = arith.mulf %163, %165 : vector<64x256xf32>
    %167 = arith.truncf %166 : vector<64x256xf32> to vector<64x256xbf16>
    %c448 = arith.constant 448 : index
    %c0_170 = arith.constant 0 : index
    %168 = vector.load %arg14[%c448, %c0_170] : memref<1600x256xbf16, #tpu.memory_space<vmem>>, vector<64x256xbf16>
    tpu.vector_store %arg14[%c448, %c0_170], %167 {strides = array<i32>} : memref<1600x256xbf16, #tpu.memory_space<vmem>>, vector<64x256xbf16>,
    %c0_171 = arith.constant 0 : index
    %c113_172 = arith.constant 113 : index
    %169 = vector.load %arg12[%c0_171, %c113_172] : memref<64x512xf32, #tpu.memory_space<vmem>>, vector<64x256xf32>
    %c8_173 = arith.constant 8 : index
    %c0_174 = arith.constant 0 : index
    %170 = vector.load %arg2[%c8_173, %c0_174] : memref<74x256xf32, #tpu.memory_space<vmem>>, vector<1x256xf32>
    %171 = vector.broadcast %170 : vector<1x256xf32> to vector<64x256xf32>
    %172 = arith.mulf %169, %171 : vector<64x256xf32>
    %173 = arith.truncf %172 : vector<64x256xf32> to vector<64x256xbf16>
    %c512 = arith.constant 512 : index
    %c0_175 = arith.constant 0 : index
    %174 = vector.load %arg14[%c512, %c0_175] : memref<1600x256xbf16, #tpu.memory_space<vmem>>, vector<64x256xbf16>
    tpu.vector_store %arg14[%c512, %c0_175], %173 {strides = array<i32>} : memref<1600x256xbf16, #tpu.memory_space<vmem>>, vector<64x256xbf16>,
    %c0_176 = arith.constant 0 : index
    %c114_177 = arith.constant 114 : index
    %175 = vector.load %arg12[%c0_176, %c114_177] : memref<64x512xf32, #tpu.memory_space<vmem>>, vector<64x256xf32>
    %c9_178 = arith.constant 9 : index
    %c0_179 = arith.constant 0 : index
    %176 = vector.load %arg2[%c9_178, %c0_179] : memref<74x256xf32, #tpu.memory_space<vmem>>, vector<1x256xf32>
    %177 = vector.broadcast %176 : vector<1x256xf32> to vector<64x256xf32>
    %178 = arith.mulf %175, %177 : vector<64x256xf32>
    %179 = arith.truncf %178 : vector<64x256xf32> to vector<64x256xbf16>
    %c576 = arith.constant 576 : index
    %c0_180 = arith.constant 0 : index
    %180 = vector.load %arg14[%c576, %c0_180] : memref<1600x256xbf16, #tpu.memory_space<vmem>>, vector<64x256xbf16>
    tpu.vector_store %arg14[%c576, %c0_180], %179 {strides = array<i32>} : memref<1600x256xbf16, #tpu.memory_space<vmem>>, vector<64x256xbf16>,
    %c0_181 = arith.constant 0 : index
    %c126_182 = arith.constant 126 : index
    %181 = vector.load %arg12[%c0_181, %c126_182] : memref<64x512xf32, #tpu.memory_space<vmem>>, vector<64x256xf32>
    %c10_183 = arith.constant 10 : index
    %c0_184 = arith.constant 0 : index
    %182 = vector.load %arg2[%c10_183, %c0_184] : memref<74x256xf32, #tpu.memory_space<vmem>>, vector<1x256xf32>
    %183 = vector.broadcast %182 : vector<1x256xf32> to vector<64x256xf32>
    %184 = arith.mulf %181, %183 : vector<64x256xf32>
    %185 = arith.truncf %184 : vector<64x256xf32> to vector<64x256xbf16>
    %c640 = arith.constant 640 : index
    %c0_185 = arith.constant 0 : index
    %186 = vector.load %arg14[%c640, %c0_185] : memref<1600x256xbf16, #tpu.memory_space<vmem>>, vector<64x256xbf16>
    tpu.vector_store %arg14[%c640, %c0_185], %185 {strides = array<i32>} : memref<1600x256xbf16, #tpu.memory_space<vmem>>, vector<64x256xbf16>,
    %c0_186 = arith.constant 0 : index
    %c127_187 = arith.constant 127 : index
    %187 = vector.load %arg12[%c0_186, %c127_187] : memref<64x512xf32, #tpu.memory_space<vmem>>, vector<64x256xf32>
    %c11_188 = arith.constant 11 : index
    %c0_189 = arith.constant 0 : index
    %188 = vector.load %arg2[%c11_188, %c0_189] : memref<74x256xf32, #tpu.memory_space<vmem>>, vector<1x256xf32>
    %189 = vector.broadcast %188 : vector<1x256xf32> to vector<64x256xf32>
    %190 = arith.mulf %187, %189 : vector<64x256xf32>
    %191 = arith.truncf %190 : vector<64x256xf32> to vector<64x256xbf16>
    %c704 = arith.constant 704 : index
    %c0_190 = arith.constant 0 : index
    %192 = vector.load %arg14[%c704, %c0_190] : memref<1600x256xbf16, #tpu.memory_space<vmem>>, vector<64x256xbf16>
    tpu.vector_store %arg14[%c704, %c0_190], %191 {strides = array<i32>} : memref<1600x256xbf16, #tpu.memory_space<vmem>>, vector<64x256xbf16>,
    %c0_191 = arith.constant 0 : index
    %c128_192 = arith.constant 128 : index
    %193 = vector.load %arg12[%c0_191, %c128_192] : memref<64x512xf32, #tpu.memory_space<vmem>>, vector<64x256xf32>
    %c12_193 = arith.constant 12 : index
    %c0_194 = arith.constant 0 : index
    %194 = vector.load %arg2[%c12_193, %c0_194] : memref<74x256xf32, #tpu.memory_space<vmem>>, vector<1x256xf32>
    %195 = vector.broadcast %194 : vector<1x256xf32> to vector<64x256xf32>
    %196 = arith.mulf %193, %195 : vector<64x256xf32>
    %197 = arith.truncf %196 : vector<64x256xf32> to vector<64x256xbf16>
    %c768 = arith.constant 768 : index
    %c0_195 = arith.constant 0 : index
    %198 = vector.load %arg14[%c768, %c0_195] : memref<1600x256xbf16, #tpu.memory_space<vmem>>, vector<64x256xbf16>
    tpu.vector_store %arg14[%c768, %c0_195], %197 {strides = array<i32>} : memref<1600x256xbf16, #tpu.memory_space<vmem>>, vector<64x256xbf16>,
    %c0_196 = arith.constant 0 : index
    %c129_197 = arith.constant 129 : index
    %199 = vector.load %arg12[%c0_196, %c129_197] : memref<64x512xf32, #tpu.memory_space<vmem>>, vector<64x256xf32>
    %c13_198 = arith.constant 13 : index
    %c0_199 = arith.constant 0 : index
    %200 = vector.load %arg2[%c13_198, %c0_199] : memref<74x256xf32, #tpu.memory_space<vmem>>, vector<1x256xf32>
    %201 = vector.broadcast %200 : vector<1x256xf32> to vector<64x256xf32>
    %202 = arith.mulf %199, %201 : vector<64x256xf32>
    %203 = arith.truncf %202 : vector<64x256xf32> to vector<64x256xbf16>
    %c832 = arith.constant 832 : index
    %c0_200 = arith.constant 0 : index
    %204 = vector.load %arg14[%c832, %c0_200] : memref<1600x256xbf16, #tpu.memory_space<vmem>>, vector<64x256xbf16>
    tpu.vector_store %arg14[%c832, %c0_200], %203 {strides = array<i32>} : memref<1600x256xbf16, #tpu.memory_space<vmem>>, vector<64x256xbf16>,
    %c0_201 = arith.constant 0 : index
    %c130_202 = arith.constant 130 : index
    %205 = vector.load %arg12[%c0_201, %c130_202] : memref<64x512xf32, #tpu.memory_space<vmem>>, vector<64x256xf32>
    %c14_203 = arith.constant 14 : index
    %c0_204 = arith.constant 0 : index
    %206 = vector.load %arg2[%c14_203, %c0_204] : memref<74x256xf32, #tpu.memory_space<vmem>>, vector<1x256xf32>
    %207 = vector.broadcast %206 : vector<1x256xf32> to vector<64x256xf32>
    %208 = arith.mulf %205, %207 : vector<64x256xf32>
    %209 = arith.truncf %208 : vector<64x256xf32> to vector<64x256xbf16>
    %c896 = arith.constant 896 : index
    %c0_205 = arith.constant 0 : index
    %210 = vector.load %arg14[%c896, %c0_205] : memref<1600x256xbf16, #tpu.memory_space<vmem>>, vector<64x256xbf16>
    tpu.vector_store %arg14[%c896, %c0_205], %209 {strides = array<i32>} : memref<1600x256xbf16, #tpu.memory_space<vmem>>, vector<64x256xbf16>,
    %c0_206 = arith.constant 0 : index
    %c142_207 = arith.constant 142 : index
    %211 = vector.load %arg12[%c0_206, %c142_207] : memref<64x512xf32, #tpu.memory_space<vmem>>, vector<64x256xf32>
    %c15_208 = arith.constant 15 : index
    %c0_209 = arith.constant 0 : index
    %212 = vector.load %arg2[%c15_208, %c0_209] : memref<74x256xf32, #tpu.memory_space<vmem>>, vector<1x256xf32>
    %213 = vector.broadcast %212 : vector<1x256xf32> to vector<64x256xf32>
    %214 = arith.mulf %211, %213 : vector<64x256xf32>
    %215 = arith.truncf %214 : vector<64x256xf32> to vector<64x256xbf16>
    %c960 = arith.constant 960 : index
    %c0_210 = arith.constant 0 : index
    %216 = vector.load %arg14[%c960, %c0_210] : memref<1600x256xbf16, #tpu.memory_space<vmem>>, vector<64x256xbf16>
    tpu.vector_store %arg14[%c960, %c0_210], %215 {strides = array<i32>} : memref<1600x256xbf16, #tpu.memory_space<vmem>>, vector<64x256xbf16>,
    %c0_211 = arith.constant 0 : index
    %c143_212 = arith.constant 143 : index
    %217 = vector.load %arg12[%c0_211, %c143_212] : memref<64x512xf32, #tpu.memory_space<vmem>>, vector<64x256xf32>
    %c16_213 = arith.constant 16 : index
    %c0_214 = arith.constant 0 : index
    %218 = vector.load %arg2[%c16_213, %c0_214] : memref<74x256xf32, #tpu.memory_space<vmem>>, vector<1x256xf32>
    %219 = vector.broadcast %218 : vector<1x256xf32> to vector<64x256xf32>
    %220 = arith.mulf %217, %219 : vector<64x256xf32>
    %221 = arith.truncf %220 : vector<64x256xf32> to vector<64x256xbf16>
    %c1024 = arith.constant 1024 : index
    %c0_215 = arith.constant 0 : index
    %222 = vector.load %arg14[%c1024, %c0_215] : memref<1600x256xbf16, #tpu.memory_space<vmem>>, vector<64x256xbf16>
    tpu.vector_store %arg14[%c1024, %c0_215], %221 {strides = array<i32>} : memref<1600x256xbf16, #tpu.memory_space<vmem>>, vector<64x256xbf16>,
    %c0_216 = arith.constant 0 : index
    %c144_217 = arith.constant 144 : index
    %223 = vector.load %arg12[%c0_216, %c144_217] : memref<64x512xf32, #tpu.memory_space<vmem>>, vector<64x256xf32>
    %c17_218 = arith.constant 17 : index
    %c0_219 = arith.constant 0 : index
    %224 = vector.load %arg2[%c17_218, %c0_219] : memref<74x256xf32, #tpu.memory_space<vmem>>, vector<1x256xf32>
    %225 = vector.broadcast %224 : vector<1x256xf32> to vector<64x256xf32>
    %226 = arith.mulf %223, %225 : vector<64x256xf32>
    %227 = arith.truncf %226 : vector<64x256xf32> to vector<64x256xbf16>
    %c1088 = arith.constant 1088 : index
    %c0_220 = arith.constant 0 : index
    %228 = vector.load %arg14[%c1088, %c0_220] : memref<1600x256xbf16, #tpu.memory_space<vmem>>, vector<64x256xbf16>
    tpu.vector_store %arg14[%c1088, %c0_220], %227 {strides = array<i32>} : memref<1600x256xbf16, #tpu.memory_space<vmem>>, vector<64x256xbf16>,
    %c0_221 = arith.constant 0 : index
    %c145_222 = arith.constant 145 : index
    %229 = vector.load %arg12[%c0_221, %c145_222] : memref<64x512xf32, #tpu.memory_space<vmem>>, vector<64x256xf32>
    %c18_223 = arith.constant 18 : index
    %c0_224 = arith.constant 0 : index
    %230 = vector.load %arg2[%c18_223, %c0_224] : memref<74x256xf32, #tpu.memory_space<vmem>>, vector<1x256xf32>
    %231 = vector.broadcast %230 : vector<1x256xf32> to vector<64x256xf32>
    %232 = arith.mulf %229, %231 : vector<64x256xf32>
    %233 = arith.truncf %232 : vector<64x256xf32> to vector<64x256xbf16>
    %c1152 = arith.constant 1152 : index
    %c0_225 = arith.constant 0 : index
    %234 = vector.load %arg14[%c1152, %c0_225] : memref<1600x256xbf16, #tpu.memory_space<vmem>>, vector<64x256xbf16>
    tpu.vector_store %arg14[%c1152, %c0_225], %233 {strides = array<i32>} : memref<1600x256xbf16, #tpu.memory_space<vmem>>, vector<64x256xbf16>,
    %c0_226 = arith.constant 0 : index
    %c146_227 = arith.constant 146 : index
    %235 = vector.load %arg12[%c0_226, %c146_227] : memref<64x512xf32, #tpu.memory_space<vmem>>, vector<64x256xf32>
    %c19_228 = arith.constant 19 : index
    %c0_229 = arith.constant 0 : index
    %236 = vector.load %arg2[%c19_228, %c0_229] : memref<74x256xf32, #tpu.memory_space<vmem>>, vector<1x256xf32>
    %237 = vector.broadcast %236 : vector<1x256xf32> to vector<64x256xf32>
    %238 = arith.mulf %235, %237 : vector<64x256xf32>
    %239 = arith.truncf %238 : vector<64x256xf32> to vector<64x256xbf16>
    %c1216 = arith.constant 1216 : index
    %c0_230 = arith.constant 0 : index
    %240 = vector.load %arg14[%c1216, %c0_230] : memref<1600x256xbf16, #tpu.memory_space<vmem>>, vector<64x256xbf16>
    tpu.vector_store %arg14[%c1216, %c0_230], %239 {strides = array<i32>} : memref<1600x256xbf16, #tpu.memory_space<vmem>>, vector<64x256xbf16>,
    %c0_231 = arith.constant 0 : index
    %c158_232 = arith.constant 158 : index
    %241 = vector.load %arg12[%c0_231, %c158_232] : memref<64x512xf32, #tpu.memory_space<vmem>>, vector<64x256xf32>
    %c20_233 = arith.constant 20 : index
    %c0_234 = arith.constant 0 : index
    %242 = vector.load %arg2[%c20_233, %c0_234] : memref<74x256xf32, #tpu.memory_space<vmem>>, vector<1x256xf32>
    %243 = vector.broadcast %242 : vector<1x256xf32> to vector<64x256xf32>
    %244 = arith.mulf %241, %243 : vector<64x256xf32>
    %245 = arith.truncf %244 : vector<64x256xf32> to vector<64x256xbf16>
    %c1280 = arith.constant 1280 : index
    %c0_235 = arith.constant 0 : index
    %246 = vector.load %arg14[%c1280, %c0_235] : memref<1600x256xbf16, #tpu.memory_space<vmem>>, vector<64x256xbf16>
    tpu.vector_store %arg14[%c1280, %c0_235], %245 {strides = array<i32>} : memref<1600x256xbf16, #tpu.memory_space<vmem>>, vector<64x256xbf16>,
    %c0_236 = arith.constant 0 : index
    %c159_237 = arith.constant 159 : index
    %247 = vector.load %arg12[%c0_236, %c159_237] : memref<64x512xf32, #tpu.memory_space<vmem>>, vector<64x256xf32>
    %c21_238 = arith.constant 21 : index
    %c0_239 = arith.constant 0 : index
    %248 = vector.load %arg2[%c21_238, %c0_239] : memref<74x256xf32, #tpu.memory_space<vmem>>, vector<1x256xf32>
    %249 = vector.broadcast %248 : vector<1x256xf32> to vector<64x256xf32>
    %250 = arith.mulf %247, %249 : vector<64x256xf32>
    %251 = arith.truncf %250 : vector<64x256xf32> to vector<64x256xbf16>
    %c1344 = arith.constant 1344 : index
    %c0_240 = arith.constant 0 : index
    %252 = vector.load %arg14[%c1344, %c0_240] : memref<1600x256xbf16, #tpu.memory_space<vmem>>, vector<64x256xbf16>
    tpu.vector_store %arg14[%c1344, %c0_240], %251 {strides = array<i32>} : memref<1600x256xbf16, #tpu.memory_space<vmem>>, vector<64x256xbf16>,
    %c0_241 = arith.constant 0 : index
    %c160_242 = arith.constant 160 : index
    %253 = vector.load %arg12[%c0_241, %c160_242] : memref<64x512xf32, #tpu.memory_space<vmem>>, vector<64x256xf32>
    %c22_243 = arith.constant 22 : index
    %c0_244 = arith.constant 0 : index
    %254 = vector.load %arg2[%c22_243, %c0_244] : memref<74x256xf32, #tpu.memory_space<vmem>>, vector<1x256xf32>
    %255 = vector.broadcast %254 : vector<1x256xf32> to vector<64x256xf32>
    %256 = arith.mulf %253, %255 : vector<64x256xf32>
    %257 = arith.truncf %256 : vector<64x256xf32> to vector<64x256xbf16>
    %c1408 = arith.constant 1408 : index
    %c0_245 = arith.constant 0 : index
    %258 = vector.load %arg14[%c1408, %c0_245] : memref<1600x256xbf16, #tpu.memory_space<vmem>>, vector<64x256xbf16>
    tpu.vector_store %arg14[%c1408, %c0_245], %257 {strides = array<i32>} : memref<1600x256xbf16, #tpu.memory_space<vmem>>, vector<64x256xbf16>,
    %c0_246 = arith.constant 0 : index
    %c161_247 = arith.constant 161 : index
    %259 = vector.load %arg12[%c0_246, %c161_247] : memref<64x512xf32, #tpu.memory_space<vmem>>, vector<64x256xf32>
    %c23_248 = arith.constant 23 : index
    %c0_249 = arith.constant 0 : index
    %260 = vector.load %arg2[%c23_248, %c0_249] : memref<74x256xf32, #tpu.memory_space<vmem>>, vector<1x256xf32>
    %261 = vector.broadcast %260 : vector<1x256xf32> to vector<64x256xf32>
    %262 = arith.mulf %259, %261 : vector<64x256xf32>
    %263 = arith.truncf %262 : vector<64x256xf32> to vector<64x256xbf16>
    %c1472 = arith.constant 1472 : index
    %c0_250 = arith.constant 0 : index
    %264 = vector.load %arg14[%c1472, %c0_250] : memref<1600x256xbf16, #tpu.memory_space<vmem>>, vector<64x256xbf16>
    tpu.vector_store %arg14[%c1472, %c0_250], %263 {strides = array<i32>} : memref<1600x256xbf16, #tpu.memory_space<vmem>>, vector<64x256xbf16>,
    %c0_251 = arith.constant 0 : index
    %c162_252 = arith.constant 162 : index
    %265 = vector.load %arg12[%c0_251, %c162_252] : memref<64x512xf32, #tpu.memory_space<vmem>>, vector<64x256xf32>
    %c24_253 = arith.constant 24 : index
    %c0_254 = arith.constant 0 : index
    %266 = vector.load %arg2[%c24_253, %c0_254] : memref<74x256xf32, #tpu.memory_space<vmem>>, vector<1x256xf32>
    %267 = vector.broadcast %266 : vector<1x256xf32> to vector<64x256xf32>
    %268 = arith.mulf %265, %267 : vector<64x256xf32>
    %269 = arith.truncf %268 : vector<64x256xf32> to vector<64x256xbf16>
    %c1536 = arith.constant 1536 : index
    %c0_255 = arith.constant 0 : index
    %270 = vector.load %arg14[%c1536, %c0_255] : memref<1600x256xbf16, #tpu.memory_space<vmem>>, vector<64x256xbf16>
    tpu.vector_store %arg14[%c1536, %c0_255], %269 {strides = array<i32>} : memref<1600x256xbf16, #tpu.memory_space<vmem>>, vector<64x256xbf16>,
    %c0_256 = arith.constant 0 : index
    %c0_257 = arith.constant 0 : index
    %271 = vector.load %arg5[%c0_256, %c0_257] : memref<64x1600xbf16, #tpu.memory_space<vmem>>, vector<64x1600xbf16>
    %c0_258 = arith.constant 0 : index
    %c0_259 = arith.constant 0 : index
    %272 = vector.load %arg14[%c0_258, %c0_259] : memref<1600x256xbf16, #tpu.memory_space<vmem>>, vector<1600x256xbf16>
    %cst_260 = arith.constant dense<0.000000e+00> : vector<64x256xf32>
    %273 = tpu.matmul %271, %272, %cst_260 {dimension_numbers = #tpu.dot_dimension_numbers<[1], [0], [0], [1], [0, 0, 1, 1], [], []>} : vector<64x1600xbf16>, vector<1600x256xbf16>, vector<64x256xf32> -> vector<64x256xf32>
    %c0_261 = arith.constant 0 : index
    %c0_262 = arith.constant 0 : index
    %274 = vector.load %arg6[%c0_261, %c0_262] : memref<64x1xf32, #tpu.memory_space<vmem>>, vector<64x1xf32>
    %275 = vector.broadcast %274 : vector<64x1xf32> to vector<64x256xf32>
    %276 = arith.addf %273, %275 : vector<64x256xf32>
    %cst_263 = arith.constant 0.000000e+00 : f32
    %277 = vector.broadcast %cst_263 : f32 to vector<64x256xf32>
    %278 = arith.maximumf %276, %277 : vector<64x256xf32>
    %c0_264 = arith.constant 0 : index
    %c0_265 = arith.constant 0 : index
    %279 = vector.load %arg7[%c0_264, %c0_265] : memref<49x64xbf16, #tpu.memory_space<vmem>>, vector<49x64xbf16>
    %280 = arith.truncf %278 : vector<64x256xf32> to vector<64x256xbf16>
    %cst_266 = arith.constant dense<0.000000e+00> : vector<49x256xf32>
    %281 = tpu.matmul %279, %280, %cst_266 {dimension_numbers = #tpu.dot_dimension_numbers<[1], [0], [0], [1], [0, 0, 1, 1], [], []>} : vector<49x64xbf16>, vector<64x256xbf16>, vector<49x256xf32> -> vector<49x256xf32>
    %c0_267 = arith.constant 0 : index
    %c128_268 = arith.constant 128 : index
    %282 = vector.load %arg13[%c0_267, %c128_268] : memref<49x512xf32, #tpu.memory_space<vmem>>, vector<49x256xf32>
    tpu.vector_store %arg13[%c0_267, %c128_268], %281 {strides = array<i32>} : memref<49x512xf32, #tpu.memory_space<vmem>>, vector<49x256xf32>,
    %cst_269 = arith.constant 0.000000e+00 : f32
    %283 = vector.broadcast %cst_269 : f32 to vector<1x256xf32>
    %cst_270 = arith.constant 0.000000e+00 : f32
    %284 = vector.broadcast %cst_270 : f32 to vector<1x256xf32>
    %cst_271 = arith.constant 0.000000e+00 : f32
    %285 = vector.broadcast %cst_271 : f32 to vector<1x256xf32>
    %cst_272 = arith.constant 0.000000e+00 : f32
    %286 = vector.broadcast %cst_272 : f32 to vector<1x256xf32>
    %c0_273 = arith.constant 0 : index
    %c77 = arith.constant 77 : index
    %287 = vector.load %arg13[%c0_273, %c77] : memref<49x512xf32, #tpu.memory_space<vmem>>, vector<1x256xf32>
    %c25 = arith.constant 25 : index
    %c0_274 = arith.constant 0 : index
    %288 = vector.load %arg2[%c25, %c0_274] : memref<74x256xf32, #tpu.memory_space<vmem>>, vector<1x256xf32>
    %289 = arith.mulf %287, %288 : vector<1x256xf32>
    %290 = arith.addf %283, %289 : vector<1x256xf32>
    %c1_275 = arith.constant 1 : index
    %c78 = arith.constant 78 : index
    %291 = vector.load %arg13[%c1_275, %c78] : memref<49x512xf32, #tpu.memory_space<vmem>>, vector<1x256xf32>
    %c26 = arith.constant 26 : index
    %c0_276 = arith.constant 0 : index
    %292 = vector.load %arg2[%c26, %c0_276] : memref<74x256xf32, #tpu.memory_space<vmem>>, vector<1x256xf32>
    %293 = arith.mulf %291, %292 : vector<1x256xf32>
    %294 = arith.addf %284, %293 : vector<1x256xf32>
    %c2_277 = arith.constant 2 : index
    %c79 = arith.constant 79 : index
    %295 = vector.load %arg13[%c2_277, %c79] : memref<49x512xf32, #tpu.memory_space<vmem>>, vector<1x256xf32>
    %c27 = arith.constant 27 : index
    %c0_278 = arith.constant 0 : index
    %296 = vector.load %arg2[%c27, %c0_278] : memref<74x256xf32, #tpu.memory_space<vmem>>, vector<1x256xf32>
    %297 = arith.mulf %295, %296 : vector<1x256xf32>
    %298 = arith.addf %285, %297 : vector<1x256xf32>
    %c3_279 = arith.constant 3 : index
    %c80 = arith.constant 80 : index
    %299 = vector.load %arg13[%c3_279, %c80] : memref<49x512xf32, #tpu.memory_space<vmem>>, vector<1x256xf32>
    %c28 = arith.constant 28 : index
    %c0_280 = arith.constant 0 : index
    %300 = vector.load %arg2[%c28, %c0_280] : memref<74x256xf32, #tpu.memory_space<vmem>>, vector<1x256xf32>
    %301 = arith.mulf %299, %300 : vector<1x256xf32>
    %302 = arith.addf %286, %301 : vector<1x256xf32>
    %c4_281 = arith.constant 4 : index
    %c81 = arith.constant 81 : index
    %303 = vector.load %arg13[%c4_281, %c81] : memref<49x512xf32, #tpu.memory_space<vmem>>, vector<1x256xf32>
    %c29 = arith.constant 29 : index
    %c0_282 = arith.constant 0 : index
    %304 = vector.load %arg2[%c29, %c0_282] : memref<74x256xf32, #tpu.memory_space<vmem>>, vector<1x256xf32>
    %305 = arith.mulf %303, %304 : vector<1x256xf32>
    %306 = arith.addf %290, %305 : vector<1x256xf32>
    %c5_283 = arith.constant 5 : index
    %c82 = arith.constant 82 : index
    %307 = vector.load %arg13[%c5_283, %c82] : memref<49x512xf32, #tpu.memory_space<vmem>>, vector<1x256xf32>
    %c30 = arith.constant 30 : index
    %c0_284 = arith.constant 0 : index
    %308 = vector.load %arg2[%c30, %c0_284] : memref<74x256xf32, #tpu.memory_space<vmem>>, vector<1x256xf32>
    %309 = arith.mulf %307, %308 : vector<1x256xf32>
    %310 = arith.addf %294, %309 : vector<1x256xf32>
    %c6_285 = arith.constant 6 : index
    %c83 = arith.constant 83 : index
    %311 = vector.load %arg13[%c6_285, %c83] : memref<49x512xf32, #tpu.memory_space<vmem>>, vector<1x256xf32>
    %c31 = arith.constant 31 : index
    %c0_286 = arith.constant 0 : index
    %312 = vector.load %arg2[%c31, %c0_286] : memref<74x256xf32, #tpu.memory_space<vmem>>, vector<1x256xf32>
    %313 = arith.mulf %311, %312 : vector<1x256xf32>
    %314 = arith.addf %298, %313 : vector<1x256xf32>
    %c7_287 = arith.constant 7 : index
    %c93 = arith.constant 93 : index
    %315 = vector.load %arg13[%c7_287, %c93] : memref<49x512xf32, #tpu.memory_space<vmem>>, vector<1x256xf32>
    %c32 = arith.constant 32 : index
    %c0_288 = arith.constant 0 : index
    %316 = vector.load %arg2[%c32, %c0_288] : memref<74x256xf32, #tpu.memory_space<vmem>>, vector<1x256xf32>
    %317 = arith.mulf %315, %316 : vector<1x256xf32>
    %318 = arith.addf %302, %317 : vector<1x256xf32>
    %c8_289 = arith.constant 8 : index
    %c94_290 = arith.constant 94 : index
    %319 = vector.load %arg13[%c8_289, %c94_290] : memref<49x512xf32, #tpu.memory_space<vmem>>, vector<1x256xf32>
    %c33 = arith.constant 33 : index
    %c0_291 = arith.constant 0 : index
    %320 = vector.load %arg2[%c33, %c0_291] : memref<74x256xf32, #tpu.memory_space<vmem>>, vector<1x256xf32>
    %321 = arith.mulf %319, %320 : vector<1x256xf32>
    %322 = arith.addf %306, %321 : vector<1x256xf32>
    %c9_292 = arith.constant 9 : index
    %c95_293 = arith.constant 95 : index
    %323 = vector.load %arg13[%c9_292, %c95_293] : memref<49x512xf32, #tpu.memory_space<vmem>>, vector<1x256xf32>
    %c34 = arith.constant 34 : index
    %c0_294 = arith.constant 0 : index
    %324 = vector.load %arg2[%c34, %c0_294] : memref<74x256xf32, #tpu.memory_space<vmem>>, vector<1x256xf32>
    %325 = arith.mulf %323, %324 : vector<1x256xf32>
    %326 = arith.addf %310, %325 : vector<1x256xf32>
    %c10_295 = arith.constant 10 : index
    %c96_296 = arith.constant 96 : index
    %327 = vector.load %arg13[%c10_295, %c96_296] : memref<49x512xf32, #tpu.memory_space<vmem>>, vector<1x256xf32>
    %c35 = arith.constant 35 : index
    %c0_297 = arith.constant 0 : index
    %328 = vector.load %arg2[%c35, %c0_297] : memref<74x256xf32, #tpu.memory_space<vmem>>, vector<1x256xf32>
    %329 = arith.mulf %327, %328 : vector<1x256xf32>
    %330 = arith.addf %314, %329 : vector<1x256xf32>
    %c11_298 = arith.constant 11 : index
    %c97_299 = arith.constant 97 : index
    %331 = vector.load %arg13[%c11_298, %c97_299] : memref<49x512xf32, #tpu.memory_space<vmem>>, vector<1x256xf32>
    %c36 = arith.constant 36 : index
    %c0_300 = arith.constant 0 : index
    %332 = vector.load %arg2[%c36, %c0_300] : memref<74x256xf32, #tpu.memory_space<vmem>>, vector<1x256xf32>
    %333 = arith.mulf %331, %332 : vector<1x256xf32>
    %334 = arith.addf %318, %333 : vector<1x256xf32>
    %c12_301 = arith.constant 12 : index
    %c98_302 = arith.constant 98 : index
    %335 = vector.load %arg13[%c12_301, %c98_302] : memref<49x512xf32, #tpu.memory_space<vmem>>, vector<1x256xf32>
    %c37 = arith.constant 37 : index
    %c0_303 = arith.constant 0 : index
    %336 = vector.load %arg2[%c37, %c0_303] : memref<74x256xf32, #tpu.memory_space<vmem>>, vector<1x256xf32>
    %337 = arith.mulf %335, %336 : vector<1x256xf32>
    %338 = arith.addf %322, %337 : vector<1x256xf32>
    %c13_304 = arith.constant 13 : index
    %c99 = arith.constant 99 : index
    %339 = vector.load %arg13[%c13_304, %c99] : memref<49x512xf32, #tpu.memory_space<vmem>>, vector<1x256xf32>
    %c38 = arith.constant 38 : index
    %c0_305 = arith.constant 0 : index
    %340 = vector.load %arg2[%c38, %c0_305] : memref<74x256xf32, #tpu.memory_space<vmem>>, vector<1x256xf32>
    %341 = arith.mulf %339, %340 : vector<1x256xf32>
    %342 = arith.addf %326, %341 : vector<1x256xf32>
    %c14_306 = arith.constant 14 : index
    %c109 = arith.constant 109 : index
    %343 = vector.load %arg13[%c14_306, %c109] : memref<49x512xf32, #tpu.memory_space<vmem>>, vector<1x256xf32>
    %c39 = arith.constant 39 : index
    %c0_307 = arith.constant 0 : index
    %344 = vector.load %arg2[%c39, %c0_307] : memref<74x256xf32, #tpu.memory_space<vmem>>, vector<1x256xf32>
    %345 = arith.mulf %343, %344 : vector<1x256xf32>
    %346 = arith.addf %330, %345 : vector<1x256xf32>
    %c15_308 = arith.constant 15 : index
    %c110_309 = arith.constant 110 : index
    %347 = vector.load %arg13[%c15_308, %c110_309] : memref<49x512xf32, #tpu.memory_space<vmem>>, vector<1x256xf32>
    %c40 = arith.constant 40 : index
    %c0_310 = arith.constant 0 : index
    %348 = vector.load %arg2[%c40, %c0_310] : memref<74x256xf32, #tpu.memory_space<vmem>>, vector<1x256xf32>
    %349 = arith.mulf %347, %348 : vector<1x256xf32>
    %350 = arith.addf %334, %349 : vector<1x256xf32>
    %c16_311 = arith.constant 16 : index
    %c111_312 = arith.constant 111 : index
    %351 = vector.load %arg13[%c16_311, %c111_312] : memref<49x512xf32, #tpu.memory_space<vmem>>, vector<1x256xf32>
    %c41 = arith.constant 41 : index
    %c0_313 = arith.constant 0 : index
    %352 = vector.load %arg2[%c41, %c0_313] : memref<74x256xf32, #tpu.memory_space<vmem>>, vector<1x256xf32>
    %353 = arith.mulf %351, %352 : vector<1x256xf32>
    %354 = arith.addf %338, %353 : vector<1x256xf32>
    %c17_314 = arith.constant 17 : index
    %c112_315 = arith.constant 112 : index
    %355 = vector.load %arg13[%c17_314, %c112_315] : memref<49x512xf32, #tpu.memory_space<vmem>>, vector<1x256xf32>
    %c42 = arith.constant 42 : index
    %c0_316 = arith.constant 0 : index
    %356 = vector.load %arg2[%c42, %c0_316] : memref<74x256xf32, #tpu.memory_space<vmem>>, vector<1x256xf32>
    %357 = arith.mulf %355, %356 : vector<1x256xf32>
    %358 = arith.addf %342, %357 : vector<1x256xf32>
    %c18_317 = arith.constant 18 : index
    %c113_318 = arith.constant 113 : index
    %359 = vector.load %arg13[%c18_317, %c113_318] : memref<49x512xf32, #tpu.memory_space<vmem>>, vector<1x256xf32>
    %c43 = arith.constant 43 : index
    %c0_319 = arith.constant 0 : index
    %360 = vector.load %arg2[%c43, %c0_319] : memref<74x256xf32, #tpu.memory_space<vmem>>, vector<1x256xf32>
    %361 = arith.mulf %359, %360 : vector<1x256xf32>
    %362 = arith.addf %346, %361 : vector<1x256xf32>
    %c19_320 = arith.constant 19 : index
    %c114_321 = arith.constant 114 : index
    %363 = vector.load %arg13[%c19_320, %c114_321] : memref<49x512xf32, #tpu.memory_space<vmem>>, vector<1x256xf32>
    %c44 = arith.constant 44 : index
    %c0_322 = arith.constant 0 : index
    %364 = vector.load %arg2[%c44, %c0_322] : memref<74x256xf32, #tpu.memory_space<vmem>>, vector<1x256xf32>
    %365 = arith.mulf %363, %364 : vector<1x256xf32>
    %366 = arith.addf %350, %365 : vector<1x256xf32>
    %c20_323 = arith.constant 20 : index
    %c115 = arith.constant 115 : index
    %367 = vector.load %arg13[%c20_323, %c115] : memref<49x512xf32, #tpu.memory_space<vmem>>, vector<1x256xf32>
    %c45 = arith.constant 45 : index
    %c0_324 = arith.constant 0 : index
    %368 = vector.load %arg2[%c45, %c0_324] : memref<74x256xf32, #tpu.memory_space<vmem>>, vector<1x256xf32>
    %369 = arith.mulf %367, %368 : vector<1x256xf32>
    %370 = arith.addf %354, %369 : vector<1x256xf32>
    %c21_325 = arith.constant 21 : index
    %c125 = arith.constant 125 : index
    %371 = vector.load %arg13[%c21_325, %c125] : memref<49x512xf32, #tpu.memory_space<vmem>>, vector<1x256xf32>
    %c46 = arith.constant 46 : index
    %c0_326 = arith.constant 0 : index
    %372 = vector.load %arg2[%c46, %c0_326] : memref<74x256xf32, #tpu.memory_space<vmem>>, vector<1x256xf32>
    %373 = arith.mulf %371, %372 : vector<1x256xf32>
    %374 = arith.addf %358, %373 : vector<1x256xf32>
    %c22_327 = arith.constant 22 : index
    %c126_328 = arith.constant 126 : index
    %375 = vector.load %arg13[%c22_327, %c126_328] : memref<49x512xf32, #tpu.memory_space<vmem>>, vector<1x256xf32>
    %c47 = arith.constant 47 : index
    %c0_329 = arith.constant 0 : index
    %376 = vector.load %arg2[%c47, %c0_329] : memref<74x256xf32, #tpu.memory_space<vmem>>, vector<1x256xf32>
    %377 = arith.mulf %375, %376 : vector<1x256xf32>
    %378 = arith.addf %362, %377 : vector<1x256xf32>
    %c23_330 = arith.constant 23 : index
    %c127_331 = arith.constant 127 : index
    %379 = vector.load %arg13[%c23_330, %c127_331] : memref<49x512xf32, #tpu.memory_space<vmem>>, vector<1x256xf32>
    %c48 = arith.constant 48 : index
    %c0_332 = arith.constant 0 : index
    %380 = vector.load %arg2[%c48, %c0_332] : memref<74x256xf32, #tpu.memory_space<vmem>>, vector<1x256xf32>
    %381 = arith.mulf %379, %380 : vector<1x256xf32>
    %382 = arith.addf %366, %381 : vector<1x256xf32>
    %c24_333 = arith.constant 24 : index
    %c128_334 = arith.constant 128 : index
    %383 = vector.load %arg13[%c24_333, %c128_334] : memref<49x512xf32, #tpu.memory_space<vmem>>, vector<1x256xf32>
    %c49 = arith.constant 49 : index
    %c0_335 = arith.constant 0 : index
    %384 = vector.load %arg2[%c49, %c0_335] : memref<74x256xf32, #tpu.memory_space<vmem>>, vector<1x256xf32>
    %385 = arith.mulf %383, %384 : vector<1x256xf32>
    %386 = arith.addf %370, %385 : vector<1x256xf32>
    %c25_336 = arith.constant 25 : index
    %c129_337 = arith.constant 129 : index
    %387 = vector.load %arg13[%c25_336, %c129_337] : memref<49x512xf32, #tpu.memory_space<vmem>>, vector<1x256xf32>
    %c50 = arith.constant 50 : index
    %c0_338 = arith.constant 0 : index
    %388 = vector.load %arg2[%c50, %c0_338] : memref<74x256xf32, #tpu.memory_space<vmem>>, vector<1x256xf32>
    %389 = arith.mulf %387, %388 : vector<1x256xf32>
    %390 = arith.addf %374, %389 : vector<1x256xf32>
    %c26_339 = arith.constant 26 : index
    %c130_340 = arith.constant 130 : index
    %391 = vector.load %arg13[%c26_339, %c130_340] : memref<49x512xf32, #tpu.memory_space<vmem>>, vector<1x256xf32>
    %c51 = arith.constant 51 : index
    %c0_341 = arith.constant 0 : index
    %392 = vector.load %arg2[%c51, %c0_341] : memref<74x256xf32, #tpu.memory_space<vmem>>, vector<1x256xf32>
    %393 = arith.mulf %391, %392 : vector<1x256xf32>
    %394 = arith.addf %378, %393 : vector<1x256xf32>
    %c27_342 = arith.constant 27 : index
    %c131 = arith.constant 131 : index
    %395 = vector.load %arg13[%c27_342, %c131] : memref<49x512xf32, #tpu.memory_space<vmem>>, vector<1x256xf32>
    %c52 = arith.constant 52 : index
    %c0_343 = arith.constant 0 : index
    %396 = vector.load %arg2[%c52, %c0_343] : memref<74x256xf32, #tpu.memory_space<vmem>>, vector<1x256xf32>
    %397 = arith.mulf %395, %396 : vector<1x256xf32>
    %398 = arith.addf %382, %397 : vector<1x256xf32>
    %c28_344 = arith.constant 28 : index
    %c141 = arith.constant 141 : index
    %399 = vector.load %arg13[%c28_344, %c141] : memref<49x512xf32, #tpu.memory_space<vmem>>, vector<1x256xf32>
    %c53 = arith.constant 53 : index
    %c0_345 = arith.constant 0 : index
    %400 = vector.load %arg2[%c53, %c0_345] : memref<74x256xf32, #tpu.memory_space<vmem>>, vector<1x256xf32>
    %401 = arith.mulf %399, %400 : vector<1x256xf32>
    %402 = arith.addf %386, %401 : vector<1x256xf32>
    %c29_346 = arith.constant 29 : index
    %c142_347 = arith.constant 142 : index
    %403 = vector.load %arg13[%c29_346, %c142_347] : memref<49x512xf32, #tpu.memory_space<vmem>>, vector<1x256xf32>
    %c54 = arith.constant 54 : index
    %c0_348 = arith.constant 0 : index
    %404 = vector.load %arg2[%c54, %c0_348] : memref<74x256xf32, #tpu.memory_space<vmem>>, vector<1x256xf32>
    %405 = arith.mulf %403, %404 : vector<1x256xf32>
    %406 = arith.addf %390, %405 : vector<1x256xf32>
    %c30_349 = arith.constant 30 : index
    %c143_350 = arith.constant 143 : index
    %407 = vector.load %arg13[%c30_349, %c143_350] : memref<49x512xf32, #tpu.memory_space<vmem>>, vector<1x256xf32>
    %c55 = arith.constant 55 : index
    %c0_351 = arith.constant 0 : index
    %408 = vector.load %arg2[%c55, %c0_351] : memref<74x256xf32, #tpu.memory_space<vmem>>, vector<1x256xf32>
    %409 = arith.mulf %407, %408 : vector<1x256xf32>
    %410 = arith.addf %394, %409 : vector<1x256xf32>
    %c31_352 = arith.constant 31 : index
    %c144_353 = arith.constant 144 : index
    %411 = vector.load %arg13[%c31_352, %c144_353] : memref<49x512xf32, #tpu.memory_space<vmem>>, vector<1x256xf32>
    %c56 = arith.constant 56 : index
    %c0_354 = arith.constant 0 : index
    %412 = vector.load %arg2[%c56, %c0_354] : memref<74x256xf32, #tpu.memory_space<vmem>>, vector<1x256xf32>
    %413 = arith.mulf %411, %412 : vector<1x256xf32>
    %414 = arith.addf %398, %413 : vector<1x256xf32>
    %c32_355 = arith.constant 32 : index
    %c145_356 = arith.constant 145 : index
    %415 = vector.load %arg13[%c32_355, %c145_356] : memref<49x512xf32, #tpu.memory_space<vmem>>, vector<1x256xf32>
    %c57 = arith.constant 57 : index
    %c0_357 = arith.constant 0 : index
    %416 = vector.load %arg2[%c57, %c0_357] : memref<74x256xf32, #tpu.memory_space<vmem>>, vector<1x256xf32>
    %417 = arith.mulf %415, %416 : vector<1x256xf32>
    %418 = arith.addf %402, %417 : vector<1x256xf32>
    %c33_358 = arith.constant 33 : index
    %c146_359 = arith.constant 146 : index
    %419 = vector.load %arg13[%c33_358, %c146_359] : memref<49x512xf32, #tpu.memory_space<vmem>>, vector<1x256xf32>
    %c58 = arith.constant 58 : index
    %c0_360 = arith.constant 0 : index
    %420 = vector.load %arg2[%c58, %c0_360] : memref<74x256xf32, #tpu.memory_space<vmem>>, vector<1x256xf32>
    %421 = arith.mulf %419, %420 : vector<1x256xf32>
    %422 = arith.addf %406, %421 : vector<1x256xf32>
    %c34_361 = arith.constant 34 : index
    %c147 = arith.constant 147 : index
    %423 = vector.load %arg13[%c34_361, %c147] : memref<49x512xf32, #tpu.memory_space<vmem>>, vector<1x256xf32>
    %c59 = arith.constant 59 : index
    %c0_362 = arith.constant 0 : index
    %424 = vector.load %arg2[%c59, %c0_362] : memref<74x256xf32, #tpu.memory_space<vmem>>, vector<1x256xf32>
    %425 = arith.mulf %423, %424 : vector<1x256xf32>
    %426 = arith.addf %410, %425 : vector<1x256xf32>
    %c35_363 = arith.constant 35 : index
    %c157 = arith.constant 157 : index
    %427 = vector.load %arg13[%c35_363, %c157] : memref<49x512xf32, #tpu.memory_space<vmem>>, vector<1x256xf32>
    %c60 = arith.constant 60 : index
    %c0_364 = arith.constant 0 : index
    %428 = vector.load %arg2[%c60, %c0_364] : memref<74x256xf32, #tpu.memory_space<vmem>>, vector<1x256xf32>
    %429 = arith.mulf %427, %428 : vector<1x256xf32>
    %430 = arith.addf %414, %429 : vector<1x256xf32>
    %c36_365 = arith.constant 36 : index
    %c158_366 = arith.constant 158 : index
    %431 = vector.load %arg13[%c36_365, %c158_366] : memref<49x512xf32, #tpu.memory_space<vmem>>, vector<1x256xf32>
    %c61 = arith.constant 61 : index
    %c0_367 = arith.constant 0 : index
    %432 = vector.load %arg2[%c61, %c0_367] : memref<74x256xf32, #tpu.memory_space<vmem>>, vector<1x256xf32>
    %433 = arith.mulf %431, %432 : vector<1x256xf32>
    %434 = arith.addf %418, %433 : vector<1x256xf32>
    %c37_368 = arith.constant 37 : index
    %c159_369 = arith.constant 159 : index
    %435 = vector.load %arg13[%c37_368, %c159_369] : memref<49x512xf32, #tpu.memory_space<vmem>>, vector<1x256xf32>
    %c62 = arith.constant 62 : index
    %c0_370 = arith.constant 0 : index
    %436 = vector.load %arg2[%c62, %c0_370] : memref<74x256xf32, #tpu.memory_space<vmem>>, vector<1x256xf32>
    %437 = arith.mulf %435, %436 : vector<1x256xf32>
    %438 = arith.addf %422, %437 : vector<1x256xf32>
    %c38_371 = arith.constant 38 : index
    %c160_372 = arith.constant 160 : index
    %439 = vector.load %arg13[%c38_371, %c160_372] : memref<49x512xf32, #tpu.memory_space<vmem>>, vector<1x256xf32>
    %c63 = arith.constant 63 : index
    %c0_373 = arith.constant 0 : index
    %440 = vector.load %arg2[%c63, %c0_373] : memref<74x256xf32, #tpu.memory_space<vmem>>, vector<1x256xf32>
    %441 = arith.mulf %439, %440 : vector<1x256xf32>
    %442 = arith.addf %426, %441 : vector<1x256xf32>
    %c39_374 = arith.constant 39 : index
    %c161_375 = arith.constant 161 : index
    %443 = vector.load %arg13[%c39_374, %c161_375] : memref<49x512xf32, #tpu.memory_space<vmem>>, vector<1x256xf32>
    %c64_376 = arith.constant 64 : index
    %c0_377 = arith.constant 0 : index
    %444 = vector.load %arg2[%c64_376, %c0_377] : memref<74x256xf32, #tpu.memory_space<vmem>>, vector<1x256xf32>
    %445 = arith.mulf %443, %444 : vector<1x256xf32>
    %446 = arith.addf %430, %445 : vector<1x256xf32>
    %c40_378 = arith.constant 40 : index
    %c162_379 = arith.constant 162 : index
    %447 = vector.load %arg13[%c40_378, %c162_379] : memref<49x512xf32, #tpu.memory_space<vmem>>, vector<1x256xf32>
    %c65 = arith.constant 65 : index
    %c0_380 = arith.constant 0 : index
    %448 = vector.load %arg2[%c65, %c0_380] : memref<74x256xf32, #tpu.memory_space<vmem>>, vector<1x256xf32>
    %449 = arith.mulf %447, %448 : vector<1x256xf32>
    %450 = arith.addf %434, %449 : vector<1x256xf32>
    %c41_381 = arith.constant 41 : index
    %c163 = arith.constant 163 : index
    %451 = vector.load %arg13[%c41_381, %c163] : memref<49x512xf32, #tpu.memory_space<vmem>>, vector<1x256xf32>
    %c66 = arith.constant 66 : index
    %c0_382 = arith.constant 0 : index
    %452 = vector.load %arg2[%c66, %c0_382] : memref<74x256xf32, #tpu.memory_space<vmem>>, vector<1x256xf32>
    %453 = arith.mulf %451, %452 : vector<1x256xf32>
    %454 = arith.addf %438, %453 : vector<1x256xf32>
    %c42_383 = arith.constant 42 : index
    %c173 = arith.constant 173 : index
    %455 = vector.load %arg13[%c42_383, %c173] : memref<49x512xf32, #tpu.memory_space<vmem>>, vector<1x256xf32>
    %c67 = arith.constant 67 : index
    %c0_384 = arith.constant 0 : index
    %456 = vector.load %arg2[%c67, %c0_384] : memref<74x256xf32, #tpu.memory_space<vmem>>, vector<1x256xf32>
    %457 = arith.mulf %455, %456 : vector<1x256xf32>
    %458 = arith.addf %442, %457 : vector<1x256xf32>
    %c43_385 = arith.constant 43 : index
    %c174 = arith.constant 174 : index
    %459 = vector.load %arg13[%c43_385, %c174] : memref<49x512xf32, #tpu.memory_space<vmem>>, vector<1x256xf32>
    %c68 = arith.constant 68 : index
    %c0_386 = arith.constant 0 : index
    %460 = vector.load %arg2[%c68, %c0_386] : memref<74x256xf32, #tpu.memory_space<vmem>>, vector<1x256xf32>
    %461 = arith.mulf %459, %460 : vector<1x256xf32>
    %462 = arith.addf %446, %461 : vector<1x256xf32>
    %c44_387 = arith.constant 44 : index
    %c175 = arith.constant 175 : index
    %463 = vector.load %arg13[%c44_387, %c175] : memref<49x512xf32, #tpu.memory_space<vmem>>, vector<1x256xf32>
    %c69 = arith.constant 69 : index
    %c0_388 = arith.constant 0 : index
    %464 = vector.load %arg2[%c69, %c0_388] : memref<74x256xf32, #tpu.memory_space<vmem>>, vector<1x256xf32>
    %465 = arith.mulf %463, %464 : vector<1x256xf32>
    %466 = arith.addf %450, %465 : vector<1x256xf32>
    %c45_389 = arith.constant 45 : index
    %c176 = arith.constant 176 : index
    %467 = vector.load %arg13[%c45_389, %c176] : memref<49x512xf32, #tpu.memory_space<vmem>>, vector<1x256xf32>
    %c70 = arith.constant 70 : index
    %c0_390 = arith.constant 0 : index
    %468 = vector.load %arg2[%c70, %c0_390] : memref<74x256xf32, #tpu.memory_space<vmem>>, vector<1x256xf32>
    %469 = arith.mulf %467, %468 : vector<1x256xf32>
    %470 = arith.addf %454, %469 : vector<1x256xf32>
    %c46_391 = arith.constant 46 : index
    %c177 = arith.constant 177 : index
    %471 = vector.load %arg13[%c46_391, %c177] : memref<49x512xf32, #tpu.memory_space<vmem>>, vector<1x256xf32>
    %c71 = arith.constant 71 : index
    %c0_392 = arith.constant 0 : index
    %472 = vector.load %arg2[%c71, %c0_392] : memref<74x256xf32, #tpu.memory_space<vmem>>, vector<1x256xf32>
    %473 = arith.mulf %471, %472 : vector<1x256xf32>
    %474 = arith.addf %458, %473 : vector<1x256xf32>
    %c47_393 = arith.constant 47 : index
    %c178 = arith.constant 178 : index
    %475 = vector.load %arg13[%c47_393, %c178] : memref<49x512xf32, #tpu.memory_space<vmem>>, vector<1x256xf32>
    %c72 = arith.constant 72 : index
    %c0_394 = arith.constant 0 : index
    %476 = vector.load %arg2[%c72, %c0_394] : memref<74x256xf32, #tpu.memory_space<vmem>>, vector<1x256xf32>
    %477 = arith.mulf %475, %476 : vector<1x256xf32>
    %478 = arith.addf %462, %477 : vector<1x256xf32>
    %c48_395 = arith.constant 48 : index
    %c179 = arith.constant 179 : index
    %479 = vector.load %arg13[%c48_395, %c179] : memref<49x512xf32, #tpu.memory_space<vmem>>, vector<1x256xf32>
    %c73 = arith.constant 73 : index
    %c0_396 = arith.constant 0 : index
    %480 = vector.load %arg2[%c73, %c0_396] : memref<74x256xf32, #tpu.memory_space<vmem>>, vector<1x256xf32>
    %481 = arith.mulf %479, %480 : vector<1x256xf32>
    %482 = arith.addf %466, %481 : vector<1x256xf32>
    %483 = arith.addf %482, %470 : vector<1x256xf32>
    %484 = arith.addf %483, %474 : vector<1x256xf32>
    %485 = arith.addf %484, %478 : vector<1x256xf32>
    %c0_397 = arith.constant 0 : index
    %c0_398 = arith.constant 0 : index
    %486 = vector.load %arg8[%c0_397, %c0_398] : memref<1x1xf32, #tpu.memory_space<vmem>>, vector<1x1xf32>
    %487 = vector.broadcast %486 : vector<1x1xf32> to vector<1x256xf32>
    %488 = arith.addf %485, %487 : vector<1x256xf32>
    %c0_399 = arith.constant 0 : index
    %c0_400 = arith.constant 0 : index
    %c0_401 = arith.constant 0 : index
    %489 = vector.load %arg9[%c0_399, %c0_400, %c0_401] : memref<1x1x256xf32, #tpu.memory_space<vmem>>, vector<1x1x256xf32>
    %490 = vector.shape_cast %489 : vector<1x1x256xf32> to vector<1x256xf32>
    %491 = vector.shape_cast %488 : vector<1x256xf32> to vector<1x1x256xf32>
    tpu.vector_store %arg9[%c0_399, %c0_400, %c0_401], %491 {strides = array<i32>} : memref<1x1x256xf32, #tpu.memory_space<vmem>>, vector<1x1x256xf32>,
    return
  }
  func.func @transform_0(%arg0: i32) -> (i32, i32, i32) {
    %c0_i32 = arith.constant 0 : i32
    %c0_i32_0 = arith.constant 0 : i32
    %c0_i32_1 = arith.constant 0 : i32
    return %arg0, %c0_i32, %c0_i32_0 : i32, i32, i32
  }
  func.func @transform_1(%arg0: i32) -> (i32, i32) {
    %c0_i32 = arith.constant 0 : i32
    %c0_i32_0 = arith.constant 0 : i32
    %c0_i32_1 = arith.constant 0 : i32
    return %c0_i32, %c0_i32_0 : i32, i32
  }
  func.func @transform_2(%arg0: i32) -> (i32, i32) {
    %c0_i32 = arith.constant 0 : i32
    %c0_i32_0 = arith.constant 0 : i32
    %c0_i32_1 = arith.constant 0 : i32
    return %c0_i32, %c0_i32_0 : i32, i32
  }
  func.func @transform_3(%arg0: i32) -> (i32, i32) {
    %c0_i32 = arith.constant 0 : i32
    %c0_i32_0 = arith.constant 0 : i32
    %c0_i32_1 = arith.constant 0 : i32
    return %c0_i32, %c0_i32_0 : i32, i32
  }
  func.func @transform_4(%arg0: i32) -> (i32, i32) {
    %c0_i32 = arith.constant 0 : i32
    %c0_i32_0 = arith.constant 0 : i32
    %c0_i32_1 = arith.constant 0 : i32
    return %c0_i32, %c0_i32_0 : i32, i32
  }
  func.func @transform_5(%arg0: i32) -> (i32, i32) {
    %c0_i32 = arith.constant 0 : i32
    %c0_i32_0 = arith.constant 0 : i32
    %c0_i32_1 = arith.constant 0 : i32
    return %c0_i32, %c0_i32_0 : i32, i32
  }
  func.func @transform_6(%arg0: i32) -> (i32, i32) {
    %c0_i32 = arith.constant 0 : i32
    %c0_i32_0 = arith.constant 0 : i32
    %c0_i32_1 = arith.constant 0 : i32
    return %c0_i32, %c0_i32_0 : i32, i32
  }
  func.func @transform_7(%arg0: i32) -> (i32, i32) {
    %c0_i32 = arith.constant 0 : i32
    %c0_i32_0 = arith.constant 0 : i32
    %c0_i32_1 = arith.constant 0 : i32
    return %c0_i32, %c0_i32_0 : i32, i32
  }
  func.func @transform_8(%arg0: i32) -> (i32, i32, i32) {
    %c0_i32 = arith.constant 0 : i32
    %c0_i32_0 = arith.constant 0 : i32
    %c0_i32_1 = arith.constant 0 : i32
    return %arg0, %c0_i32, %c0_i32_0 : i32, i32, i32
  }
}

</mosaic_0001>

<bundles_post_ra>
// kernel: automap_basic_2_forward.2
= control target key start
LH: loop header
LB: loop body
LE: loop exit
PB: predicated region body
PF: predicated region fallthrough
CT: control target
= control target key end

     0   :  { %12 = vsyncpa [#allocation3], 0  ;;  %s949_s0 = inlined_call_operand.vmem [shape: f32[2,512], index: 0, kind: input, shape index: {}]   ;;  %s950_s1 = inlined_call_operand.hbm [shape: f32[512,256], index: 1, kind: input, shape index: {}]   ;;  %s951_s2 = inlined_call_operand.vmem [shape: f32[1,256], index: 2, kind: input, shape index: {}]   ;;  %s952_s3 = inlined_call_operand.hbm [shape: f32[256,256], index: 3, kind: input, shape index: {}]   ;;  %s953_s4 = inlined_call_operand.vmem [shape: f32[1,256], index: 4, kind: input, shape index: {}]   ;;  %s954_s5 = inlined_call_operand.hbm [shape: f32[2,256], index: 5, kind: output, shape index: {0}]   ;;  %s955_s6 = inlined_call_operand.vmem [shape: f32[2,256], index: 6, kind: output, shape index: {1}]  }
   0x1   :  { %13 = vsyncpa [#allocation6], 0 }
   0x2   :  { %14 = vsyncpa [#allocation4], 0  ;;  %s836_s21 = smov [#allocation2]   ;;  %s764_s25 = scalar_lea.hbm %s950_s1, 16384 }
   0x3   :  { %s22_s22 = sshll.u32 %s836_s21, 4  ;;  %p765_p0 = scmp.ne.s32.totalorder %s950_s1, %s764_s25  ;;  %s23_s22 = int_to_ptr.vmem [resolvable:$true] %s22_s22 }
   0x4   :  { %p768_p1 = scmp.lt.u32.totalorder %s764_s25, %s950_s1 }
   0x6   :  { %p770_p2 = pnand %p768_p1, %p765_p0 }
   0x8   :  { %773 = shalt.err (!%p770_p2)
}
   0x9   :  { %s774_s30 = scalar_lea.vmem %s23_s22, 16384  ;;  %p779_p4 = scmp.lt.s32.totalorder %s23_s22, %s23_s22 }
   0xa   :  { %p775_p3 = scmp.ne.s32.totalorder %s23_s22, %s774_s30  ;;  %p780_p5 = scmp.lt.s32.totalorder %s774_s30, %s774_s30 }
   0xc   :  { %p781_p6 = por %p780_p5, %p779_p4 }
   0xe   :  { %p782_p7 = pnand %p781_p6, %p775_p3 }
  0x10   :  { %785 = shalt.err (!%p782_p7)
}
  0x11   :  { %s837_s7 = smov 256   ;;  %s838_s8 = smov 16  }
  0x12   :  { %28 = dma.hbm_to_vmem [thread:$0]  %s950_s1, 16384, %s23_s22, [#allocation3], %s837_s7, %s837_s7, %s838_s8  }
  0x13   :  { %s839_s11 = smov [#allocation5]   ;;  %s786_s15 = scalar_lea.hbm %s952_s3, 8192 }
  0x14   :  { %s36_s12 = sshll.u32 %s839_s11, 4  ;;  %p787_p8 = scmp.ne.s32.totalorder %s952_s3, %s786_s15  ;;  %s37_s12 = int_to_ptr.vmem [resolvable:$true] %s36_s12 }
  0x15   :  { %p790_p9 = scmp.lt.u32.totalorder %s786_s15, %s952_s3 }
  0x17   :  { %p792_p10 = pnand %p790_p9, %p787_p8 }
  0x19   :  { %795 = shalt.err (!%p792_p10)
}
  0x1a   :  { %s796_s20 = scalar_lea.vmem %s37_s12, 8192  ;;  %p801_p12 = scmp.lt.s32.totalorder %s37_s12, %s37_s12 }
  0x1b   :  { %p797_p11 = scmp.ne.s32.totalorder %s37_s12, %s796_s20  ;;  %p802_p13 = scmp.lt.s32.totalorder %s796_s20, %s796_s20 }
  0x1d   :  { %p803_p0 = por %p802_p13, %p801_p12 }
  0x1f   :  { %p804_p1 = pnand %p803_p0, %p797_p11 }
  0x21   :  { %807 = shalt.err (!%p804_p1)
}
  0x22   :  { %42 = dma.hbm_to_vmem [thread:$0]  %s952_s3, 8192, %s37_s12, [#allocation6], %s837_s7, %s837_s7, %s838_s8  }
  0x23   :  { %830 = dma.done.wait [#allocation3], 16384  }
  0x24   :  { %831 = vsyncadd [#allocation3], 4294950912 }
  0x25   :  { %832 = dma.done.wait [#allocation6], 8192  }
  0x26   :  { %833 = vsyncadd [#allocation6], 4294959104  ;;  %v53_v0 = vld [vmem:[#allocation2 + $0x8] sm:$0xff]  ;;  %v55_v1 = vld [vmem:[#allocation2 + $0x18] sm:$0xff]  ;;  %v182_v25 = vlaneseq  ;;  %v840_v26 = vmov 1983009808  }
  0x27   :  { %v52_v2 = vld [vmem:[#allocation2] sm:$0xff]  ;;  %v553_v3 = vpack.c.bf16 %v55_v1, %v53_v0  ;;  %v54_v4 = vld [vmem:[#allocation2 + $0x10] sm:$0xff]  ;;  %v57_v5 = vld [vmem:[#allocation2 + $0x28] sm:$0xff]  ;;  %v195_v27 = vunpack.c.l.s4 %v840_v26  ;;  %s841_s24 = smov [#allocation7]  }
  0x28   :  { %v59_v6 = vld [vmem:[#allocation2 + $0x38] sm:$0xff]  ;;  %v555_v7 = vpack.c.bf16 %v54_v4, %v52_v2  ;;  %v56_v9 = vld [vmem:[#allocation2 + $0x20] sm:$0xff]  ;;  %v58_v10 = vld [vmem:[#allocation2 + $0x30] sm:$0xff]  ;;  %v901_v34 = vshrl.u32 %v182_v25, 7  ;;  %s537_s25 = sshll.u32 %s841_s24, 4  ;;  %s538_s25 = int_to_ptr.vmem [resolvable:$true] %s537_s25 }
  0x29   :  { %v557_v8 = vpack.c.bf16 %v59_v6, %v57_v5  ;;  %v61_v11 = vld [vmem:[#allocation2 + $0x48] sm:$0xff]  ;;  %554 = vmatprep.subr.bf16.mxu0 %v553_v3  ;;  %v63_v12 = vld [vmem:[#allocation2 + $0x58] sm:$0xff]  ;;  %v559_v13 = vpack.c.bf16 %v58_v10, %v56_v9  ;;  %v60_v15 = vld [vmem:[#allocation2 + $0x40] sm:$0xff]  ;;  %v196_v35 = vunpack.c.0.s8 %v195_v27  ;;  %p813_p3 = scmp.lt.s32.totalorder %s538_s25, %s538_s25 }
  0x2a   :  { %556 = vmatpush1.bf16.msra.mxu0 %v555_v7  ;;  %v561_v14 = vpack.c.bf16 %v63_v12, %v61_v11  ;;  %v62_v16 = vld [vmem:[#allocation2 + $0x50] sm:$0xff]  ;;  %v65_v17 = vld [vmem:[#allocation2 + $0x68] sm:$0xff]  ;;  %v67_v18 = vld [vmem:[#allocation2 + $0x78] sm:$0xff] }
  0x2b   :  { %558 = vmatprep.subr.bf16.mxu0 %v557_v8  ;;  %v563_v19 = vpack.c.bf16 %v62_v16, %v60_v15  ;;  %v565_v20 = vpack.c.bf16 %v67_v18, %v65_v17  ;;  %v64_v21 = vld [vmem:[#allocation2 + $0x60] sm:$0xff]  ;;  %v66_v22 = vld [vmem:[#allocation2 + $0x70] sm:$0xff]  ;;  %v69_v23 = vld [vmem:[#allocation2 + $0x88] sm:$0xff]  ;;  %v904_v42 = vsub.s32 %v196_v35, %v901_v34 }
  0x2c   :  { %v71_v24 = vld [vmem:[#allocation2 + $0x98] sm:$0xff]  ;;  %v567_v28 = vpack.c.bf16 %v66_v22, %v64_v21  ;;  %v68_v30 = vld [vmem:[#allocation2 + $0x80] sm:$0xff]  ;;  %v70_v31 = vld [vmem:[#allocation2 + $0x90] sm:$0xff] }
  0x2d   :  { %v569_v29 = vpack.c.bf16 %v71_v24, %v69_v23  ;;  %v73_v32 = vld [vmem:[#allocation2 + $0xa8] sm:$0xff]  ;;  %v75_v33 = vld [vmem:[#allocation2 + $0xb8] sm:$0xff]  ;;  %v571_v36 = vpack.c.bf16 %v70_v31, %v68_v30  ;;  %v72_v38 = vld [vmem:[#allocation2 + $0xa0] sm:$0xff] }
  0x2e   :  { %560 = vmatpush1.bf16.msra.mxu0 %v559_v13  ;;  %v573_v37 = vpack.c.bf16 %v75_v33, %v73_v32  ;;  %v74_v39 = vld [vmem:[#allocation2 + $0xb0] sm:$0xff]  ;;  %v77_v40 = vld [vmem:[#allocation2 + $0xc8] sm:$0xff]  ;;  %v79_v41 = vld [vmem:[#allocation2 + $0xd8] sm:$0xff] }
  0x2f   :  { %562 = vmatprep.subr.bf16.mxu0 %v561_v14  ;;  %v575_v43 = vpack.c.bf16 %v74_v39, %v72_v38  ;;  %v577_v44 = vpack.c.bf16 %v79_v41, %v77_v40  ;;  %v76_v45 = vld [vmem:[#allocation2 + $0xc0] sm:$0xff]  ;;  %v78_v46 = vld [vmem:[#allocation2 + $0xd0] sm:$0xff]  ;;  %v81_v48 = vld [vmem:[#allocation2 + $0xe8] sm:$0xff] }
  0x30   :  { %v909_v47 = vld [vmem:[%s949_s0] sm:$0xff]  ;;  %v83_v49 = vld [vmem:[#allocation2 + $0xf8] sm:$0xff]  ;;  %v579_v51 = vpack.c.bf16 %v78_v46, %v76_v45  ;;  %v82_v55 = vld [vmem:[#allocation2 + $0xf0] sm:$0xff] }
  0x31   :  { %v913_v50 = vrot.slane %v909_v47, %v904_v42  ;;  %v581_v53 = vpack.c.bf16 %v83_v49, %v81_v48  ;;  %v80_v54 = vld [vmem:[#allocation2 + $0xe0] sm:$0xff]  ;;  %v85_v56 = vld [vmem:[#allocation2 + $0x108] sm:$0xff]  ;;  %v87_v57 = vld [vmem:[#allocation2 + $0x118] sm:$0xff] }
  0x32   :  { %564 = vmatpush1.bf16.msra.mxu0 %v563_v19  ;;  %v583_v58 = vpack.c.bf16 %v82_v55, %v80_v54  ;;  %v585_v59 = vpack.c.bf16 %v87_v57, %v85_v56  ;;  %v84_v60 = vld [vmem:[#allocation2 + $0x100] sm:$0xff]  ;;  %v86_v61 = vld [vmem:[#allocation2 + $0x110] sm:$0xff]  ;;  %v89_v62 = vld [vmem:[#allocation2 + $0x128] sm:$0xff] }
  0x33   :  { %566 = vmatprep.subr.bf16.mxu0 %v565_v20  ;;  %v208_v52 = vcombine.high %v913_v50, %v913_v50  ;;  %v91_v63 = vld [vmem:[#allocation2 + $0x138] sm:$0xff]  ;;  %v587_v0 = vpack.c.bf16 %v86_v61, %v84_v60  ;;  %v88_v2 = vld [vmem:[#allocation2 + $0x120] sm:$0xff]  ;;  %v90_v3 = vld [vmem:[#allocation2 + $0x130] sm:$0xff] }
  0x34   :  { %v589_v1 = vpack.c.bf16 %v91_v63, %v89_v62  ;;  %v93_v4 = vld [vmem:[#allocation2 + $0x148] sm:$0xff]  ;;  %v95_v5 = vld [vmem:[#allocation2 + $0x158] sm:$0xff]  ;;  %v591_v6 = vpack.c.bf16 %v90_v3, %v88_v2  ;;  %v92_v8 = vld [vmem:[#allocation2 + $0x140] sm:$0xff] }
  0x35   :  { %278 = vmatprep.mubr.f32.mxu0 %v208_v52  ;;  %v593_v7 = vpack.c.bf16 %v95_v5, %v93_v4  ;;  %v94_v9 = vld [vmem:[#allocation2 + $0x150] sm:$0xff]  ;;  %v97_v10 = vld [vmem:[#allocation2 + $0x168] sm:$0xff]  ;;  %v99_v11 = vld [vmem:[#allocation2 + $0x178] sm:$0xff]  ;;  %v193_v4 = vcombine.high %v909_v47, %v909_v47 }
  0x36   :  { %568 = vmatpush1.bf16.msra.mxu0 %v567_v28  ;;  %v595_v12 = vpack.c.bf16 %v94_v9, %v92_v8  ;;  %v597_v13 = vpack.c.bf16 %v99_v11, %v97_v10  ;;  %v96_v14 = vld [vmem:[#allocation2 + $0x160] sm:$0xff]  ;;  %v98_v15 = vld [vmem:[#allocation2 + $0x170] sm:$0xff]  ;;  %v101_v16 = vld [vmem:[#allocation2 + $0x188] sm:$0xff] }
  0x37   :  { %570 = vmatprep.subr.bf16.mxu0 %v569_v29  ;;  %v103_v17 = vld [vmem:[#allocation2 + $0x198] sm:$0xff]  ;;  %v100_v18 = vld [vmem:[#allocation2 + $0x180] sm:$0xff]  ;;  %v102_v19 = vld [vmem:[#allocation2 + $0x190] sm:$0xff]  ;;  %v599_v23 = vpack.c.bf16 %v98_v15, %v96_v14 }
  0x38   :  { %v371_v20 = vld [vmem:[#allocation5 + $0x8] sm:$0xff]  ;;  %v373_v21 = vld [vmem:[#allocation5 + $0x18] sm:$0xff]  ;;  %v370_v22 = vld [vmem:[#allocation5] sm:$0xff]  ;;  %v601_v28 = vpack.c.bf16 %v103_v17, %v101_v16  ;;  %v603_v39 = vpack.c.bf16 %v102_v19, %v100_v18  ;;  %v920_v16 = vrot.slane %v193_v4, %v904_v42 }
  0x39   :  { %v681_v24 = vpack.c.bf16 %v373_v21, %v371_v20  ;;  %v372_v25 = vld [vmem:[#allocation5 + $0x10] sm:$0xff]  ;;  %v375_v26 = vld [vmem:[#allocation5 + $0x28] sm:$0xff]  ;;  %v377_v27 = vld [vmem:[#allocation5 + $0x38] sm:$0xff] }
  0x3a   :  { %572 = vmatpush1.bf16.msra.mxu0 %v571_v36  ;;  %v683_v29 = vpack.c.bf16 %v372_v25, %v370_v22  ;;  %v685_v30 = vpack.c.bf16 %v377_v27, %v375_v26  ;;  %v374_v31 = vld [vmem:[#allocation5 + $0x20] sm:$0xff]  ;;  %v376_v32 = vld [vmem:[#allocation5 + $0x30] sm:$0xff]  ;;  %v379_v33 = vld [vmem:[#allocation5 + $0x48] sm:$0xff]  ;;  %v209_v42 = vcombine.high %v920_v16, %v920_v16 }
  0x3b   :  { %574 = vmatprep.subr.bf16.mxu0 %v573_v37  ;;  %v105_v35 = vld [vmem:[#allocation2 + $0x1a8] sm:$0xff]  ;;  %v107_v36 = vld [vmem:[#allocation2 + $0x1b8] sm:$0xff]  ;;  %682 = vmatprep.subr.bf16.mxu1 %v681_v24  ;;  %v687_v38 = vpack.c.bf16 %v376_v32, %v374_v31  ;;  %v104_v40 = vld [vmem:[#allocation2 + $0x1a0] sm:$0xff] }
  0x3c   :  { %v381_v37 = vld [vmem:[#allocation5 + $0x58] sm:$0xff]  ;;  %684 = vmatpush1.bf16.msra.mxu1 %v683_v29  ;;  %v605_v45 = vpack.c.bf16 %v107_v36, %v105_v35  ;;  %v106_v46 = vld [vmem:[#allocation2 + $0x1b0] sm:$0xff]  ;;  %v383_v48 = vld [vmem:[#allocation5 + $0x68] sm:$0xff] }
  0x3d   :  { %686 = vmatprep.subr.bf16.mxu1 %v685_v30  ;;  %v689_v41 = vpack.c.bf16 %v381_v37, %v379_v33  ;;  %v385_v49 = vld [vmem:[#allocation5 + $0x78] sm:$0xff]  ;;  %v607_v54 = vpack.c.bf16 %v106_v46, %v104_v40  ;;  %v108_v55 = vld [vmem:[#allocation2 + $0x1c0] sm:$0xff]  ;;  %v110_v60 = vld [vmem:[#allocation2 + $0x1d0] sm:$0xff] }
  0x3e   :  { %576 = vmatpush1.bf16.msra.mxu0 %v575_v43  ;;  %v378_v43 = vld [vmem:[#allocation5 + $0x40] sm:$0xff]  ;;  %v111_v52 = vld [vmem:[#allocation2 + $0x1d8] sm:$0xff]  ;;  %v693_v56 = vpack.c.bf16 %v385_v49, %v383_v48  ;;  %v387_v61 = vld [vmem:[#allocation5 + $0x88] sm:$0xff]  ;;  %v611_v2 = vpack.c.bf16 %v110_v60, %v108_v55 }
  0x3f   :  { %578 = vmatprep.subr.bf16.mxu0 %v577_v44  ;;  %v380_v44 = vld [vmem:[#allocation5 + $0x50] sm:$0xff]  ;;  %v382_v57 = vld [vmem:[#allocation5 + $0x60] sm:$0xff]  ;;  %v389_v62 = vld [vmem:[#allocation5 + $0x98] sm:$0xff] }
  0x40   :  { %688 = vmatpush1.bf16.msra.mxu1 %v687_v38  ;;  %v113_v63 = vld [vmem:[#allocation2 + $0x1e8] sm:$0xff]  ;;  %v112_v3 = vld [vmem:[#allocation2 + $0x1e0] sm:$0xff]  ;;  %v697_v5 = vpack.c.bf16 %v389_v62, %v387_v61  ;;  %v114_v9 = vld [vmem:[#allocation2 + $0x1f0] sm:$0xff] }
  0x41   :  { %690 = vmatprep.subr.bf16.mxu1 %v689_v41  ;;  %v391_v10 = vld [vmem:[#allocation5 + $0xa8] sm:$0xff]  ;;  %v393_v11 = vld [vmem:[#allocation5 + $0xb8] sm:$0xff]  ;;  %v615_v15 = vpack.c.bf16 %v114_v9, %v112_v3  ;;  %v390_v17 = vld [vmem:[#allocation5 + $0xa0] sm:$0xff] }
  0x42   :  { %580 = vmatpush1.bf16.msra.mxu0 %v579_v51  ;;  %v109_v51 = vld [vmem:[#allocation2 + $0x1c8] sm:$0xff]  ;;  %v701_v47 = vpack.c.bf16 %v393_v11, %v391_v10  ;;  %v392_v18 = vld [vmem:[#allocation5 + $0xb0] sm:$0xff]  ;;  %v116_v20 = vld [vmem:[#allocation2 + $0x200] sm:$0xff] }
  0x43   :  { %582 = vmatprep.subr.bf16.mxu0 %v581_v53  ;;  %v691_v53 = vpack.c.bf16 %v380_v44, %v378_v43  ;;  %v118_v21 = vld [vmem:[#allocation2 + $0x210] sm:$0xff]  ;;  %v121_v22 = vld [vmem:[#allocation2 + $0x228] sm:$0xff]  ;;  %v397_v25 = vld [vmem:[#allocation5 + $0xd8] sm:$0xff]  ;;  %v703_v26 = vpack.c.bf16 %v392_v18, %v390_v17 }
  0x44   :  { %v395_v24 = vld [vmem:[#allocation5 + $0xc8] sm:$0xff]  ;;  %v619_v27 = vpack.c.bf16 %v118_v21, %v116_v20  ;;  %v394_v29 = vld [vmem:[#allocation5 + $0xc0] sm:$0xff]  ;;  %v396_v30 = vld [vmem:[#allocation5 + $0xd0] sm:$0xff] }
  0x45   :  { %692 = vmatpush1.bf16.msra.mxu1 %v691_v53  ;;  %v122_v32 = vld [vmem:[#allocation2 + $0x230] sm:$0xff]  ;;  %v705_v33 = vpack.c.bf16 %v397_v25, %v395_v24  ;;  %v399_v35 = vld [vmem:[#allocation5 + $0xe8] sm:$0xff]  ;;  %v401_v36 = vld [vmem:[#allocation5 + $0xf8] sm:$0xff] }
  0x46   :  { %584 = vmatpush1.bf16.msra.mxu0 %v583_v58  ;;  %v384_v58 = vld [vmem:[#allocation5 + $0x70] sm:$0xff]  ;;  %694 = vmatprep.subr.bf16.mxu1 %v693_v56  ;;  %v125_v37 = vld [vmem:[#allocation2 + $0x248] sm:$0xff]  ;;  %v127_v38 = vld [vmem:[#allocation2 + $0x258] sm:$0xff]  ;;  %v709_v43 = vpack.c.bf16 %v401_v36, %v399_v35 }
  0x47   :  { %586 = vmatprep.subr.bf16.mxu0 %v585_v59  ;;  %v609_v59 = vpack.c.bf16 %v111_v52, %v109_v51  ;;  %v124_v41 = vld [vmem:[#allocation2 + $0x240] sm:$0xff]  ;;  %v625_v46 = vpack.c.bf16 %v127_v38, %v125_v37  ;;  %v126_v48 = vld [vmem:[#allocation2 + $0x250] sm:$0xff]  ;;  %v403_v49 = vld [vmem:[#allocation5 + $0x108] sm:$0xff] }
  0x48   :  { %v398_v44 = vld [vmem:[#allocation5 + $0xe0] sm:$0xff]  ;;  %v405_v51 = vld [vmem:[#allocation5 + $0x118] sm:$0xff]  ;;  %v129_v52 = vld [vmem:[#allocation2 + $0x268] sm:$0xff] }
  0x49   :  { %v131_v53 = vld [vmem:[#allocation2 + $0x278] sm:$0xff]  ;;  %v128_v55 = vld [vmem:[#allocation2 + $0x260] sm:$0xff]  ;;  %v713_v56 = vpack.c.bf16 %v405_v51, %v403_v49  ;;  %v130_v60 = vld [vmem:[#allocation2 + $0x270] sm:$0xff] }
  0x4a   :  { %588 = vmatpush1.bf16.msra.mxu0 %v587_v0  ;;  %v115_v0 = vld [vmem:[#allocation2 + $0x1f8] sm:$0xff]  ;;  %v407_v61 = vld [vmem:[#allocation5 + $0x128] sm:$0xff]  ;;  %v132_v3 = vld [vmem:[#allocation2 + $0x280] sm:$0xff] }
  0x4b   :  { %590 = vmatprep.subr.bf16.mxu0 %v589_v1  ;;  %v695_v1 = vpack.c.bf16 %v384_v58, %v382_v57  ;;  %v613_v8 = vpack.c.bf16 %v115_v0, %v113_v63  ;;  %v402_v57 = vld [vmem:[#allocation5 + $0x100] sm:$0xff]  ;;  %v404_v58 = vld [vmem:[#allocation5 + $0x110] sm:$0xff]  ;;  %v409_v62 = vld [vmem:[#allocation5 + $0x138] sm:$0xff] }
  0x4c   :  { %v133_v63 = vld [vmem:[#allocation2 + $0x288] sm:$0xff]  ;;  %v135_v0 = vld [vmem:[#allocation2 + $0x298] sm:$0xff]  ;;  %v717_v4 = vpack.c.bf16 %v409_v62, %v407_v61  ;;  %v410_v17 = vld [vmem:[#allocation5 + $0x140] sm:$0xff] }
  0x4d   :  { %696 = vmatpush1.bf16.msra.mxu1 %v695_v1  ;;  %v715_v1 = vpack.c.bf16 %v404_v58, %v402_v57  ;;  %v411_v9 = vld [vmem:[#allocation5 + $0x148] sm:$0xff]  ;;  %v413_v10 = vld [vmem:[#allocation5 + $0x158] sm:$0xff]  ;;  %v412_v18 = vld [vmem:[#allocation5 + $0x150] sm:$0xff] }
  0x4e   :  { %592 = vmatpush1.bf16.msra.mxu0 %v591_v6  ;;  %v386_v6 = vld [vmem:[#allocation5 + $0x80] sm:$0xff]  ;;  %698 = vmatprep.subr.bf16.mxu1 %v697_v5  ;;  %v137_v11 = vld [vmem:[#allocation2 + $0x2a8] sm:$0xff]  ;;  %v138_v20 = vld [vmem:[#allocation2 + $0x2b0] sm:$0xff]  ;;  %v723_v25 = vpack.c.bf16 %v412_v18, %v410_v17 }
  0x4f   :  { %594 = vmatprep.subr.bf16.mxu0 %v593_v7  ;;  %v388_v7 = vld [vmem:[#allocation5 + $0x90] sm:$0xff]  ;;  %v406_v5 = vld [vmem:[#allocation5 + $0x120] sm:$0xff]  ;;  %v415_v21 = vld [vmem:[#allocation5 + $0x168] sm:$0xff] }
  0x50   :  { %v699_v14 = vpack.c.bf16 %v388_v7, %v386_v6  ;;  %v408_v6 = vld [vmem:[#allocation5 + $0x130] sm:$0xff]  ;;  %v633_v7 = vpack.c.bf16 %v135_v0, %v133_v63  ;;  %v143_v24 = vld [vmem:[#allocation2 + $0x2d8] sm:$0xff]  ;;  %v144_v38 = vld [vmem:[#allocation2 + $0x2e0] sm:$0xff] }
  0x51   :  { %v155_v49 = vld [vmem:[#allocation2 + $0x338] sm:$0xff]  ;;  %v156_v58 = vld [vmem:[#allocation2 + $0x340] sm:$0xff] }
  0x52   :  { %596 = vmatpush1.bf16.msra.mxu0 %v595_v12  ;;  %v117_v12 = vld [vmem:[#allocation2 + $0x208] sm:$0xff]  ;;  %700 = vmatpush1.bf16.msra.mxu1 %v699_v14  ;;  %v163_v61 = vld [vmem:[#allocation2 + $0x378] sm:$0xff]  ;;  %v160_v0 = vld [vmem:[#allocation2 + $0x360] sm:$0xff] }
  0x53   :  { %598 = vmatprep.subr.bf16.mxu0 %v597_v13  ;;  %v119_v13 = vld [vmem:[#allocation2 + $0x218] sm:$0xff]  ;;  %702 = vmatprep.subr.bf16.mxu1 %v701_v47  ;;  %v721_v47 = vpack.c.bf16 %v413_v10, %v411_v9  ;;  %v172_v18 = vld [vmem:[#allocation2 + $0x3c0] sm:$0xff] }
  0x54   :  { %v617_v19 = vpack.c.bf16 %v119_v13, %v117_v12  ;;  %v139_v12 = vld [vmem:[#allocation2 + $0x2b8] sm:$0xff]  ;;  %v719_v13 = vpack.c.bf16 %v408_v6, %v406_v5  ;;  %v164_v6 = vld [vmem:[#allocation2 + $0x380] sm:$0xff] }
  0x55   :  { %v171_v9 = vld [vmem:[#allocation2 + $0x3b8] sm:$0xff] }
  0x56   :  { %600 = vmatpush1.bf16.msra.mxu0 %v599_v23  ;;  %v123_v23 = vld [vmem:[#allocation2 + $0x238] sm:$0xff]  ;;  %704 = vmatpush1.bf16.msra.mxu1 %v703_v26 }
  0x57   :  { %602 = vmatprep.subr.bf16.mxu0 %v601_v28  ;;  %v120_v28 = vld [vmem:[#allocation2 + $0x220] sm:$0xff]  ;;  %v621_v31 = vpack.c.bf16 %v123_v23, %v121_v22  ;;  %706 = vmatprep.subr.bf16.mxu1 %v705_v33  ;;  %v417_v22 = vld [vmem:[#allocation5 + $0x178] sm:$0xff]  ;;  %v141_v23 = vld [vmem:[#allocation2 + $0x2c8] sm:$0xff] }
  0x58   :  { %v623_v40 = vpack.c.bf16 %v122_v32, %v120_v28  ;;  %v414_v28 = vld [vmem:[#allocation5 + $0x160] sm:$0xff]  ;;  %v145_v32 = vld [vmem:[#allocation2 + $0x2e8] sm:$0xff]  ;;  %v147_v33 = vld [vmem:[#allocation2 + $0x2f8] sm:$0xff] }
  0x59   :  { %v645_v37 = vpack.c.bf16 %v147_v33, %v145_v32  ;;  %v423_v32 = vld [vmem:[#allocation5 + $0x1a8] sm:$0xff]  ;;  %v425_v33 = vld [vmem:[#allocation5 + $0x1b8] sm:$0xff] }
  0x5a   :  { %604 = vmatpush1.bf16.msra.mxu0 %v603_v39  ;;  %v707_v39 = vpack.c.bf16 %v396_v30, %v394_v29  ;;  %v641_v29 = vpack.c.bf16 %v143_v24, %v141_v23  ;;  %v140_v30 = vld [vmem:[#allocation2 + $0x2c0] sm:$0xff] }
  0x5b   :  { %606 = vmatprep.subr.bf16.mxu0 %v605_v45  ;;  %v400_v45 = vld [vmem:[#allocation5 + $0xf0] sm:$0xff]  ;;  %v176_v24 = vld [vmem:[#allocation2 + $0x3e0] sm:$0xff] }
  0x5c   :  { %708 = vmatpush1.bf16.msra.mxu1 %v707_v39  ;;  %v146_v39 = vld [vmem:[#allocation2 + $0x2f0] sm:$0xff] }
  0x5d   :  { %710 = vmatprep.subr.bf16.mxu1 %v709_v43  ;;  %v647_v43 = vpack.c.bf16 %v146_v39, %v144_v38  ;;  %v427_v39 = vld [vmem:[#allocation5 + $0x1c8] sm:$0xff] }
  0x5e   :  { %608 = vmatpush1.bf16.msra.mxu0 %v607_v54  ;;  %v711_v54 = vpack.c.bf16 %v400_v45, %v398_v44  ;;  %v148_v45 = vld [vmem:[#allocation2 + $0x300] sm:$0xff] }
  0x5f   :  { %610 = vmatprep.subr.bf16.mxu0 %v609_v59  ;;  %v629_v59 = vpack.c.bf16 %v131_v53, %v129_v52  ;;  %v152_v53 = vld [vmem:[#allocation2 + $0x320] sm:$0xff] }
  0x60   :  { %712 = vmatpush1.bf16.msra.mxu1 %v711_v54  ;;  %v154_v54 = vld [vmem:[#allocation2 + $0x330] sm:$0xff] }
  0x61   :  { %714 = vmatprep.subr.bf16.mxu1 %v713_v56  ;;  %v655_v56 = vpack.c.bf16 %v154_v54, %v152_v53  ;;  %v184_v53 = vsub.s32 0, %v901_v34  ;;  %v180_v54 = vld [vmem:[%s951_s2] sm:$0x3]  ;;  %s808_s2 = scalar_lea.vmem %s538_s25, 64 }
  0x62   :  { %612 = vmatpush1.bf16.msra.mxu0 %v611_v2  ;;  %v631_v2 = vpack.c.bf16 %v130_v60, %v128_v55  ;;  %v159_v55 = vld [vmem:[#allocation2 + $0x358] sm:$0xff]  ;;  %v161_v60 = vld [vmem:[#allocation2 + $0x368] sm:$0xff]  ;;  %p809_p2 = scmp.ne.s32.totalorder %s538_s25, %s808_s2  ;;  %p814_p4 = scmp.lt.s32.totalorder %s808_s2, %s808_s2 }
  0x63   :  { %614 = vmatprep.subr.bf16.mxu0 %v613_v8  ;;  %v134_v8 = vld [vmem:[#allocation2 + $0x290] sm:$0xff]  ;;  %v661_v63 = vpack.c.bf16 %v163_v61, %v161_v60 }
  0x64   :  { %716 = vmatpush1.bf16.msra.mxu1 %v715_v1  ;;  %v635_v14 = vpack.c.bf16 %v134_v8, %v132_v3  ;;  %v162_v1 = vld [vmem:[#allocation2 + $0x370] sm:$0xff]  ;;  %v167_v3 = vld [vmem:[#allocation2 + $0x398] sm:$0xff]  ;;  %v169_v8 = vld [vmem:[#allocation2 + $0x3a8] sm:$0xff]  ;;  %p815_p5 = por %p814_p4, %p813_p3 }
  0x65   :  { %718 = vmatprep.subr.bf16.mxu1 %v717_v4  ;;  %v663_v4 = vpack.c.bf16 %v162_v1, %v160_v0 }
  0x66   :  { %616 = vmatpush1.bf16.msra.mxu0 %v615_v15  ;;  %v136_v15 = vld [vmem:[#allocation2 + $0x2a0] sm:$0xff]  ;;  %p816_p6 = pnand %p815_p5, %p809_p2 }
  0x67   :  { %618 = vmatprep.subr.bf16.mxu0 %v617_v19  ;;  %v637_v19 = vpack.c.bf16 %v139_v12, %v137_v11  ;;  %v639_v26 = vpack.c.bf16 %v138_v20, %v136_v15  ;;  %v669_v11 = vpack.c.bf16 %v171_v9, %v169_v8  ;;  %v168_v12 = vld [vmem:[#allocation2 + $0x3a0] sm:$0xff]  ;;  %v175_v15 = vld [vmem:[#allocation2 + $0x3d8] sm:$0xff]  ;;  %v177_v20 = vld [vmem:[#allocation2 + $0x3e8] sm:$0xff] }
  0x68   :  { %720 = vmatpush1.bf16.msra.mxu1 %v719_v13  ;;  %v170_v13 = vld [vmem:[#allocation2 + $0x3b0] sm:$0xff] }
  0x69   :  { %279 = vmatmul.mubr.f32.vlgmr.msra.gmra.mrb[0].mxu0 %v913_v50  ;;  %v627_v50 = vpack.c.bf16 %v126_v48, %v124_v41  ;;  %722 = vmatprep.subr.bf16.mxu1 %v721_v47  ;;  %v151_v41 = vld [vmem:[#allocation2 + $0x318] sm:$0xff]  ;;  %v153_v48 = vld [vmem:[#allocation2 + $0x328] sm:$0xff]  ;;  %v671_v47 = vpack.c.bf16 %v170_v13, %v168_v12 }
  0x6a   :  { %620 = vmatpush1.bf16.msra.mxu0 %v619_v27  ;;  %349 = vmatprep.mubr.f32.mxu0 %v209_v42  ;;  %v725_v27 = vpack.c.bf16 %v417_v22, %v415_v21  ;;  %v416_v42 = vld [vmem:[#allocation5 + $0x170] sm:$0xff]  ;;  %v653_v52 = vpack.c.bf16 %v155_v49, %v153_v48  ;;  %v179_v21 = vld [vmem:[#allocation2 + $0x3f8] sm:$0xff]  ;;  %v430_v49 = vld [vmem:[#allocation5 + $0x1e0] sm:$0xff] }
  0x6b   :  { %622 = vmatprep.subr.bf16.mxu0 %v621_v31  ;;  %v142_v31 = vld [vmem:[#allocation2 + $0x2d0] sm:$0xff]  ;;  %v727_v35 = vpack.c.bf16 %v416_v42, %v414_v28  ;;  %v677_v23 = vpack.c.bf16 %v179_v21, %v177_v20  ;;  %v421_v28 = vld [vmem:[#allocation5 + $0x198] sm:$0xff] }
  0x6c   :  { %724 = vmatpush1.bf16.msra.mxu1 %v723_v25  ;;  %v643_v36 = vpack.c.bf16 %v142_v31, %v140_v30  ;;  %v178_v25 = vld [vmem:[#allocation2 + $0x3f0] sm:$0xff] }
  0x6d   :  { %726 = vmatprep.subr.bf16.mxu1 %v725_v27  ;;  %v419_v27 = vld [vmem:[#allocation5 + $0x188] sm:$0xff]  ;;  %v420_v30 = vld [vmem:[#allocation5 + $0x190] sm:$0xff] }
  0x6e   :  { %624 = vmatpush1.bf16.msra.mxu0 %v623_v40  ;;  %v149_v40 = vld [vmem:[#allocation2 + $0x308] sm:$0xff]  ;;  %v729_v42 = vpack.c.bf16 %v421_v28, %v419_v27 }
  0x6f   :  { %626 = vmatprep.subr.bf16.mxu0 %v625_v46  ;;  %v649_v44 = vpack.c.bf16 %v151_v41, %v149_v40  ;;  %v150_v46 = vld [vmem:[#allocation2 + $0x310] sm:$0xff]  ;;  %v429_v40 = vld [vmem:[#allocation5 + $0x1d8] sm:$0xff]  ;;  %v426_v41 = vld [vmem:[#allocation5 + $0x1c0] sm:$0xff] }
  0x70   :  { %728 = vmatpush1.bf16.msra.mxu1 %v727_v35  ;;  %v651_v51 = vpack.c.bf16 %v150_v46, %v148_v45  ;;  %v733_v35 = vpack.c.bf16 %v425_v33, %v423_v32  ;;  %v433_v45 = vld [vmem:[#allocation5 + $0x1f8] sm:$0xff] }
  0x71   :  { %730 = vmatprep.subr.bf16.mxu1 %v729_v42 }
  0x72   :  { %628 = vmatpush1.bf16.msra.mxu0 %v627_v50  ;;  %v157_v50 = vld [vmem:[#allocation2 + $0x348] sm:$0xff] }
  0x73   :  { %630 = vmatprep.subr.bf16.mxu0 %v629_v59  ;;  %v657_v57 = vpack.c.bf16 %v159_v55, %v157_v50  ;;  %v158_v59 = vld [vmem:[#allocation2 + $0x350] sm:$0xff]  ;;  %v188_v50 = vsub.s32 1, %v901_v34  ;;  %v185_v55 = vrot.slane %v180_v54, %v184_v53 }
  0x74   :  { %v659_v62 = vpack.c.bf16 %v158_v59, %v156_v58 }
  0x76   :  { %632 = vmatpush1.bf16.msra.mxu0 %v631_v2  ;;  %v165_v2 = vld [vmem:[#allocation2 + $0x388] sm:$0xff] }
  0x77   :  { %634 = vmatprep.subr.bf16.mxu0 %v633_v7  ;;  %v665_v5 = vpack.c.bf16 %v167_v3, %v165_v2  ;;  %v166_v7 = vld [vmem:[#allocation2 + $0x390] sm:$0xff] }
  0x78   :  { %v667_v10 = vpack.c.bf16 %v166_v7, %v164_v6 }
  0x7a   :  { %636 = vmatpush1.bf16.msra.mxu0 %v635_v14  ;;  %v173_v14 = vld [vmem:[#allocation2 + $0x3c8] sm:$0xff] }
  0x7b   :  { %638 = vmatprep.subr.bf16.mxu0 %v637_v19  ;;  %v673_v17 = vpack.c.bf16 %v175_v15, %v173_v14  ;;  %v174_v19 = vld [vmem:[#allocation2 + $0x3d0] sm:$0xff] }
  0x7c   :  { %v675_v22 = vpack.c.bf16 %v174_v19, %v172_v18 }
  0x7e   :  { %640 = vmatpush1.bf16.msra.mxu0 %v639_v26  ;;  %v679_v26 = vpack.c.bf16 %v178_v25, %v176_v24 }
  0x7f   :  { %642 = vmatprep.subr.bf16.mxu0 %v641_v29  ;;  %v418_v29 = vld [vmem:[#allocation5 + $0x180] sm:$0xff] }
  0x80   :  { %v731_v31 = vpack.c.bf16 %v420_v30, %v418_v29 }
  0x82   :  { %644 = vmatpush1.bf16.msra.mxu0 %v643_v36  ;;  %732 = vmatpush1.bf16.msra.mxu1 %v731_v31  ;;  %v422_v36 = vld [vmem:[#allocation5 + $0x1a0] sm:$0xff] }
  0x83   :  { %646 = vmatprep.subr.bf16.mxu0 %v645_v37  ;;  %v424_v37 = vld [vmem:[#allocation5 + $0x1b0] sm:$0xff]  ;;  %734 = vmatprep.subr.bf16.mxu1 %v733_v35 }
  0x84   :  { %v735_v38 = vpack.c.bf16 %v424_v37, %v422_v36 }
  0x86   :  { %648 = vmatpush1.bf16.msra.mxu0 %v647_v43  ;;  %736 = vmatpush1.bf16.msra.mxu1 %v735_v38  ;;  %v428_v43 = vld [vmem:[#allocation5 + $0x1d0] sm:$0xff] }
  0x87   :  { %650 = vmatprep.subr.bf16.mxu0 %v649_v44  ;;  %v431_v44 = vld [vmem:[#allocation5 + $0x1e8] sm:$0xff]  ;;  %v739_v46 = vpack.c.bf16 %v428_v43, %v426_v41 }
  0x88   :  { %v741_v48 = vpack.c.bf16 %v433_v45, %v431_v44 }
  0x8a   :  { %652 = vmatpush1.bf16.msra.mxu0 %v651_v51  ;;  %v432_v51 = vld [vmem:[#allocation5 + $0x1f0] sm:$0xff] }
  0x8b   :  { %654 = vmatprep.subr.bf16.mxu0 %v653_v52  ;;  %v743_v52 = vpack.c.bf16 %v432_v51, %v430_v49 }
  0x8e   :  { %656 = vmatpush1.bf16.msra.mxu0 %v655_v56  ;;  %v189_v56 = vrot.slane %v180_v54, %v188_v50 }
  0x8f   :  { %658 = vmatprep.subr.bf16.mxu0 %v657_v57 }
  0x92   :  { %660 = vmatpush1.bf16.msra.mxu0 %v659_v62 }
  0x93   :  { %662 = vmatprep.subr.bf16.mxu0 %v661_v63 }
  0x96   :  { %664 = vmatpush1.bf16.msra.mxu0 %v663_v4 }
  0x97   :  { %666 = vmatprep.subr.bf16.mxu0 %v665_v5 }
  0x9a   :  { %668 = vmatpush1.bf16.msra.mxu0 %v667_v10 }
  0x9b   :  { %670 = vmatprep.subr.bf16.mxu0 %v669_v11 }
  0x9e   :  { %672 = vmatpush1.bf16.msra.mxu0 %v671_v47 }
  0x9f   :  { %674 = vmatprep.subr.bf16.mxu0 %v673_v17 }
  0xa2   :  { %676 = vmatpush1.bf16.msra.mxu0 %v675_v22 }
  0xa3   :  { %678 = vmatprep.subr.bf16.mxu0 %v677_v23 }
  0xa6   :  { %680 = vmatpush1.bf16.msra.mxu0 %v679_v26 }
  0xa9   :  { %350 = vmatmul.mubr.f32.vlgmr.msra.gmra.mrb[0].mxu0 %v920_v16  ;;  %v737_v16 = vpack.c.bf16 %v429_v40, %v427_v39 }
  0xab   :  { %738 = vmatprep.subr.bf16.mxu1 %v737_v16 }
  0xac   :  { %740 = vmatpush1.bf16.msra.mxu1 %v739_v46 }
  0xad   :  { %742 = vmatprep.subr.bf16.mxu1 %v741_v48 }
  0xb0   :  { %744 = vmatpush1.bf16.msra.mxu1 %v743_v52 }
 0x17c   :  { %v351_v57 = vpop.f32.mrb[0].mxu0 }
 0x17d   :  { %v745_v58 = vadd.f32 %v351_v57, %v185_v55  ;;  %v353_v59 = vpop.f32.mrb[1].mxu0 }
 0x17e   :  { %v746_v60 = vadd.f32 %v353_v59, %v189_v56 }
 0x17f   :  { %756 = vtanh.f32 %v745_v58 }
 0x180   :  { %758 = vtanh.f32 %v746_v60 }
 0x189   :  { %v757_v61 = vpop.eup %756 }
 0x18a   :  { %v759_v62 = vpop.eup %758 }
 0x18b   :  { %510 = vmatprep.mubr.f32.mxu1 %v759_v62  ;;  %v360_v63 = vcombine.low %v757_v61, %v759_v62 }
 0x18c   :  { %511 = vmatmul.mubr.f32.vlgmr.msra.gmra.mrb[0].mxu1 %v757_v61 }
 0x18d   :  { %551 = vst.sshfl [vmem:[#allocation7] sm:$0x33 pattern:$0x76325410] %v360_v63 }
 0x18e   :  { %819 = shalt.err (!%p816_p6)
}
 0x18f   :  { %s820_s28 = scalar_lea.hbm %s954_s5, 64 }
 0x190   :  { %p821_p7 = scmp.ne.s32.totalorder %s954_s5, %s820_s28  ;;  %p824_p8 = scmp.lt.u32.totalorder %s820_s28, %s954_s5 }
 0x192   :  { %p826_p9 = pnand %p824_p8, %p821_p7 }
 0x194   :  { %829 = shalt.err (!%p826_p9)
}
 0x195   :  { %540 = dma.vmem_to_hbm [thread:$0]  %s538_s25, 64, %s954_s5, [#allocation4]   ;;  %v434_v34 = vld [vmem:[%s953_s4] sm:$0x3] }
 0x196   :  { %v439_v0 = vrot.slane %v434_v34, %v184_v53  ;;  %v443_v1 = vrot.slane %v434_v34, %v188_v50 }
 0x25f   :  { %v512_v2 = vpop.f32.mrb[0].mxu1 }
 0x260   :  { %v513_v3 = vadd.f32 %v512_v2, %v439_v0  ;;  %v514_v4 = vpop.f32.mrb[1].mxu1 }
 0x261   :  { %v515_v5 = vadd.f32 %v514_v4, %v443_v1 }
 0x262   :  { %760 = vtanh.f32 %v513_v3 }
 0x263   :  { %762 = vtanh.f32 %v515_v5 }
 0x26c   :  { %v761_v6 = vpop.eup %760 }
 0x26d   :  { %v763_v7 = vpop.eup %762 }
 0x26e   :  { %v521_v8 = vcombine.low %v761_v6, %v763_v7 }
 0x270   :  { %552 = vst.sshfl [vmem:[%s955_s6] sm:$0x33 pattern:$0x76325410] %v521_v8 }
 0x271   :  { %834 = dma.done.wait [#allocation4], 64  }
 0x272   :  { %835 = vsyncadd [#allocation4], 4294967232 }
 0x273   :  { %548 = vsyncpa [#allocation3], 1 }
 0x274   :  { %549 = vsyncpa [#allocation6], 1 }
 0x275   :  { %550 = vsyncpa [#allocation4], 1 }

// kernel: automap_basic_2_forward.3
= control target key start
LH: loop header
LB: loop body
LE: loop exit
PB: predicated region body
PF: predicated region fallthrough
CT: control target
= control target key end

     0   :  { %s7238_s29 = smov 0   ;;  %s10781_s0 = inlined_call_operand.vmem [shape: f32[2,1,256], index: 0, kind: input, shape index: {}]   ;;  %s10782_s1 = inlined_call_operand.vmem [shape: f32[74,256], index: 1, kind: input, shape index: {}]   ;;  %s10783_s2 = inlined_call_operand.vmem [shape: f32[64,25], index: 2, kind: input, shape index: {}]   ;;  %s10784_s3 = inlined_call_operand.vmem [shape: f32[64,1], index: 3, kind: input, shape index: {}]   ;;  %s10785_s4 = inlined_call_operand.vmem [shape: bf16[64,1600], index: 4, kind: input, shape index: {}]   ;;  %s10786_s5 = inlined_call_operand.vmem [shape: f32[64,1], index: 5, kind: input, shape index: {}]   ;;  %s10787_s6 = inlined_call_operand.vmem [shape: bf16[49,64], index: 6, kind: input, shape index: {}]   ;;  %s10788_s7 = inlined_call_operand.<no memory space> [shape: f32[1,1], index: 7, kind: input, shape index: {}]   ;;  %s10789_s8 = inlined_call_operand.vmem [shape: f32[2,1,256], index: 8, kind: output, shape index: {}]  }
   0x1   :  { %10915 = sst [smem:[#allocation127_spill]] %s10781_s0  ;;  %v13_v0 = vstv %s10788_s7 }
   0x2   :  { %10916 = sst [smem:[#allocation128_spill]] %s10783_s2  ;;  %14 = vst [vmem:[#allocation7] sm:$0x1] %v13_v0 }
   0x3   :  { %10917 = sst [smem:[#allocation129_spill]] %s10784_s3 }
   0x4   :  { %10918 = sst [smem:[#allocation130_spill]] %s10786_s5 }
   0x5   :  { %10919 = sst [smem:[#allocation131_spill]] %s10787_s6 }
   0x6   :  { %10920 = sst [smem:[#allocation132_spill]] %s10789_s8 }
   0x7 LB: > { %10921 = sst [smem:[#allocation8_spill]] %s7130_s29  ;;  %s6673_s30 = sadd.s32 4294967295, %s7130_s29   ;;  %s7130_s29 = sphi %s7238_s29, %s20_s29  }
   0x8   : > { %p6677_p0 = scmp.ge.s32.totalorder %s7130_s29, 1  ;;  %p263_p1 = scmp.lt.s32.totalorder %s7130_s29, 3 }
   0xa   : > { %p264_p2 = pnand %p6677_p0, %p263_p1 }
   0xc   : > { %267 = sbr.rel (%p264_p2) target bundleno = 2143 (0x85f), region = 52 }
  0x13   : > { %v345_v1 = vld [vmem:[%s10782_s1] ss:$8 sm:$0x3]  ;;  %s10836_s7 = smov 94   ;;  %v10852_v3 = vmov 0   ;;  %s10793_s13 = smov 96   ;;  %v304_v12 = vlaneseq }
  0x14   : > { %347 = vrot.lane.b32.xlu0 %v345_v1, %s10836_s7  ;;  %v6681_v2 = vld [vmem:[%s10782_s1 + $0x2] ss:$8 sm:$0x3]  ;;  %7042 = vset.pattern.permute.xlu1 %v10852_v3  ;;  %v6680_v4 = vld [vmem:[%s10782_s1 + $0x1] ss:$8 sm:$0x3] }
  0x15   : > { %388 = vrot.lane.b32.xlu1 %v6681_v2, %s10793_s13  ;;  %7041 = vset.pattern.permute.xlu0 %v10852_v3  ;;  %v6682_v5 = vld [vmem:[%s10782_s1 + $0x3] ss:$8 sm:$0x3]  ;;  %s10790_s18 = smov 95   ;;  %s10795_s19 = smov 97   ;;  %vm306_vm0 = vcmp.lt.s32.totalorder %v304_v12, 128 }
  0x16   : > { %v6683_v6 = vld [vmem:[%s10782_s1 + $0x4] ss:$8 sm:$0x3]  ;;  %v6684_v7 = vld [vmem:[%s10782_s1 + $0x5] ss:$8 sm:$0x3] }
  0x17   : > { %s10797_s24 = smov 98   ;;  %s10799_s25 = smov 110   ;;  %v6685_v8 = vld [vmem:[%s10782_s1 + $0x6] ss:$8 sm:$0x3]  ;;  %v7144_v15 = vmov 0.0  }
  0x18   : > { %367 = vrot.lane.b32.xlu0 %v6680_v4, %s10790_s18  ;;  %v6686_v9 = vld [vmem:[%s10782_s1 + $0x7] ss:$8 sm:$0x3]  ;;  %s10801_s10 = smov 111   ;;  %s10803_s11 = smov 112   ;;  %329 = vst [vmem:[#allocation5 + $0x60] sm:$0xff] %v7144_v15  ;;  %989 = vmatprep.mubr.f32.mxu0 %v7144_v15 }
  0x19   : > { %409 = vrot.lane.b32.xlu1 %v6682_v5, %s10795_s19  ;;  %v6687_v10 = vld [vmem:[%s10782_s1 + $0x10] ss:$8 sm:$0x3]  ;;  %v6688_v11 = vld [vmem:[%s10782_s1 + $0x11] ss:$8 sm:$0x3] }
  0x1a   : > { %s10805_s17 = smov 113   ;;  %s10807_s20 = smov 114   ;;  %v6689_v13 = vld [vmem:[%s10782_s1 + $0x12] ss:$8 sm:$0x3]  ;;  %326 = vst [vmem:[#allocation5] sm:$0xff] %v7144_v15 }
  0x1b   : > { %v6690_v14 = vld [vmem:[%s10782_s1 + $0x13] ss:$8 sm:$0x3]  ;;  %p295_p3 = scmp.lt.s32.totalorder %s6673_s30, 1  ;;  %s10809_s27 = smov 126   ;;  %327 = vst [vmem:[#allocation5 + $0x20] sm:$0xff] %v7144_v15 }
  0x1c   : > { %430 = vrot.lane.b32.xlu0 %v6683_v6, %s10797_s24  ;;  %308 = vst.msk [vmem:[#allocation2] sm:$0x1] %vm306_vm0, %v7144_v15  ;;  %309 = vst.msk [vmem:[#allocation2 + $0x3] sm:$0x1] %vm306_vm0, %v7144_v15  ;;  %s10811_s28 = smov 127   ;;  %vm7311_vm1 = vcmp.lt.s32.totalorder %v304_v12, 256 }
  0x1d   : > { %451 = vrot.lane.b32.xlu1 %v6684_v7, %s10799_s25  ;;  %s11361_s30 = smov (!%p295_p3, %s6673_s30), 1  ;;  %328 = vst [vmem:[#allocation5 + $0x40] sm:$0xff] %v7144_v15  ;;  %336 = vst [vmem:[#allocation5 + $0x78] sm:$0xff] %v7144_v15  ;;  %v6692_v16 = vld [vmem:[%s10782_s1 + $0x15] ss:$8 sm:$0x3] }
  0x1e   : > { %10922 = sst [smem:[#allocation9_spill]] %s11361_s30  ;;  %337 = vst [vmem:[#allocation5 + $0x98] sm:$0xff] %v7144_v15  ;;  %338 = vst [vmem:[#allocation5 + $0xb8] sm:$0xff] %v7144_v15  ;;  %v6693_v17 = vld [vmem:[%s10782_s1 + $0x16] ss:$8 sm:$0x3] }
  0x1f   : > { %339 = vst [vmem:[#allocation5 + $0xd8] sm:$0x1] %v7144_v15  ;;  %s10792_s16 = sshll.u32 %s11361_s30, 1  ;;  %v10923_v18 = vmov 0  ;;  %s10926_s0 = sld [smem:[#allocation127_spill]]  ;;  %v1097_v34 = vshrl.u32 %v304_v12, 7 }
  0x20   : > { %472 = vrot.lane.b32.xlu0 %v6685_v8, %s10801_s10  ;;  %v10924_v18 = vsel %vm7311_vm1, 4294967295, %v10923_v18  ;;  %v6694_v19 = vld [vmem:[%s10782_s1 + $0x17] ss:$8 sm:$0x3]  ;;  %s10822_s12 = smov 1   ;;  %s10842_s18 = smov 2  }
  0x21   : > { %493 = vrot.lane.b32.xlu1 %v6686_v9, %s10803_s11  ;;  %10925 = vst [vmem:[#allocation10_spill] sm:$0xff] %v10924_v18  ;;  %v6695_v20 = vld [vmem:[%s10782_s1 + $0x20] ss:$8 sm:$0x3]  ;;  %s10844_s23 = smov 14   ;;  %s10846_s14 = smov 15  }
  0x22   : > { %v6696_v22 = vld [vmem:[%s10782_s1 + $0x21] ss:$8 sm:$0x3]  ;;  %v6697_v23 = vld [vmem:[%s10782_s1 + $0x22] ss:$8 sm:$0x3] }
  0x23   : > { %s10834_s15 = smov 17   ;;  %v6698_v24 = vld [vmem:[%s10782_s1 + $0x23] ss:$8 sm:$0x3]  ;;  %s10832_s24 = smov 18   ;;  %v7377_v35 = vsub.s32 1, %v1097_v34 }
  0x24   : > { %514 = vrot.lane.b32.xlu0 %v6687_v10, %s10805_s17  ;;  %v6699_v25 = vld [vmem:[%s10782_s1 + $0x24] ss:$8 sm:$0x3]  ;;  %v6700_v26 = vld [vmem:[%s10782_s1 + $0x25] ss:$8 sm:$0x3] }
  0x25   : > { %535 = vrot.lane.b32.xlu1 %v6688_v11, %s10807_s20  ;;  %s298_s9 = scalar_lea.vmem %s10926_s0, %s10792_s16  ;;  %s10830_s16 = smov 30   ;;  %v6701_v27 = vld [vmem:[%s10782_s1 + $0x26] ss:$8 sm:$0x3]  ;;  %10928 = vst [vmem:[#allocation11_spill] sm:$0xff] %v7377_v35  ;;  %v7382_v37 = vsub.s32 0, %v1097_v34 }
  0x26   : > { %v340_v21 = vld [vmem:[%s298_s9] sm:$0x3]  ;;  %s10848_s9 = smov 16   ;;  %v6702_v28 = vld [vmem:[%s10782_s1 + $0x27] ss:$8 sm:$0x3] }
  0x27   : > { %343 = vst.msk [vmem:[#allocation2 + $0x1] sm:$0x3] %vm7311_vm1, %v340_v21  ;;  %s10828_s21 = smov 31   ;;  %v6703_v29 = vld [vmem:[%s10782_s1 + $0x30] ss:$8 sm:$0x3] }
  0x28   : > { %556 = vrot.lane.b32.xlu0 %v6689_v13, %s10809_s27  ;;  %s10824_s20 = smov 32   ;;  %s10927_s3 = sld [smem:[#allocation129_spill]]  ;;  %10929 = vst [vmem:[#allocation12_spill] sm:$0xff] %v7382_v37  ;;  %v6726_v39 = vld [vmem:[%s10782_s1 + $0x15] ss:$8 sm:$0x3] }
  0x29   : > { %577 = vrot.lane.b32.xlu1 %v6690_v14, %s10811_s28  ;;  %s10826_s10 = smov 33   ;;  %s10850_s19 = smov 34   ;;  %v2831_v40 = vrot.slane %v6726_v39, %v7377_v35  ;;  %v2827_v41 = vrot.slane %v6726_v39, %v7382_v37  ;;  %v1094_v43 = vld [vmem:[%s10782_s1] ss:$8 sm:$0x3]  ;;  %vm10813_vm2 = vcmask 769024  }
  0x2a   : > { %v1103_v45 = vrot.slane %v1094_v43, %v7377_v35  ;;  %v1099_v46 = vrot.slane %v1094_v43, %v7382_v37  ;;  %v7408_v47 = vld [vmem:[%s10782_s1 + $0x16] ss:$8 sm:$0x3]  ;;  %vm10815_vm3 = vcmask 785408   ;;  %vm10814_vm4 = vcmask 777216   ;;  %s10930_s25 = smov 127  }
  0x2b   : > { %v2966_v48 = vrot.slane %v7408_v47, %v7382_v37  ;;  %vm10816_vm5 = vcmask 793600   ;;  %vm10817_vm6 = vcmask 801792   ;;  %vm10818_vm7 = vcmask 900096   ;;  %v6691_v43 = vld [vmem:[%s10782_s1 + $0x14] ss:$8 sm:$0x3] }
  0x2c   : > { %605 = vrot.lane.b32.xlu0 %v6692_v16, %s10822_s12  ;;  %vm10819_vm8 = vcmask 908288   ;;  %vm10820_vm9 = vcmask 916480   ;;  %vm10821_vm10 = vcmask 924672   ;;  %vm538_vm11 = vcmask 932864   ;;  %s10931_s26 = smov 126   ;;  %s10932_s11 = smov 114  }
  0x2d   : > { %624 = vrot.lane.b32.xlu1 %v6693_v17, %s10842_s18  ;;  %vm10840_vm12 = vcmask 1031168   ;;  %vm580_vm13 = vcmask 1039360   ;;  %vm588_vm14 = vcmask 7168   ;;  %vm567_vm15 = vcmask 15360   ;;  %s10933_s13 = smov 113   ;;  %s10934_s17 = smov 112  }
  0x2e   : > { %v845_v30 = vld [vmem:[%s10927_s3] sm:$0xff]  ;;  %v846_v31 = vld [vmem:[%s10927_s3 + $0x8] sm:$0xff]  ;;  %v848_v32 = vld [vmem:[%s10927_s3 + $0x18] sm:$0xff]  ;;  %vm546_vm0 = vcmask 113664   ;;  %s10935_s27 = smov 111   ;;  %s10936_s28 = smov 110  }
  0x2f   : > { %v847_v33 = vld [vmem:[%s10927_s3 + $0x10] sm:$0xff]  ;;  %v850_v36 = vld [vmem:[%s10927_s3 + $0x28] sm:$0xff]  ;;  %v849_v38 = vld [vmem:[%s10927_s3 + $0x20] sm:$0xff]  ;;  %s10937_s22 = smov 98   ;;  %s10954_s2 = sld [smem:[#allocation128_spill]] }
  0x30   : > { %643 = vrot.lane.b32.xlu0 %v6694_v19, %s10844_s23  ;;  %v852_v42 = vld [vmem:[%s10927_s3 + $0x38] sm:$0xff]  ;;  %v851_v44 = vld [vmem:[%s10927_s3 + $0x30] sm:$0xff]  ;;  %v344_v52 = vld [vmem:[#allocation2] sm:$0x7]  ;;  %s11075_s0 = smov 15   ;;  %s11210_s8 = smov 2  }
  0x31   : > { %662 = vrot.lane.b32.xlu1 %v6695_v20, %s10846_s14  ;;  %v363_v60 = vld [vmem:[#allocation2] sm:$0x7]  ;;  %s11286_s3 = smov 1   ;;  %s11288_s29 = smov 94  }
  0x32   : > { %v384_v61 = vld [vmem:[#allocation2] sm:$0x7]  ;;  %s11294_s5 = sld [smem:[#allocation130_spill]]  ;;  %s7164_s6 = smov 125  }
  0x33   : > { %v405_v7 = vld [vmem:[#allocation2] sm:$0x7]  ;;  %s7172_s30 = smov 49  }
  0x34   : > { %681 = vrot.lane.b32.xlu0 %v6696_v22, %s10848_s9  ;;  %v426_v8 = vld [vmem:[#allocation2] sm:$0x7] }
  0x35   : > { %700 = vrot.lane.b32.xlu1 %v6697_v23, %s10834_s15  ;;  %v447_v17 = vld [vmem:[#allocation2] sm:$0x7] }
  0x36   : > { %v468_v19 = vld [vmem:[#allocation2] sm:$0x7] }
  0x38   : > { %719 = vrot.lane.b32.xlu0 %v6698_v24, %s10832_s24 }
  0x39   : > { %738 = vrot.lane.b32.xlu1 %v6699_v25, %s10830_s16 }
  0x3c   : > { %757 = vrot.lane.b32.xlu0 %v6700_v26, %s10828_s21 }
  0x3d   : > { %776 = vrot.lane.b32.xlu1 %v6701_v27, %s10824_s20 }
  0x40   : > { %795 = vrot.lane.b32.xlu0 %v6702_v28, %s10826_s10  ;;  %v489_v28 = vld [vmem:[#allocation2] sm:$0x7] }
  0x41   : > { %814 = vrot.lane.b32.xlu1 %v6703_v29, %s10850_s19  ;;  %v510_v29 = vld [vmem:[#allocation2] sm:$0x7] }
  0x44   : > { %855 = vperm.xlu0 %7041, %v845_v30  }
  0x45   : > { %860 = vperm.xlu1 %7042, %v846_v31  }
  0x48   : > { %870 = vperm.xlu0 %7041, %v848_v32  }
  0x49   : > { %865 = vperm.xlu1 %7042, %v847_v33  }
  0x4c   : > { %880 = vperm.xlu0 %7041, %v850_v36   ;;  %v531_v36 = vld [vmem:[#allocation2] sm:$0x7] }
  0x4d   : > { %875 = vperm.xlu1 %7042, %v849_v38   ;;  %v552_v38 = vld [vmem:[#allocation2] sm:$0x7] }
  0x50   : > { %2834 = vrot.lane.b32.xlu0 %v2831_v40, %s10822_s12 }
  0x51   : > { %2832 = vrot.lane.b32.xlu1 %v2827_v41, %s10822_s12 }
  0x54   : > { %890 = vperm.xlu0 %7041, %v852_v42   ;;  %v594_v42 = vld [vmem:[#allocation2 + $0x1] sm:$0x3] }
  0x55   : > { %885 = vperm.xlu1 %7042, %v851_v44  }
  0x58   : > { %1106 = vrot.lane.b32.xlu0 %v1103_v45, %s10836_s7  ;;  %v597_v45 = vmul.f32 %v6691_v43, %v594_v42 }
  0x59   : > { %1104 = vrot.lane.b32.xlu1 %v1099_v46, %s10836_s7 }
  0x5a   : > { %599 = vst.msk [vmem:[#allocation3 + $0x14] ss:$8 sm:$0x3] %vm7311_vm1, %v597_v45  ;;  %v791_v45 = vld [vmem:[#allocation2 + $0x1] sm:$0x7] }
  0x5d   : > { %2971 = vrot.lane.b32.xlu1 %v2966_v48, %s10842_s18 }
  0x86   : > { %v348_v49 = vpop.permute.xlu0 %347 }
  0x87   : > { %v349_v50 = vrot.slane %v348_v49, 7  ;;  %v389_v51 = vpop.permute.xlu1 %388 }
  0x88   : > { %v390_v53 = vrot.slane %v389_v51, 7 }
  0x89   : > { %v351_v54 = vsel %vm10813_vm2, %v349_v50, %v348_v49  ;;  %vm525_vm2 = vcmask 121856  }
  0x8a   : > { %v368_v55 = vpop.permute.xlu0 %367  ;;  %v353_v56 = vmul.f32 %v351_v54, %v344_v52  ;;  %v392_v57 = vsel %vm10815_vm3, %v390_v53, %v389_v51  ;;  %v573_v54 = vld [vmem:[#allocation2] sm:$0x7]  ;;  %vm483_vm3 = vcmask 138240  }
  0x8b   : > { %v369_v58 = vrot.slane %v368_v55, 7  ;;  %v410_v59 = vpop.permute.xlu1 %409  ;;  %v394_v2 = vmul.f32 %v392_v57, %v384_v61 }
  0x8c   : > { %v411_v62 = vrot.slane %v410_v59, 7  ;;  %355 = vrot.lane.b32.xlu0 %v353_v56, %s10850_s19 }
  0x8d   : > { %v371_v63 = vsel %vm10814_vm4, %v369_v58, %v368_v55  ;;  %v601_v55 = vld [vmem:[#allocation2 + $0x1] sm:$0x7]  ;;  %vm504_vm4 = vcmask 130048  }
  0x8e   : > { %v431_v0 = vpop.permute.xlu0 %430  ;;  %v373_v1 = vmul.f32 %v371_v63, %v363_v60  ;;  %v413_v4 = vsel %vm10816_vm5, %v411_v62, %v410_v59  ;;  %vm462_vm5 = vcmask 146432  }
  0x8f   : > { %v432_v5 = vrot.slane %v431_v0, 7  ;;  %v452_v6 = vpop.permute.xlu1 %451  ;;  %v415_v12 = vmul.f32 %v413_v4, %v405_v7 }
  0x90   : > { %v453_v9 = vrot.slane %v452_v6, 7  ;;  %375 = vrot.lane.b32.xlu1 %v373_v1, %s10826_s10  ;;  %396 = vrot.lane.b32.xlu0 %v394_v2, %s10824_s20  ;;  %v639_v1 = vld [vmem:[#allocation2 + $0x1] sm:$0x7]  ;;  %s10939_s20 = smov 96   ;;  %s10940_s10 = smov 95  }
  0x91   : > { %v434_v10 = vsel %vm10817_vm6, %v432_v5, %v431_v0  ;;  %v620_v0 = vld [vmem:[#allocation2 + $0x1] sm:$0x7]  ;;  %vm441_vm6 = vcmask 244736  }
  0x92   : > { %v473_v11 = vpop.permute.xlu0 %472  ;;  %v436_v13 = vmul.f32 %v434_v10, %v426_v8  ;;  %v455_v14 = vsel %vm10818_vm7, %v453_v9, %v452_v6  ;;  %vm10841_vm7 = vcmask 252928  }
  0x93   : > { %v474_v15 = vrot.slane %v473_v11, 7  ;;  %v494_v16 = vpop.permute.xlu1 %493  ;;  %v457_v23 = vmul.f32 %v455_v14, %v447_v17 }
  0x94   : > { %v495_v20 = vrot.slane %v494_v16, 7  ;;  %417 = vrot.lane.b32.xlu1 %v415_v12, %s10828_s21  ;;  %438 = vrot.lane.b32.xlu0 %v436_v13, %s10830_s16  ;;  %v677_v12 = vld [vmem:[#allocation2 + $0x1] sm:$0x7]  ;;  %s10941_s16 = smov 17   ;;  %s10942_s21 = smov 18  }
  0x95   : > { %v476_v21 = vsel %vm10819_vm8, %v474_v15, %v473_v11  ;;  %v658_v11 = vld [vmem:[#allocation2 + $0x1] sm:$0x7]  ;;  %vm10838_vm8 = vcmask 261120  }
  0x96   : > { %v515_v22 = vpop.permute.xlu0 %514  ;;  %v478_v24 = vmul.f32 %v476_v21, %v468_v19  ;;  %v497_v25 = vsel %vm10820_vm9, %v495_v20, %v494_v16  ;;  %vm10839_vm9 = vcmask 269312  }
  0x97   : > { %v516_v26 = vrot.slane %v515_v22, 7  ;;  %v536_v27 = vpop.permute.xlu1 %535  ;;  %v499_v33 = vmul.f32 %v497_v25, %v489_v28 }
  0x98   : > { %v537_v30 = vrot.slane %v536_v27, 7  ;;  %459 = vrot.lane.b32.xlu1 %v457_v23, %s10832_s24  ;;  %480 = vrot.lane.b32.xlu0 %v478_v24, %s10834_s15  ;;  %v715_v23 = vld [vmem:[#allocation2 + $0x1] sm:$0x7]  ;;  %s10945_s24 = smov 30   ;;  %s10952_s15 = smov 31  }
  0x99   : > { %v518_v31 = vsel %vm10821_vm10, %v516_v26, %v515_v22  ;;  %v696_v22 = vld [vmem:[#allocation2 + $0x1] sm:$0x7]  ;;  %vm10914_vm10 = vcmask 277504  }
  0x9a   : > { %v557_v32 = vpop.permute.xlu0 %556  ;;  %v520_v34 = vmul.f32 %v518_v31, %v510_v29  ;;  %v539_v39 = vsel %vm538_vm11, %v537_v30, %v536_v27 }
  0x9b   : > { %v558_v40 = vrot.slane %v557_v32, 7  ;;  %v578_v41 = vpop.permute.xlu1 %577  ;;  %v541_v49 = vmul.f32 %v539_v39, %v531_v36 }
  0x9c   : > { %v579_v44 = vrot.slane %v578_v41, 7  ;;  %501 = vrot.lane.b32.xlu1 %v499_v33, %s10848_s9  ;;  %522 = vrot.lane.b32.xlu0 %v520_v34, %s10846_s14  ;;  %v753_v33 = vld [vmem:[#allocation2 + $0x1] sm:$0x7] }
  0x9d   : > { %v560_v46 = vsel %vm10840_vm12, %v558_v40, %v557_v32  ;;  %v734_v32 = vld [vmem:[#allocation2 + $0x1] sm:$0x7] }
  0x9e   : > { %v606_v48 = vpop.permute.xlu0 %605  ;;  %v562_v50 = vmul.f32 %v560_v46, %v552_v38  ;;  %v581_v51 = vsel %vm580_vm13, %v579_v44, %v578_v41  ;;  %v772_v44 = vld [vmem:[#allocation2 + $0x1] sm:$0x7] }
  0x9f   : > { %v607_v52 = vrot.slane %v606_v48, 7  ;;  %v625_v53 = vpop.permute.xlu1 %624  ;;  %v583_v59 = vmul.f32 %v581_v51, %v573_v54  ;;  %v6714_v54 = vld [vmem:[%s10782_s1 + $0x1] ss:$8 sm:$0x3] }
  0xa0   : > { %v626_v56 = vrot.slane %v625_v53, 7  ;;  %543 = vrot.lane.b32.xlu1 %v541_v49, %s10844_s23  ;;  %564 = vrot.lane.b32.xlu0 %v562_v50, %s10842_s18 }
  0xa1   : > { %v608_v57 = vsel %vm588_vm14, %v607_v52, %v606_v48  ;;  %v810_v52 = vld [vmem:[#allocation2 + $0x1] sm:$0x7] }
  0xa2   : > { %v644_v58 = vpop.permute.xlu0 %643  ;;  %v610_v60 = vmul.f32 %v608_v57, %v601_v55  ;;  %v627_v61 = vsel %vm567_vm15, %v626_v56, %v625_v53  ;;  %v2970_v53 = vrot.slane %v7408_v47, %v7377_v35  ;;  %v1238_v56 = vrot.slane %v6714_v54, %v7382_v37 }
  0xa3   : > { %v645_v62 = vrot.slane %v644_v58, 7  ;;  %v663_v63 = vpop.permute.xlu1 %662  ;;  %v629_v6 = vmul.f32 %v627_v61, %v620_v0  ;;  %v1242_v57 = vrot.slane %v6714_v54, %v7377_v35 }
  0xa4   : > { %v664_v2 = vrot.slane %v663_v63, 7  ;;  %585 = vrot.lane.b32.xlu1 %v583_v59, %s10822_s12  ;;  %612 = vrot.lane.b32.xlu0 %v610_v60, %s10930_s25  ;;  %s10938_s12 = smov 97   ;;  %v6715_v60 = vld [vmem:[%s10782_s1 + $0x2] ss:$8 sm:$0x3] }
  0xa5   : > { %v646_v4 = vsel %vm546_vm0, %v645_v62, %v644_v58  ;;  %v6728_v58 = vld [vmem:[%s10782_s1 + $0x17] ss:$8 sm:$0x3]  ;;  %v1381_v0 = vrot.slane %v6715_v60, %v7377_v35 }
  0xa6   : > { %v682_v5 = vpop.permute.xlu0 %681  ;;  %v648_v7 = vmul.f32 %v646_v4, %v639_v1  ;;  %v665_v8 = vsel %vm525_vm2, %v664_v2, %v663_v63  ;;  %v3105_v47 = vrot.slane %v6728_v58, %v7382_v37  ;;  %v3109_v59 = vrot.slane %v6728_v58, %v7377_v35  ;;  %v6729_v1 = vld [vmem:[%s10782_s1 + $0x20] ss:$8 sm:$0x3] }
  0xa7   : > { %v683_v9 = vrot.slane %v682_v5, 7  ;;  %v701_v10 = vpop.permute.xlu1 %700  ;;  %v667_v16 = vmul.f32 %v665_v8, %v658_v11  ;;  %v1377_v63 = vrot.slane %v6715_v60, %v7382_v37 }
  0xa8   : > { %v702_v13 = vrot.slane %v701_v10, 7  ;;  %631 = vrot.lane.b32.xlu1 %v629_v6, %s10931_s26  ;;  %650 = vrot.lane.b32.xlu0 %v648_v7, %s10932_s11  ;;  %v3248_v6 = vrot.slane %v6729_v1, %v7377_v35  ;;  %v6716_v7 = vld [vmem:[%s10782_s1 + $0x3] ss:$8 sm:$0x3] }
  0xa9   : > { %v684_v14 = vsel %vm504_vm4, %v683_v9, %v682_v5  ;;  %v3244_v5 = vrot.slane %v6729_v1, %v7382_v37  ;;  %v1520_v11 = vrot.slane %v6716_v7, %v7377_v35 }
  0xaa   : > { %v720_v15 = vpop.permute.xlu0 %719  ;;  %v686_v17 = vmul.f32 %v684_v14, %v677_v12  ;;  %v703_v19 = vsel %vm483_vm3, %v702_v13, %v701_v10  ;;  %v1516_v10 = vrot.slane %v6716_v7, %v7382_v37  ;;  %v6730_v12 = vld [vmem:[%s10782_s1 + $0x21] ss:$8 sm:$0x3] }
  0xab   : > { %v721_v20 = vrot.slane %v720_v15, 7  ;;  %v739_v21 = vpop.permute.xlu1 %738  ;;  %v705_v27 = vmul.f32 %v703_v19, %v696_v22 }
  0xac   : > { %v740_v24 = vrot.slane %v739_v21, 7  ;;  %669 = vrot.lane.b32.xlu1 %v667_v16, %s10933_s13  ;;  %688 = vrot.lane.b32.xlu0 %v686_v17, %s10934_s17  ;;  %v3387_v16 = vrot.slane %v6730_v12, %v7377_v35 }
  0xad   : > { %v722_v25 = vsel %vm462_vm5, %v721_v20, %v720_v15  ;;  %v3383_v20 = vrot.slane %v6730_v12, %v7382_v37 }
  0xae   : > { %v758_v26 = vpop.permute.xlu0 %757  ;;  %v724_v28 = vmul.f32 %v722_v25, %v715_v23  ;;  %v741_v29 = vsel %vm441_vm6, %v740_v24, %v739_v21  ;;  %v6717_v23 = vld [vmem:[%s10782_s1 + $0x4] ss:$8 sm:$0x3] }
  0xaf   : > { %v759_v30 = vrot.slane %v758_v26, 7  ;;  %v777_v31 = vpop.permute.xlu1 %776  ;;  %v743_v39 = vmul.f32 %v741_v29, %v734_v32  ;;  %v1655_v25 = vrot.slane %v6717_v23, %v7382_v37 }
  0xb0   : > { %v778_v34 = vrot.slane %v777_v31, 7  ;;  %707 = vrot.lane.b32.xlu1 %v705_v27, %s10935_s27  ;;  %726 = vrot.lane.b32.xlu0 %v724_v28, %s10936_s28  ;;  %v1659_v27 = vrot.slane %v6717_v23, %v7377_v35 }
  0xb1   : > { %v760_v36 = vsel %vm10841_vm7, %v759_v30, %v758_v26  ;;  %v7548_v26 = vld [vmem:[%s10782_s1 + $0x22] ss:$8 sm:$0x3] }
  0xb2   : > { %v796_v38 = vpop.permute.xlu0 %795  ;;  %v762_v40 = vmul.f32 %v760_v36, %v753_v33  ;;  %v779_v41 = vsel %vm10838_vm8, %v778_v34, %v777_v31  ;;  %v3526_v28 = vrot.slane %v7548_v26, %v7377_v35  ;;  %v7565_v31 = vld [vmem:[%s10782_s1 + $0x5] ss:$8 sm:$0x3] }
  0xb3   : > { %v797_v42 = vrot.slane %v796_v38, 7  ;;  %v815_v43 = vpop.permute.xlu1 %814  ;;  %v781_v49 = vmul.f32 %v779_v41, %v772_v44  ;;  %v1794_v32 = vrot.slane %v7565_v31, %v7382_v37 }
  0xb4   : > { %v816_v46 = vrot.slane %v815_v43, 7  ;;  %745 = vrot.lane.b32.xlu1 %v743_v39, %s10937_s22  ;;  %764 = vrot.lane.b32.xlu0 %v762_v40, %s10938_s12  ;;  %v7576_v39 = vld [vmem:[%s10782_s1 + $0x23] ss:$8 sm:$0x3] }
  0xb5   : > { %v798_v48 = vsel %vm10839_vm9, %v797_v42, %v796_v38  ;;  %v3665_v42 = vrot.slane %v7576_v39, %v7377_v35 }
  0xb6   : > { %v800_v50 = vmul.f32 %v798_v48, %v791_v45  ;;  %v817_v51 = vsel %vm10914_vm10, %v816_v46, %v815_v43 }
  0xb7   : > { %v819_v55 = vmul.f32 %v817_v51, %v810_v52 }
  0xb8   : > { %783 = vrot.lane.b32.xlu1 %v781_v49, %s10939_s20  ;;  %802 = vrot.lane.b32.xlu0 %v800_v50, %s10940_s10 }
  0xbc   : > { %821 = vrot.lane.b32.xlu1 %v819_v55, %s10836_s7  ;;  %2973 = vrot.lane.b32.xlu0 %v2970_v53, %s10842_s18  ;;  %s10956_s7 = smov 32   ;;  %s11079_s18 = smov 14  }
  0xc0   : > { %1243 = vrot.lane.b32.xlu1 %v1238_v56, %s10940_s10  ;;  %1245 = vrot.lane.b32.xlu0 %v1242_v57, %s10940_s10 }
  0xc3   : > { %v7486_v61 = vpop.permute.xlu0 %855 }
  0xc4   : > { %v7488_v62 = vpop.permute.xlu1 %860  ;;  %3110 = vrot.lane.b32.xlu1 %v3105_v47, %s10844_s23  ;;  %3112 = vrot.lane.b32.xlu0 %v3109_v59, %s10844_s23  ;;  %s10955_s23 = smov 33  }
  0xc7   : > { %v7497_v2 = vpop.permute.xlu0 %870 }
  0xc8   : > { %v7499_v4 = vpop.permute.xlu1 %865  ;;  %1382 = vrot.lane.b32.xlu1 %v1377_v63, %s10939_s20  ;;  %1384 = vrot.lane.b32.xlu0 %v1381_v0, %s10939_s20 }
  0xcb   : > { %v7508_v8 = vpop.permute.xlu0 %880 }
  0xcc   : > { %v7510_v9 = vpop.permute.xlu1 %875  ;;  %3249 = vrot.lane.b32.xlu1 %v3244_v5, %s10846_s14  ;;  %3251 = vrot.lane.b32.xlu0 %v3248_v6, %s10846_s14  ;;  %s11050_s14 = smov 16  }
  0xcf   : > { %v7519_v13 = vpop.permute.xlu0 %2834 }
  0xd0   : > { %v2842_v14 = vmul.f32 0.0, %v7519_v13  ;;  %v7522_v15 = vpop.permute.xlu1 %2832  ;;  %1521 = vrot.lane.b32.xlu1 %v1516_v10, %s10938_s12  ;;  %1523 = vrot.lane.b32.xlu0 %v1520_v11, %s10938_s12 }
  0xd2   : > { %v2866_v17 = vpack.c.bf16 %v2842_v14, %v2842_v14 }
  0xd3   : > { %v7558_v29 = vpop.permute.xlu0 %890 }
  0xd4   : > { %v7527_v19 = vpop.permute.xlu1 %885  ;;  %3390 = vrot.lane.b32.xlu1 %v3387_v16, %s10848_s9  ;;  %2892 = vrot.lane.b32.xlu0 %v2866_v17, %s10930_s25 }
  0xd7   : > { %v7560_v30 = vpop.permute.xlu0 %1106 }
  0xd8   : > { %2898 = vrot.lane.b32.xlu1 %v2866_v17, %s10930_s25  ;;  %3388 = vrot.lane.b32.xlu0 %v3383_v20, %s10848_s9  ;;  %v7534_v21 = vpop.permute.xlu1 %1104  ;;  %s10993_s9 = smov 34  }
  0xd9   : > { %v1112_v22 = vmul.f32 0.0, %v7534_v21 }
  0xdb   : > { %v7542_v24 = vpack.c.bf16 %v1112_v22, %v1112_v22 }
  0xdc   : > { %2910 = vrot.lane.b32.xlu1 %v2866_v17, %s10930_s25  ;;  %2904 = vrot.lane.b32.xlu0 %v2866_v17, %s10930_s25  ;;  %v7569_v33 = vpop.permute.xlu1 %2971 }
  0xe0   : > { %1160 = vrot.lane.b32.xlu1 %v7542_v24, %s10850_s19  ;;  %1660 = vrot.lane.b32.xlu0 %v1655_v25, %s10937_s22 }
  0xe4   : > { %1662 = vrot.lane.b32.xlu1 %v1659_v27, %s10937_s22  ;;  %3529 = vrot.lane.b32.xlu0 %v3526_v28, %s10941_s16 }
  0xe8   : > { %1799 = vrot.lane.b32.xlu0 %v1794_v32, %s10936_s28  ;;  %v7622_v32 = vld [vmem:[%s10782_s1 + $0x6] ss:$8 sm:$0x3] }
  0xec   : > { %3668 = vrot.lane.b32.xlu0 %v3665_v42, %s10942_s21 }
  0xfe   : > { %v356_v34 = vpop.permute.xlu0 %355 }
  0xff   : > { %v357_v36 = vrot.slane %v356_v34, 1 }
 0x101   : > { %v359_v38 = vsel %vm10914_vm10, %v356_v34, %v357_v36 }
 0x102   : > { %361 = vst.msk [vmem:[#allocation3] ss:$8 sm:$0x3] %vm7311_vm1, %v359_v38  ;;  %v376_v40 = vpop.permute.xlu1 %375  ;;  %v397_v41 = vpop.permute.xlu0 %396  ;;  %v1933_v38 = vrot.slane %v7622_v32, %v7382_v37 }
 0x103   : > { %v377_v43 = vrot.slane %v376_v40, 1  ;;  %v398_v44 = vrot.slane %v397_v41, 1 }
 0x104   : > { %1938 = vrot.lane.b32.xlu0 %v1933_v38, %s10935_s27 }
 0x105   : > { %v379_v45 = vsel %vm10839_vm9, %v376_v40, %v377_v43  ;;  %v400_v46 = vsel %vm10838_vm8, %v397_v41, %v398_v44  ;;  %v7636_v44 = vld [vmem:[%s10782_s1 + $0x24] ss:$8 sm:$0x3]  ;;  %vm10943_vm8 = vcmask 924672   ;;  %vm10944_vm9 = vcmask 916480  }
 0x106   : > { %382 = vst.msk [vmem:[#allocation3 + $0x1] ss:$8 sm:$0x3] %vm7311_vm1, %v379_v45  ;;  %403 = vst.msk [vmem:[#allocation3 + $0x2] ss:$8 sm:$0x3] %vm7311_vm1, %v400_v46  ;;  %v418_v48 = vpop.permute.xlu1 %417  ;;  %v439_v49 = vpop.permute.xlu0 %438 }
 0x107   : > { %v419_v50 = vrot.slane %v418_v48, 1  ;;  %v440_v51 = vrot.slane %v439_v49, 1 }
 0x109   : > { %v421_v52 = vsel %vm10841_vm7, %v418_v48, %v419_v50  ;;  %v442_v53 = vsel %vm441_vm6, %v439_v49, %v440_v51  ;;  %v3804_v48 = vrot.slane %v7636_v44, %v7377_v35 }
 0x10a   : > { %424 = vst.msk [vmem:[#allocation3 + $0x3] ss:$8 sm:$0x3] %vm7311_vm1, %v421_v52  ;;  %445 = vst.msk [vmem:[#allocation3 + $0x4] ss:$8 sm:$0x3] %vm7311_vm1, %v442_v53  ;;  %v460_v54 = vpop.permute.xlu1 %459  ;;  %v481_v55 = vpop.permute.xlu0 %480 }
 0x10b   : > { %v461_v56 = vrot.slane %v460_v54, 1  ;;  %v482_v57 = vrot.slane %v481_v55, 1  ;;  %3807 = vrot.lane.b32.xlu0 %v3804_v48, %s10945_s24 }
 0x10d   : > { %v463_v58 = vsel %vm462_vm5, %v460_v54, %v461_v56  ;;  %v484_v47 = vsel %vm483_vm3, %v481_v55, %v482_v57  ;;  %v7650_v56 = vld [vmem:[%s10782_s1 + $0x7] ss:$8 sm:$0x3] }
 0x10e   : > { %466 = vst.msk [vmem:[#allocation3 + $0x5] ss:$8 sm:$0x3] %vm7311_vm1, %v463_v58  ;;  %487 = vst.msk [vmem:[#allocation3 + $0x6] ss:$8 sm:$0x3] %vm7311_vm1, %v484_v47  ;;  %v502_v59 = vpop.permute.xlu1 %501  ;;  %v523_v60 = vpop.permute.xlu0 %522 }
 0x10f   : > { %v503_v63 = vrot.slane %v502_v59, 1  ;;  %v524_v0 = vrot.slane %v523_v60, 1 }
 0x111   : > { %v505_v1 = vsel %vm504_vm4, %v502_v59, %v503_v63  ;;  %v526_v5 = vsel %vm525_vm2, %v523_v60, %v524_v0  ;;  %v2072_v63 = vrot.slane %v7650_v56, %v7382_v37 }
 0x112   : > { %508 = vst.msk [vmem:[#allocation3 + $0x7] ss:$8 sm:$0x3] %vm7311_vm1, %v505_v1  ;;  %529 = vst.msk [vmem:[#allocation3 + $0x10] ss:$8 sm:$0x3] %vm7311_vm1, %v526_v5  ;;  %v544_v6 = vpop.permute.xlu1 %543  ;;  %v565_v7 = vpop.permute.xlu0 %564 }
 0x113   : > { %v545_v10 = vrot.slane %v544_v6, 1  ;;  %v566_v11 = vrot.slane %v565_v7, 1  ;;  %2077 = vrot.lane.b32.xlu0 %v2072_v63, %s10934_s17 }
 0x115   : > { %v547_v12 = vsel %vm546_vm0, %v544_v6, %v545_v10  ;;  %v568_v14 = vsel %vm567_vm15, %v565_v7, %v566_v11 }
 0x116   : > { %550 = vst.msk [vmem:[#allocation3 + $0x11] ss:$8 sm:$0x3] %vm7311_vm1, %v547_v12  ;;  %571 = vst.msk [vmem:[#allocation3 + $0x12] ss:$8 sm:$0x3] %vm7311_vm1, %v568_v14  ;;  %v586_v16 = vpop.permute.xlu1 %585  ;;  %v613_v17 = vpop.permute.xlu0 %612 }
 0x117   : > { %v587_v20 = vrot.slane %v586_v16, 1  ;;  %v614_v22 = vrot.slane %v613_v17, 1 }
 0x119   : > { %v589_v23 = vsel %vm588_vm14, %v586_v16, %v587_v20  ;;  %v615_v25 = vsel %vm580_vm13, %v613_v17, %v614_v22  ;;  %v838_v55 = vld [vmem:[#allocation3 + $0x8] sm:$0xff]  ;;  %v837_v59 = vld [vmem:[#allocation3] sm:$0xff] }
 0x11a   : > { %592 = vst.msk [vmem:[#allocation3 + $0x13] ss:$8 sm:$0x3] %vm7311_vm1, %v589_v23  ;;  %618 = vst.msk [vmem:[#allocation3 + $0x15] ss:$8 sm:$0x3] %vm7311_vm1, %v615_v25  ;;  %v632_v27 = vpop.permute.xlu1 %631  ;;  %v651_v28 = vpop.permute.xlu0 %650 }
 0x11b   : > { %v633_v34 = vrot.slane %v632_v27, 1  ;;  %v652_v36 = vrot.slane %v651_v28, 1  ;;  %v7670_v22 = vld [vmem:[%s10782_s1 + $0x25] ss:$8 sm:$0x3] }
 0x11d   : > { %v634_v40 = vsel %vm10840_vm12, %v632_v27, %v633_v34  ;;  %v653_v41 = vsel %vm538_vm11, %v651_v28, %v652_v36  ;;  %vm10950_vm12 = vcmask 785408   ;;  %v3943_v27 = vrot.slane %v7670_v22, %v7377_v35 }
 0x11e   : > { %637 = vst.msk [vmem:[#allocation3 + $0x16] ss:$8 sm:$0x3] %vm7311_vm1, %v634_v40  ;;  %656 = vst.msk [vmem:[#allocation3 + $0x17] ss:$8 sm:$0x3] %vm7311_vm1, %v653_v41  ;;  %v670_v42 = vpop.permute.xlu1 %669  ;;  %v689_v43 = vpop.permute.xlu0 %688 }
 0x11f   : > { %v671_v45 = vrot.slane %v670_v42, 1  ;;  %v690_v46 = vrot.slane %v689_v43, 1  ;;  %3946 = vrot.lane.b32.xlu0 %v3943_v27, %s10952_s15 }
 0x121   : > { %v672_v49 = vsel %vm10943_vm8, %v670_v42, %v671_v45  ;;  %v691_v50 = vsel %vm10944_vm9, %v689_v43, %v690_v46  ;;  %vm10946_vm8 = vcmask 908288   ;;  %vm10947_vm9 = vcmask 900096  }
 0x122   : > { %675 = vst.msk [vmem:[#allocation3 + $0x20] ss:$8 sm:$0x3] %vm7311_vm1, %v672_v49  ;;  %694 = vst.msk [vmem:[#allocation3 + $0x21] ss:$8 sm:$0x3] %vm7311_vm1, %v691_v50  ;;  %v708_v51 = vpop.permute.xlu1 %707  ;;  %v727_v52 = vpop.permute.xlu0 %726  ;;  %v3522_v42 = vrot.slane %v7548_v26, %v7382_v37 }
 0x123   : > { %v709_v53 = vrot.slane %v708_v51, 1  ;;  %v728_v54 = vrot.slane %v727_v52, 1  ;;  %v829_v26 = vld [vmem:[%s10954_s2] sm:$0xff] }
 0x125   : > { %v710_v57 = vsel %vm10946_vm8, %v708_v51, %v709_v53  ;;  %v729_v58 = vsel %vm10947_vm9, %v727_v52, %v728_v54  ;;  %v840_v47 = vld [vmem:[#allocation3 + $0x18] sm:$0xff]  ;;  %v839_v60 = vld [vmem:[#allocation3 + $0x10] sm:$0xff]  ;;  %vm10948_vm8 = vcmask 801792   ;;  %vm10949_vm9 = vcmask 793600   ;;  %v7123_v51 = vld [vmem:[#allocation5 + $0x60] sm:$0xff] }
 0x126   : > { %713 = vst.msk [vmem:[#allocation3 + $0x22] ss:$8 sm:$0x3] %vm7311_vm1, %v710_v57  ;;  %732 = vst.msk [vmem:[#allocation3 + $0x23] ss:$8 sm:$0x3] %vm7311_vm1, %v729_v58  ;;  %v746_v0 = vpop.permute.xlu1 %745  ;;  %v765_v1 = vpop.permute.xlu0 %764  ;;  %v6853_v5 = vpack.c.bf16 %v840_v47, %v838_v55  ;;  %v6855_v6 = vpack.c.bf16 %v839_v60, %v837_v59 }
 0x127   : > { %v747_v7 = vrot.slane %v746_v0, 1  ;;  %v766_v10 = vrot.slane %v765_v1, 1  ;;  %v830_v52 = vld [vmem:[%s10954_s2 + $0x8] sm:$0xff]  ;;  %v831_v53 = vld [vmem:[%s10954_s2 + $0x10] sm:$0xff]  ;;  %v832_v54 = vld [vmem:[%s10954_s2 + $0x18] sm:$0xff] }
 0x128   : > { %6854 = vmatprep.subr.bf16.mxu0 %v6853_v5  ;;  %v7723_v47 = vld [vmem:[%s10782_s1 + $0x10] ss:$8 sm:$0x3]  ;;  %v833_v59 = vld [vmem:[%s10954_s2 + $0x20] sm:$0xff]  ;;  %v1798_v5 = vrot.slane %v7565_v31, %v7377_v35 }
 0x129   : > { %v748_v11 = vsel %vm10948_vm8, %v746_v0, %v747_v7  ;;  %v767_v12 = vsel %vm10949_vm9, %v765_v1, %v766_v10  ;;  %6856 = vmatpush1.bf16.msra.mxu0 %v6855_v6  ;;  %vm10951_vm8 = vcmask 777216   ;;  %vm918_vm9 = vcmask 1040384   ;;  %v7746_v6 = vld [vmem:[%s10782_s1 + $0x26] ss:$8 sm:$0x3]  ;;  %v835_v7 = vld [vmem:[%s10954_s2 + $0x30] sm:$0xff] }
 0x12a   : > { %751 = vst.msk [vmem:[#allocation3 + $0x24] ss:$8 sm:$0x3] %vm7311_vm1, %v748_v11  ;;  %770 = vst.msk [vmem:[#allocation3 + $0x25] ss:$8 sm:$0x3] %vm7311_vm1, %v767_v12  ;;  %v784_v14 = vpop.permute.xlu1 %783  ;;  %v803_v16 = vpop.permute.xlu0 %802  ;;  %v2211_v60 = vrot.slane %v7723_v47, %v7382_v37  ;;  %v4082_v10 = vrot.slane %v7746_v6, %v7377_v35  ;;  %v3661_v12 = vrot.slane %v7576_v39, %v7382_v37 }
 0x12b   : > { %v785_v17 = vrot.slane %v784_v14, 1  ;;  %v804_v20 = vrot.slane %v803_v16, 1  ;;  %v836_v31 = vld [vmem:[%s10954_s2 + $0x38] sm:$0xff] }
 0x12c   : > { %2216 = vrot.lane.b32.xlu0 %v2211_v60, %s10933_s13  ;;  %v3939_v60 = vrot.slane %v7670_v22, %v7382_v37 }
 0x12d   : > { %v786_v23 = vsel %vm10950_vm12, %v784_v14, %v785_v17  ;;  %v805_v25 = vsel %vm10951_vm8, %v803_v16, %v804_v20  ;;  %vm10953_vm12 = vcmask 769024   ;;  %vm7158_vm8 = vmmov 1   ;;  %v7779_v20 = vld [vmem:[%s10782_s1 + $0x11] ss:$8 sm:$0x3] }
 0x12e   : > { %789 = vst.msk [vmem:[#allocation3 + $0x26] ss:$8 sm:$0x3] %vm7311_vm1, %v786_v23  ;;  %808 = vst.msk [vmem:[#allocation3 + $0x27] ss:$8 sm:$0x3] %vm7311_vm1, %v805_v25  ;;  %v822_v28 = vpop.permute.xlu1 %821  ;;  %v7680_v34 = vpop.permute.xlu0 %2973  ;;  %v2350_v23 = vrot.slane %v7779_v20, %v7382_v37 }
 0x12f   : > { %v823_v36 = vrot.slane %v822_v28, 1  ;;  %v2981_v38 = vmul.f32 0.0, %v7680_v34  ;;  %vm6858_vm7 = vmpackc.low %vm918_vm9, %vm7158_vm8  ;;  %vm10991_vm9 = vcmask 777216   ;;  %vm10992_vm8 = vcmask 785408  }
 0x130   : > { %4085 = vrot.lane.b32.xlu0 %v4082_v10, %s10956_s7 }
 0x131   : > { %v824_v40 = vsel %vm10953_vm12, %v822_v28, %v823_v36  ;;  %v3005_v41 = vpack.c.bf16 %v2981_v38, %v2981_v38  ;;  %vm893_vm12 = vcmask 203776   ;;  %v1937_v36 = vrot.slane %v7622_v32, %v7377_v35  ;;  %v7794_v38 = vld [vmem:[%s10782_s1 + $0x27] ss:$8 sm:$0x3] }
 0x132   : > { %827 = vst.msk [vmem:[#allocation3 + $0x30] ss:$8 sm:$0x3] %vm7311_vm1, %v824_v40  ;;  %v7712_v55 = vpop.permute.xlu1 %1243  ;;  %v7717_v58 = vpop.permute.xlu0 %1245  ;;  %v4221_v40 = vrot.slane %v7794_v38, %v7377_v35  ;;  %v3800_v32 = vrot.slane %v7636_v44, %v7382_v37 }
 0x133   : > { %3031 = vrot.lane.b32.xlu1 %v3005_v41, %s10931_s26  ;;  %v1251_v57 = vmul.f32 0.0, %v7712_v55 }
 0x134   : > { %2355 = vrot.lane.b32.xlu0 %v2350_v23, %s10932_s11 }
 0x135   : > { %v842_v43 = vld [vmem:[#allocation3 + $0x28] sm:$0xff]  ;;  %v841_v46 = vld [vmem:[#allocation3 + $0x20] sm:$0xff]  ;;  %v1275_v63 = vpack.c.bf16 %v1251_v57, %v1251_v57 }
 0x136   : > { %v7736_v0 = vpop.permute.xlu0 %3112  ;;  %v7767_v14 = vpop.permute.xlu1 %3110 }
 0x137   : > { %3527 = vrot.lane.b32.xlu1 %v3522_v42, %s10941_s16  ;;  %v3120_v1 = vmul.f32 0.0, %v7736_v0 }
 0x138   : > { %4224 = vrot.lane.b32.xlu0 %v4221_v40, %s10955_s23  ;;  %v2215_v40 = vrot.slane %v7723_v47, %v7377_v35 }
 0x139   : > { %v844_v45 = vld [vmem:[#allocation3 + $0x38] sm:$0x1]  ;;  %v843_v48 = vld [vmem:[#allocation3 + $0x30] sm:$0x1]  ;;  %v3144_v11 = vpack.c.bf16 %v3120_v1, %v3120_v1 }
 0x13a   : > { %v6857_v49 = vpack.c.bf16 %v844_v45, %v842_v43  ;;  %v6860_v50 = vpack.c.bf16 %v843_v48, %v841_v46  ;;  %v7770_v16 = vpop.permute.xlu1 %1382  ;;  %v7774_v39 = vpop.permute.xlu0 %1384 }
 0x13b   : > { %1166 = vrot.lane.b32.xlu1 %v7542_v24, %s10850_s19  ;;  %v1390_v17 = vmul.f32 0.0, %v7770_v16 }
 0x13c   : > { %6859 = vmatprep.subr.msk.bf16.mxu0 %vm6858_vm7, %v6857_v49 }
 0x13d   : > { %6862 = vmatpush1.bf16.msk.msra.mxu0 %vm6858_vm7, %v6860_v50  ;;  %v1414_v25 = vpack.c.bf16 %v1390_v17, %v1390_v17  ;;  %vm10988_vm7 = vcmask 769024  }
 0x13e   : > { %v7785_v27 = vpop.permute.xlu0 %3251 }
 0x13f   : > { %3037 = vrot.lane.b32.xlu1 %v3005_v41, %s10931_s26  ;;  %v3259_v28 = vmul.f32 0.0, %v7785_v27 }
 0x140   : > { %6706 = vmatmul.mubr.msk.f32.vlgmr.msra.gmra.mrb[0].mxu0 %vm893_vm12, %v829_v26 }
 0x141   : > { %995 = vmatprep.mubr.f32.mxu0 %v7123_v51  ;;  %v3283_v42 = vpack.c.bf16 %v3259_v28, %v3259_v28 }
 0x143   : > { %1172 = vrot.lane.b32.xlu1 %v7542_v24, %s10850_s19 }
 0x144   : > { %6707 = vmatmul.mubr.msk.f32.gmra.mrb[2].mxu0 %vm893_vm12, %v830_v52  ;;  %v2076_v52 = vrot.slane %v7650_v56, %v7377_v35 }
 0x145   : > { %1001 = vmatprep.mubr.f32.mxu0 %v7123_v51 }
 0x147   : > { %3043 = vrot.lane.b32.xlu1 %v3005_v41, %s10931_s26 }
 0x148   : > { %6708 = vmatmul.mubr.msk.f32.gmra.mrb[4].mxu0 %vm893_vm12, %v831_v53 }
 0x149   : > { %1007 = vmatprep.mubr.f32.mxu0 %v7123_v51 }
 0x14b   : > { %1178 = vrot.lane.b32.xlu1 %v7542_v24, %s10850_s19  ;;  %v834_v24 = vld [vmem:[%s10954_s2 + $0x28] sm:$0xff]  ;;  %s7163_s19 = smov 109  }
 0x14c   : > { %6709 = vmatmul.mubr.msk.f32.gmra.mrb[6].mxu0 %vm893_vm12, %v832_v54 }
 0x14d   : > { %1013 = vmatprep.mubr.f32.mxu0 %v7123_v51 }
 0x14f   : > { %3049 = vrot.lane.b32.xlu1 %v3005_v41, %s10931_s26  ;;  %v7798_v41 = vpop.permute.xlu1 %3249 }
 0x150   : > { %6710 = vmatmul.mubr.msk.f32.gmra.mrb[8].mxu0 %vm893_vm12, %v833_v59  ;;  %v7834_v59 = vpop.permute.xlu0 %1523 }
 0x151   : > { %1019 = vmatprep.mubr.f32.mxu0 %v7123_v51 }
 0x153   : > { %1299 = vrot.lane.b32.xlu1 %v1275_v63, %s10955_s23  ;;  %v7805_v43 = vpop.permute.xlu1 %1521 }
 0x154   : > { %6711 = vmatmul.mubr.msk.f32.gmra.mrb[10].mxu0 %vm893_vm12, %v834_v24  ;;  %v1529_v44 = vmul.f32 0.0, %v7805_v43  ;;  %v7842_v24 = vpop.permute.xlu0 %2892 }
 0x155   : > { %1025 = vmatprep.mubr.f32.mxu0 %v7123_v51  ;;  %10961 = vst [vmem:[#allocation17_spill] sm:$0xff] %v7842_v24 }
 0x156   : > { %v1553_v50 = vpack.c.bf16 %v1529_v44, %v1529_v44 }
 0x157   : > { %1801 = vrot.lane.b32.xlu1 %v1798_v5, %s10936_s28  ;;  %v7808_v45 = vpop.permute.xlu1 %3390 }
 0x158   : > { %6712 = vmatmul.mubr.msk.f32.gmra.mrb[12].mxu0 %vm893_vm12, %v835_v7  ;;  %v7849_v5 = vpop.permute.xlu0 %3388 }
 0x159   : > { %1031 = vmatprep.mubr.f32.mxu0 %v7123_v51  ;;  %v3398_v51 = vmul.f32 0.0, %v7808_v45 }
 0x15b   : > { %3170 = vrot.lane.b32.xlu1 %v3144_v11, %s10932_s11  ;;  %v7812_v46 = vpop.permute.xlu1 %2898  ;;  %v3422_v54 = vpack.c.bf16 %v3398_v51, %v3398_v51 }
 0x15c   : > { %6713 = vmatmul.mubr.msk.f32.gmra.mrb[14].mxu0 %vm893_vm12, %v836_v31  ;;  %10957 = vst [vmem:[#allocation13_spill] sm:$0xff] %v7812_v46  ;;  %v7855_v22 = vpop.permute.xlu0 %2904  ;;  %vm10995_vm12 = vcmask 793600  }
 0x15d   : > { %10965 = vst [vmem:[#allocation21_spill] sm:$0xff] %v7855_v22 }
 0x15f   : > { %3666 = vrot.lane.b32.xlu1 %v3661_v12, %s10942_s21  ;;  %v7815_v48 = vpop.permute.xlu1 %2910 }
 0x160   : > { %10958 = vst [vmem:[#allocation14_spill] sm:$0xff] %v7815_v48 }
 0x163   : > { %1305 = vrot.lane.b32.xlu1 %v1275_v63, %s10955_s23  ;;  %v7819_v49 = vpop.permute.xlu1 %1160 }
 0x167   : > { %3176 = vrot.lane.b32.xlu1 %v3144_v11, %s10932_s11  ;;  %v7823_v26 = vpop.permute.xlu1 %1662 }
 0x16b   : > { %1311 = vrot.lane.b32.xlu1 %v1275_v63, %s10955_s23 }
 0x16f   : > { %3182 = vrot.lane.b32.xlu1 %v3144_v11, %s10932_s11 }
 0x173   : > { %1317 = vrot.lane.b32.xlu1 %v1275_v63, %s10955_s23 }
 0x177   : > { %3188 = vrot.lane.b32.xlu1 %v3144_v11, %s10932_s11  ;;  %v7860_v11 = vpop.permute.xlu0 %1660 }
 0x178   : > { %v1668_v12 = vmul.f32 0.0, %v7860_v11 }
 0x17a   : > { %v1692_v23 = vpack.c.bf16 %v1668_v12, %v1668_v12 }
 0x17b   : > { %1438 = vrot.lane.b32.xlu1 %v1414_v25, %s10956_s7 }
 0x17f   : > { %1940 = vrot.lane.b32.xlu1 %v1937_v36, %s10935_s27 }
 0x183   : > { %3309 = vrot.lane.b32.xlu1 %v3283_v42, %s10933_s13 }
 0x187   : > { %3805 = vrot.lane.b32.xlu1 %v3800_v32, %s10945_s24 }
 0x18b   : > { %1444 = vrot.lane.b32.xlu1 %v1414_v25, %s10956_s7 }
 0x18f   : > { %3315 = vrot.lane.b32.xlu1 %v3283_v42, %s10933_s13 }
 0x193   : > { %1450 = vrot.lane.b32.xlu1 %v1414_v25, %s10956_s7 }
 0x197   : > { %3321 = vrot.lane.b32.xlu1 %v3283_v42, %s10933_s13 }
 0x19b   : > { %1456 = vrot.lane.b32.xlu1 %v1414_v25, %s10956_s7  ;;  %v7869_v25 = vpop.permute.xlu0 %3529 }
 0x19c   : > { %v3537_v36 = vmul.f32 0.0, %v7869_v25 }
 0x19e   : > { %v3561_v32 = vpack.c.bf16 %v3537_v36, %v3537_v36 }
 0x19f   : > { %3327 = vrot.lane.b32.xlu1 %v3283_v42, %s10933_s13 }
 0x1a3   : > { %1577 = vrot.lane.b32.xlu1 %v1553_v50, %s10952_s15 }
 0x1a5   : > { %v7829_v53 = vpop.permute.xlu1 %3031 }
 0x1a6   : > { %10959 = vst [vmem:[#allocation15_spill] sm:$0xff] %v7829_v53 }
 0x1a7   : > { %2079 = vrot.lane.b32.xlu1 %v2076_v52, %s10934_s17 }
 0x1a9   : > { %v7832_v57 = vpop.permute.xlu1 %3527 }
 0x1ab   : > { %3448 = vrot.lane.b32.xlu1 %v3422_v54, %s10934_s17 }
 0x1ad   : > { %v7839_v63 = vpop.permute.xlu1 %1166 }
 0x1ae   : > { %10960 = vst [vmem:[#allocation16_spill] sm:$0xff] %v7839_v63 }
 0x1af   : > { %3944 = vrot.lane.b32.xlu1 %v3939_v60, %s10952_s15 }
 0x1b1   : > { %v7844_v56 = vpop.permute.xlu1 %3037 }
 0x1b2   : > { %10962 = vst [vmem:[#allocation18_spill] sm:$0xff] %v7844_v56 }
 0x1b3   : > { %1583 = vrot.lane.b32.xlu1 %v1553_v50, %s10952_s15 }
 0x1b5   : > { %v7847_v1 = vpop.permute.xlu1 %1172 }
 0x1b6   : > { %10963 = vst [vmem:[#allocation19_spill] sm:$0xff] %v7847_v1 }
 0x1b7   : > { %3454 = vrot.lane.b32.xlu1 %v3422_v54, %s10934_s17 }
 0x1b9   : > { %v7852_v7 = vpop.permute.xlu1 %3043 }
 0x1ba   : > { %10964 = vst [vmem:[#allocation20_spill] sm:$0xff] %v7852_v7 }
 0x1bb   : > { %1589 = vrot.lane.b32.xlu1 %v1553_v50, %s10952_s15 }
 0x1bd   : > { %v7857_v10 = vpop.permute.xlu1 %1178 }
 0x1be   : > { %10966 = vst [vmem:[#allocation22_spill] sm:$0xff] %v7857_v10 }
 0x1bf   : > { %3460 = vrot.lane.b32.xlu1 %v3422_v54, %s10934_s17 }
 0x1c1   : > { %v7862_v31 = vpop.permute.xlu1 %3049 }
 0x1c2   : > { %10967 = vst [vmem:[#allocation23_spill] sm:$0xff] %v7862_v31 }
 0x1c3   : > { %1595 = vrot.lane.b32.xlu1 %v1553_v50, %s10952_s15  ;;  %v4078_v50 = vrot.slane %v7746_v6, %v7382_v37  ;;  %v7900_v6 = vpop.permute.xlu0 %1799 }
 0x1c4   : > { %v1807_v36 = vmul.f32 0.0, %v7900_v6 }
 0x1c5   : > { %v7866_v17 = vpop.permute.xlu1 %1299 }
 0x1c6   : > { %10968 = vst [vmem:[#allocation24_spill] sm:$0xff] %v7866_v17 }
 0x1c7   : > { %3466 = vrot.lane.b32.xlu1 %v3422_v54, %s10934_s17  ;;  %v7909_v3 = vpop.permute.xlu0 %3668 }
 0x1c9   : > { %v7871_v28 = vpop.permute.xlu1 %1801 }
 0x1cb   : > { %1716 = vrot.lane.b32.xlu1 %v1692_v23, %s10945_s24 }
 0x1cd   : > { %v7877_v42 = vpop.permute.xlu1 %3170 }
 0x1ce   : > { %10969 = vst [vmem:[#allocation25_spill] sm:$0xff] %v7877_v42 }
 0x1cf   : > { %2218 = vrot.lane.b32.xlu1 %v2215_v40, %s10933_s13 }
 0x1d1   : > { %v7880_v44 = vpop.permute.xlu1 %3666 }
 0x1d3   : > { %3587 = vrot.lane.b32.xlu1 %v3561_v32, %s10935_s27 }
 0x1d5   : > { %v7885_v51 = vpop.permute.xlu1 %1305 }
 0x1d6   : > { %10970 = vst [vmem:[#allocation26_spill] sm:$0xff] %v7885_v51 }
 0x1d7   : > { %4083 = vrot.lane.b32.xlu1 %v4078_v50, %s10956_s7  ;;  %v1831_v50 = vpack.c.bf16 %v1807_v36, %v1807_v36 }
 0x1d9   : > { %v7888_v52 = vpop.permute.xlu1 %3176 }
 0x1da   : > { %10971 = vst [vmem:[#allocation27_spill] sm:$0xff] %v7888_v52 }
 0x1db   : > { %1722 = vrot.lane.b32.xlu1 %v1692_v23, %s10945_s24 }
 0x1dd   : > { %v7891_v47 = vpop.permute.xlu1 %1311 }
 0x1de   : > { %10972 = vst [vmem:[#allocation28_spill] sm:$0xff] %v7891_v47 }
 0x1df   : > { %3593 = vrot.lane.b32.xlu1 %v3561_v32, %s10935_s27 }
 0x1e1   : > { %v7894_v54 = vpop.permute.xlu1 %3182 }
 0x1e2   : > { %10973 = vst [vmem:[#allocation29_spill] sm:$0xff] %v7894_v54  ;;  %v3676_v54 = vmul.f32 0.0, %v7909_v3 }
 0x1e3   : > { %1728 = vrot.lane.b32.xlu1 %v1692_v23, %s10945_s24 }
 0x1e5   : > { %v7897_v60 = vpop.permute.xlu1 %1317 }
 0x1e6   : > { %10974 = vst [vmem:[#allocation30_spill] sm:$0xff] %v7897_v60 }
 0x1e7   : > { %3599 = vrot.lane.b32.xlu1 %v3561_v32, %s10935_s27 }
 0x1e9   : > { %v7902_v12 = vpop.permute.xlu1 %3188 }
 0x1ea   : > { %10975 = vst [vmem:[#allocation31_spill] sm:$0xff] %v7902_v12  ;;  %v2354_v12 = vrot.slane %v7779_v20, %v7377_v35 }
 0x1eb   : > { %1734 = vrot.lane.b32.xlu1 %v1692_v23, %s10945_s24  ;;  %v3700_v23 = vpack.c.bf16 %v3676_v54, %v3676_v54 }
 0x1ed   : > { %v7906_v40 = vpop.permute.xlu1 %1438 }
 0x1ee   : > { %10976 = vst [vmem:[#allocation32_spill] sm:$0xff] %v7906_v40 }
 0x1ef   : > { %3605 = vrot.lane.b32.xlu1 %v3561_v32, %s10935_s27  ;;  %v4217_v32 = vrot.slane %v7794_v38, %v7382_v37 }
 0x1f1   : > { %v7911_v18 = vpop.permute.xlu1 %1940 }
 0x1f3   : > { %1855 = vrot.lane.b32.xlu1 %v1831_v50, %s10942_s21 }
 0x1f5   : > { %v7917_v52 = vpop.permute.xlu1 %3309 }
 0x1f6   : > { %10977 = vst [vmem:[#allocation33_spill] sm:$0xff] %v7917_v52 }
 0x1f7   : > { %2357 = vrot.lane.b32.xlu1 %v2354_v12, %s10932_s11 }
 0x1f9   : > { %v7920_v40 = vpop.permute.xlu1 %3805 }
 0x1fa   : > { %10978 = vst [vmem:[#allocation34_spill] sm:$0xff] %v7920_v40 }
 0x1fb   : > { %3726 = vrot.lane.b32.xlu1 %v3700_v23, %s10936_s28 }
 0x1fd   : > { %v7925_v36 = vpop.permute.xlu1 %1444 }
 0x1fe   : > { %10979 = vst [vmem:[#allocation35_spill] sm:$0xff] %v7925_v36 }
 0x1ff   : > { %4222 = vrot.lane.b32.xlu1 %v4217_v32, %s10955_s23 }
 0x201   : > { %v7928_v60 = vpop.permute.xlu1 %3315 }
 0x202   : > { %10980 = vst [vmem:[#allocation36_spill] sm:$0xff] %v7928_v60 }
 0x203   : > { %1861 = vrot.lane.b32.xlu1 %v1831_v50, %s10942_s21 }
 0x205   : > { %v7931_v20 = vpop.permute.xlu1 %1450 }
 0x206   : > { %10981 = vst [vmem:[#allocation37_spill] sm:$0xff] %v7931_v20 }
 0x207   : > { %3732 = vrot.lane.b32.xlu1 %v3700_v23, %s10936_s28 }
 0x209   : > { %v7934_v54 = vpop.permute.xlu1 %3321 }
 0x20a   : > { %10982 = vst [vmem:[#allocation38_spill] sm:$0xff] %v7934_v54  ;;  %v6725_v54 = vld [vmem:[%s10782_s1 + $0x14] ss:$8 sm:$0x3] }
 0x20b   : > { %1867 = vrot.lane.b32.xlu1 %v1831_v50, %s10942_s21 }
 0x20d   : > { %v7937_v12 = vpop.permute.xlu1 %1456 }
 0x20e   : > { %10983 = vst [vmem:[#allocation39_spill] sm:$0xff] %v7937_v12 }
 0x20f   : > { %3738 = vrot.lane.b32.xlu1 %v3700_v23, %s10936_s28 }
 0x211   : > { %v7940_v38 = vpop.permute.xlu1 %3327 }
 0x212   : > { %10984 = vst [vmem:[#allocation40_spill] sm:$0xff] %v7940_v38 }
 0x213   : > { %v991_v52 = vpop.f32.mrb[0].mxu0  ;;  %1873 = vrot.lane.b32.xlu1 %v1831_v50, %s10942_s21 }
 0x214   : > { %v992_v32 = vadd.f32 %v991_v52, %v7486_v61  ;;  %v993_v60 = vpop.f32.mrb[1].mxu0  ;;  %v7957_v52 = vrot.slane %v6725_v54, %v7377_v35 }
 0x215   : > { %v994_v20 = vadd.f32 %v993_v60, %v7486_v61  ;;  %v7945_v36 = vpop.permute.xlu1 %1577 }
 0x216   : > { %10985 = vst [vmem:[#allocation41_spill] sm:$0xff] %v7945_v36  ;;  %v7950_v42 = vmax.f32 %v992_v32, 0.0  ;;  %v7965_v32 = vrot.slane %v6725_v54, %v7382_v37 }
 0x217   : > { %v997_v12 = vpop.f32.mrb[2].mxu0  ;;  %3744 = vrot.lane.b32.xlu1 %v3700_v23, %s10936_s28  ;;  %v7953_v38 = vmax.f32 %v994_v20, 0.0  ;;  %v7970_v23 = vsel %vm10988_vm7, %v7534_v21, %v7560_v30  ;;  %vm10997_vm7 = vcmask 801792  }
 0x218   : > { %v998_v50 = vadd.f32 %v997_v12, %v7488_v62  ;;  %v999_v47 = vpop.f32.mrb[3].mxu0  ;;  %v2979_v31 = vmul.f32 %v7569_v33, %v7950_v42  ;;  %v2766_v40 = vmul.f32 %v7965_v32, %v7950_v42 }
 0x219   : > { %10986 = vst [vmem:[#allocation42_spill] sm:$0xff] %v7953_v38  ;;  %v1000_v61 = vadd.f32 %v999_v47, %v7488_v62  ;;  %v7960_v60 = vpop.permute.xlu1 %2079  ;;  %v2840_v62 = vmul.f32 %v7522_v15, %v7950_v42  ;;  %v2767_v21 = vmul.f32 %v7957_v52, %v7953_v38 }
 0x21a   : > { %10987 = vst [vmem:[#allocation43_spill] sm:$0xff] %v7960_v60  ;;  %v7962_v36 = vmax.f32 %v998_v50, 0.0  ;;  %v8059_v60 = vsel %vm10995_vm12, %v7805_v43, %v7834_v59  ;;  %vm11045_vm12 = vcmask 916480  }
 0x21b   : > { %v7972_v20 = vmax.f32 %v1000_v61, 0.0  ;;  %v1003_v12 = vpop.f32.mrb[4].mxu0 }
 0x21c   : > { %v1005_v47 = vpop.f32.mrb[5].mxu0  ;;  %v2982_v50 = vmul.f32 %v7569_v33, %v7962_v36  ;;  %v2843_v54 = vmul.f32 %v7522_v15, %v7962_v36  ;;  %v2768_v61 = vmul.f32 %v7965_v32, %v7962_v36  ;;  %v1004_v51 = vadd.f32 %v1003_v12, %v7499_v4 }
 0x21d   : > { %v1006_v7 = vadd.f32 %v1005_v47, %v7499_v4  ;;  %v7988_v17 = vpop.permute.xlu1 %3448  ;;  %v2769_v56 = vmul.f32 %v7957_v52, %v7972_v20  ;;  %v3121_v10 = vmul.f32 %v7767_v14, %v7962_v36  ;;  %v1116_v1 = vmul.f32 %v7970_v23, %v7962_v36 }
 0x21e   : > { %10989 = vst [vmem:[#allocation44_spill] sm:$0xff] %v7988_v17  ;;  %v3003_v53 = vpack.c.bf16 %v2982_v50, %v2979_v31  ;;  %v2864_v48 = vpack.c.bf16 %v2843_v54, %v2840_v62  ;;  %v3118_v4 = vmul.f32 %v7767_v14, %v7950_v42  ;;  %v2782_v31 = vpack.c.bf16 %v2768_v61, %v2766_v40 }
 0x21f   : > { %v1009_v63 = vpop.f32.mrb[6].mxu0  ;;  %v2783_v12 = vpack.c.bf16 %v2769_v56, %v2767_v21  ;;  %v8000_v47 = vmax.f32 %v1006_v7, 0.0  ;;  %v1113_v62 = vmul.f32 %v7970_v23, %v7950_v42  ;;  %v8007_v50 = vmax.f32 %v1004_v51, 0.0 }
 0x220   : > { %v1010_v17 = vadd.f32 %v1009_v63, %v7497_v2  ;;  %v1011_v22 = vpop.f32.mrb[7].mxu0  ;;  %3027 = vrot.lane.b32.xlu0 %v3003_v53, %s10931_s26  ;;  %2888 = vrot.lane.b32.xlu1 %v2864_v48, %s10930_s25  ;;  %v3142_v7 = vpack.c.bf16 %v3121_v10, %v3118_v4  ;;  %v8015_v63 = vsel %vm10991_vm9, %v7712_v55, %v7717_v58  ;;  %vm10999_vm9 = vcmask 900096  }
 0x221   : > { %v1012_v56 = vadd.f32 %v1011_v22, %v7497_v2  ;;  %5262 = vmatprep.subr.bf16.mxu1 %v2783_v12  ;;  %v8010_v54 = vpop.permute.xlu1 %3944  ;;  %v1137_v48 = vpack.c.bf16 %v1116_v1, %v1113_v62  ;;  %v3260_v40 = vmul.f32 %v7798_v41, %v7962_v36  ;;  %v1255_v51 = vmul.f32 %v8015_v63, %v7962_v36 }
 0x222   : > { %10990 = vst [vmem:[#allocation45_spill] sm:$0xff] %v8010_v54  ;;  %v8017_v53 = vmax.f32 %v1010_v17, 0.0  ;;  %5263 = vmatpush1.bf16.msra.mxu1 %v2782_v31  ;;  %v3257_v10 = vmul.f32 %v7798_v41, %v7950_v42  ;;  %v8030_v55 = vsel %vm10992_vm8, %v7770_v16, %v7774_v39  ;;  %v1252_v1 = vmul.f32 %v8015_v63, %v7950_v42 }
 0x223   : > { %v8023_v2 = vmax.f32 %v1012_v56, 0.0  ;;  %v1015_v22 = vpop.f32.mrb[8].mxu0  ;;  %v2771_v21 = vmul.f32 %v7957_v52, %v8000_v47  ;;  %v2770_v31 = vmul.f32 %v7965_v32, %v8007_v50  ;;  %v3399_v62 = vmul.f32 %v7849_v5, %v7962_v36 }
 0x224   : > { %v1017_v17 = vpop.f32.mrb[9].mxu0  ;;  %3166 = vrot.lane.b32.xlu0 %v3142_v7, %s10932_s11  ;;  %1162 = vrot.lane.b32.xlu1 %v1137_v48, %s10993_s9  ;;  %v2772_v61 = vmul.f32 %v7965_v32, %v8017_v53  ;;  %v1016_v56 = vadd.f32 %v1015_v22, %v7510_v9  ;;  %v3281_v7 = vpack.c.bf16 %v3260_v40, %v3257_v10  ;;  %vm11022_vm8 = vcmask 908288  }
 0x225   : > { %v1018_v12 = vadd.f32 %v1017_v17, %v7510_v9  ;;  %v8041_v4 = vpop.permute.xlu1 %1583  ;;  %v2773_v16 = vmul.f32 %v7957_v52, %v8023_v2  ;;  %v1276_v48 = vpack.c.bf16 %v1255_v51, %v1252_v1  ;;  %v1394_v54 = vmul.f32 %v8030_v55, %v7962_v36 }
 0x226   : > { %10994 = vst [vmem:[#allocation46_spill] sm:$0xff] %v8041_v4  ;;  %v3396_v4 = vmul.f32 %v7849_v5, %v7950_v42  ;;  %v1391_v37 = vmul.f32 %v8030_v55, %v7950_v42  ;;  %v2784_v51 = vpack.c.bf16 %v2772_v61, %v2770_v31  ;;  %v3538_v22 = vmul.f32 %v7832_v57, %v7962_v36 }
 0x227   : > { %v1021_v46 = vpop.f32.mrb[10].mxu0  ;;  %v2785_v17 = vpack.c.bf16 %v2773_v16, %v2771_v21  ;;  %v8066_v10 = vmax.f32 %v1018_v12, 0.0  ;;  %v8073_v16 = vmax.f32 %v1016_v56, 0.0  ;;  %v1533_v31 = vmul.f32 %v8059_v60, %v7962_v36 }
 0x228   : > { %v1022_v9 = vadd.f32 %v1021_v46, %v7508_v8  ;;  %v1023_v40 = vpop.f32.mrb[11].mxu0  ;;  %3305 = vrot.lane.b32.xlu0 %v3281_v7, %s10933_s13  ;;  %1301 = vrot.lane.b32.xlu1 %v1276_v48, %s10955_s23  ;;  %v3420_v43 = vpack.c.bf16 %v3399_v62, %v3396_v4  ;;  %v3535_v46 = vmul.f32 %v7832_v57, %v7950_v42 }
 0x229   : > { %v1024_v1 = vadd.f32 %v1023_v40, %v7508_v8  ;;  %5264 = vmatprep.subr.bf16.mxu1 %v2785_v17  ;;  %v8069_v21 = vpop.permute.xlu1 %3454  ;;  %v1415_v61 = vpack.c.bf16 %v1394_v54, %v1391_v37  ;;  %v8082_v8 = vsel %vm10997_vm7, %v7860_v11, %v7823_v26  ;;  %v1530_v37 = vmul.f32 %v8059_v60, %v7950_v42 }
 0x22a   : > { %10996 = vst [vmem:[#allocation47_spill] sm:$0xff] %v8069_v21  ;;  %v8075_v7 = vmax.f32 %v1022_v9, 0.0  ;;  %5265 = vmatpush1.bf16.msra.mxu1 %v2784_v51  ;;  %v3559_v56 = vpack.c.bf16 %v3538_v22, %v3535_v46  ;;  %v2775_v11 = vmul.f32 %v7957_v52, %v8066_v10  ;;  %v3677_v40 = vmul.f32 %v7880_v44, %v7962_v36 }
 0x22b   : > { %v8084_v12 = vmax.f32 %v1024_v1, 0.0  ;;  %v1027_v4 = vpop.f32.mrb[12].mxu0  ;;  %v1554_v22 = vpack.c.bf16 %v1533_v31, %v1530_v37  ;;  %v2774_v1 = vmul.f32 %v7965_v32, %v8073_v16  ;;  %v8109_v46 = vsel %vm10999_vm9, %v7900_v6, %v7871_v28 }
 0x22c   : > { %v1029_v62 = vpop.f32.mrb[13].mxu0  ;;  %3444 = vrot.lane.b32.xlu0 %v3420_v43, %s10934_s17  ;;  %1440 = vrot.lane.b32.xlu1 %v1415_v61, %s10956_s7  ;;  %v2776_v54 = vmul.f32 %v7965_v32, %v8075_v7  ;;  %v1028_v51 = vadd.f32 %v1027_v4, %v7527_v19  ;;  %v1672_v43 = vmul.f32 %v8082_v8, %v7962_v36  ;;  %vm11071_vm7 = vcmask 924672  }
 0x22d   : > { %v1030_v48 = vadd.f32 %v1029_v62, %v7527_v19  ;;  %v8093_v17 = vpop.permute.xlu1 %1589  ;;  %v2777_v9 = vmul.f32 %v7957_v52, %v8084_v12  ;;  %v3674_v21 = vmul.f32 %v7880_v44, %v7950_v42  ;;  %v1669_v4 = vmul.f32 %v8082_v8, %v7950_v42 }
 0x22e   : > { %10998 = vst [vmem:[#allocation48_spill] sm:$0xff] %v8093_v17  ;;  %v2786_v31 = vpack.c.bf16 %v2776_v54, %v2774_v1  ;;  %v8125_v24 = vmax.f32 %v1028_v51, 0.0  ;;  %v8149_v51 = vsel %vm567_vm15, %v7569_v33, %v7680_v34  ;;  %vm11105_vm9 = vcmask 252928  }
 0x22f   : > { %v1033_v61 = vpop.f32.mrb[14].mxu0  ;;  %v2787_v62 = vpack.c.bf16 %v2777_v9, %v2775_v11  ;;  %v8118_v37 = vmax.f32 %v1030_v48, 0.0  ;;  %v3698_v9 = vpack.c.bf16 %v3677_v40, %v3674_v21  ;;  %v1693_v54 = vpack.c.bf16 %v1672_v43, %v1669_v4 }
 0x230   : > { %v1034_v17 = vadd.f32 %v1033_v61, %v7558_v29  ;;  %v1035_v19 = vpop.f32.mrb[15].mxu0  ;;  %3583 = vrot.lane.b32.xlu0 %v3559_v56, %s10935_s27  ;;  %1579 = vrot.lane.b32.xlu1 %v1554_v22, %s10952_s15  ;;  %v1117_v61 = vmul.f32 %v7560_v30, %v7972_v20  ;;  %v1811_v22 = vmul.f32 %v8109_v46, %v7962_v36 }
 0x231   : > { %v1036_v6 = vadd.f32 %v1035_v19, %v7558_v29  ;;  %5266 = vmatprep.subr.bf16.mxu1 %v2787_v62  ;;  %v8121_v11 = vpop.permute.xlu1 %3460  ;;  %v1114_v29 = vmul.f32 %v7560_v30, %v7953_v38  ;;  %v1808_v21 = vmul.f32 %v8109_v46, %v7950_v42  ;;  %v8144_v40 = vsel %vm588_vm14, %v7522_v15, %v7519_v13 }
 0x232   : > { %11000 = vst [vmem:[#allocation49_spill] sm:$0xff] %v8121_v11  ;;  %v8127_v56 = vmax.f32 %v1034_v17, 0.0  ;;  %5267 = vmatpush1.bf16.msra.mxu1 %v2786_v31  ;;  %v2779_v62 = vmul.f32 %v7957_v52, %v8118_v37  ;;  %v2778_v4 = vmul.f32 %v7965_v32, %v8125_v24  ;;  %v2983_v13 = vmul.f32 %v8149_v51, %v7972_v20 }
 0x233   : > { %v8131_v48 = vmax.f32 %v1036_v6, 0.0  ;;  %v1138_v43 = vpack.c.bf16 %v1117_v61, %v1114_v29  ;;  %v1832_v31 = vpack.c.bf16 %v1811_v22, %v1808_v21  ;;  %v2844_v34 = vmul.f32 %v8144_v40, %v7972_v20 }
 0x234   : > { %3722 = vrot.lane.b32.xlu0 %v3698_v9, %s10936_s28  ;;  %1718 = vrot.lane.b32.xlu1 %v1693_v54, %s10945_s24  ;;  %v2780_v17 = vmul.f32 %v7965_v32, %v8127_v56  ;;  %v2980_v61 = vmul.f32 %v8149_v51, %v7953_v38  ;;  %v1256_v29 = vmul.f32 %v7717_v58, %v7972_v20 }
 0x235   : > { %v8151_v1 = vpop.permute.xlu1 %1595  ;;  %v2781_v19 = vmul.f32 %v7957_v52, %v8131_v48  ;;  %v2841_v52 = vmul.f32 %v8144_v40, %v7953_v38  ;;  %v1122_v21 = vmul.f32 %v7970_v23, %v8017_v53 }
 0x236   : > { %11001 = vst [vmem:[#allocation50_spill] sm:$0xff] %v8151_v1  ;;  %v2788_v9 = vpack.c.bf16 %v2780_v17, %v2778_v4  ;;  %v3004_v54 = vpack.c.bf16 %v2983_v13, %v2980_v61  ;;  %v1253_v17 = vmul.f32 %v7717_v58, %v7953_v38 }
 0x237   : > { %v2789_v6 = vpack.c.bf16 %v2781_v19, %v2779_v62  ;;  %v2865_v22 = vpack.c.bf16 %v2844_v34, %v2841_v52  ;;  %v8184_v62 = vsel %vm546_vm0, %v7767_v14, %v7736_v0  ;;  %v1261_v34 = vmul.f32 %v8015_v63, %v8017_v53 }
 0x238   : > { %1164 = vrot.lane.b32.xlu0 %v1138_v43, %s10993_s9  ;;  %1857 = vrot.lane.b32.xlu1 %v1832_v31, %s10942_s21  ;;  %v1119_v43 = vmul.f32 %v7970_v23, %v8007_v50  ;;  %v1277_v31 = vpack.c.bf16 %v1256_v29, %v1253_v17  ;;  %v3122_v13 = vmul.f32 %v8184_v62, %v7972_v20 }
 0x239   : > { %5268 = vmatprep.subr.bf16.mxu1 %v2789_v6  ;;  %v8169_v32 = vpop.permute.xlu1 %3466  ;;  %v3119_v6 = vmul.f32 %v8184_v62, %v7953_v38  ;;  %v1258_v0 = vmul.f32 %v8015_v63, %v8007_v50  ;;  %v1392_v29 = vmul.f32 %v7774_v39, %v7953_v38  ;;  %v8213_v17 = vsel %vm525_vm2, %v7798_v41, %v7785_v27 }
 0x23a   : > { %11002 = vst [vmem:[#allocation51_spill] sm:$0xff] %v8169_v32  ;;  %5269 = vmatpush1.bf16.msra.mxu1 %v2788_v9  ;;  %v1140_v4 = vpack.c.bf16 %v1122_v21, %v1119_v43  ;;  %v1397_v21 = vmul.f32 %v8030_v55, %v8007_v50  ;;  %v1536_v27 = vmul.f32 %v8059_v60, %v8007_v50 }
 0x23b   : > { %v3143_v61 = vpack.c.bf16 %v3122_v13, %v3119_v6  ;;  %v1279_v52 = vpack.c.bf16 %v1261_v34, %v1258_v0  ;;  %v3261_v13 = vmul.f32 %v8213_v17, %v7972_v20  ;;  %v1539_v34 = vmul.f32 %v8059_v60, %v8017_v53 }
 0x23c   : > { %3029 = vrot.lane.b32.xlu0 %v3004_v54, %s10931_s26  ;;  %2890 = vrot.lane.b32.xlu1 %v2865_v22, %s10930_s25  ;;  %v1395_v54 = vmul.f32 %v7774_v39, %v7972_v20  ;;  %v1400_v22 = vmul.f32 %v8030_v55, %v8017_v53  ;;  %v3258_v6 = vmul.f32 %v8213_v17, %v7953_v38 }
 0x23d   : > { %v8186_v19 = vpop.permute.xlu1 %1716  ;;  %v3128_v11 = vmul.f32 %v8184_v62, %v8023_v2 }
 0x23e   : > { %11003 = vst [vmem:[#allocation52_spill] sm:$0xff] %v8186_v19 }
 0x240   : > { %1303 = vrot.lane.b32.xlu0 %v1277_v31, %s10955_s23  ;;  %1168 = vrot.lane.b32.xlu1 %v1140_v4, %s10993_s9  ;;  %v1416_v31 = vpack.c.bf16 %v1395_v54, %v1392_v29  ;;  %v1418_v4 = vpack.c.bf16 %v1400_v22, %v1397_v21  ;;  %v1534_v54 = vmul.f32 %v7834_v59, %v7972_v20 }
 0x241   : > { %v8198_v9 = vpop.permute.xlu1 %2218  ;;  %v1678_v22 = vmul.f32 %v8082_v8, %v8017_v53  ;;  %v1531_v29 = vmul.f32 %v7834_v59, %v7953_v38  ;;  %v1675_v21 = vmul.f32 %v8082_v8, %v8007_v50 }
 0x244   : > { %3168 = vrot.lane.b32.xlu0 %v3143_v61, %s10932_s11  ;;  %1307 = vrot.lane.b32.xlu1 %v1279_v52, %s10955_s23  ;;  %v3282_v61 = vpack.c.bf16 %v3261_v13, %v3258_v6  ;;  %v1557_v52 = vpack.c.bf16 %v1539_v34, %v1536_v27  ;;  %v1555_v13 = vpack.c.bf16 %v1534_v54, %v1531_v29 }
 0x245   : > { %v8215_v43 = vpop.permute.xlu1 %3587  ;;  %v1696_v34 = vpack.c.bf16 %v1678_v22, %v1675_v21  ;;  %v1817_v27 = vmul.f32 %v8109_v46, %v8017_v53  ;;  %v1673_v29 = vmul.f32 %v7823_v26, %v7972_v20  ;;  %v2855_v21 = vmul.f32 %v7522_v15, %v8075_v7 }
 0x246   : > { %11004 = vst [vmem:[#allocation53_spill] sm:$0xff] %v8215_v43 }
 0x248   : > { %1442 = vrot.lane.b32.xlu0 %v1416_v31, %s10956_s7  ;;  %1446 = vrot.lane.b32.xlu1 %v1418_v4, %s10956_s7  ;;  %v8244_v4 = vsel %vm504_vm4, %v7849_v5, %v7808_v45 }
 0x249   : > { %v8227_v0 = vpop.permute.xlu1 %4083  ;;  %v3400_v6 = vmul.f32 %v8244_v4, %v7972_v20 }
 0x24a   : > { %11005 = vst [vmem:[#allocation54_spill] sm:$0xff] %v8227_v0 }
 0x24c   : > { %3307 = vrot.lane.b32.xlu0 %v3282_v61, %s10933_s13  ;;  %1585 = vrot.lane.b32.xlu1 %v1557_v52, %s10952_s15  ;;  %v3397_v61 = vmul.f32 %v8244_v4, %v7953_v38  ;;  %v1814_v52 = vmul.f32 %v8109_v46, %v8007_v50 }
 0x24d   : > { %v8239_v31 = vpop.permute.xlu1 %1722 }
 0x24e   : > { %11006 = vst [vmem:[#allocation55_spill] sm:$0xff] %v8239_v31  ;;  %v3421_v54 = vpack.c.bf16 %v3400_v6, %v3397_v61  ;;  %v1835_v22 = vpack.c.bf16 %v1817_v27, %v1814_v52  ;;  %v8271_v6 = vsel %vm483_vm3, %v7832_v57, %v7869_v25  ;;  %v1125_v25 = vmul.f32 %v7970_v23, %v8073_v16 }
 0x250   : > { %1581 = vrot.lane.b32.xlu0 %v1555_v13, %s10952_s15  ;;  %1724 = vrot.lane.b32.xlu1 %v1696_v34, %s10945_s24  ;;  %v1670_v13 = vmul.f32 %v7823_v26, %v7953_v38  ;;  %v2852_v34 = vmul.f32 %v7522_v15, %v8073_v16 }
 0x251   : > { %v8256_v45 = vpop.permute.xlu1 %3593 }
 0x252   : > { %11007 = vst [vmem:[#allocation56_spill] sm:$0xff] %v8256_v45  ;;  %v1694_v61 = vpack.c.bf16 %v1673_v29, %v1670_v13  ;;  %v2870_v52 = vpack.c.bf16 %v2855_v21, %v2852_v34  ;;  %v3536_v45 = vmul.f32 %v8271_v6, %v7953_v38  ;;  %v1812_v13 = vmul.f32 %v7871_v28, %v7972_v20 }
 0x253   : > { %v1267_v34 = vmul.f32 %v8015_v63, %v8075_v7 }
 0x254   : > { %3446 = vrot.lane.b32.xlu0 %v3421_v54, %s10934_s17  ;;  %1863 = vrot.lane.b32.xlu1 %v1835_v22, %s10942_s21  ;;  %v3539_v54 = vmul.f32 %v8271_v6, %v7972_v20  ;;  %v1128_v22 = vmul.f32 %v7970_v23, %v8075_v7 }
 0x255   : > { %v8273_v27 = vpop.permute.xlu1 %1728 }
 0x256   : > { %11008 = vst [vmem:[#allocation57_spill] sm:$0xff] %v8273_v27  ;;  %v3560_v29 = vpack.c.bf16 %v3539_v54, %v3536_v45  ;;  %v1143_v21 = vpack.c.bf16 %v1128_v22, %v1125_v25  ;;  %v8300_v45 = vsel %vm462_vm5, %v7880_v44, %v7909_v3 }
 0x257   : > { %v3675_v3 = vmul.f32 %v8300_v45, %v7953_v38 }
 0x258   : > { %1720 = vrot.lane.b32.xlu0 %v1694_v61, %s10945_s24  ;;  %2900 = vrot.lane.b32.xlu1 %v2870_v52, %s10930_s25  ;;  %v1809_v61 = vmul.f32 %v7871_v28, %v7953_v38  ;;  %v1264_v52 = vmul.f32 %v8015_v63, %v8073_v16 }
 0x259   : > { %v8285_v43 = vpop.permute.xlu1 %3599 }
 0x25a   : > { %11009 = vst [vmem:[#allocation58_spill] sm:$0xff] %v8285_v43  ;;  %v1833_v22 = vpack.c.bf16 %v1812_v13, %v1809_v61  ;;  %v1282_v25 = vpack.c.bf16 %v1267_v34, %v1264_v52  ;;  %v1403_v43 = vmul.f32 %v8030_v55, %v8073_v16  ;;  %v1545_v61 = vmul.f32 %v8059_v60, %v8075_v7 }
 0x25b   : > { %v2849_v52 = vmul.f32 %v7522_v15, %v8017_v53 }
 0x25c   : > { %3585 = vrot.lane.b32.xlu0 %v3560_v29, %s10935_s27  ;;  %1174 = vrot.lane.b32.xlu1 %v1143_v21, %s10993_s9  ;;  %v1406_v29 = vmul.f32 %v8030_v55, %v8075_v7  ;;  %v3678_v21 = vmul.f32 %v8300_v45, %v7972_v20 }
 0x25d   : > { %v8302_v54 = vpop.permute.xlu1 %1734 }
 0x25e   : > { %11010 = vst [vmem:[#allocation59_spill] sm:$0xff] %v8302_v54  ;;  %v1421_v13 = vpack.c.bf16 %v1406_v29, %v1403_v43  ;;  %v3699_v34 = vpack.c.bf16 %v3678_v21, %v3675_v3  ;;  %v1684_v21 = vmul.f32 %v8082_v8, %v8075_v7  ;;  %v2988_v3 = vmul.f32 %v7569_v33, %v8017_v53 }
 0x260   : > { %1859 = vrot.lane.b32.xlu0 %v1833_v22, %s10942_s21  ;;  %1313 = vrot.lane.b32.xlu1 %v1282_v25, %s10955_s23  ;;  %v1542_v22 = vmul.f32 %v8059_v60, %v8073_v16  ;;  %v2846_v25 = vmul.f32 %v7522_v15, %v8007_v50 }
 0x261   : > { %v8314_v27 = vpop.permute.xlu1 %3605 }
 0x262   : > { %11011 = vst [vmem:[#allocation60_spill] sm:$0xff] %v8314_v27  ;;  %v1560_v43 = vpack.c.bf16 %v1545_v61, %v1542_v22  ;;  %v2867_v29 = vpack.c.bf16 %v2849_v52, %v2846_v25  ;;  %v1823_v22 = vmul.f32 %v8109_v46, %v8075_v7  ;;  %v3127_v25 = vmul.f32 %v7767_v14, %v8017_v53 }
 0x264   : > { %1452 = vrot.lane.b32.xlu1 %v1421_v13, %s10956_s7  ;;  %3724 = vrot.lane.b32.xlu0 %v3699_v34, %s10936_s28  ;;  %v1681_v13 = vmul.f32 %v8082_v8, %v8073_v16  ;;  %v2985_v34 = vmul.f32 %v7569_v33, %v8007_v50 }
 0x265   : > { %v8326_v54 = vpop.permute.xlu1 %1855 }
 0x266   : > { %11012 = vst [vmem:[#allocation61_spill] sm:$0xff] %v8326_v54  ;;  %v1699_v61 = vpack.c.bf16 %v1684_v21, %v1681_v13  ;;  %v3006_v52 = vpack.c.bf16 %v2988_v3, %v2985_v34  ;;  %v8352_v21 = vpop.permute.xlu0 %1938  ;;  %v2856_v34 = vmul.f32 %v8144_v40, %v8084_v12 }
 0x268   : > { %1591 = vrot.lane.b32.xlu1 %v1560_v43, %s10952_s15  ;;  %2894 = vrot.lane.b32.xlu0 %v2867_v29, %s10930_s25  ;;  %v1820_v43 = vmul.f32 %v8109_v46, %v8073_v16  ;;  %v3124_v29 = vmul.f32 %v7767_v14, %v8007_v50 }
 0x269   : > { %v8338_v27 = vpop.permute.xlu1 %2357 }
 0x26a   : > { %11013 = vst [vmem:[#allocation62_spill] sm:$0xff] %v8338_v27  ;;  %v1838_v3 = vpack.c.bf16 %v1823_v22, %v1820_v43  ;;  %v3145_v13 = vpack.c.bf16 %v3127_v25, %v3124_v29  ;;  %v1134_v43 = vmul.f32 %v7970_v23, %v8127_v56  ;;  %v3405_v29 = vmul.f32 %v7849_v5, %v8017_v53  ;;  %v8370_v31 = vpop.permute.xlu0 %3807 }
 0x26b   : > { %11016 = vst [vmem:[#allocation65_spill] sm:$0xff] %v8370_v31 }
 0x26c   : > { %1730 = vrot.lane.b32.xlu1 %v1699_v61, %s10945_s24  ;;  %3033 = vrot.lane.b32.xlu0 %v3006_v52, %s10931_s26  ;;  %v3266_v61 = vmul.f32 %v7798_v41, %v8017_v53  ;;  %v2853_v52 = vmul.f32 %v8144_v40, %v8066_v10 }
 0x26d   : > { %v8350_v54 = vpop.permute.xlu1 %3726 }
 0x26e   : > { %11014 = vst [vmem:[#allocation63_spill] sm:$0xff] %v8350_v54  ;;  %v3263_v54 = vmul.f32 %v7798_v41, %v8007_v50  ;;  %v2871_v22 = vpack.c.bf16 %v2856_v34, %v2853_v52  ;;  %v1273_v52 = vmul.f32 %v8015_v63, %v8127_v56 }
 0x270   : > { %1869 = vrot.lane.b32.xlu1 %v1838_v3, %s10942_s21  ;;  %3172 = vrot.lane.b32.xlu0 %v3145_v13, %s10932_s11  ;;  %v3284_v25 = vpack.c.bf16 %v3266_v61, %v3263_v54  ;;  %v1131_v3 = vmul.f32 %v7970_v23, %v8125_v24  ;;  %v3402_v13 = vmul.f32 %v7849_v5, %v8007_v50 }
 0x271   : > { %v8364_v32 = vpop.permute.xlu1 %4222  ;;  %v1270_v23 = vmul.f32 %v8015_v63, %v8125_v24  ;;  %v1409_v63 = vmul.f32 %v8030_v55, %v8125_v24 }
 0x272   : > { %11015 = vst [vmem:[#allocation64_spill] sm:$0xff] %v8364_v32  ;;  %v1146_v54 = vpack.c.bf16 %v1134_v43, %v1131_v3  ;;  %v3423_v61 = vpack.c.bf16 %v3405_v29, %v3402_v13  ;;  %v3544_v32 = vmul.f32 %v7832_v57, %v8017_v53  ;;  %v8392_v43 = vpop.permute.xlu0 %2077  ;;  %v1412_v13 = vmul.f32 %v8030_v55, %v8127_v56 }
 0x273   : > { %v1285_v29 = vpack.c.bf16 %v1273_v52, %v1270_v23  ;;  %v1548_v55 = vmul.f32 %v8059_v60, %v8125_v24 }
 0x274   : > { %2902 = vrot.lane.b32.xlu1 %v2871_v22, %s10930_s25  ;;  %3311 = vrot.lane.b32.xlu0 %v3284_v25, %s10933_s13  ;;  %v3541_v22 = vmul.f32 %v7832_v57, %v8007_v50 }
 0x275   : > { %v8378_v34 = vpop.permute.xlu1 %1861 }
 0x276   : > { %11017 = vst [vmem:[#allocation66_spill] sm:$0xff] %v8378_v34  ;;  %v3562_v3 = vpack.c.bf16 %v3544_v32, %v3541_v22  ;;  %v8406_v52 = vpop.permute.xlu0 %3946  ;;  %v1424_v32 = vpack.c.bf16 %v1412_v13, %v1409_v63  ;;  %v1551_v22 = vmul.f32 %v8059_v60, %v8127_v56  ;;  %v1687_v60 = vmul.f32 %v8082_v8, %v8125_v24 }
 0x278   : > { %1180 = vrot.lane.b32.xlu1 %v1146_v54, %s10993_s9  ;;  %3450 = vrot.lane.b32.xlu0 %v3423_v61, %s10934_s17  ;;  %v3683_v54 = vmul.f32 %v7880_v44, %v8017_v53  ;;  %v3680_v61 = vmul.f32 %v7880_v44, %v8007_v50 }
 0x279   : > { %v8390_v25 = vpop.permute.xlu1 %3732 }
 0x27a   : > { %11018 = vst [vmem:[#allocation67_spill] sm:$0xff] %v8390_v25  ;;  %v3701_v23 = vpack.c.bf16 %v3683_v54, %v3680_v61  ;;  %v8420_v13 = vpop.permute.xlu0 %2216  ;;  %v1563_v54 = vpack.c.bf16 %v1551_v22, %v1548_v55  ;;  %v1690_v61 = vmul.f32 %v8082_v8, %v8127_v56  ;;  %v1826_v8 = vmul.f32 %v8109_v46, %v8125_v24 }
 0x27c   : > { %1319 = vrot.lane.b32.xlu1 %v1285_v29, %s10955_s23  ;;  %3589 = vrot.lane.b32.xlu0 %v3562_v3, %s10935_s27  ;;  %v2850_v29 = vmul.f32 %v8144_v40, %v8023_v2  ;;  %v2847_v3 = vmul.f32 %v8144_v40, %v8000_v47  ;;  %v1702_v22 = vpack.c.bf16 %v1690_v61, %v1687_v60 }
 0x27d   : > { %v8404_v25 = vpop.permute.xlu1 %1867  ;;  %v8449_v61 = vsel %vm11022_vm8, %v8352_v21, %v7911_v18  ;;  %vm11113_vm8 = vcmask 1031168  }
 0x27e   : > { %11019 = vst [vmem:[#allocation68_spill] sm:$0xff] %v8404_v25  ;;  %v2868_v63 = vpack.c.bf16 %v2850_v29, %v2847_v3  ;;  %v1829_v3 = vmul.f32 %v8109_v46, %v8127_v56  ;;  %v1947_v34 = vmul.f32 %v8449_v61, %v7950_v42 }
 0x280   : > { %1458 = vrot.lane.b32.xlu1 %v1424_v32, %s10956_s7  ;;  %3728 = vrot.lane.b32.xlu0 %v3701_v23, %s10936_s28  ;;  %v1123_v32 = vmul.f32 %v7560_v30, %v8023_v2  ;;  %v1120_v23 = vmul.f32 %v7560_v30, %v8000_v47  ;;  %v1841_v60 = vpack.c.bf16 %v1829_v3, %v1826_v8  ;;  %v1946_v3 = vmul.f32 0.0, %v8352_v21 }
 0x281   : > { %v8418_v25 = vpop.permute.xlu1 %3738 }
 0x282   : > { %11020 = vst [vmem:[#allocation69_spill] sm:$0xff] %v8418_v25  ;;  %v8432_v25 = vpop.permute.xlu0 %4085  ;;  %v1141_v29 = vpack.c.bf16 %v1123_v32, %v1120_v23  ;;  %v8479_v21 = vpack.c.bf16 %v1946_v3, %v1946_v3 }
 0x284   : > { %1597 = vrot.lane.b32.xlu1 %v1563_v54, %s10952_s15  ;;  %2896 = vrot.lane.b32.xlu0 %v2868_v63, %s10930_s25  ;;  %v2989_v54 = vmul.f32 %v8149_v51, %v8023_v2  ;;  %v2986_v63 = vmul.f32 %v8149_v51, %v8000_v47 }
 0x285   : > { %v8434_v55 = vpop.permute.xlu1 %1873 }
 0x286   : > { %11021 = vst [vmem:[#allocation70_spill] sm:$0xff] %v8434_v55  ;;  %v8451_v32 = vpop.permute.xlu0 %2355  ;;  %v3007_v23 = vpack.c.bf16 %v2989_v54, %v2986_v63  ;;  %v1259_v55 = vmul.f32 %v7717_v58, %v8000_v47 }
 0x288   : > { %1736 = vrot.lane.b32.xlu1 %v1702_v22, %s10945_s24  ;;  %1170 = vrot.lane.b32.xlu0 %v1141_v29, %s10993_s9  ;;  %v1262_v22 = vmul.f32 %v7717_v58, %v8023_v2  ;;  %v1950_v29 = vmul.f32 %v8449_v61, %v7962_v36 }
 0x289   : > { %v8459_v46 = vpop.permute.xlu1 %3744 }
 0x28a   : > { %11023 = vst [vmem:[#allocation71_spill] sm:$0xff] %v8459_v46  ;;  %v8466_v54 = vpop.permute.xlu0 %4224  ;;  %v1280_v8 = vpack.c.bf16 %v1262_v22, %v1259_v55  ;;  %v1971_v63 = vpack.c.bf16 %v1950_v29, %v1947_v34  ;;  %v1401_v22 = vmul.f32 %v7774_v39, %v8023_v2  ;;  %v1398_v29 = vmul.f32 %v7774_v39, %v8000_v47 }
 0x28b   : > { %11024 = vst [vmem:[#allocation72_spill] sm:$0xff] %v8466_v54 }
 0x28c   : > { %1875 = vrot.lane.b32.xlu1 %v1841_v60, %s10942_s21  ;;  %3035 = vrot.lane.b32.xlu0 %v3007_v23, %s10931_s26  ;;  %v3125_v60 = vmul.f32 %v8184_v62, %v8000_v47  ;;  %v8477_v23 = vld [vmem:[%s10782_s1 + $0x12] ss:$8 sm:$0x3] }
 0x28d   : > { %11025 = vst [vmem:[#allocation73_spill] sm:$0xff] %v8477_v23  ;;  %v2493_v3 = vrot.slane %v8477_v23, %v7377_v35 }
 0x28e   : > { %v3146_v55 = vpack.c.bf16 %v3128_v11, %v3125_v60  ;;  %v1419_v11 = vpack.c.bf16 %v1401_v22, %v1398_v29  ;;  %v3267_v60 = vmul.f32 %v8213_v17, %v8023_v2  ;;  %v1540_v22 = vmul.f32 %v7834_v59, %v8023_v2 }
 0x28f   : > { %v1956_v29 = vmul.f32 %v8449_v61, %v8017_v53 }
 0x290   : > { %1309 = vrot.lane.b32.xlu0 %v1280_v8, %s10955_s23  ;;  %1996 = vrot.lane.b32.xlu1 %v1971_v63, %s10941_s16  ;;  %v3815_v8 = vmul.f32 0.0, %v8370_v31 }
 0x292   : > { %v8481_v46 = vpop.permute.xlu1 %2888  ;;  %v8483_v34 = vpop.permute.xlu0 %3027  ;;  %v8503_v1 = vpack.c.bf16 %v3815_v8, %v3815_v8  ;;  %v1953_v8 = vmul.f32 %v8449_v61, %v8007_v50 }
 0x293   : > { %11026 = vst [vmem:[#allocation74_spill] sm:$0xff] %v8483_v34 }
 0x294   : > { %3174 = vrot.lane.b32.xlu0 %v3146_v55, %s10932_s11  ;;  %1994 = vrot.lane.b32.xlu1 %v8479_v21, %s10941_s16  ;;  %v3264_v55 = vmul.f32 %v8213_v17, %v8000_v47 }
 0x296   : > { %v1163_v63 = vpop.permute.xlu1 %1162  ;;  %v8495_v19 = vpop.permute.xlu0 %3166  ;;  %v3285_v31 = vpack.c.bf16 %v3267_v60, %v3264_v55 }
 0x297   : > { %11027 = vst [vmem:[#allocation75_spill] sm:$0xff] %v8495_v19  ;;  %v3406_v19 = vmul.f32 %v8244_v4, %v8023_v2 }
 0x298   : > { %1448 = vrot.lane.b32.xlu0 %v1419_v11, %s10956_s7  ;;  %2496 = vrot.lane.b32.xlu1 %v2493_v3, %s10931_s26  ;;  %v1537_v3 = vmul.f32 %v7834_v59, %v8000_v47 }
 0x29a   : > { %v8505_v0 = vpop.permute.xlu1 %1301  ;;  %v8507_v34 = vpop.permute.xlu0 %3305  ;;  %v1558_v55 = vpack.c.bf16 %v1540_v22, %v1537_v3  ;;  %v1676_v22 = vmul.f32 %v7823_v26, %v8000_v47 }
 0x29b   : > { %11028 = vst [vmem:[#allocation76_spill] sm:$0xff] %v8505_v0  ;;  %11029 = vst [vmem:[#allocation77_spill] sm:$0xff] %v8507_v34  ;;  %v1974_v34 = vpack.c.bf16 %v1956_v29, %v1953_v8  ;;  %v3545_v8 = vmul.f32 %v8271_v6, %v8023_v2 }
 0x29c   : > { %3313 = vrot.lane.b32.xlu0 %v3285_v31, %s10933_s13  ;;  %3865 = vrot.lane.b32.xlu1 %v8503_v1, %s10937_s22  ;;  %v3403_v31 = vmul.f32 %v8244_v4, %v8000_v47 }
 0x29e   : > { %v8520_v11 = vpop.permute.xlu1 %1440  ;;  %v8522_v60 = vpop.permute.xlu0 %3444  ;;  %v3424_v38 = vpack.c.bf16 %v3406_v19, %v3403_v31  ;;  %v1962_v19 = vmul.f32 %v8449_v61, %v8075_v7 }
 0x29f   : > { %11030 = vst [vmem:[#allocation78_spill] sm:$0xff] %v8520_v11  ;;  %11031 = vst [vmem:[#allocation79_spill] sm:$0xff] %v8522_v60  ;;  %v1679_v60 = vmul.f32 %v7823_v26, %v8023_v2  ;;  %v3272_v11 = vmul.f32 %v7798_v41, %v8075_v7 }
 0x2a0   : > { %1587 = vrot.lane.b32.xlu0 %v1558_v55, %s10952_s15  ;;  %2002 = vrot.lane.b32.xlu1 %v1974_v34, %s10941_s16  ;;  %v1959_v55 = vmul.f32 %v8449_v61, %v8073_v16 }
 0x2a1   : > { %v1697_v3 = vpack.c.bf16 %v1679_v60, %v1676_v22 }
 0x2a2   : > { %v8530_v0 = vpop.permute.xlu1 %1579  ;;  %v8532_v23 = vpop.permute.xlu0 %3583 }
 0x2a3   : > { %11032 = vst [vmem:[#allocation80_spill] sm:$0xff] %v8530_v0  ;;  %11033 = vst [vmem:[#allocation81_spill] sm:$0xff] %v8532_v23  ;;  %v1818_v23 = vmul.f32 %v7871_v28, %v8023_v2  ;;  %v1185_v0 = vsel %vm10914_vm10, %v7819_v49, %v1163_v63  ;;  %v3681_v49 = vmul.f32 %v8300_v45, %v8000_v47 }
 0x2a4   : > { %3452 = vrot.lane.b32.xlu0 %v3424_v38, %s10934_s17  ;;  %2000 = vrot.lane.b32.xlu1 %v8479_v21, %s10941_s16  ;;  %v3542_v38 = vmul.f32 %v8271_v6, %v8000_v47 }
 0x2a6   : > { %v8541_v34 = vpop.permute.xlu1 %1718  ;;  %v8543_v29 = vpop.permute.xlu0 %3722  ;;  %v3563_v22 = vpack.c.bf16 %v3545_v8, %v3542_v38  ;;  %v3684_v38 = vmul.f32 %v8300_v45, %v8023_v2 }
 0x2a7   : > { %11034 = vst [vmem:[#allocation82_spill] sm:$0xff] %v8541_v34  ;;  %11035 = vst [vmem:[#allocation83_spill] sm:$0xff] %v8543_v29  ;;  %v1977_v29 = vpack.c.bf16 %v1962_v19, %v1959_v55  ;;  %v11038_v55 = vld [vmem:[#allocation17_spill] sm:$0xff] }
 0x2a8   : > { %1726 = vrot.lane.b32.xlu0 %v1697_v3, %s10945_s24  ;;  %3871 = vrot.lane.b32.xlu1 %v8503_v1, %s10937_s22  ;;  %v1815_v3 = vmul.f32 %v7871_v28, %v8000_v47 }
 0x2aa   : > { %v8556_v31 = vpop.permute.xlu1 %1857  ;;  %v1165_v60 = vpop.permute.xlu0 %1164  ;;  %v1836_v19 = vpack.c.bf16 %v1818_v23, %v1815_v3 }
 0x2ab   : > { %11036 = vst [vmem:[#allocation84_spill] sm:$0xff] %v8556_v31  ;;  %v1186_v34 = vsel %vm10914_vm10, %v1163_v63, %v1165_v60  ;;  %v3702_v63 = vpack.c.bf16 %v3684_v38, %v3681_v49 }
 0x2ac   : > { %3591 = vrot.lane.b32.xlu0 %v3563_v22, %s10935_s27  ;;  %2008 = vrot.lane.b32.xlu1 %v1977_v29, %s10941_s16  ;;  %v1965_v22 = vmul.f32 %v8449_v61, %v8125_v24 }
 0x2ad   : > { %5043 = vmatprep.subr.bf16.mxu0 %v1186_v34  ;;  %v2994_v34 = vmul.f32 %v7569_v33, %v8075_v7 }
 0x2ae   : > { %5044 = vmatpush1.bf16.msra.mxu0 %v1185_v0  ;;  %v2891_v31 = vpop.permute.xlu1 %2890  ;;  %v8567_v8 = vpop.permute.xlu0 %3029 }
 0x2af   : > { %11037 = vst [vmem:[#allocation85_spill] sm:$0xff] %v8567_v8  ;;  %v2914_v60 = vsel %vm580_vm13, %v2891_v31, %v11038_v55  ;;  %v2913_v29 = vsel %vm580_vm13, %v8481_v46, %v2891_v31  ;;  %v1968_v46 = vmul.f32 %v8449_v61, %v8127_v56  ;;  %v2991_v31 = vmul.f32 %v7569_v33, %v8073_v16 }
 0x2b0   : > { %5270 = vmatprep.subr.bf16.mxu1 %v2914_v60  ;;  %1865 = vrot.lane.b32.xlu0 %v1836_v19, %s10942_s21  ;;  %v3133_v55 = vmul.f32 %v7767_v14, %v8075_v7 }
 0x2b1   : > { %2006 = vrot.lane.b32.xlu1 %v8479_v21, %s10941_s16  ;;  %5271 = vmatpush1.bf16.msra.mxu1 %v2913_v29  ;;  %v3009_v38 = vpack.c.bf16 %v2994_v34, %v2991_v31  ;;  %v1980_v60 = vpack.c.bf16 %v1968_v46, %v1965_v22  ;;  %v3130_v29 = vmul.f32 %v7767_v14, %v8073_v16  ;;  %v11044_v34 = vld [vmem:[#allocation43_spill] sm:$0xff] }
 0x2b2   : > { %v8580_v0 = vpop.permute.xlu1 %1168  ;;  %v8582_v23 = vpop.permute.xlu0 %1303  ;;  %v8614_v31 = vsel %vm11045_vm12, %v8392_v43, %v11044_v34  ;;  %v3269_v46 = vmul.f32 %v7798_v41, %v8073_v16  ;;  %vm11116_vm12 = vmmov %vm11113_vm8 }
 0x2b3   : > { %11039 = vst [vmem:[#allocation17_spill] sm:$0xff] %v8582_v23  ;;  %v3148_v61 = vpack.c.bf16 %v3133_v55, %v3130_v29  ;;  %v2086_v29 = vmul.f32 %v8614_v31, %v7950_v42  ;;  %v2092_v23 = vmul.f32 %v8614_v31, %v8007_v50 }
 0x2b4   : > { %3730 = vrot.lane.b32.xlu0 %v3702_v63, %s10936_s28  ;;  %v3287_v55 = vpack.c.bf16 %v3272_v11, %v3269_v46 }
 0x2b5   : > { %3877 = vrot.lane.b32.xlu1 %v8503_v1, %s10937_s22 }
 0x2b6   : > { %v8595_v3 = vpop.permute.xlu1 %1307  ;;  %v8597_v19 = vpop.permute.xlu0 %3168 }
 0x2b7   : > { %11040 = vst [vmem:[#allocation86_spill] sm:$0xff] %v8595_v3  ;;  %11041 = vst [vmem:[#allocation87_spill] sm:$0xff] %v8597_v19  ;;  %v1265_v3 = vmul.f32 %v7717_v58, %v8066_v10 }
 0x2b8   : > { %3039 = vrot.lane.b32.xlu0 %v3009_v38, %s10931_s26 }
 0x2b9   : > { %2014 = vrot.lane.b32.xlu1 %v1980_v60, %s10941_s16  ;;  %v3411_v60 = vmul.f32 %v7849_v5, %v8075_v7 }
 0x2ba   : > { %v8605_v49 = vpop.permute.xlu1 %1446  ;;  %v8607_v63 = vpop.permute.xlu0 %1442 }
 0x2bb   : > { %11042 = vst [vmem:[#allocation88_spill] sm:$0xff] %v8605_v49  ;;  %11043 = vst [vmem:[#allocation89_spill] sm:$0xff] %v8607_v63  ;;  %v3408_v49 = vmul.f32 %v7849_v5, %v8073_v16 }
 0x2bc   : > { %3178 = vrot.lane.b32.xlu0 %v3148_v61, %s10932_s11  ;;  %v2089_v61 = vmul.f32 %v8614_v31, %v7962_v36 }
 0x2bd   : > { %2012 = vrot.lane.b32.xlu1 %v8479_v21, %s10941_s16  ;;  %v3426_v46 = vpack.c.bf16 %v3411_v60, %v3408_v49  ;;  %v8654_v49 = vld [vmem:[%s10782_s1 + $0x13] ss:$8 sm:$0x3] }
 0x2be   : > { %v8621_v22 = vpop.permute.xlu1 %1585  ;;  %v8623_v38 = vpop.permute.xlu0 %3307  ;;  %v2110_v63 = vpack.c.bf16 %v2089_v61, %v2086_v29  ;;  %11053 = vst [vmem:[#allocation95_spill] sm:$0xff] %v8654_v49 }
 0x2bf   : > { %11046 = vst [vmem:[#allocation43_spill] sm:$0xff] %v8621_v22  ;;  %11047 = vst [vmem:[#allocation90_spill] sm:$0xff] %v8623_v38  ;;  %v3550_v22 = vmul.f32 %v7832_v57, %v8075_v7  ;;  %v2085_v38 = vmul.f32 0.0, %v8392_v43  ;;  %v3689_v43 = vmul.f32 %v7880_v44, %v8075_v7 }
 0x2c0   : > { %3317 = vrot.lane.b32.xlu0 %v3287_v55, %s10933_s13  ;;  %v3547_v55 = vmul.f32 %v7832_v57, %v8073_v16 }
 0x2c1   : > { %3883 = vrot.lane.b32.xlu1 %v8503_v1, %s10937_s22  ;;  %v8658_v60 = vpack.c.bf16 %v2085_v38, %v2085_v38  ;;  %v3954_v38 = vmul.f32 0.0, %v8406_v52 }
 0x2c2   : > { %v8636_v21 = vpop.permute.xlu1 %1724  ;;  %v8638_v11 = vpop.permute.xlu0 %1581 }
 0x2c3   : > { %11048 = vst [vmem:[#allocation91_spill] sm:$0xff] %v8636_v21  ;;  %11049 = vst [vmem:[#allocation92_spill] sm:$0xff] %v8638_v11  ;;  %v3565_v21 = vpack.c.bf16 %v3550_v22, %v3547_v55  ;;  %v2632_v22 = vrot.slane %v8654_v49, %v7377_v35  ;;  %v1407_v49 = vmul.f32 %v7774_v39, %v8084_v12 }
 0x2c4   : > { %3456 = vrot.lane.b32.xlu0 %v3426_v46, %s10934_s17  ;;  %v1129_v46 = vmul.f32 %v7560_v30, %v8084_v12 }
 0x2c5   : > { %2135 = vrot.lane.b32.xlu1 %v2110_v63, %s11050_s14  ;;  %v3686_v63 = vmul.f32 %v7880_v44, %v8073_v16 }
 0x2c6   : > { %v8647_v19 = vpop.permute.xlu1 %1863  ;;  %v8649_v1 = vpop.permute.xlu0 %3446 }
 0x2c7   : > { %11051 = vst [vmem:[#allocation93_spill] sm:$0xff] %v8647_v19  ;;  %11052 = vst [vmem:[#allocation94_spill] sm:$0xff] %v8649_v1  ;;  %v3704_v61 = vpack.c.bf16 %v3689_v43, %v3686_v63  ;;  %v8683_v43 = vld [vmem:[%s10782_s1 + $0x30] ss:$8 sm:$0x3]  ;;  %v2995_v63 = vmul.f32 %v8149_v51, %v8084_v12 }
 0x2c8   : > { %3595 = vrot.lane.b32.xlu0 %v3565_v21, %s10935_s27  ;;  %v1126_v21 = vmul.f32 %v7560_v30, %v8066_v10  ;;  %11056 = vst [vmem:[#allocation98_spill] sm:$0xff] %v8683_v43 }
 0x2c9   : > { %2133 = vrot.lane.b32.xlu1 %v8658_v60, %s11050_s14 }
 0x2ca   : > { %v8667_v29 = vpop.permute.xlu0 %1720  ;;  %v8672_v55 = vpop.permute.xlu1 %2900  ;;  %v1144_v1 = vpack.c.bf16 %v1129_v46, %v1126_v21 }
 0x2cb   : > { %11054 = vst [vmem:[#allocation96_spill] sm:$0xff] %v8667_v29  ;;  %v8687_v29 = vpack.c.bf16 %v3954_v38, %v3954_v38  ;;  %v1268_v38 = vmul.f32 %v7717_v58, %v8084_v12 }
 0x2cc   : > { %3734 = vrot.lane.b32.xlu0 %v3704_v61, %s10936_s28  ;;  %v2992_v61 = vmul.f32 %v8149_v51, %v8066_v10 }
 0x2cd   : > { %2635 = vrot.lane.b32.xlu1 %v2632_v22, %s10930_s25  ;;  %v11057_v22 = vld [vmem:[#allocation12_spill] sm:$0xff] }
 0x2ce   : > { %v8678_v19 = vpop.permute.xlu0 %3585  ;;  %v4356_v46 = vrot.slane %v8683_v43, %v11057_v22  ;;  %v8696_v21 = vpop.permute.xlu1 %1174  ;;  %v3010_v11 = vpack.c.bf16 %v2995_v63, %v2992_v61  ;;  %v3134_v63 = vmul.f32 %v8184_v62, %v8084_v12 }
 0x2cf   : > { %11055 = vst [vmem:[#allocation97_spill] sm:$0xff] %v8678_v19 }
 0x2d0   : > { %1176 = vrot.lane.b32.xlu0 %v1144_v1, %s10993_s9  ;;  %v2095_v1 = vmul.f32 %v8614_v31, %v8017_v53 }
 0x2d1   : > { %4004 = vrot.lane.b32.xlu1 %v8687_v29, %s10938_s12 }
 0x2d2   : > { %v8698_v19 = vpop.permute.xlu0 %1859  ;;  %v2113_v61 = vpack.c.bf16 %v2095_v1, %v2092_v23  ;;  %v8714_v35 = vpop.permute.xlu1 %1313  ;;  %v3273_v1 = vmul.f32 %v8213_v17, %v8084_v12 }
 0x2d3   : > { %11058 = vst [vmem:[#allocation99_spill] sm:$0xff] %v8698_v19  ;;  %v1283_v19 = vpack.c.bf16 %v1268_v38, %v1265_v3  ;;  %11060 = vst [vmem:[#allocation101_spill] sm:$0xff] %v8714_v35  ;;  %v1404_v3 = vmul.f32 %v7774_v39, %v8066_v10 }
 0x2d4   : > { %3041 = vrot.lane.b32.xlu0 %v3010_v11, %s10931_s26  ;;  %v3131_v11 = vmul.f32 %v8184_v62, %v8066_v10 }
 0x2d5   : > { %4361 = vrot.lane.b32.xlu1 %v4356_v46, %s10993_s9  ;;  %v1422_v38 = vpack.c.bf16 %v1407_v49, %v1404_v3  ;;  %v1546_v3 = vmul.f32 %v7834_v59, %v8084_v12 }
 0x2d6   : > { %v8710_v43 = vpop.permute.xlu0 %3724  ;;  %v3149_v8 = vpack.c.bf16 %v3134_v63, %v3131_v11  ;;  %v8727_v23 = vpop.permute.xlu1 %1452  ;;  %v2101_v63 = vmul.f32 %v8614_v31, %v8075_v7 }
 0x2d7   : > { %11059 = vst [vmem:[#allocation100_spill] sm:$0xff] %v8710_v43  ;;  %11061 = vst [vmem:[#allocation102_spill] sm:$0xff] %v8727_v23 }
 0x2d8   : > { %1315 = vrot.lane.b32.xlu0 %v1283_v19, %s10955_s23 }
 0x2d9   : > { %2141 = vrot.lane.b32.xlu1 %v2113_v61, %s11050_s14  ;;  %v2098_v61 = vmul.f32 %v8614_v31, %v8073_v16 }
 0x2da   : > { %v2895_v46 = vpop.permute.xlu0 %2894  ;;  %v8746_v23 = vpop.permute.xlu1 %1591 }
 0x2db   : > { %v2116_v43 = vpack.c.bf16 %v2101_v63, %v2098_v61  ;;  %11064 = vst [vmem:[#allocation105_spill] sm:$0xff] %v8746_v23 }
 0x2dc   : > { %3180 = vrot.lane.b32.xlu0 %v3149_v8, %s10932_s11  ;;  %v3270_v8 = vmul.f32 %v8213_v17, %v8066_v10 }
 0x2dd   : > { %2139 = vrot.lane.b32.xlu1 %v8658_v60, %s11050_s14 }
 0x2de   : > { %v8729_v19 = vpop.permute.xlu0 %3033  ;;  %v3288_v49 = vpack.c.bf16 %v3273_v1, %v3270_v8  ;;  %v3409_v1 = vmul.f32 %v8244_v4, %v8066_v10  ;;  %v8761_v63 = vpop.permute.xlu1 %1730 }
 0x2df   : > { %11062 = vst [vmem:[#allocation103_spill] sm:$0xff] %v8729_v19  ;;  %11066 = vst [vmem:[#allocation107_spill] sm:$0xff] %v8761_v63 }
 0x2e0   : > { %1454 = vrot.lane.b32.xlu0 %v1422_v38, %s10956_s7  ;;  %v1543_v38 = vmul.f32 %v7834_v59, %v8066_v10 }
 0x2e1   : > { %4010 = vrot.lane.b32.xlu1 %v8687_v29, %s10938_s12 }
 0x2e2   : > { %v8742_v11 = vpop.permute.xlu0 %3172  ;;  %v1561_v19 = vpack.c.bf16 %v1546_v3, %v1543_v38  ;;  %v2104_v3 = vmul.f32 %v8614_v31, %v8125_v24 }
 0x2e3   : > { %11063 = vst [vmem:[#allocation104_spill] sm:$0xff] %v8742_v11  ;;  %v3412_v11 = vmul.f32 %v8244_v4, %v8084_v12 }
 0x2e4   : > { %3319 = vrot.lane.b32.xlu0 %v3288_v49, %s10933_s13  ;;  %v2107_v49 = vmul.f32 %v8614_v31, %v8127_v56  ;;  %v1824_v31 = vmul.f32 %v7871_v28, %v8084_v12 }
 0x2e5   : > { %2147 = vrot.lane.b32.xlu1 %v2116_v43, %s11050_s14  ;;  %v3427_v61 = vpack.c.bf16 %v3412_v11, %v3409_v1  ;;  %v1685_v43 = vmul.f32 %v7823_v26, %v8084_v12  ;;  %v3551_v1 = vmul.f32 %v8271_v6, %v8084_v12 }
 0x2e6   : > { %v8752_v35 = vpop.permute.xlu0 %3311  ;;  %v2119_v63 = vpack.c.bf16 %v2107_v49, %v2104_v3  ;;  %v1821_v49 = vmul.f32 %v7871_v28, %v8066_v10 }
 0x2e7   : > { %11065 = vst [vmem:[#allocation106_spill] sm:$0xff] %v8752_v35 }
 0x2e8   : > { %1593 = vrot.lane.b32.xlu0 %v1561_v19, %s10952_s15  ;;  %v1682_v19 = vmul.f32 %v7823_v26, %v8066_v10  ;;  %v1839_v3 = vpack.c.bf16 %v1824_v31, %v1821_v49  ;;  %v11073_v31 = vld [vmem:[#allocation21_spill] sm:$0xff] }
 0x2e9   : > { %2145 = vrot.lane.b32.xlu1 %v8658_v60, %s11050_s14 }
 0x2ea   : > { %v8763_v8 = vpop.permute.xlu0 %3450  ;;  %v1700_v11 = vpack.c.bf16 %v1685_v43, %v1682_v19  ;;  %v8793_v43 = vsel %vm11071_vm7, %v8420_v13, %v8198_v9  ;;  %vm11121_vm7 = vcmask 269312  }
 0x2eb   : > { %11067 = vst [vmem:[#allocation108_spill] sm:$0xff] %v8763_v8  ;;  %v8780_v8 = vpop.permute.xlu1 %1869 }
 0x2ec   : > { %3458 = vrot.lane.b32.xlu0 %v3427_v61, %s10934_s17  ;;  %11069 = vst [vmem:[#allocation110_spill] sm:$0xff] %v8780_v8  ;;  %v3548_v61 = vmul.f32 %v8271_v6, %v8066_v10  ;;  %v2228_v8 = vmul.f32 %v8793_v43, %v7962_v36 }
 0x2ed   : > { %4016 = vrot.lane.b32.xlu1 %v8687_v29, %s10938_s12 }
 0x2ee   : > { %v8776_v38 = vpop.permute.xlu0 %3589  ;;  %v3566_v35 = vpack.c.bf16 %v3551_v1, %v3548_v61  ;;  %v11072_v1 = vld [vmem:[#allocation13_spill] sm:$0xff] }
 0x2ef   : > { %11068 = vst [vmem:[#allocation109_spill] sm:$0xff] %v8776_v38  ;;  %v2224_v38 = vmul.f32 0.0, %v8420_v13 }
 0x2f0   : > { %1732 = vrot.lane.b32.xlu0 %v1700_v11, %s10945_s24  ;;  %v3690_v11 = vmul.f32 %v8300_v45, %v8084_v12 }
 0x2f1   : > { %2153 = vrot.lane.b32.xlu1 %v2119_v63, %s11050_s14  ;;  %v2903_v63 = vpop.permute.xlu1 %2902 }
 0x2f2   : > { %v8786_v23 = vpop.permute.xlu0 %3728  ;;  %v2918_v49 = vsel %vm580_vm13, %v2903_v63, %v11073_v31  ;;  %v2858_v31 = vmul.f32 %v7522_v15, %v8125_v24  ;;  %v2917_v13 = vsel %vm580_vm13, %v8672_v55, %v2903_v63 }
 0x2f3   : > { %11070 = vst [vmem:[#allocation111_spill] sm:$0xff] %v8786_v23 }
 0x2f4   : > { %3597 = vrot.lane.b32.xlu0 %v3566_v35, %s10935_s27  ;;  %v2225_v35 = vmul.f32 %v8793_v43, %v7950_v42 }
 0x2f5   : > { %2151 = vrot.lane.b32.xlu1 %v8658_v60, %s11050_s14  ;;  %v3687_v60 = vmul.f32 %v8300_v45, %v8066_v10 }
 0x2f6   : > { %v2897_v19 = vpop.permute.xlu0 %2896 }
 0x2f7   : > { %v2916_v61 = vsel %vm580_vm13, %v2897_v19, %v11072_v1  ;;  %v2915_v23 = vsel %vm580_vm13, %v2895_v46, %v2897_v19  ;;  %v3705_v19 = vpack.c.bf16 %v3690_v11, %v3687_v60  ;;  %v2861_v1 = vmul.f32 %v7522_v15, %v8127_v56 }
 0x2f8   : > { %1871 = vrot.lane.b32.xlu0 %v1839_v3, %s10942_s21  ;;  %5272 = vmatprep.subr.bf16.mxu1 %v2916_v61  ;;  %v2249_v3 = vpack.c.bf16 %v2228_v8, %v2225_v35  ;;  %v3000_v35 = vmul.f32 %v7569_v33, %v8127_v56  ;;  %v8834_v60 = vpack.c.bf16 %v2224_v38, %v2224_v38 }
 0x2f9   : > { %4022 = vrot.lane.b32.xlu1 %v8687_v29, %s10938_s12  ;;  %5273 = vmatpush1.bf16.msra.mxu1 %v2915_v23  ;;  %v11074_v29 = vld [vmem:[#allocation16_spill] sm:$0xff]  ;;  %v2873_v11 = vpack.c.bf16 %v2861_v1, %v2858_v31  ;;  %v2997_v15 = vmul.f32 %v7569_v33, %v8125_v24  ;;  %v2231_v38 = vmul.f32 %v8793_v43, %v8007_v50 }
 0x2fa   : > { %5274 = vmatprep.subr.bf16.mxu1 %v2918_v49  ;;  %v1171_v46 = vpop.permute.xlu0 %1170  ;;  %v1187_v23 = vsel %vm10914_vm10, %v11074_v29, %v8580_v0  ;;  %v3139_v49 = vmul.f32 %v7767_v14, %v8127_v56  ;;  %v3136_v33 = vmul.f32 %v7767_v14, %v8125_v24 }
 0x2fb   : > { %v1188_v61 = vsel %vm10914_vm10, %v8580_v0, %v1171_v46  ;;  %v4093_v0 = vmul.f32 0.0, %v8432_v25  ;;  %v3012_v63 = vpack.c.bf16 %v3000_v35, %v2997_v15  ;;  %v2237_v15 = vmul.f32 %v8793_v43, %v8073_v16 }
 0x2fc   : > { %3736 = vrot.lane.b32.xlu0 %v3705_v19, %s10936_s28  ;;  %5045 = vmatprep.subr.bf16.mxu0 %v1188_v61  ;;  %v2234_v19 = vmul.f32 %v8793_v43, %v8017_v53  ;;  %v3278_v61 = vmul.f32 %v7798_v41, %v8127_v56 }
 0x2fd   : > { %2274 = vrot.lane.b32.xlu1 %v2249_v3, %s11075_s0  ;;  %5046 = vmatpush1.bf16.msra.mxu0 %v1187_v23  ;;  %v8846_v46 = vpack.c.bf16 %v4093_v0, %v4093_v0  ;;  %v3151_v3 = vpack.c.bf16 %v3139_v49, %v3136_v33  ;;  %v3275_v23 = vmul.f32 %v7798_v41, %v8125_v24 }
 0x2fe   : > { %5275 = vmatpush1.bf16.msra.mxu1 %v2917_v13  ;;  %v8830_v8 = vpop.permute.xlu0 %3035  ;;  %v2252_v29 = vpack.c.bf16 %v2234_v19, %v2231_v38  ;;  %v3417_v13 = vmul.f32 %v7849_v5, %v8127_v56  ;;  %v3556_v41 = vmul.f32 %v7832_v57, %v8127_v56  ;;  %v2862_v19 = vmul.f32 %v8144_v40, %v8131_v48 }
 0x2ff   : > { %v3290_v14 = vpack.c.bf16 %v3278_v61, %v3275_v23  ;;  %v8899_v23 = vpop.permute.xlu1 %1180 }
 0x300   : > { %2906 = vrot.lane.b32.xlu0 %v2873_v11, %s10930_s25  ;;  %v3414_v11 = vmul.f32 %v7849_v5, %v8125_v24  ;;  %v3553_v5 = vmul.f32 %v7832_v57, %v8125_v24 }
 0x301   : > { %2272 = vrot.lane.b32.xlu1 %v8834_v60, %s11075_s0 }
 0x302   : > { %v8842_v55 = vpop.permute.xlu0 %1309  ;;  %v3429_v0 = vpack.c.bf16 %v3417_v13, %v3414_v11  ;;  %v3568_v38 = vpack.c.bf16 %v3556_v41, %v3553_v5  ;;  %v3001_v11 = vmul.f32 %v8149_v51, %v8131_v48  ;;  %v2246_v41 = vmul.f32 %v8793_v43, %v8127_v56 }
 0x304   : > { %3045 = vrot.lane.b32.xlu0 %v3012_v63, %s10931_s26  ;;  %v2240_v63 = vmul.f32 %v8793_v43, %v8075_v7 }
 0x305   : > { %4143 = vrot.lane.b32.xlu1 %v8846_v46, %s10939_s20 }
 0x306   : > { %v8857_v1 = vpop.permute.xlu0 %3174  ;;  %v2255_v33 = vpack.c.bf16 %v2240_v63, %v2237_v15  ;;  %v8919_v15 = vpop.permute.xlu1 %1319 }
 0x308   : > { %3184 = vrot.lane.b32.xlu0 %v3151_v3, %s10932_s11  ;;  %v2859_v3 = vmul.f32 %v8144_v40, %v8118_v37 }
 0x309   : > { %2280 = vrot.lane.b32.xlu1 %v2252_v29, %s11075_s0  ;;  %v1135_v29 = vmul.f32 %v7560_v30, %v8131_v48 }
 0x30a   : > { %v8865_v31 = vpop.permute.xlu0 %1448  ;;  %v2874_v57 = vpack.c.bf16 %v2862_v19, %v2859_v3  ;;  %v3140_v3 = vmul.f32 %v8184_v62, %v8131_v48 }
 0x30c   : > { %3323 = vrot.lane.b32.xlu0 %v3290_v14, %s10933_s13  ;;  %v1132_v14 = vmul.f32 %v7560_v30, %v8118_v37  ;;  %v2998_v30 = vmul.f32 %v8149_v51, %v8118_v37 }
 0x30d   : > { %2278 = vrot.lane.b32.xlu1 %v8834_v60, %s11075_s0 }
 0x30e   : > { %v8874_v35 = vpop.permute.xlu0 %3313  ;;  %v1147_v40 = vpack.c.bf16 %v1135_v29, %v1132_v14  ;;  %v3013_v5 = vpack.c.bf16 %v3001_v11, %v2998_v30  ;;  %v8938_v29 = vpop.permute.xlu1 %1458  ;;  %v1413_v11 = vmul.f32 %v7774_v39, %v8131_v48 }
 0x310   : > { %3462 = vrot.lane.b32.xlu0 %v3429_v0, %s10934_s17  ;;  %v2243_v0 = vmul.f32 %v8793_v43, %v8125_v24  ;;  %v1271_v43 = vmul.f32 %v7717_v58, %v8118_v37 }
 0x311   : > { %4149 = vrot.lane.b32.xlu1 %v8846_v46, %s10939_s20 }
 0x312   : > { %v8887_v49 = vpop.permute.xlu0 %1587  ;;  %v2258_v19 = vpack.c.bf16 %v2246_v41, %v2243_v0 }
 0x314   : > { %3601 = vrot.lane.b32.xlu0 %v3568_v38, %s10935_s27  ;;  %v1274_v38 = vmul.f32 %v7717_v58, %v8131_v48  ;;  %v3137_v58 = vmul.f32 %v8184_v62, %v8118_v37  ;;  %v1410_v62 = vmul.f32 %v7774_v39, %v8118_v37 }
 0x315   : > { %2286 = vrot.lane.b32.xlu1 %v2255_v33, %s11075_s0 }
 0x316   : > { %v8895_v61 = vpop.permute.xlu0 %3452  ;;  %v1286_v33 = vpack.c.bf16 %v1274_v38, %v1271_v43  ;;  %v3279_v38 = vmul.f32 %v8213_v17, %v8131_v48 }
 0x318   : > { %2908 = vrot.lane.b32.xlu0 %v2874_v57, %s10930_s25  ;;  %v8936_v57 = vsel %vm538_vm11, %v8451_v32, %v8338_v27  ;;  %v11091_v27 = vld [vmem:[#allocation34_spill] sm:$0xff] }
 0x319   : > { %2284 = vrot.lane.b32.xlu1 %v8834_v60, %s11075_s0  ;;  %v2364_v0 = vmul.f32 %v8936_v57, %v7950_v42  ;;  %v2367_v41 = vmul.f32 %v8936_v57, %v7962_v36 }
 0x31a   : > { %v8906_v13 = vpop.permute.xlu0 %1726 }
 0x31b   : > { %v2388_v43 = vpack.c.bf16 %v2367_v41, %v2364_v0 }
 0x31c   : > { %1182 = vrot.lane.b32.xlu0 %v1147_v40, %s10993_s9  ;;  %v3152_v40 = vpack.c.bf16 %v3140_v3, %v3137_v58  ;;  %v1552_v3 = vmul.f32 %v7834_v59, %v8131_v48 }
 0x31d   : > { %4155 = vrot.lane.b32.xlu1 %v8846_v46, %s10939_s20 }
 0x31e   : > { %v8921_v63 = vpop.permute.xlu0 %3591 }
 0x31f   : > { %11076 = vst [vmem:[#allocation13_spill] sm:$0xff] %v8921_v63  ;;  %v11112_v63 = vld [vmem:[#allocation85_spill] sm:$0xff] }
 0x320   : > { %3047 = vrot.lane.b32.xlu0 %v3013_v5, %s10931_s26  ;;  %v1425_v5 = vpack.c.bf16 %v1413_v11, %v1410_v62  ;;  %v3418_v62 = vmul.f32 %v8244_v4, %v8131_v48 }
 0x321   : > { %2292 = vrot.lane.b32.xlu1 %v2258_v19, %s11075_s0  ;;  %v2363_v19 = vmul.f32 0.0, %v8451_v32  ;;  %v1549_v32 = vmul.f32 %v7834_v59, %v8118_v37  ;;  %v2373_v59 = vmul.f32 %v8936_v57, %v8017_v53 }
 0x322   : > { %v8929_v51 = vpop.permute.xlu0 %1865 }
 0x323   : > { %11077 = vst [vmem:[#allocation21_spill] sm:$0xff] %v8929_v51  ;;  %v8973_v58 = vpack.c.bf16 %v2363_v19, %v2363_v19  ;;  %v1564_v41 = vpack.c.bf16 %v1552_v3, %v1549_v32  ;;  %v3415_v19 = vmul.f32 %v8244_v4, %v8118_v37  ;;  %v1691_v3 = vmul.f32 %v7823_v26, %v8131_v48 }
 0x324   : > { %1321 = vrot.lane.b32.xlu0 %v1286_v33, %s10955_s23  ;;  %v3276_v33 = vmul.f32 %v8213_v17, %v8118_v37  ;;  %v7045_v17 = vld [vmem:[%s10785_s4 + $0x1c] ss:$52 sps:$4 sm:$0xff]   ;;  %v1688_v32 = vmul.f32 %v7823_v26, %v8118_v37 }
 0x325   : > { %2290 = vrot.lane.b32.xlu1 %v8834_v60, %s11075_s0  ;;  %v8958_v60 = vpop.permute.xlu1 %1597  ;;  %5294 = vmatprep.mubr.bf16.mxu1 %v7045_v17 }
 0x326   : > { %v8945_v14 = vpop.permute.xlu0 %3730  ;;  %v1703_v17 = vpack.c.bf16 %v1691_v3, %v1688_v32 }
 0x327   : > { %11078 = vst [vmem:[#allocation16_spill] sm:$0xff] %v8945_v14 }
 0x328   : > { %3186 = vrot.lane.b32.xlu0 %v3152_v40, %s10932_s11  ;;  %v4232_v40 = vmul.f32 0.0, %v8466_v54 }
 0x329   : > { %4161 = vrot.lane.b32.xlu1 %v8846_v46, %s10939_s20  ;;  %v3291_v46 = vpack.c.bf16 %v3279_v38, %v3276_v33  ;;  %v8976_v11 = vpop.permute.xlu1 %1736  ;;  %v2370_v38 = vmul.f32 %v8936_v57, %v8007_v50 }
 0x32a   : > { %v8960_v30 = vpop.permute.xlu0 %3039  ;;  %11080 = vst [vmem:[#allocation112_spill] sm:$0xff] %v8976_v11 }
 0x32c   : > { %1460 = vrot.lane.b32.xlu0 %v1425_v5, %s10956_s7  ;;  %v8990_v5 = vpack.c.bf16 %v4232_v40, %v4232_v40  ;;  %v2391_v40 = vpack.c.bf16 %v2373_v59, %v2370_v38  ;;  %v1830_v59 = vmul.f32 %v7871_v28, %v8131_v48 }
 0x32d   : > { %2413 = vrot.lane.b32.xlu1 %v2388_v43, %s11079_s18  ;;  %v9001_v43 = vpop.permute.xlu1 %1875 }
 0x32e   : > { %v8969_v39 = vpop.permute.xlu0 %3178  ;;  %11081 = vst [vmem:[#allocation113_spill] sm:$0xff] %v9001_v43 }
 0x330   : > { %3325 = vrot.lane.b32.xlu0 %v3291_v46, %s10933_s13  ;;  %v3430_v46 = vpack.c.bf16 %v3418_v62, %v3415_v19  ;;  %v3554_v62 = vmul.f32 %v8271_v6, %v8118_v37  ;;  %v2376_v19 = vmul.f32 %v8936_v57, %v8073_v16 }
 0x331   : > { %2411 = vrot.lane.b32.xlu1 %v8973_v58, %s11079_s18  ;;  %v9015_v54 = vpop.permute.xlu1 %1996 }
 0x332   : > { %v8986_v0 = vpop.permute.xlu0 %3317  ;;  %11083 = vst [vmem:[#allocation115_spill] sm:$0xff] %v9015_v54 }
 0x334   : > { %1599 = vrot.lane.b32.xlu0 %v1564_v41, %s10952_s15  ;;  %v3557_v41 = vmul.f32 %v8271_v6, %v8131_v48  ;;  %v1827_v6 = vmul.f32 %v7871_v28, %v8118_v37  ;;  %v11086_v28 = vld [vmem:[#allocation19_spill] sm:$0xff] }
 0x335   : > { %4282 = vrot.lane.b32.xlu1 %v8990_v5, %s10940_s10  ;;  %v9035_v3 = vpop.permute.xlu1 %1994 }
 0x336   : > { %v9003_v33 = vpop.permute.xlu0 %3456  ;;  %v3569_v26 = vpack.c.bf16 %v3557_v41, %v3554_v62  ;;  %11085 = vst [vmem:[#allocation117_spill] sm:$0xff] %v9035_v3  ;;  %v1842_v32 = vpack.c.bf16 %v1830_v59, %v1827_v6  ;;  %v3693_v59 = vmul.f32 %v8300_v45, %v8118_v37  ;;  %v3695_v6 = vmul.f32 %v7880_v44, %v8127_v56 }
 0x338   : > { %3464 = vrot.lane.b32.xlu0 %v3430_v46, %s10934_s17  ;;  %v2379_v46 = vmul.f32 %v8936_v57, %v8075_v7 }
 0x339   : > { %2419 = vrot.lane.b32.xlu1 %v2391_v40, %s11079_s18 }
 0x33a   : > { %v9011_v4 = vpop.permute.xlu0 %3595  ;;  %v2394_v41 = vpack.c.bf16 %v2379_v46, %v2376_v19 }
 0x33b   : > { %11082 = vst [vmem:[#allocation114_spill] sm:$0xff] %v9011_v4 }
 0x33c   : > { %1738 = vrot.lane.b32.xlu0 %v1703_v17, %s10945_s24  ;;  %v3696_v17 = vmul.f32 %v8300_v45, %v8131_v48  ;;  %s7159_s24 = smov 82  }
 0x33d   : > { %2417 = vrot.lane.b32.xlu1 %v8973_v58, %s11079_s18 }
 0x33e   : > { %v9022_v38 = vpop.permute.xlu0 %3734  ;;  %v3708_v46 = vpack.c.bf16 %v3696_v17, %v3693_v59  ;;  %v2382_v17 = vmul.f32 %v8936_v57, %v8125_v24 }
 0x33f   : > { %11084 = vst [vmem:[#allocation116_spill] sm:$0xff] %v9022_v38  ;;  %v1189_v38 = vsel %vm10914_vm10, %v11086_v28, %v8696_v21 }
 0x340   : > { %3603 = vrot.lane.b32.xlu0 %v3569_v26, %s10935_s27  ;;  %v7048_v26 = vld [vmem:[%s10785_s4 + $0x4] ss:$52 sps:$4 sm:$0xff]   ;;  %s11321_s27 = smov 34  }
 0x341   : > { %4288 = vrot.lane.b32.xlu1 %v8990_v5, %s10940_s10  ;;  %5075 = vmatprep.mubr.bf16.mxu0 %v7048_v26 }
 0x342   : > { %v1177_v40 = vpop.permute.xlu0 %1176 }
 0x343   : > { %v1190_v62 = vsel %vm10914_vm10, %v8696_v21, %v1177_v40  ;;  %v9055_v40 = vpop.permute.xlu1 %2496  ;;  %v3692_v21 = vmul.f32 %v7880_v44, %v8125_v24 }
 0x344   : > { %1877 = vrot.lane.b32.xlu0 %v1842_v32, %s10942_s21  ;;  %5047 = vmatprep.subr.bf16.mxu0 %v1190_v62  ;;  %v1951_v32 = vmul.f32 %v7911_v18, %v7972_v20  ;;  %v11087_v62 = vld [vmem:[#allocation42_spill] sm:$0xff] }
 0x345   : > { %2425 = vrot.lane.b32.xlu1 %v2394_v41, %s11079_s18  ;;  %5048 = vmatpush1.bf16.msra.mxu0 %v1189_v38  ;;  %v3707_v38 = vpack.c.bf16 %v3695_v6, %v3692_v21  ;;  %v2385_v41 = vmul.f32 %v8936_v57, %v8127_v56  ;;  %v1948_v44 = vmul.f32 %v7911_v18, %v11087_v62  ;;  %v11089_v6 = vld [vmem:[#allocation73_spill] sm:$0xff] }
 0x346   : > { %v9051_v19 = vpop.permute.xlu0 %3041  ;;  %v2489_v21 = vrot.slane %v11089_v6, %v11057_v22  ;;  %v11090_v57 = vld [vmem:[#allocation65_spill] sm:$0xff] }
 0x347   : > { %v9075_v26 = vpop.permute.xlu1 %3865  ;;  %v1972_v59 = vpack.c.bf16 %v1951_v32, %v1948_v44  ;;  %v3816_v44 = vmul.f32 %v11091_v27, %v7962_v36 }
 0x348   : > { %3742 = vrot.lane.b32.xlu0 %v3708_v46, %s10936_s28  ;;  %11088 = vst [vmem:[#allocation19_spill] sm:$0xff] %v9075_v26  ;;  %v2397_v46 = vpack.c.bf16 %v2385_v41, %v2382_v17 }
 0x349   : > { %2423 = vrot.lane.b32.xlu1 %v8973_v58, %s11079_s18 }
 0x34a   : > { %v9062_v45 = vpop.permute.xlu0 %1315 }
 0x34b   : > { %v9089_v26 = vpop.permute.xlu1 %2002 }
 0x34c   : > { %3740 = vrot.lane.b32.xlu0 %v3707_v38, %s10936_s28  ;;  %v3809_v38 = vsel %vm441_vm6, %v11091_v27, %v11090_v57  ;;  %11092 = vst [vmem:[#allocation42_spill] sm:$0xff] %v9089_v26 }
 0x34d   : > { %4294 = vrot.lane.b32.xlu1 %v8990_v5, %s10940_s10  ;;  %v3817_v14 = vmul.f32 %v3809_v38, %v7972_v20  ;;  %v3814_v32 = vmul.f32 %v3809_v38, %v11087_v62 }
 0x34e   : > { %v9077_v28 = vpop.permute.xlu0 %3180 }
 0x34f   : > { %v3838_v41 = vpack.c.bf16 %v3817_v14, %v3814_v32  ;;  %v1954_v14 = vmul.f32 %v7911_v18, %v8000_v47 }
 0x350   : > { %1998 = vrot.lane.b32.xlu0 %v1972_v59, %s10941_s16  ;;  %v3813_v59 = vmul.f32 %v11091_v27, %v7950_v42 }
 0x351   : > { %2431 = vrot.lane.b32.xlu1 %v2397_v46, %s11079_s18  ;;  %v9104_v46 = vpop.permute.xlu1 %2000 }
 0x352   : > { %v9086_v3 = vpop.permute.xlu0 %1454  ;;  %11093 = vst [vmem:[#allocation73_spill] sm:$0xff] %v9104_v46  ;;  %v3819_v46 = vmul.f32 %v11091_v27, %v8007_v50 }
 0x354   : > { %2494 = vrot.lane.b32.xlu0 %v2489_v21, %s10931_s26  ;;  %v3837_v21 = vpack.c.bf16 %v3816_v44, %v3813_v59 }
 0x355   : > { %2429 = vrot.lane.b32.xlu1 %v8973_v58, %s11079_s18  ;;  %v1957_v58 = vmul.f32 %v7911_v18, %v8023_v2  ;;  %v9116_v26 = vpop.permute.xlu1 %3871 }
 0x356   : > { %v9095_v17 = vpop.permute.xlu0 %3319  ;;  %11094 = vst [vmem:[#allocation65_spill] sm:$0xff] %v9116_v26 }
 0x357   : > { %v1975_v32 = vpack.c.bf16 %v1957_v58, %v1954_v14 }
 0x358   : > { %3863 = vrot.lane.b32.xlu0 %v3838_v41, %s10937_s22  ;;  %v3823_v41 = vmul.f32 %v3809_v38, %v8023_v2 }
 0x359   : > { %4300 = vrot.lane.b32.xlu1 %v8990_v5, %s10940_s10  ;;  %v3820_v5 = vmul.f32 %v3809_v38, %v8000_v47  ;;  %v9127_v58 = vpop.permute.xlu1 %2008 }
 0x35a   : > { %v9106_v6 = vpop.permute.xlu0 %1593  ;;  %11095 = vst [vmem:[#allocation34_spill] sm:$0xff] %v9127_v58  ;;  %v3826_v58 = vmul.f32 %v3809_v38, %v8066_v10 }
 0x35b   : > { %v3841_v59 = vpack.c.bf16 %v3823_v41, %v3820_v5  ;;  %v1960_v41 = vmul.f32 %v7911_v18, %v8066_v10 }
 0x35c   : > { %3861 = vrot.lane.b32.xlu0 %v3837_v21, %s10937_s22  ;;  %v3822_v21 = vmul.f32 %v11091_v27, %v8017_v53 }
 0x35d   : > { %v9139_v43 = vpop.permute.xlu1 %2006 }
 0x35e   : > { %v9113_v57 = vpop.permute.xlu0 %3458  ;;  %v3840_v26 = vpack.c.bf16 %v3822_v21, %v3819_v46  ;;  %11098 = vst [vmem:[#allocation120_spill] sm:$0xff] %v9139_v43 }
 0x360   : > { %2004 = vrot.lane.b32.xlu0 %v1975_v32, %s10941_s16  ;;  %v1963_v32 = vmul.f32 %v7911_v18, %v8084_v12 }
 0x362   : > { %v9120_v44 = vpop.permute.xlu0 %1732  ;;  %v1978_v54 = vpack.c.bf16 %v1963_v32, %v1960_v41  ;;  %v9150_v32 = vpop.permute.xlu1 %3877 }
 0x363   : > { %11100 = vst [vmem:[#allocation122_spill] sm:$0xff] %v9150_v32  ;;  %v3832_v32 = vmul.f32 %v3809_v38, %v8118_v37 }
 0x364   : > { %3869 = vrot.lane.b32.xlu0 %v3841_v59, %s10937_s22  ;;  %v3829_v59 = vmul.f32 %v3809_v38, %v8084_v12 }
 0x366   : > { %v9129_v14 = vpop.permute.xlu0 %3597  ;;  %v3844_v21 = vpack.c.bf16 %v3829_v59, %v3826_v58  ;;  %v1966_v58 = vmul.f32 %v7911_v18, %v8118_v37 }
 0x367   : > { %11096 = vst [vmem:[#allocation118_spill] sm:$0xff] %v9129_v14 }
 0x368   : > { %3867 = vrot.lane.b32.xlu0 %v3840_v26, %s10937_s22  ;;  %v3828_v26 = vmul.f32 %v11091_v27, %v8075_v7 }
 0x36a   : > { %v9136_v5 = vpop.permute.xlu0 %1871 }
 0x36b   : > { %11097 = vst [vmem:[#allocation119_spill] sm:$0xff] %v9136_v5  ;;  %v3825_v5 = vmul.f32 %v11091_v27, %v8073_v16 }
 0x36c   : > { %2010 = vrot.lane.b32.xlu0 %v1978_v54, %s10941_s16  ;;  %v1969_v54 = vmul.f32 %v7911_v18, %v8131_v48  ;;  %v3831_v18 = vmul.f32 %v11091_v27, %v8125_v24 }
 0x36d   : > { %v3843_v4 = vpack.c.bf16 %v3828_v26, %v3825_v5 }
 0x36e   : > { %v9143_v46 = vpop.permute.xlu0 %3736  ;;  %v1981_v43 = vpack.c.bf16 %v1969_v54, %v1966_v58 }
 0x36f   : > { %11099 = vst [vmem:[#allocation121_spill] sm:$0xff] %v9143_v46  ;;  %v9160_v46 = vpop.permute.xlu1 %2014 }
 0x370   : > { %3875 = vrot.lane.b32.xlu0 %v3844_v21, %s10937_s22  ;;  %v3835_v21 = vmul.f32 %v3809_v38, %v8131_v48  ;;  %11101 = vst [vmem:[#allocation123_spill] sm:$0xff] %v9160_v46  ;;  %v2087_v38 = vmul.f32 %v11044_v34, %v11087_v62 }
 0x372   : > { %v2907_v41 = vpop.permute.xlu0 %2906  ;;  %v3847_v26 = vpack.c.bf16 %v3835_v21, %v3832_v32 }
 0x373   : > { %v9171_v54 = vpop.permute.xlu1 %2012 }
 0x374   : > { %3873 = vrot.lane.b32.xlu0 %v3843_v4, %s10937_s22  ;;  %v3834_v4 = vmul.f32 %v11091_v27, %v8127_v56  ;;  %11102 = vst [vmem:[#allocation124_spill] sm:$0xff] %v9171_v54 }
 0x376   : > { %v9157_v59 = vpop.permute.xlu0 %3045  ;;  %v3846_v46 = vpack.c.bf16 %v3834_v4, %v3831_v18  ;;  %v11107_v4 = vld [vmem:[#allocation95_spill] sm:$0xff] }
 0x377   : > { %v9187_v54 = vpop.permute.xlu1 %3883  ;;  %v2628_v18 = vrot.slane %v11107_v4, %v11057_v22  ;;  %v11110_v22 = vld [vmem:[#allocation14_spill] sm:$0xff] }
 0x378   : > { %2016 = vrot.lane.b32.xlu0 %v1981_v43, %s10941_s16  ;;  %v2090_v43 = vmul.f32 %v11044_v34, %v7972_v20  ;;  %s7162_s16 = smov 99  }
 0x37a   : > { %v9164_v5 = vpop.permute.xlu0 %3184  ;;  %v2111_v21 = vpack.c.bf16 %v2090_v43, %v2087_v38 }
 0x37b   : > { %v9199_v38 = vpop.permute.xlu1 %2135 }
 0x37c   : > { %3881 = vrot.lane.b32.xlu0 %v3847_v26, %s10937_s22  ;;  %v11104_v26 = vld [vmem:[#allocation45_spill] sm:$0xff]  ;;  %11109 = vst [vmem:[#allocation126_spill] sm:$0xff] %v9199_v38 }
 0x37d   : > { %v9185_v27 = vsel %vm11105_vm9, %v11104_v26, %v8406_v52  ;;  %11106 = vst [vmem:[#allocation45_spill] sm:$0xff] %v9187_v54  ;;  %v3955_v4 = vmul.f32 %v11104_v26, %v7962_v36  ;;  %vm11123_vm9 = vmmov %vm11113_vm8 }
 0x37e   : > { %v9173_v58 = vpop.permute.xlu0 %3323  ;;  %v3956_v43 = vmul.f32 %v9185_v27, %v7972_v20 }
 0x380   : > { %3879 = vrot.lane.b32.xlu0 %v3846_v46, %s10937_s22  ;;  %v3953_v46 = vmul.f32 %v9185_v27, %v11087_v62  ;;  %s7160_s22 = smov 83  }
 0x382   : > { %v9180_v32 = vpop.permute.xlu0 %3462  ;;  %v3977_v51 = vpack.c.bf16 %v3956_v43, %v3953_v46 }
 0x383   : > { %11103 = vst [vmem:[#allocation125_spill] sm:$0xff] %v9180_v32  ;;  %v9214_v32 = vpop.permute.xlu1 %2133 }
 0x384   : > { %2137 = vrot.lane.b32.xlu0 %v2111_v21, %s11050_s14  ;;  %v3952_v21 = vmul.f32 %v11104_v26, %v7950_v42 }
 0x386   : > { %v9192_v14 = vpop.permute.xlu0 %3601  ;;  %v3976_v43 = vpack.c.bf16 %v3955_v4, %v3952_v21  ;;  %v11119_v21 = vld [vmem:[#allocation17_spill] sm:$0xff]  ;;  %v11120_v4 = vld [vmem:[#allocation76_spill] sm:$0xff] }
 0x387   : > { %11108 = vst [vmem:[#allocation95_spill] sm:$0xff] %v9192_v14 }
 0x388   : > { %2633 = vrot.lane.b32.xlu0 %v2628_v18, %s10930_s25  ;;  %v11111_v18 = vld [vmem:[#allocation15_spill] sm:$0xff] }
 0x389   : > { %v3053_v38 = vsel %vm11113_vm8, %v11112_v63, %v11111_v18  ;;  %v1325_v18 = vsel %vm11121_vm7, %v11120_v4, %v11119_v21  ;;  %vm11125_vm8 = vmmov %vm11121_vm7  ;;  %v11129_v21 = vld [vmem:[#allocation20_spill] sm:$0xff] }
 0x38a   : > { %v2909_v52 = vpop.permute.xlu0 %2908 }
 0x38b   : > { %v2920_v54 = vsel %vm580_vm13, %v2909_v52, %v11110_v22  ;;  %v2919_v14 = vsel %vm580_vm13, %v2907_v41, %v2909_v52  ;;  %v11114_v22 = vld [vmem:[#allocation22_spill] sm:$0xff] }
 0x38c   : > { %4002 = vrot.lane.b32.xlu0 %v3977_v51, %s10938_s12  ;;  %5276 = vmatprep.subr.bf16.mxu1 %v2920_v54  ;;  %v1191_v51 = vsel %vm10914_vm10, %v11114_v22, %v8899_v23  ;;  %v11117_v54 = vld [vmem:[#allocation11_spill] sm:$0xff] }
 0x38d   : > { %5277 = vmatpush1.bf16.msra.mxu1 %v2919_v14  ;;  %v11115_v14 = vld [vmem:[#allocation74_spill] sm:$0xff] }
 0x38e   : > { %5278 = vmatprep.subr.bf16.mxu1 %v3053_v38  ;;  %v1183_v46 = vpop.permute.xlu0 %1182  ;;  %v3052_v41 = vsel %vm11116_vm12, %v11115_v14, %v11112_v63  ;;  %v11118_v38 = vld [vmem:[#allocation98_spill] sm:$0xff]  ;;  %v11124_v63 = vld [vmem:[#allocation24_spill] sm:$0xff]  ;;  %vm11127_vm12 = vmmov %vm11123_vm9 }
 0x38f   : > { %v1192_v11 = vsel %vm10914_vm10, %v8899_v23, %v1183_v46  ;;  %v4360_v52 = vrot.slane %v11118_v38, %v11117_v54  ;;  %v11122_v46 = vld [vmem:[#allocation18_spill] sm:$0xff]  ;;  %v1324_v22 = vsel %vm11125_vm8, %v11124_v63, %v11120_v4  ;;  %vm11131_vm8 = vmmov %vm11121_vm7 }
 0x390   : > { %4000 = vrot.lane.b32.xlu0 %v3976_v43, %s10938_s12  ;;  %5049 = vmatprep.subr.bf16.mxu0 %v1192_v11  ;;  %v3055_v11 = vsel %vm11123_vm9, %v8830_v8, %v11122_v46  ;;  %v2096_v43 = vmul.f32 %v11044_v34, %v8023_v2  ;;  %v11128_v54 = vld [vmem:[#allocation86_spill] sm:$0xff] }
 0x391   : > { %5050 = vmatpush1.bf16.msra.mxu0 %v1191_v51  ;;  %5279 = vmatpush1.bf16.msra.mxu1 %v3052_v41  ;;  %v11126_v51 = vld [vmem:[#allocation103_spill] sm:$0xff]  ;;  %v2093_v41 = vmul.f32 %v11044_v34, %v8000_v47  ;;  %v1327_v38 = vsel %vm11121_vm7, %v11128_v54, %v8842_v55 }
 0x392   : > { %5051 = vmatprep.subr.bf16.mxu0 %v1325_v18  ;;  %5280 = vmatprep.subr.bf16.mxu1 %v3055_v11  ;;  %v3048_v23 = vpop.permute.xlu0 %3047  ;;  %v3054_v14 = vsel %vm11127_vm12, %v11126_v51, %v8830_v8  ;;  %v9248_v18 = vpop.permute.xlu1 %2635  ;;  %v3962_v8 = vmul.f32 %v9185_v27, %v8023_v2  ;;  %v11130_v11 = vld [vmem:[#allocation26_spill] sm:$0xff]  ;;  %vm11132_vm12 = vmmov %vm11123_vm9 }
 0x393   : > { %v2114_v46 = vpack.c.bf16 %v2096_v43, %v2093_v41  ;;  %v1326_v63 = vsel %vm11131_vm8, %v11130_v11, %v11128_v54  ;;  %v3056_v55 = vsel %vm11132_vm12, %v8960_v30, %v9051_v19  ;;  %v11133_v43 = vld [vmem:[#allocation101_spill] sm:$0xff]  ;;  %vm11136_vm8 = vmmov %vm11121_vm7 }
 0x394   : > { %4363 = vrot.lane.b32.xlu0 %v4360_v52, %s10993_s9  ;;  %v3057_v52 = vsel %vm11123_vm9, %v9051_v19, %v11129_v21  ;;  %v1329_v51 = vsel %vm11121_vm7, %v11133_v43, %v9062_v45  ;;  %v3961_v21 = vmul.f32 %v11104_v26, %v8017_v53  ;;  %v11135_v19 = vld [vmem:[#allocation28_spill] sm:$0xff]  ;;  %vm11137_vm12 = vmmov %vm11123_vm9  ;;  %v11138_v11 = vld [vmem:[#allocation25_spill] sm:$0xff]  ;;  %s7187_s9 = smov 43  }
 0x395   : > { %5052 = vmatpush1.bf16.msra.mxu0 %v1324_v22  ;;  %5281 = vmatpush1.bf16.msra.mxu1 %v3054_v14  ;;  %v3959_v22 = vmul.f32 %v9185_v27, %v8000_v47  ;;  %v11134_v14 = vld [vmem:[#allocation23_spill] sm:$0xff]  ;;  %v3058_v45 = vsel %vm11137_vm12, %v9157_v59, %v3048_v23  ;;  %v11140_v59 = vld [vmem:[#allocation30_spill] sm:$0xff] }
 0x396   : > { %5053 = vmatprep.subr.bf16.mxu0 %v1327_v38  ;;  %5282 = vmatprep.subr.bf16.mxu1 %v3057_v52  ;;  %v1322_v4 = vpop.permute.xlu0 %1321  ;;  %v3059_v41 = vsel %vm11123_vm9, %v3048_v23, %v11134_v14  ;;  %v9268_v30 = vpop.permute.xlu1 %4004  ;;  %v1328_v52 = vsel %vm11136_vm8, %v11135_v19, %v11133_v43  ;;  %v2102_v43 = vmul.f32 %v11044_v34, %v8084_v12  ;;  %vm11141_vm9 = vmmov %vm11121_vm7  ;;  %v11142_v14 = vld [vmem:[#allocation75_spill] sm:$0xff]  ;;  %vm11145_vm8 = vcmask 261120  }
 0x397   : > { %v3980_v54 = vpack.c.bf16 %v3962_v8, %v3959_v22  ;;  %v1331_v8 = vsel %vm11121_vm7, %v8919_v15, %v1322_v4  ;;  %v1330_v23 = vsel %vm11141_vm9, %v11140_v59, %v8919_v15  ;;  %vm11148_vm12 = vmmov %vm11145_vm8 }
 0x398   : > { %2143 = vrot.lane.b32.xlu0 %v2114_v46, %s11050_s14  ;;  %v3958_v46 = vmul.f32 %v11104_v26, %v8007_v50  ;;  %vm11151_vm7 = vmmov %vm11145_vm8 }
 0x399   : > { %5054 = vmatpush1.bf16.msra.mxu0 %v1326_v63  ;;  %5283 = vmatpush1.bf16.msra.mxu1 %v3056_v55  ;;  %v11139_v63 = vld [vmem:[#allocation87_spill] sm:$0xff]  ;;  %vm11154_vm9 = vmmov %vm11151_vm7 }
 0x39a   : > { %5055 = vmatprep.subr.bf16.mxu0 %v1329_v51  ;;  %5284 = vmatprep.subr.bf16.mxu1 %v3059_v41  ;;  %v3187_v38 = vpop.permute.xlu0 %3186  ;;  %v3192_v55 = vsel %vm538_vm11, %v11139_v63, %v11138_v11  ;;  %v3979_v51 = vpack.c.bf16 %v3961_v21, %v3958_v46  ;;  %v3191_v4 = vsel %vm538_vm11, %v11142_v14, %v11139_v63  ;;  %v11144_v21 = vld [vmem:[#allocation78_spill] sm:$0xff]  ;;  %v9300_v46 = vpop.permute.xlu1 %4361  ;;  %v11147_v63 = vld [vmem:[#allocation32_spill] sm:$0xff] }
 0x39b   : > { %v2099_v41 = vmul.f32 %v11044_v34, %v8066_v10  ;;  %v3968_v11 = vmul.f32 %v9185_v27, %v8084_v12 }
 0x39c   : > { %4008 = vrot.lane.b32.xlu0 %v3980_v54, %s10938_s12  ;;  %v11143_v54 = vld [vmem:[#allocation89_spill] sm:$0xff] }
 0x39d   : > { %5056 = vmatpush1.bf16.msra.mxu0 %v1328_v52  ;;  %5285 = vmatpush1.bf16.msra.mxu1 %v3058_v45  ;;  %v1464_v19 = vsel %vm11145_vm8, %v11144_v21, %v11143_v54  ;;  %v11146_v52 = vld [vmem:[#allocation27_spill] sm:$0xff]  ;;  %vm11156_vm8 = vmmov %vm11151_vm7 }
 0x39e   : > { %5057 = vmatprep.subr.bf16.mxu0 %v1331_v8  ;;  %5286 = vmatprep.subr.bf16.mxu1 %v3192_v55  ;;  %v1461_v22 = vpop.permute.xlu0 %1460  ;;  %v3194_v45 = vsel %vm538_vm11, %v8857_v1, %v11146_v52  ;;  %v2117_v8 = vpack.c.bf16 %v2102_v43, %v2099_v41  ;;  %v1463_v55 = vsel %vm11148_vm12, %v11147_v63, %v11144_v21  ;;  %v11150_v43 = vld [vmem:[#allocation88_spill] sm:$0xff]  ;;  %v11153_v52 = vld [vmem:[#allocation35_spill] sm:$0xff]  ;;  %vm11159_vm12 = vmmov %vm11151_vm7 }
 0x39f   : > { %v1466_v14 = vsel %vm11151_vm7, %v11150_v43, %v8865_v31  ;;  %v1465_v31 = vsel %vm11154_vm9, %v11153_v52, %v11150_v43  ;;  %vm11162_vm9 = vcmask 924672  }
 0x3a0   : > { %4006 = vrot.lane.b32.xlu0 %v3979_v51, %s10938_s12  ;;  %v11149_v51 = vld [vmem:[#allocation104_spill] sm:$0xff] }
 0x3a1   : > { %5058 = vmatpush1.bf16.msra.mxu0 %v1330_v23  ;;  %5287 = vmatpush1.bf16.msra.mxu1 %v3191_v4  ;;  %v3193_v59 = vsel %vm538_vm11, %v11149_v51, %v8857_v1  ;;  %v3965_v23 = vmul.f32 %v9185_v27, %v8066_v10  ;;  %v11152_v4 = vld [vmem:[#allocation29_spill] sm:$0xff]  ;;  %v3967_v1 = vmul.f32 %v11104_v26, %v8075_v7 }
 0x3a2   : > { %5059 = vmatprep.subr.bf16.mxu0 %v1464_v19  ;;  %5288 = vmatprep.subr.bf16.mxu1 %v3194_v45  ;;  %v9302_v15 = vpop.permute.xlu0 %3325  ;;  %v3196_v41 = vsel %vm538_vm11, %v9077_v28, %v11152_v4  ;;  %v9325_v19 = vpop.permute.xlu1 %2141  ;;  %v3195_v45 = vsel %vm538_vm11, %v8969_v39, %v9077_v28  ;;  %v2108_v39 = vmul.f32 %v11044_v34, %v8131_v48  ;;  %v11158_v28 = vld [vmem:[#allocation37_spill] sm:$0xff] }
 0x3a3   : > { %v3983_v21 = vpack.c.bf16 %v3968_v11, %v3965_v23  ;;  %v11155_v11 = vld [vmem:[#allocation102_spill] sm:$0xff]  ;;  %v2105_v4 = vmul.f32 %v11044_v34, %v8118_v37 }
 0x3a4   : > { %2149 = vrot.lane.b32.xlu0 %v2117_v8, %s11050_s14  ;;  %v3964_v8 = vmul.f32 %v11104_v26, %v8073_v16  ;;  %v1468_v63 = vsel %vm11156_vm8, %v11155_v11, %v9086_v3  ;;  %v1467_v43 = vsel %vm11159_vm12, %v11158_v28, %v11155_v11  ;;  %v3197_v3 = vsel %vm538_vm11, %v9164_v5, %v3187_v38  ;;  %v7049_v34 = vld [vmem:[%s10785_s4 + $0x84] ss:$52 sps:$4 sm:$0xff]   ;;  %vm11164_vm8 = vmmov %vm11151_vm7 }
 0x3a5   : > { %5060 = vmatpush1.bf16.msra.mxu0 %v1463_v55  ;;  %5289 = vmatpush1.bf16.msra.mxu1 %v3193_v59  ;;  %v11157_v55 = vld [vmem:[#allocation31_spill] sm:$0xff]  ;;  %v11165_v11 = vld [vmem:[#allocation77_spill] sm:$0xff]  ;;  %vm11166_vm12 = vmmov %vm11162_vm9 }
 0x3a6   : > { %5061 = vmatprep.subr.bf16.mxu0 %v1466_v14  ;;  %5290 = vmatprep.subr.bf16.mxu1 %v3196_v41  ;;  %v9321_v54 = vpop.permute.xlu0 %1599  ;;  %v3198_v51 = vsel %vm538_vm11, %v3187_v38, %v11157_v55  ;;  %v3982_v23 = vpack.c.bf16 %v3967_v1, %v3964_v8  ;;  %v7043_v14 = vld [vmem:[%s10785_s4 + $0x18] ss:$52 sps:$4 sm:$0xff]   ;;  %v1470_v41 = vsel %vm11151_vm7, %v8938_v29, %v1461_v22  ;;  %vm11169_vm7 = vcmask 252928  }
 0x3a7   : > { %v11161_v1 = vld [vmem:[#allocation90_spill] sm:$0xff]  ;;  %v2120_v38 = vpack.c.bf16 %v2108_v39, %v2105_v4  ;;  %v11163_v22 = vld [vmem:[#allocation39_spill] sm:$0xff]  ;;  %v3971_v55 = vmul.f32 %v9185_v27, %v8118_v37  ;;  %v11170_v28 = vld [vmem:[#allocation36_spill] sm:$0xff] }
 0x3a8   : > { %4014 = vrot.lane.b32.xlu0 %v3983_v21, %s10938_s12  ;;  %v11160_v21 = vld [vmem:[#allocation33_spill] sm:$0xff]  ;;  %v1469_v8 = vsel %vm11164_vm8, %v11163_v22, %v8938_v29  ;;  %vm11172_vm8 = vmmov %vm11169_vm7  ;;  %v11176_v22 = vld [vmem:[#allocation38_spill] sm:$0xff] }
 0x3a9   : > { %5062 = vmatpush1.bf16.msra.mxu0 %v1465_v31  ;;  %5291 = vmatpush1.bf16.msra.mxu1 %v3195_v45  ;;  %v3331_v52 = vsel %vm11162_vm9, %v11161_v1, %v11160_v21  ;;  %v9361_v31 = vpop.permute.xlu1 %2139  ;;  %v3974_v45 = vmul.f32 %v9185_v27, %v8131_v48  ;;  %v11171_v4 = vld [vmem:[#allocation41_spill] sm:$0xff]  ;;  %v11173_v21 = vld [vmem:[#allocation106_spill] sm:$0xff] }
 0x3aa   : > { %5063 = vmatprep.subr.bf16.mxu0 %v1468_v63  ;;  %5292 = vmatprep.subr.bf16.mxu1 %v3198_v51  ;;  %v9341_v59 = vpop.permute.xlu0 %3464  ;;  %v3330_v63 = vsel %vm11166_vm12, %v11165_v11, %v11161_v1  ;;  %v11167_v51 = vld [vmem:[#allocation92_spill] sm:$0xff]  ;;  %vm11174_vm12 = vmmov %vm11162_vm9 }
 0x3ab   : > { %v3332_v1 = vsel %vm11174_vm12, %v11173_v21, %v8874_v35  ;;  %vm11180_vm12 = vmmov %vm11169_vm7 }
 0x3ac   : > { %4012 = vrot.lane.b32.xlu0 %v3982_v23, %s10938_s12  ;;  %v11168_v23 = vld [vmem:[#allocation80_spill] sm:$0xff] }
 0x3ad   : > { %5064 = vmatpush1.bf16.msra.mxu0 %v1467_v43  ;;  %5293 = vmatpush1.bf16.msra.mxu1 %v3197_v3  ;;  %v1603_v39 = vsel %vm11169_vm7, %v11168_v23, %v11167_v51  ;;  %v3333_v43 = vsel %vm11162_vm9, %v8874_v35, %v11170_v28  ;;  %v3986_v3 = vpack.c.bf16 %v3974_v45, %v3971_v55  ;;  %v9389_v27 = vpop.permute.xlu1 %4010  ;;  %v11175_v45 = vld [vmem:[#allocation43_spill] sm:$0xff]  ;;  %v11177_v55 = vld [vmem:[#allocation54_spill] sm:$0xff] }
 0x3ae   : > { %5065 = vmatprep.subr.bf16.mxu0 %v1470_v41  ;;  %5335 = vmatprep.subr.bf16.mxu1 %v3331_v52  ;;  %v9363_v5 = vpop.permute.xlu0 %1738  ;;  %v1602_v41 = vsel %vm11172_vm8, %v11171_v4, %v11168_v23  ;;  %v3970_v52 = vmul.f32 %v11104_v26, %v8125_v24  ;;  %vm11178_vm8 = vcmask 261120   ;;  %v11179_v23 = vld [vmem:[#allocation46_spill] sm:$0xff] }
 0x3af   : > { %v9418_v51 = vsel %vm11178_vm8, %v11177_v55, %v8432_v25  ;;  %v11182_v25 = vld [vmem:[#allocation105_spill] sm:$0xff] }
 0x3b0   : > { %2155 = vrot.lane.b32.xlu0 %v2120_v38, %s11050_s14  ;;  %5295 = vmatmul.mubr.bf16.vlgmr.msra.gmra.mrb[0].mxu1 %v7043_v14  ;;  %v3973_v14 = vmul.f32 %v11104_v26, %v8127_v56  ;;  %v7051_v38 = vld [vmem:[%s10785_s4 + $0x80] ss:$52 sps:$4 sm:$0xff]   ;;  %v2226_v26 = vmul.f32 %v8198_v9, %v11087_v62 }
 0x3b1   : > { %5066 = vmatpush1.bf16.msra.mxu0 %v1469_v8  ;;  %5336 = vmatpush1.bf16.msra.mxu1 %v3330_v63  ;;  %v3335_v8 = vsel %vm11162_vm9, %v9095_v17, %v11176_v22  ;;  %v2229_v63 = vmul.f32 %v8198_v9, %v7972_v20  ;;  %v9436_v4 = vpop.permute.xlu1 %2147  ;;  %v11189_v22 = vld [vmem:[#allocation94_spill] sm:$0xff] }
 0x3b2   : > { %5067 = vmatprep.subr.bf16.mxu0 %v1603_v39  ;;  %5337 = vmatprep.subr.bf16.mxu1 %v3333_v43  ;;  %v9385_v29 = vpop.permute.xlu0 %3603  ;;  %v3985_v11 = vpack.c.bf16 %v3973_v14, %v3970_v52  ;;  %v1604_v39 = vsel %vm11180_vm12, %v11179_v23, %v11175_v45 }
 0x3b3   : > { %5304 = vmatprep.mubr.bf16.mxu1 %v7049_v34  ;;  %v1605_v34 = vsel %vm11169_vm7, %v11175_v45, %v8887_v49  ;;  %v7052_v49 = vld [vmem:[%s10785_s4 + $0xec] ss:$52 sps:$4 sm:$0xff]   ;;  %vm11181_vm7 = vmmov %vm11162_vm9  ;;  %v2250_v21 = vpack.c.bf16 %v2229_v63, %v2226_v26  ;;  %v7055_v63 = vld [vmem:[%s10785_s4 + $0x154] ss:$52 sps:$4 sm:$0xff]  }
 0x3b4   : > { %4020 = vrot.lane.b32.xlu0 %v3986_v3, %s10938_s12  ;;  %v3334_v28 = vsel %vm11181_vm7, %v8986_v0, %v9095_v17  ;;  %vm11183_vm9 = vmmov %vm11180_vm12  ;;  %v11184_v3 = vld [vmem:[#allocation40_spill] sm:$0xff]  ;;  %v4092_v0 = vmul.f32 %v9418_v51, %v11087_v62  ;;  %v4095_v17 = vmul.f32 %v9418_v51, %v7972_v20  ;;  %v3336_v52 = vsel %vm11181_vm7, %v9173_v58, %v9302_v15 }
 0x3b5   : > { %5068 = vmatpush1.bf16.msra.mxu0 %v1602_v41  ;;  %5338 = vmatpush1.bf16.msra.mxu1 %v3332_v1  ;;  %v1607_v43 = vsel %vm11183_vm9, %v11182_v25, %v9106_v6  ;;  %vm11185_vm8 = vmmov %vm11181_vm7  ;;  %v11186_v6 = vld [vmem:[#allocation48_spill] sm:$0xff]  ;;  %v1609_v45 = vsel %vm11183_vm9, %v8958_v60, %v9321_v54  ;;  %v4091_v58 = vmul.f32 %v11177_v55, %v7950_v42  ;;  %v9469_v54 = vpop.permute.xlu1 %2145 }
 0x3b6   : > { %5069 = vmatprep.subr.bf16.mxu0 %v1605_v34  ;;  %5339 = vmatprep.subr.bf16.mxu1 %v3335_v8  ;;  %v9409_v35 = vpop.permute.xlu0 %1877  ;;  %v3337_v14 = vsel %vm11185_vm8, %v9302_v15, %v11184_v3  ;;  %vm11187_vm12 = vmmov %vm11183_vm9  ;;  %v11188_v34 = vld [vmem:[#allocation44_spill] sm:$0xff]  ;;  %vm11190_vm8 = vcmask 916480   ;;  %v4116_v26 = vpack.c.bf16 %v4095_v17, %v4092_v0  ;;  %v4094_v15 = vmul.f32 %v11177_v55, %v7962_v36  ;;  %v11196_v3 = vld [vmem:[#allocation82_spill] sm:$0xff] }
 0x3b7   : > { %v1606_v1 = vsel %vm11187_vm12, %v11186_v6, %v11182_v25  ;;  %v3470_v8 = vsel %vm11190_vm8, %v11189_v22, %v11188_v34  ;;  %vm11192_vm12 = vmmov %vm11183_vm9  ;;  %v7046_v25 = vld [vmem:[%s10785_s4] ss:$52 sps:$4 sm:$0xff]   ;;  %v2232_v6 = vmul.f32 %v8198_v9, %v8000_v47 }
 0x3b8   : > { %4018 = vrot.lane.b32.xlu0 %v3985_v11, %s10938_s12  ;;  %5305 = vmatmul.mubr.bf16.gmra.mrb[4].mxu1 %v7051_v38  ;;  %v7054_v38 = vld [vmem:[%s10785_s4 + $0xe8] ss:$52 sps:$4 sm:$0xff]   ;;  %vm11194_vm7 = vmmov %vm11190_vm8  ;;  %v4115_v17 = vpack.c.bf16 %v4094_v15, %v4091_v58 }
 0x3b9   : > { %5070 = vmatpush1.bf16.msra.mxu0 %v1604_v39  ;;  %5340 = vmatpush1.bf16.msra.mxu1 %v3334_v28  ;;  %v11193_v39 = vld [vmem:[#allocation79_spill] sm:$0xff]  ;;  %vm11198_vm9 = vmmov %vm11194_vm7  ;;  %v11200_v34 = vld [vmem:[#allocation108_spill] sm:$0xff] }
 0x3ba   : > { %5071 = vmatprep.subr.bf16.mxu0 %v1607_v43  ;;  %5341 = vmatprep.subr.bf16.mxu1 %v3337_v14  ;;  %v9438_v41 = vpop.permute.xlu0 %3742  ;;  %v3469_v28 = vsel %vm11194_vm7, %v11193_v39, %v11189_v22  ;;  %v11195_v43 = vld [vmem:[#allocation96_spill] sm:$0xff]  ;;  %vm11201_vm8 = vmmov %vm11194_vm7  ;;  %v11203_v58 = vld [vmem:[#allocation49_spill] sm:$0xff]  ;;  %v4098_v39 = vmul.f32 %v9418_v51, %v8000_v47 }
 0x3bb   : > { %5314 = vmatprep.mubr.bf16.mxu1 %v7052_v49  ;;  %v11191_v49 = vld [vmem:[#allocation50_spill] sm:$0xff]  ;;  %v1742_v14 = vsel %vm441_vm6, %v11196_v3, %v11195_v43  ;;  %v3471_v22 = vsel %vm11201_vm8, %v11200_v34, %v8895_v61  ;;  %v11206_v43 = vld [vmem:[#allocation55_spill] sm:$0xff] }
 0x3bc   : > { %2276 = vrot.lane.b32.xlu0 %v2250_v21, %s11075_s0  ;;  %v1608_v23 = vsel %vm11192_vm12, %v11191_v49, %v8958_v60  ;;  %v11197_v21 = vld [vmem:[#allocation47_spill] sm:$0xff]  ;;  %vm11204_vm12 = vmmov %vm11194_vm7  ;;  %vm11205_vm7 = vcmask 1031168  }
 0x3bd   : > { %5072 = vmatpush1.bf16.msra.mxu0 %v1606_v1  ;;  %5342 = vmatpush1.bf16.msra.mxu1 %v3336_v52  ;;  %v3472_v0 = vsel %vm11198_vm9, %v8895_v61, %v11197_v21  ;;  %v2235_v1 = vmul.f32 %v8198_v9, %v8023_v2  ;;  %v7061_v52 = vld [vmem:[%s10785_s4 + $0x6c] ss:$52 sps:$4 sm:$0xff]   ;;  %v3474_v15 = vsel %vm11204_vm12, %v9113_v57, %v11203_v58  ;;  %vm11207_vm9 = vmmov %vm11201_vm8 }
 0x3be   : > { %5073 = vmatprep.subr.bf16.mxu0 %v1609_v45  ;;  %5343 = vmatprep.subr.bf16.mxu1 %v3470_v8  ;;  %v9460_v11 = vpop.permute.xlu0 %3740  ;;  %v11202_v8 = vld [vmem:[#allocation91_spill] sm:$0xff]  ;;  %v4101_v61 = vmul.f32 %v9418_v51, %v8023_v2  ;;  %v11211_v58 = vld [vmem:[#allocation57_spill] sm:$0xff]  ;;  %vm11213_vm12 = vmmov %vm11201_vm8 }
 0x3c0   : > { %4141 = vrot.lane.b32.xlu0 %v4116_v26, %s10939_s20  ;;  %5315 = vmatmul.mubr.bf16.gmra.mrb[8].mxu1 %v7054_v38  ;;  %v11199_v38 = vld [vmem:[#allocation52_spill] sm:$0xff]  ;;  %v1744_v26 = vsel %vm441_vm6, %v11202_v8, %v8906_v13  ;;  %v4097_v13 = vmul.f32 %v11177_v55, %v8007_v50 }
 0x3c1   : > { %5074 = vmatpush1.bf16.msra.mxu0 %v1608_v23  ;;  %5344 = vmatpush1.bf16.msra.mxu1 %v3469_v28  ;;  %v1741_v45 = vsel %vm441_vm6, %v11199_v38, %v11196_v3  ;;  %v2253_v23 = vpack.c.bf16 %v2235_v1, %v2232_v6  ;;  %v1743_v3 = vsel %vm441_vm6, %v11206_v43, %v11202_v8  ;;  %v11209_v1 = vld [vmem:[#allocation51_spill] sm:$0xff]  ;;  %v7063_v8 = vld [vmem:[%s10785_s4 + $0x68] ss:$52 sps:$4 sm:$0xff]  }
 0x3c2   : > { %5116 = vmatprep.subr.bf16.mxu0 %v1742_v14  ;;  %5345 = vmatprep.subr.bf16.mxu1 %v3472_v0  ;;  %v9487_v60 = vpop.permute.xlu0 %1998  ;;  %v3473_v14 = vsel %vm11207_vm9, %v9003_v33, %v9113_v57  ;;  %v4100_v38 = vmul.f32 %v11177_v55, %v8017_v53  ;;  %v11215_v43 = vld [vmem:[#allocation53_spill] sm:$0xff] }
 0x3c3   : > { %5324 = vmatprep.mubr.bf16.mxu1 %v7055_v63  ;;  %v9509_v63 = vpop.permute.xlu1 %4016 }
 0x3c4   : > { %4139 = vrot.lane.b32.xlu0 %v4115_v17, %s10939_s20  ;;  %5076 = vmatmul.mubr.bf16.vlgmr.msra.gmra.mrb[16].mxu0 %v7046_v25  ;;  %v7057_v25 = vld [vmem:[%s10785_s4 + $0x150] ss:$52 sps:$4 sm:$0xff]  }
 0x3c5   : > { %5117 = vmatpush1.bf16.msra.mxu0 %v1741_v45  ;;  %5346 = vmatpush1.bf16.msra.mxu1 %v3471_v22  ;;  %v11208_v17 = vld [vmem:[#allocation107_spill] sm:$0xff]  ;;  %v4119_v45 = vpack.c.bf16 %v4101_v61, %v4098_v39  ;;  %v2238_v22 = vmul.f32 %v8198_v9, %v8066_v10  ;;  %v2241_v39 = vmul.f32 %v8198_v9, %v8084_v12  ;;  %v11214_v61 = vld [vmem:[#allocation112_spill] sm:$0xff] }
 0x3c6   : > { %5118 = vmatprep.subr.bf16.mxu0 %v1744_v26  ;;  %5347 = vmatprep.subr.bf16.mxu1 %v3474_v15  ;;  %v2495_v49 = vpop.permute.xlu0 %2494  ;;  %v1746_v6 = vsel %vm441_vm6, %v11208_v17, %v9120_v44  ;;  %v7060_v44 = vld [vmem:[%s10785_s4 + $0x24] ss:$52 sps:$4 sm:$0xff]   ;;  %v1745_v15 = vsel %vm441_vm6, %v11211_v58, %v11208_v17 }
 0x3c7   : > { %v9517_v28 = vsel %vm11205_vm7, %v2495_v49, %v9055_v40  ;;  %5085 = vmatprep.mubr.bf16.mxu0 %v7061_v52  ;;  %v3476_v52 = vsel %vm11201_vm8, %v9341_v59, %v11209_v1  ;;  %v2502_v33 = vmul.f32 0.0, %v2495_v49  ;;  %v9553_v26 = vpop.permute.xlu1 %2153  ;;  %v11212_v49 = vld [vmem:[#allocation125_spill] sm:$0xff]  ;;  %vm11217_vm7 = vcmask 908288   ;;  %v11218_v1 = vld [vmem:[#allocation59_spill] sm:$0xff]  ;;  %v11223_v58 = vld [vmem:[#allocation56_spill] sm:$0xff] }
 0x3c8   : > { %2282 = vrot.lane.b32.xlu0 %v2253_v23, %s11075_s0  ;;  %v2503_v21 = vmul.f32 %v9517_v28, %v7950_v42  ;;  %v2506_v0 = vmul.f32 %v9517_v28, %v7962_v36  ;;  %5325 = vmatmul.mubr.bf16.gmra.mrb[12].mxu1 %v7057_v25  ;;  %v3475_v23 = vsel %vm11213_vm12, %v11212_v49, %v9341_v59  ;;  %vm11220_vm9 = vmmov %vm11217_vm7 }
 0x3c9   : > { %5119 = vmatpush1.bf16.msra.mxu0 %v1743_v3  ;;  %5348 = vmatpush1.bf16.msra.mxu1 %v3473_v14  ;;  %v1748_v25 = vsel %vm441_vm6, %v11214_v61, %v9363_v5  ;;  %v11216_v3 = vld [vmem:[#allocation97_spill] sm:$0xff]  ;;  %v2510_v59 = vmul.f32 %v9055_v40, %v8000_v47  ;;  %v4104_v5 = vmul.f32 %v9418_v51, %v8066_v10  ;;  %vm11225_vm8 = vmmov %vm11217_vm7 }
 0x3ca   : > { %5120 = vmatprep.subr.bf16.mxu0 %v1746_v6  ;;  %5349 = vmatprep.subr.bf16.mxu1 %v3476_v52  ;;  %v9543_v57 = vpop.permute.xlu0 %3863  ;;  %v2527_v34 = vpack.c.bf16 %v2506_v0, %v2503_v21  ;;  %v3609_v14 = vsel %vm11217_vm7, %v11216_v3, %v11215_v43  ;;  %v4118_v21 = vpack.c.bf16 %v4100_v38, %v4097_v13  ;;  %v7064_v13 = vld [vmem:[%s10785_s4 + $0xd4] ss:$52 sps:$4 sm:$0xff]   ;;  %v11219_v38 = vld [vmem:[#allocation81_spill] sm:$0xff]  ;;  %vm11228_vm12 = vmmov %vm11217_vm7 }
 0x3cb   : > { %v9571_v0 = vpack.c.bf16 %v2502_v33, %v2502_v33  ;;  %v2513_v6 = vmul.f32 %v9055_v40, %v8023_v2  ;;  %5367 = vmatprep.mubr.bf16.mxu1 %v7060_v44  ;;  %v1747_v52 = vsel %vm441_vm6, %v11218_v1, %v11214_v61  ;;  %v3608_v33 = vsel %vm11220_vm9, %v11219_v38, %v11216_v3  ;;  %v11222_v44 = vld [vmem:[#allocation84_spill] sm:$0xff]  ;;  %v11229_v1 = vld [vmem:[#allocation21_spill] sm:$0xff]  ;;  %v11231_v38 = vld [vmem:[#allocation58_spill] sm:$0xff] }
 0x3cc   : > { %4147 = vrot.lane.b32.xlu0 %v4119_v45, %s10939_s20  ;;  %2552 = vrot.lane.b32.xlu1 %v2527_v34, %s11210_s8  ;;  %v4107_v45 = vmul.f32 %v9418_v51, %v8084_v12  ;;  %v11221_v34 = vld [vmem:[#allocation99_spill] sm:$0xff]  ;;  %v2515_v3 = vmul.f32 %v9517_v28, %v8073_v16  ;;  %vm11235_vm9 = vmmov %vm11217_vm7 }
 0x3cd   : > { %5121 = vmatpush1.bf16.msra.mxu0 %v1745_v15  ;;  %5350 = vmatpush1.bf16.msra.mxu1 %v3475_v23  ;;  %v11224_v15 = vld [vmem:[#allocation13_spill] sm:$0xff]  ;;  %v2256_v23 = vpack.c.bf16 %v2241_v39, %v2238_v22  ;;  %v2531_v43 = vpack.c.bf16 %v2513_v6, %v2510_v59 }
 0x3ce   : > { %5122 = vmatprep.subr.bf16.mxu0 %v1748_v25  ;;  %5351 = vmatprep.subr.bf16.mxu1 %v3609_v14  ;;  %v9573_v17 = vpop.permute.xlu0 %3861  ;;  %v3611_v49 = vsel %vm11225_vm8, %v11224_v15, %v11223_v58  ;;  %v9601_v25 = vpop.permute.xlu1 %2151  ;;  %v2518_v14 = vmul.f32 %v9517_v28, %v8075_v7  ;;  %v11226_v22 = vld [vmem:[#allocation61_spill] sm:$0xff]  ;;  %v4122_v58 = vpack.c.bf16 %v4107_v45, %v4104_v5  ;;  %v11234_v5 = vld [vmem:[#allocation114_spill] sm:$0xff]  ;;  %vm11239_vm8 = vmmov %vm11217_vm7 }
 0x3cf   : > { %5086 = vmatmul.mubr.bf16.gmra.mrb[20].mxu0 %v7063_v8  ;;  %v1881_v8 = vsel %vm462_vm5, %v11222_v44, %v11221_v34  ;;  %v1880_v39 = vsel %vm462_vm5, %v11226_v22, %v11222_v44  ;;  %v11227_v59 = vld [vmem:[#allocation109_spill] sm:$0xff]  ;;  %v11233_v22 = vld [vmem:[#allocation66_spill] sm:$0xff] }
 0x3d0   : > { %4145 = vrot.lane.b32.xlu0 %v4118_v21, %s10939_s20  ;;  %2550 = vrot.lane.b32.xlu1 %v9571_v0, %s11210_s8  ;;  %v7066_v21 = vld [vmem:[%s10785_s4 + $0xd0] ss:$52 sps:$4 sm:$0xff]   ;;  %v3610_v6 = vsel %vm11228_vm12, %v11227_v59, %v11224_v15  ;;  %v4106_v15 = vmul.f32 %v11177_v55, %v8075_v7  ;;  %vm11242_vm12 = vmmov %vm11217_vm7 }
 0x3d1   : > { %5123 = vmatpush1.bf16.msra.mxu0 %v1747_v52  ;;  %5352 = vmatpush1.bf16.msra.mxu1 %v3608_v33  ;;  %v11232_v33 = vld [vmem:[#allocation118_spill] sm:$0xff] }
 0x3d2   : > { %5124 = vmatprep.subr.bf16.mxu0 %v1881_v8  ;;  %5353 = vmatprep.subr.bf16.mxu1 %v3611_v49  ;;  %v9603_v61 = vpop.permute.xlu0 %2004  ;;  %v3613_v34 = vsel %vm11217_vm7, %v11232_v33, %v11231_v38  ;;  %v4103_v8 = vmul.f32 %v11177_v55, %v8073_v16  ;;  %v2533_v49 = vpack.c.bf16 %v2518_v14, %v2515_v3  ;;  %v11236_v14 = vld [vmem:[#allocation119_spill] sm:$0xff]  ;;  %vm11246_vm7 = vcmask 900096  }
 0x3d3   : > { %5095 = vmatprep.mubr.bf16.mxu0 %v7064_v13  ;;  %v11230_v13 = vld [vmem:[#allocation93_spill] sm:$0xff]  ;;  %v3612_v45 = vsel %vm11235_vm9, %v11234_v5, %v11232_v33  ;;  %v2244_v3 = vmul.f32 %v8198_v9, %v8118_v37  ;;  %v2522_v33 = vmul.f32 %v9055_v40, %v8118_v37  ;;  %v11245_v5 = vld [vmem:[#allocation100_spill] sm:$0xff]  ;;  %vm11249_vm9 = vmmov %vm11246_vm7 }
 0x3d4   : > { %2288 = vrot.lane.b32.xlu0 %v2256_v23, %s11075_s0  ;;  %2560 = vrot.lane.b32.xlu1 %v2531_v43, %s11210_s8  ;;  %v1883_v52 = vsel %vm462_vm5, %v11230_v13, %v11229_v1  ;;  %v7067_v23 = vld [vmem:[%s10785_s4 + $0x13c] ss:$52 sps:$4 sm:$0xff]   ;;  %v9635_v43 = vpop.permute.xlu1 %4022  ;;  %v4121_v38 = vpack.c.bf16 %v4106_v15, %v4103_v8 }
 0x3d5   : > { %5125 = vmatpush1.bf16.msra.mxu0 %v1880_v39  ;;  %5354 = vmatpush1.bf16.msra.mxu1 %v3610_v6  ;;  %v1882_v39 = vsel %vm462_vm5, %v11233_v22, %v11230_v13  ;;  %v11238_v6 = vld [vmem:[#allocation60_spill] sm:$0xff]  ;;  %v2247_v13 = vmul.f32 %v8198_v9, %v8131_v48 }
 0x3d6   : > { %5126 = vmatprep.subr.bf16.mxu0 %v1883_v52  ;;  %5355 = vmatprep.subr.bf16.mxu1 %v3613_v34  ;;  %v9628_v44 = vpop.permute.xlu0 %3869  ;;  %v3615_v1 = vsel %vm11239_vm8, %v9385_v29, %v11238_v6  ;;  %v2525_v34 = vmul.f32 %v9055_v40, %v8131_v48  ;;  %v11240_v9 = vld [vmem:[#allocation68_spill] sm:$0xff]  ;;  %vm11253_vm8 = vmmov %vm11246_vm7 }
 0x3d7   : > { %5096 = vmatmul.mubr.bf16.gmra.mrb[24].mxu0 %v7066_v21  ;;  %v11237_v21 = vld [vmem:[#allocation110_spill] sm:$0xff]  ;;  %v2259_v6 = vpack.c.bf16 %v2247_v13, %v2244_v3 }
 0x3d8   : > { %4153 = vrot.lane.b32.xlu0 %v4122_v58, %s10939_s20  ;;  %2564 = vrot.lane.b32.xlu1 %v2533_v49, %s11210_s8  ;;  %v1885_v59 = vsel %vm462_vm5, %v11237_v21, %v11236_v14  ;;  %v7069_v58 = vld [vmem:[%s10785_s4 + $0x138] ss:$52 sps:$4 sm:$0xff]   ;;  %v1884_v8 = vsel %vm462_vm5, %v11240_v9, %v11237_v21  ;;  %v4110_v14 = vmul.f32 %v9418_v51, %v8118_v37 }
 0x3d9   : > { %5127 = vmatpush1.bf16.msra.mxu0 %v1882_v39  ;;  %5356 = vmatpush1.bf16.msra.mxu1 %v3612_v45  ;;  %v11241_v49 = vld [vmem:[#allocation95_spill] sm:$0xff] }
 0x3da   : > { %5128 = vmatprep.subr.bf16.mxu0 %v1885_v59  ;;  %5357 = vmatprep.subr.bf16.mxu1 %v3615_v1  ;;  %v9655_v52 = vpop.permute.xlu0 %3867  ;;  %v3614_v15 = vsel %vm11242_vm12, %v11241_v49, %v9385_v29  ;;  %v11244_v39 = vld [vmem:[#allocation63_spill] sm:$0xff]  ;;  %v9681_v59 = vpop.permute.xlu1 %2274  ;;  %v2537_v29 = vpack.c.bf16 %v2525_v34, %v2522_v33  ;;  %v4113_v1 = vmul.f32 %v9418_v51, %v8131_v48  ;;  %v11252_v34 = vld [vmem:[#allocation16_spill] sm:$0xff]  ;;  %vm11256_vm12 = vmmov %vm11246_vm7 }
 0x3db   : > { %5105 = vmatprep.mubr.bf16.mxu0 %v7067_v23  ;;  %v11243_v23 = vld [vmem:[#allocation113_spill] sm:$0xff]  ;;  %v3748_v45 = vsel %vm11246_vm7, %v11245_v5, %v11244_v39  ;;  %v11250_v51 = vld [vmem:[#allocation115_spill] sm:$0xff] }
 0x3dc   : > { %4151 = vrot.lane.b32.xlu0 %v4121_v38, %s10939_s20  ;;  %2562 = vrot.lane.b32.xlu1 %v9571_v0, %s11210_s8  ;;  %v1887_v22 = vsel %vm462_vm5, %v11243_v23, %v9409_v35  ;;  %v7072_v35 = vld [vmem:[%s10785_s4 + $0xc] ss:$52 sps:$4 sm:$0xff]   ;;  %v2020_v13 = vsel %vm483_vm3, %v11250_v51, %v9487_v60 }
 0x3dd   : > { %5129 = vmatpush1.bf16.msra.mxu0 %v1884_v8  ;;  %5358 = vmatpush1.bf16.msra.mxu1 %v3614_v15  ;;  %v11247_v38 = vld [vmem:[#allocation70_spill] sm:$0xff]  ;;  %v11248_v8 = vld [vmem:[#allocation83_spill] sm:$0xff]  ;;  %v4125_v15 = vpack.c.bf16 %v4113_v1, %v4110_v14  ;;  %v11254_v39 = vld [vmem:[#allocation117_spill] sm:$0xff] }
 0x3de   : > { %5130 = vmatprep.subr.bf16.mxu0 %v1887_v22  ;;  %5359 = vmatprep.subr.bf16.mxu1 %v3748_v45  ;;  %v2011_v21 = vpop.permute.xlu0 %2010  ;;  %v1886_v9 = vsel %vm462_vm5, %v11247_v38, %v11243_v23  ;;  %v3747_v3 = vsel %vm11249_vm9, %v11248_v8, %v11245_v5  ;;  %v11251_v33 = vld [vmem:[#allocation67_spill] sm:$0xff]  ;;  %v4109_v23 = vmul.f32 %v11177_v55, %v8125_v24  ;;  %v9711_v5 = vpop.permute.xlu1 %2272  ;;  %v11257_v14 = vld [vmem:[#allocation42_spill] sm:$0xff]  ;;  %v11259_v1 = vld [vmem:[#allocation121_spill] sm:$0xff]  ;;  %vm11263_vm9 = vcmask 269312  }
 0x3df   : > { %5106 = vmatmul.mubr.bf16.gmra.mrb[28].mxu0 %v7069_v58  ;;  %v3750_v58 = vsel %vm11253_vm8, %v11252_v34, %v11251_v33  ;;  %v4112_v22 = vmul.f32 %v11177_v55, %v8127_v56  ;;  %v2019_v60 = vsel %vm483_vm3, %v11254_v39, %v11250_v51  ;;  %v11255_v45 = vld [vmem:[#allocation111_spill] sm:$0xff]  ;;  %v11258_v55 = vld [vmem:[#allocation69_spill] sm:$0xff]  ;;  %v11260_v8 = vld [vmem:[#allocation62_spill] sm:$0xff] }
 0x3e0   : > { %2294 = vrot.lane.b32.xlu0 %v2259_v6, %s11075_s0  ;;  %2572 = vrot.lane.b32.xlu1 %v2537_v29, %s11210_s8  ;;  %v3749_v6 = vsel %vm11256_vm12, %v11255_v45, %v11252_v34  ;;  %v2022_v29 = vsel %vm483_vm3, %v11257_v14, %v9603_v61  ;;  %v2368_v51 = vmul.f32 %v11260_v8, %v7972_v20  ;;  %v11262_v33 = vld [vmem:[#allocation64_spill] sm:$0xff]  ;;  %v11264_v61 = vld [vmem:[#allocation73_spill] sm:$0xff]  ;;  %vm11266_vm8 = vmmov %vm11246_vm7 }
 0x3e1   : > { %5131 = vmatpush1.bf16.msra.mxu0 %v1886_v9  ;;  %5360 = vmatpush1.bf16.msra.mxu1 %v3747_v3  ;;  %v4124_v9 = vpack.c.bf16 %v4112_v22, %v4109_v23  ;;  %v2365_v3 = vmul.f32 %v11260_v8, %v11087_v62  ;;  %v11267_v22 = vld [vmem:[#allocation34_spill] sm:$0xff]  ;;  %vm11269_vm12 = vmmov %vm11246_vm7 }
 0x3e2   : > { %5132 = vmatprep.subr.bf16.mxu0 %v2020_v13  ;;  %5361 = vmatprep.subr.bf16.mxu1 %v3750_v58  ;;  %v9702_v49 = vpop.permute.xlu0 %3875  ;;  %v11261_v13 = vld [vmem:[#allocation72_spill] sm:$0xff]  ;;  %v2021_v58 = vsel %vm483_vm3, %v11264_v61, %v11257_v14  ;;  %v2024_v39 = vsel %vm483_vm3, %v11267_v22, %v2011_v21  ;;  %v11272_v61 = vld [vmem:[#allocation19_spill] sm:$0xff] }
 0x3e3   : > { %5148 = vmatprep.mubr.bf16.mxu0 %v7072_v35  ;;  %v3752_v35 = vsel %vm11246_vm7, %v11259_v1, %v11258_v55  ;;  %v9730_v34 = vsel %vm11263_vm9, %v11262_v33, %v11261_v13  ;;  %vm11273_vm9 = vcmask 801792  }
 0x3e4   : > { %4159 = vrot.lane.b32.xlu0 %v4125_v15, %s10939_s20  ;;  %v11265_v15 = vld [vmem:[#allocation116_spill] sm:$0xff]  ;;  %v4231_v55 = vmul.f32 %v9730_v34, %v11087_v62 }
 0x3e5   : > { %5133 = vmatpush1.bf16.msra.mxu0 %v2019_v60  ;;  %5362 = vmatpush1.bf16.msra.mxu1 %v3749_v6  ;;  %v3751_v23 = vsel %vm11266_vm8, %v11265_v15, %v11259_v1  ;;  %v11268_v60 = vld [vmem:[#allocation71_spill] sm:$0xff]  ;;  %v9744_v6 = vpop.permute.xlu1 %4143  ;;  %v4234_v1 = vmul.f32 %v9730_v34, %v7972_v20  ;;  %vm11275_vm8 = vmmov %vm11273_vm9 }
 0x3e6   : > { %5134 = vmatprep.subr.bf16.mxu0 %v2022_v29  ;;  %5363 = vmatprep.subr.bf16.mxu1 %v3752_v35  ;;  %v3874_v38 = vpop.permute.xlu0 %3873  ;;  %v3754_v45 = vsel %vm11269_vm12, %v9438_v41, %v11268_v60  ;;  %v2389_v29 = vpack.c.bf16 %v2368_v51, %v2365_v3  ;;  %v11270_v35 = vld [vmem:[#allocation120_spill] sm:$0xff]  ;;  %v11271_v51 = vld [vmem:[#allocation123_spill] sm:$0xff]  ;;  %vm11277_vm12 = vmmov %vm11275_vm8 }
 0x3e7   : > { %v2023_v21 = vsel %vm483_vm3, %v11270_v35, %v11267_v22  ;;  %v7058_v3 = vld [vmem:[%s10785_s4 + $0x20] ss:$52 sps:$4 sm:$0xff]   ;;  %v2371_v35 = vmul.f32 %v11260_v8, %v8000_v47 }
 0x3e8   : > { %4157 = vrot.lane.b32.xlu0 %v4124_v9, %s10939_s20  ;;  %v3753_v9 = vsel %vm11246_vm7, %v9460_v11, %v9438_v41  ;;  %v4230_v41 = vmul.f32 %v11262_v33, %v7950_v42  ;;  %v4233_v11 = vmul.f32 %v11262_v33, %v7962_v36  ;;  %v11274_v22 = vld [vmem:[#allocation124_spill] sm:$0xff]  ;;  %vm11278_vm7 = vmmov %vm11275_vm8 }
 0x3e9   : > { %5135 = vmatpush1.bf16.msra.mxu0 %v2021_v58  ;;  %5364 = vmatpush1.bf16.msra.mxu1 %v3751_v23  ;;  %v3887_v58 = vsel %vm11273_vm9, %v9543_v57, %v11272_v61  ;;  %v4255_v23 = vpack.c.bf16 %v4234_v1, %v4231_v55  ;;  %v9772_v60 = vpop.permute.xlu1 %2280  ;;  %vm11280_vm9 = vmmov %vm11278_vm7  ;;  %v4237_v61 = vmul.f32 %v9730_v34, %v8000_v47 }
 0x3ea   : > { %5136 = vmatprep.subr.bf16.mxu0 %v2024_v39  ;;  %5365 = vmatprep.subr.bf16.mxu1 %v3754_v45  ;;  %v2017_v14 = vpop.permute.xlu0 %2016  ;;  %v2025_v39 = vsel %vm483_vm3, %v11274_v22, %v11271_v51  ;;  %v3886_v45 = vsel %vm11275_vm8, %v9573_v17, %v9543_v57  ;;  %v4254_v1 = vpack.c.bf16 %v4233_v11, %v4230_v41  ;;  %v11279_v17 = vld [vmem:[#allocation122_spill] sm:$0xff]  ;;  %vm11282_vm8 = vmmov %vm11278_vm7  ;;  %v11283_v11 = vld [vmem:[#allocation45_spill] sm:$0xff] }
 0x3eb   : > { %v2026_v13 = vsel %vm483_vm3, %v11271_v51, %v2017_v14  ;;  %v11276_v14 = vld [vmem:[#allocation65_spill] sm:$0xff]  ;;  %v3888_v57 = vsel %vm11278_vm7, %v9655_v52, %v9628_v44  ;;  %v3890_v41 = vsel %vm11282_vm8, %v3874_v38, %v9702_v49 }
 0x3ec   : > { %2415 = vrot.lane.b32.xlu0 %v2389_v29, %s11079_s18  ;;  %v3889_v29 = vsel %vm11277_vm12, %v9628_v44, %v11276_v14  ;;  %vm11284_vm12 = vmmov %vm11278_vm7  ;;  %v4236_v14 = vmul.f32 %v11262_v33, %v8007_v50 }
 0x3ed   : > { %5137 = vmatpush1.bf16.msra.mxu0 %v2023_v21  ;;  %5366 = vmatpush1.bf16.msra.mxu1 %v3753_v9  ;;  %v2374_v21 = vmul.f32 %v11260_v8, %v8023_v2  ;;  %v3891_v9 = vsel %vm11280_vm9, %v9702_v49, %v11279_v17  ;;  %vm11285_vm9 = vcmask 793600  }
 0x3ee   : > { %5138 = vmatprep.subr.bf16.mxu0 %v2026_v13  ;;  %5408 = vmatprep.subr.bf16.mxu1 %v3887_v58  ;;  %v3882_v15 = vpop.permute.xlu0 %3881  ;;  %v4240_v58 = vmul.f32 %v9730_v34, %v8023_v2  ;;  %vm11287_vm8 = vmmov %vm11285_vm9 }
 0x3ef   : > { %v2392_v13 = vpack.c.bf16 %v2374_v21, %v2371_v35  ;;  %v3893_v22 = vsel %vm11284_vm12, %v3882_v15, %v11283_v11  ;;  %v2377_v21 = vmul.f32 %v11260_v8, %v8066_v10  ;;  %vm11289_vm12 = vmmov %vm11287_vm8 }
 0x3f0   : > { %4280 = vrot.lane.b32.xlu0 %v4255_v23, %s10940_s10  ;;  %5368 = vmatmul.mubr.bf16.vlgmr.msra.gmra.mrb[0].mxu1 %v7058_v3  ;;  %v9792_v3 = vpop.permute.xlu1 %2278  ;;  %v11281_v23 = vld [vmem:[#allocation126_spill] sm:$0xff] }
 0x3f1   : > { %5139 = vmatpush1.bf16.msra.mxu0 %v2025_v39  ;;  %5409 = vmatpush1.bf16.msra.mxu1 %v3886_v45  ;;  %v2158_v52 = vsel %vm504_vm4, %v9214_v32, %v11281_v23  ;;  %v4258_v45 = vpack.c.bf16 %v4240_v58, %v4237_v61  ;;  %v4239_v32 = vmul.f32 %v11262_v33, %v8017_v53 }
 0x3f2   : > { %5410 = vmatprep.subr.bf16.mxu1 %v3889_v29  ;;  %v3880_v55 = vpop.permute.xlu0 %3879 }
 0x3f3   : > { %v3892_v29 = vsel %vm11278_vm7, %v3880_v55, %v3882_v15  ;;  %vm11290_vm7 = vmmov %vm11287_vm8 }
 0x3f4   : > { %4278 = vrot.lane.b32.xlu0 %v4254_v1, %s10940_s10  ;;  %v9816_v38 = vpop.permute.xlu1 %4149 }
 0x3f5   : > { %5411 = vmatpush1.bf16.msra.mxu1 %v3888_v57 }
 0x3f6   : > { %5412 = vmatprep.subr.bf16.mxu1 %v3891_v9  ;;  %v2138_v51 = vpop.permute.xlu0 %2137  ;;  %v4257_v9 = vpack.c.bf16 %v4239_v32, %v4236_v14 }
 0x3f7   : > { %v2159_v44 = vsel %vm504_vm4, %v11281_v23, %v2138_v51 }
 0x3f8   : > { %2421 = vrot.lane.b32.xlu0 %v2392_v13, %s11079_s18  ;;  %5140 = vmatprep.subr.bf16.mxu0 %v2159_v44  ;;  %v2380_v13 = vmul.f32 %v11260_v8, %v8084_v12  ;;  %v9832_v55 = vpop.permute.xlu1 %2286  ;;  %v4243_v44 = vmul.f32 %v9730_v34, %v8066_v10 }
 0x3f9   : > { %5141 = vmatpush1.bf16.msra.mxu0 %v2158_v52  ;;  %5413 = vmatpush1.bf16.msra.mxu1 %v3890_v41  ;;  %v4246_v52 = vmul.f32 %v9730_v34, %v8084_v12 }
 0x3fa   : > { %5414 = vmatprep.subr.bf16.mxu1 %v3893_v22  ;;  %v2634_v39 = vpop.permute.xlu0 %2633  ;;  %v2395_v23 = vpack.c.bf16 %v2380_v13, %v2377_v21  ;;  %v4242_v22 = vmul.f32 %v11262_v33, %v8073_v16 }
 0x3fb   : > { %v9814_v49 = vsel %vm580_vm13, %v2634_v39, %v9248_v18  ;;  %v2641_v57 = vmul.f32 0.0, %v2634_v39  ;;  %v4261_v11 = vpack.c.bf16 %v4246_v52, %v4243_v44  ;;  %v4245_v39 = vmul.f32 %v11262_v33, %v8075_v7 }
 0x3fc   : > { %4286 = vrot.lane.b32.xlu0 %v4258_v45, %s10940_s10  ;;  %v2642_v1 = vmul.f32 %v9814_v49, %v7950_v42  ;;  %v2645_v35 = vmul.f32 %v9814_v49, %v7962_v36  ;;  %v9851_v14 = vpop.permute.xlu1 %2284  ;;  %v4252_v44 = vmul.f32 %v9730_v34, %v8131_v48 }
 0x3fd   : > { %5415 = vmatpush1.bf16.msra.mxu1 %v3892_v29  ;;  %v9834_v61 = vpack.c.bf16 %v2641_v57, %v2641_v57  ;;  %v2648_v29 = vmul.f32 %v9814_v49, %v8007_v50  ;;  %v4260_v21 = vpack.c.bf16 %v4245_v39, %v4242_v22  ;;  %v2383_v57 = vmul.f32 %v11260_v8, %v8118_v37 }
 0x3fe   : > { %v4003_v17 = vpop.permute.xlu0 %4002  ;;  %v2666_v51 = vpack.c.bf16 %v2645_v35, %v2642_v1  ;;  %v2651_v1 = vmul.f32 %v9814_v49, %v8017_v53  ;;  %v2657_v39 = vmul.f32 %v9814_v49, %v8075_v7 }
 0x3ff   : > { %v4026_v15 = vsel %vm11285_vm9, %v4003_v17, %v9268_v30  ;;  %vm11291_vm9 = vmmov %vm11290_vm7 }
 0x400   : > { %4284 = vrot.lane.b32.xlu0 %v4257_v9, %s10940_s10  ;;  %2691 = vrot.lane.b32.xlu1 %v2666_v51, %s11286_s3  ;;  %v2160_v51 = vsel %vm504_vm4, %v9361_v31, %v9325_v19  ;;  %v2669_v13 = vpack.c.bf16 %v2651_v1, %v2648_v29  ;;  %v2507_v1 = vmul.f32 %v9055_v40, %v7972_v20 }
 0x401   : > { %5416 = vmatprep.subr.bf16.mxu1 %v4026_v15  ;;  %v9872_v15 = vpop.permute.xlu1 %4155 }
 0x402   : > { %v4001_v58 = vpop.permute.xlu0 %4000 }
 0x403   : > { %v4025_v41 = vsel %vm11287_vm8, %v4001_v58, %v4003_v17  ;;  %v2386_v17 = vmul.f32 %v11260_v8, %v8131_v48  ;;  %v4249_v8 = vmul.f32 %v9730_v34, %v8118_v37  ;;  %vm11292_vm8 = vmmov %vm11290_vm7 }
 0x404   : > { %2427 = vrot.lane.b32.xlu0 %v2395_v23, %s11079_s18  ;;  %2689 = vrot.lane.b32.xlu1 %v9834_v61, %s11286_s3 }
 0x405   : > { %5417 = vmatpush1.bf16.msra.mxu1 %v4025_v41  ;;  %v2398_v23 = vpack.c.bf16 %v2386_v17, %v2383_v57  ;;  %v4264_v52 = vpack.c.bf16 %v4252_v44, %v4249_v8  ;;  %v4248_v41 = vmul.f32 %v11262_v33, %v8125_v24  ;;  %v9889_v34 = vpop.permute.xlu1 %2292  ;;  %v2162_v57 = vsel %vm504_vm4, %v9469_v54, %v9436_v4  ;;  %v7075_v17 = vld [vmem:[%s10785_s4 + $0x88] ss:$52 sps:$4 sm:$0xff]  }
 0x406   : > { %v9844_v30 = vpop.permute.xlu0 %4363 }
 0x407   : > { %v4371_v45 = vmul.f32 0.0, %v9844_v30 }
 0x408   : > { %4292 = vrot.lane.b32.xlu0 %v4261_v11, %s10940_s10  ;;  %v4251_v11 = vmul.f32 %v11262_v33, %v8127_v56  ;;  %v2504_v33 = vmul.f32 %v9055_v40, %v11087_v62 }
 0x409   : > { %v9854_v32 = vpack.c.bf16 %v4371_v45, %v4371_v45 }
 0x40a   : > { %v2144_v35 = vpop.permute.xlu0 %2143  ;;  %v4263_v29 = vpack.c.bf16 %v4251_v11, %v4248_v41  ;;  %v2660_v41 = vmul.f32 %v9814_v49, %v8125_v24  ;;  %v2663_v11 = vmul.f32 %v9814_v49, %v8127_v56 }
 0x40b   : > { %4421 = vrot.lane.b32.xlu1 %v9854_v32, %s11288_s29  ;;  %v2161_v9 = vsel %vm504_vm4, %v9325_v19, %v2144_v35 }
 0x40c   : > { %4290 = vrot.lane.b32.xlu0 %v4260_v21, %s10940_s10  ;;  %5142 = vmatprep.subr.bf16.mxu0 %v2161_v9  ;;  %v7073_v21 = vld [vmem:[%s10785_s4 + $0x8c] ss:$52 sps:$4 sm:$0xff]  }
 0x40d   : > { %5143 = vmatpush1.bf16.msra.mxu0 %v2160_v51  ;;  %5377 = vmatprep.mubr.bf16.mxu1 %v7073_v21  ;;  %v9914_v51 = vpop.permute.xlu1 %2290  ;;  %v2521_v21 = vmul.f32 %v9517_v28, %v8125_v24 }
 0x40e   : > { %v4009_v58 = vpop.permute.xlu0 %4008  ;;  %5378 = vmatmul.mubr.bf16.gmra.mrb[4].mxu1 %v7075_v17  ;;  %v7081_v17 = vld [vmem:[%s10785_s4 + $0x158] ss:$52 sps:$4 sm:$0xff]  }
 0x40f   : > { %2697 = vrot.lane.b32.xlu1 %v2669_v13, %s11286_s3  ;;  %v4028_v19 = vsel %vm11289_vm12, %v4009_v58, %v9389_v27  ;;  %v2654_v27 = vmul.f32 %v9814_v49, %v8073_v16  ;;  %v2675_v49 = vpack.c.bf16 %v2663_v11, %v2660_v41  ;;  %vm11293_vm12 = vmmov %vm11290_vm7 }
 0x410   : > { %2433 = vrot.lane.b32.xlu0 %v2398_v23, %s11079_s18  ;;  %5418 = vmatprep.subr.bf16.mxu1 %v4028_v19  ;;  %v2509_v23 = vmul.f32 %v9517_v28, %v8007_v50  ;;  %v7076_v19 = vld [vmem:[%s10785_s4 + $0xf4] ss:$52 sps:$4 sm:$0xff]  }
 0x411   : > { %v2672_v9 = vpack.c.bf16 %v2657_v39, %v2654_v27  ;;  %5387 = vmatprep.mubr.bf16.mxu1 %v7076_v19  ;;  %v2516_v27 = vmul.f32 %v9055_v40, %v8066_v10  ;;  %v2519_v39 = vmul.f32 %v9055_v40, %v8084_v12  ;;  %v7070_v40 = vld [vmem:[%s10785_s4 + $0x8] ss:$52 sps:$4 sm:$0xff]  }
 0x412   : > { %v4007_v31 = vpop.permute.xlu0 %4006 }
 0x413   : > { %v4027_v22 = vsel %vm11290_vm7, %v4007_v31, %v4009_v58  ;;  %2695 = vrot.lane.b32.xlu1 %v9834_v61, %s11286_s3  ;;  %v2528_v58 = vpack.c.bf16 %v2507_v1, %v2504_v33 }
 0x414   : > { %4298 = vrot.lane.b32.xlu0 %v4264_v52, %s10940_s10  ;;  %5419 = vmatpush1.bf16.msra.mxu1 %v4027_v22  ;;  %v9930_v52 = vpop.permute.xlu1 %4161 }
 0x416   : > { %v2150_v45 = vpop.permute.xlu0 %2149 }
 0x417   : > { %4427 = vrot.lane.b32.xlu1 %v9854_v32, %s11288_s29  ;;  %v2163_v35 = vsel %vm504_vm4, %v9436_v4, %v2150_v45  ;;  %v2512_v4 = vmul.f32 %v9517_v28, %v8017_v53 }
 0x418   : > { %4296 = vrot.lane.b32.xlu0 %v4263_v29, %s10940_s10  ;;  %5144 = vmatprep.subr.bf16.mxu0 %v2163_v35  ;;  %v2164_v29 = vsel %vm504_vm4, %v9601_v25, %v9553_v26  ;;  %v9956_v33 = vpop.permute.xlu1 %2413  ;;  %v2534_v35 = vpack.c.bf16 %v2519_v39, %v2516_v27  ;;  %v7079_v25 = vld [vmem:[%s10785_s4 + $0x15c] ss:$52 sps:$4 sm:$0xff]  }
 0x419   : > { %5145 = vmatpush1.bf16.msra.mxu0 %v2162_v57  ;;  %v2530_v44 = vpack.c.bf16 %v2512_v4, %v2509_v23  ;;  %v2643_v23 = vmul.f32 %v9248_v18, %v11087_v62  ;;  %v2646_v4 = vmul.f32 %v9248_v18, %v7972_v20 }
 0x41a   : > { %v4015_v13 = vpop.permute.xlu0 %4014 }
 0x41b   : > { %2703 = vrot.lane.b32.xlu1 %v2672_v9, %s11286_s3  ;;  %v4030_v54 = vsel %vm11291_vm9, %v4015_v13, %v9509_v63  ;;  %v7078_v63 = vld [vmem:[%s10785_s4 + $0xf0] ss:$52 sps:$4 sm:$0xff]   ;;  %vm11295_vm9 = vcmask 785408  }
 0x41c   : > { %2554 = vrot.lane.b32.xlu0 %v2528_v58, %s11210_s8  ;;  %5420 = vmatprep.subr.bf16.mxu1 %v4030_v54  ;;  %v9975_v58 = vpop.permute.xlu1 %2411  ;;  %v9985_v54 = vsel %vm10914_vm10, %v9300_v46, %v9844_v30  ;;  %v4722_v30 = vld [vmem:[%s11294_s5] sm:$0xff]  ;;  %vm5947_vm10 = vcmask 891904  }
 0x41d   : > { %5388 = vmatmul.mubr.bf16.gmra.mrb[8].mxu1 %v7078_v63  ;;  %v4370_v63 = vmul.f32 %v9985_v54, %v11087_v62  ;;  %v4372_v62 = vmul.f32 %v9300_v46, %v7962_v36 }
 0x41e   : > { %v4013_v8 = vpop.permute.xlu0 %4012  ;;  %5397 = vmatprep.mubr.bf16.mxu1 %v7079_v25 }
 0x41f   : > { %v4029_v31 = vsel %vm11292_vm8, %v4013_v8, %v4015_v13  ;;  %2701 = vrot.lane.b32.xlu1 %v9834_v61, %s11286_s3  ;;  %v7084_v8 = vld [vmem:[%s10785_s4 + $0x2c] ss:$52 sps:$4 sm:$0xff]   ;;  %vm11296_vm8 = vmmov %vm11295_vm9 }
 0x420   : > { %2558 = vrot.lane.b32.xlu0 %v2530_v44, %s11210_s8  ;;  %5421 = vmatpush1.bf16.msra.mxu1 %v4029_v31  ;;  %v2297_v44 = vsel %vm525_vm2, %v9711_v5, %v9681_v59  ;;  %v2667_v31 = vpack.c.bf16 %v2646_v4, %v2643_v23  ;;  %v4724_v5 = vld [vmem:[%s11294_s5 + $0x10] sm:$0xff] }
 0x422   : > { %v2156_v22 = vpop.permute.xlu0 %2155 }
 0x423   : > { %4433 = vrot.lane.b32.xlu1 %v9854_v32, %s11288_s29  ;;  %v2165_v45 = vsel %vm504_vm4, %v9553_v26, %v2156_v22  ;;  %v2524_v26 = vmul.f32 %v9517_v28, %v8127_v56  ;;  %v4369_v22 = vmul.f32 %v9300_v46, %v7950_v42  ;;  %v4726_v42 = vld [vmem:[%s11294_s5 + $0x20] sm:$0xff] }
 0x424   : > { %2556 = vrot.lane.b32.xlu0 %v9571_v0, %s11210_s8  ;;  %5146 = vmatprep.subr.bf16.mxu0 %v2165_v45 }
 0x425   : > { %5147 = vmatpush1.bf16.msra.mxu0 %v2164_v29  ;;  %v2536_v28 = vpack.c.bf16 %v2524_v26, %v2521_v21  ;;  %5398 = vmatmul.mubr.bf16.gmra.mrb[12].mxu1 %v7081_v17  ;;  %v4393_v45 = vpack.c.bf16 %v4372_v62, %v4369_v22  ;;  %v2649_v29 = vmul.f32 %v9248_v18, %v8000_v47 }
 0x426   : > { %v4021_v1 = vpop.permute.xlu0 %4020  ;;  %5440 = vmatprep.mubr.bf16.mxu1 %v7084_v8  ;;  %v4379_v17 = vmul.f32 %v9985_v54, %v8023_v2  ;;  %v2658_v8 = vmul.f32 %v9248_v18, %v8084_v12 }
 0x427   : > { %2709 = vrot.lane.b32.xlu1 %v2675_v49, %s11286_s3  ;;  %v4032_v57 = vsel %vm11293_vm12, %v4021_v1, %v9635_v43  ;;  %v2652_v49 = vmul.f32 %v9248_v18, %v8023_v2  ;;  %vm11297_vm12 = vmmov %vm11296_vm8  ;;  %v4375_v2 = vmul.f32 %v9300_v46, %v8007_v50 }
 0x428   : > { %2566 = vrot.lane.b32.xlu0 %v2534_v35, %s11210_s8  ;;  %5422 = vmatprep.subr.bf16.mxu1 %v4032_v57  ;;  %v4728_v35 = vld [vmem:[%s11294_s5 + $0x30] sm:$0xff]  ;;  %v4376_v57 = vmul.f32 %v9985_v54, %v8000_v47 }
 0x429   : > { %5149 = vmatmul.mubr.bf16.vlgmr.msra.gmra.mrb[16].mxu0 %v7070_v40  ;;  %v2670_v25 = vpack.c.bf16 %v2652_v49, %v2649_v29  ;;  %v4387_v49 = vmul.f32 %v9300_v46, %v8125_v24  ;;  %v4723_v24 = vld [vmem:[%s11294_s5 + $0x8] sm:$0xff] }
 0x42a   : > { %v4019_v9 = vpop.permute.xlu0 %4018 }
 0x42b   : > { %v4031_v13 = vsel %vm11290_vm7, %v4019_v9, %v4021_v1  ;;  %2707 = vrot.lane.b32.xlu1 %v9834_v61, %s11286_s3  ;;  %v2299_v1 = vsel %vm525_vm2, %v9792_v3, %v9772_v60  ;;  %v7093_v9 = vld [vmem:[%s10785_s4 + $0xd8] ss:$52 sps:$4 sm:$0xff]   ;;  %vm11298_vm7 = vmmov %vm11296_vm8 }
 0x42c   : > { %2570 = vrot.lane.b32.xlu0 %v2536_v28, %s11210_s8  ;;  %5423 = vmatpush1.bf16.msra.mxu1 %v4031_v13  ;;  %v4397_v28 = vpack.c.bf16 %v4379_v17, %v4376_v57  ;;  %v4378_v13 = vmul.f32 %v9300_v46, %v8017_v53  ;;  %v7096_v53 = vld [vmem:[%s10785_s4 + $0x144] ss:$52 sps:$4 sm:$0xff]   ;;  %v4727_v17 = vld [vmem:[%s11294_s5 + $0x28] sm:$0xff] }
 0x42e   : > { %v2277_v43 = vpop.permute.xlu0 %2276  ;;  %v4396_v4 = vpack.c.bf16 %v4378_v13, %v4375_v2 }
 0x42f   : > { %4439 = vrot.lane.b32.xlu1 %v9854_v32, %s11288_s29  ;;  %v2298_v61 = vsel %vm525_vm2, %v9681_v59, %v2277_v43  ;;  %v10002_v32 = vpop.permute.xlu1 %4282  ;;  %v4373_v59 = vmul.f32 %v9985_v54, %v7972_v20  ;;  %v7085_v20 = vld [vmem:[%s10785_s4 + $0x74] ss:$52 sps:$4 sm:$0xff]  }
 0x430   : > { %2568 = vrot.lane.b32.xlu0 %v9571_v0, %s11210_s8  ;;  %5189 = vmatprep.subr.bf16.mxu0 %v2298_v61  ;;  %v2655_v61 = vmul.f32 %v9248_v18, %v8066_v10 }
 0x431   : > { %5190 = vmatpush1.bf16.msra.mxu0 %v2297_v44  ;;  %v4394_v11 = vpack.c.bf16 %v4373_v59, %v4370_v63  ;;  %5158 = vmatprep.mubr.bf16.mxu0 %v7085_v20  ;;  %v7099_v44 = vld [vmem:[%s10785_s4 + $0x140] ss:$52 sps:$4 sm:$0xff]   ;;  %v4382_v59 = vmul.f32 %v9985_v54, %v8066_v10 }
 0x432   : > { %v4142_v19 = vpop.permute.xlu0 %4141  ;;  %v2673_v63 = vpack.c.bf16 %v2658_v8, %v2655_v61  ;;  %v7104_v10 = vld [vmem:[%s10785_s4 + $0x14] ss:$52 sps:$4 sm:$0xff]  }
 0x433   : > { %4732 = vperm.xlu1 %7042, %v4722_v30   ;;  %v4165_v0 = vsel %vm11295_vm9, %v4142_v19, %v9744_v6  ;;  %v7087_v6 = vld [vmem:[%s10785_s4 + $0x70] ss:$52 sps:$4 sm:$0xff]   ;;  %v10025_v39 = vpop.permute.xlu1 %2419  ;;  %v2301_v30 = vsel %vm525_vm2, %v9851_v14, %v9832_v55  ;;  %vm11299_vm9 = vmmov %vm11298_vm7 }
 0x434   : > { %2693 = vrot.lane.b32.xlu0 %v2667_v31, %s11286_s3  ;;  %5424 = vmatprep.subr.bf16.mxu1 %v4165_v0  ;;  %v4385_v0 = vmul.f32 %v9985_v54, %v8084_v12 }
 0x435   : > { %5159 = vmatmul.mubr.bf16.gmra.mrb[20].mxu0 %v7087_v6  ;;  %v2303_v6 = vsel %vm525_vm2, %v9914_v51, %v9889_v34 }
 0x436   : > { %v4140_v41 = vpop.permute.xlu0 %4139  ;;  %v4400_v14 = vpack.c.bf16 %v4385_v0, %v4382_v59 }
 0x437   : > { %v4164_v27 = vsel %vm11296_vm8, %v4140_v41, %v4142_v19  ;;  %4742 = vperm.xlu1 %7042, %v4724_v5   ;;  %v10044_v21 = vpop.permute.xlu1 %2417  ;;  %v4381_v41 = vmul.f32 %v9300_v46, %v8073_v16  ;;  %vm11300_vm8 = vmmov %vm11298_vm7  ;;  %v2661_v16 = vmul.f32 %v9248_v18, %v8118_v37 }
 0x438   : > { %4419 = vrot.lane.b32.xlu0 %v4394_v11, %s11288_s29  ;;  %5425 = vmatpush1.bf16.msra.mxu1 %v4164_v27  ;;  %v4384_v11 = vmul.f32 %v9300_v46, %v8075_v7  ;;  %v2664_v7 = vmul.f32 %v9248_v18, %v8131_v48  ;;  %v4391_v18 = vmul.f32 %v9985_v54, %v8131_v48 }
 0x43a   : > { %v2283_v36 = vpop.permute.xlu0 %2282  ;;  %v4399_v62 = vpack.c.bf16 %v4384_v11, %v4381_v41  ;;  %v7082_v41 = vld [vmem:[%s10785_s4 + $0x28] ss:$52 sps:$4 sm:$0xff]  }
 0x43b   : > { %4752 = vperm.xlu1 %7042, %v4726_v42   ;;  %v2300_v40 = vsel %vm525_vm2, %v9772_v60, %v2283_v36  ;;  %v7090_v60 = vld [vmem:[%s10785_s4 + $0xdc] ss:$52 sps:$4 sm:$0xff]   ;;  %v2676_v36 = vpack.c.bf16 %v2664_v7, %v2661_v16  ;;  %v7088_v11 = vld [vmem:[%s10785_s4 + $0x94] ss:$52 sps:$4 sm:$0xff]  }
 0x43c   : > { %4417 = vrot.lane.b32.xlu0 %v4393_v45, %s11288_s29  ;;  %5191 = vmatprep.subr.bf16.mxu0 %v2300_v40  ;;  %v4388_v45 = vmul.f32 %v9985_v54, %v8118_v37  ;;  %v4390_v40 = vmul.f32 %v9300_v46, %v8127_v56  ;;  %v7092_v7 = vld [vmem:[%s10785_s4 + $0x90] ss:$52 sps:$4 sm:$0xff]  }
 0x43d   : > { %5192 = vmatpush1.bf16.msra.mxu0 %v2299_v1  ;;  %5168 = vmatprep.mubr.bf16.mxu0 %v7090_v60 }
 0x43e   : > { %v4148_v26 = vpop.permute.xlu0 %4147  ;;  %5169 = vmatmul.mubr.bf16.gmra.mrb[24].mxu0 %v7093_v9  ;;  %v4403_v51 = vpack.c.bf16 %v4391_v18, %v4388_v45  ;;  %v4402_v54 = vpack.c.bf16 %v4390_v40, %v4387_v49 }
 0x43f   : > { %4762 = vperm.xlu1 %7042, %v4728_v35   ;;  %v4167_v3 = vsel %vm11297_vm12, %v4148_v26, %v9816_v38  ;;  %v10064_v38 = vpop.permute.xlu1 %4288  ;;  %5178 = vmatprep.mubr.bf16.mxu0 %v7096_v53  ;;  %vm11301_vm12 = vmmov %vm11298_vm7  ;;  %v2436_v35 = vsel %vm546_vm0, %v9975_v58, %v9956_v33 }
 0x440   : > { %2699 = vrot.lane.b32.xlu0 %v2670_v25, %s11286_s3  ;;  %5426 = vmatprep.subr.bf16.mxu1 %v4167_v3  ;;  %v4725_v25 = vld [vmem:[%s11294_s5 + $0x18] sm:$0xff]  ;;  %v2438_v3 = vsel %vm546_vm0, %v10044_v21, %v10025_v39 }
 0x442   : > { %v4146_v47 = vpop.permute.xlu0 %4145 }
 0x443   : > { %v4166_v43 = vsel %vm11298_vm7, %v4146_v47, %v4148_v26  ;;  %v10083_v19 = vpop.permute.xlu1 %2425  ;;  %v4729_v47 = vld [vmem:[%s11294_s5 + $0x38] sm:$0xff]  ;;  %s7168_s5 = smov 35  }
 0x444   : > { %4425 = vrot.lane.b32.xlu0 %v4397_v28, %s11288_s29  ;;  %5427 = vmatpush1.bf16.msra.mxu1 %v4166_v43 }
 0x446   : > { %v2289_v23 = vpop.permute.xlu0 %2288  ;;  %5179 = vmatmul.mubr.bf16.gmra.mrb[28].mxu0 %v7099_v44 }
 0x447   : > { %v2302_v50 = vsel %vm525_vm2, %v9832_v55, %v2289_v23  ;;  %v10100_v22 = vpop.permute.xlu1 %2423  ;;  %5221 = vmatprep.mubr.bf16.mxu0 %v7104_v10 }
 0x448   : > { %4423 = vrot.lane.b32.xlu0 %v4396_v4, %s11288_s29  ;;  %5193 = vmatprep.subr.bf16.mxu0 %v2302_v50  ;;  %v2440_v4 = vsel %vm546_vm0, %v10100_v22, %v10083_v19 }
 0x449   : > { %5194 = vmatpush1.bf16.msra.mxu0 %v2301_v30 }
 0x44a   : > { %v4154_v31 = vpop.permute.xlu0 %4153 }
 0x44b   : > { %v4169_v5 = vsel %vm11299_vm9, %v4154_v31, %v9872_v15  ;;  %v4295_v27 = vpop.permute.xlu1 %4294  ;;  %vm11302_vm9 = vcmask 777216  }
 0x44c   : > { %2705 = vrot.lane.b32.xlu0 %v2673_v63, %s11286_s3  ;;  %5428 = vmatprep.subr.bf16.mxu1 %v4169_v5 }
 0x44e   : > { %v4152_v55 = vpop.permute.xlu0 %4151 }
 0x44f   : > { %v4168_v12 = vsel %vm11300_vm8, %v4152_v55, %v4154_v31  ;;  %v2432_v37 = vpop.permute.xlu1 %2431  ;;  %vm11303_vm8 = vmmov %vm11302_vm9 }
 0x450   : > { %4431 = vrot.lane.b32.xlu0 %v4400_v14, %s11288_s29  ;;  %5429 = vmatpush1.bf16.msra.mxu1 %v4168_v12 }
 0x452   : > { %v2295_v15 = vpop.permute.xlu0 %2294 }
 0x453   : > { %v2304_v20 = vsel %vm525_vm2, %v9889_v34, %v2295_v15  ;;  %v2430_v56 = vpop.permute.xlu1 %2429 }
 0x454   : > { %4429 = vrot.lane.b32.xlu0 %v4399_v62, %s11288_s29  ;;  %5195 = vmatprep.subr.bf16.mxu0 %v2304_v20  ;;  %v2442_v63 = vsel %vm546_vm0, %v2430_v56, %v2432_v37 }
 0x455   : > { %5196 = vmatpush1.bf16.msra.mxu0 %v2303_v6  ;;  %v7094_v6 = vld [vmem:[%s10785_s4 + $0xfc] ss:$52 sps:$4 sm:$0xff]  }
 0x456   : > { %v4160_v42 = vpop.permute.xlu0 %4159 }
 0x457   : > { %v4171_v29 = vsel %vm11301_vm12, %v4160_v42, %v9930_v52  ;;  %v4301_v57 = vpop.permute.xlu1 %4300  ;;  %vm11304_vm12 = vmmov %vm11303_vm8 }
 0x458   : > { %2711 = vrot.lane.b32.xlu0 %v2676_v36, %s11286_s3  ;;  %5430 = vmatprep.subr.bf16.mxu1 %v4171_v29  ;;  %v7098_v29 = vld [vmem:[%s10785_s4 + $0xf8] ss:$52 sps:$4 sm:$0xff]  }
 0x45a   : > { %v4158_v34 = vpop.permute.xlu0 %4157 }
 0x45b   : > { %v4170_v1 = vsel %vm11298_vm7, %v4158_v34, %v4160_v42  ;;  %v2553_v9 = vpop.permute.xlu1 %2552  ;;  %vm11305_vm7 = vmmov %vm11303_vm8 }
 0x45c   : > { %4437 = vrot.lane.b32.xlu0 %v4403_v51, %s11288_s29  ;;  %5431 = vmatpush1.bf16.msra.mxu1 %v4170_v1  ;;  %v7100_v51 = vld [vmem:[%s10785_s4 + $0x164] ss:$52 sps:$4 sm:$0xff]  }
 0x45e   : > { %v2416_v48 = vpop.permute.xlu0 %2415 }
 0x45f   : > { %v2437_v52 = vsel %vm546_vm0, %v9956_v33, %v2416_v48  ;;  %v2551_v13 = vpop.permute.xlu1 %2550 }
 0x460   : > { %4435 = vrot.lane.b32.xlu0 %v4402_v54, %s11288_s29  ;;  %5197 = vmatprep.subr.bf16.mxu0 %v2437_v52  ;;  %v2575_v15 = vsel %vm567_vm15, %v2551_v13, %v2553_v9  ;;  %v7105_v54 = vld [vmem:[%s10785_s4 + $0x160] ss:$52 sps:$4 sm:$0xff]  }
 0x461   : > { %5198 = vmatpush1.bf16.msra.mxu0 %v2436_v35 }
 0x462   : > { %v4281_v46 = vpop.permute.xlu0 %4280 }
 0x463   : > { %v4304_v26 = vsel %vm11302_vm9, %v4281_v46, %v10002_v32  ;;  %v2561_v61 = vpop.permute.xlu1 %2560  ;;  %vm11306_vm9 = vmmov %vm11305_vm7 }
 0x464   : > { %4737 = vperm.xlu0 %7041, %v4723_v24   ;;  %5432 = vmatprep.subr.bf16.mxu1 %v4304_v26 }
 0x466   : > { %v4279_v33 = vpop.permute.xlu0 %4278 }
 0x467   : > { %v4303_v58 = vsel %vm11303_vm8, %v4279_v33, %v4281_v46  ;;  %v2565_v50 = vpop.permute.xlu1 %2564  ;;  %vm11307_vm8 = vmmov %vm11305_vm7  ;;  %v11309_v46 = vmov 0  }
 0x468   : > { %4747 = vperm.xlu0 %7041, %v4725_v25   ;;  %5433 = vmatpush1.bf16.msra.mxu1 %v4303_v58 }
 0x46a   : > { %v2422_v60 = vpop.permute.xlu0 %2421 }
 0x46b   : > { %v2439_v32 = vsel %vm546_vm0, %v10025_v39, %v2422_v60  ;;  %v2563_v59 = vpop.permute.xlu1 %2562 }
 0x46c   : > { %4757 = vperm.xlu0 %7041, %v4727_v17   ;;  %5199 = vmatprep.subr.bf16.mxu0 %v2439_v32  ;;  %v2579_v34 = vsel %vm567_vm15, %v2563_v59, %v2565_v50  ;;  %v7106_v59 = vld [vmem:[%s10785_s4 + $0x7c] ss:$52 sps:$4 sm:$0xff]  }
 0x46d   : > { %5200 = vmatpush1.bf16.msra.mxu0 %v2438_v3 }
 0x46e   : > { %v4287_v28 = vpop.permute.xlu0 %4286 }
 0x46f   : > { %v4306_v2 = vsel %vm11304_vm12, %v4287_v28, %v10064_v38  ;;  %vm11308_vm12 = vmmov %vm11305_vm7  ;;  %v2573_v5 = vpop.permute.xlu1 %2572 }
 0x470   : > { %4767 = vperm.xlu0 %7041, %v4729_v47   ;;  %5434 = vmatprep.subr.bf16.mxu1 %v4306_v2 }
 0x472   : > { %v4285_v43 = vpop.permute.xlu0 %4284 }
 0x473   : > { %v4305_v23 = vsel %vm11305_vm7, %v4285_v43, %v4287_v28  ;;  %v2692_v10 = vpop.permute.xlu1 %2691 }
 0x474   : > { %5435 = vmatpush1.bf16.msra.mxu1 %v4305_v23 }
 0x476   : > { %v2428_v39 = vpop.permute.xlu0 %2427 }
 0x477   : > { %v2441_v21 = vsel %vm546_vm0, %v10083_v19, %v2428_v39  ;;  %v2690_v20 = vpop.permute.xlu1 %2689 }
 0x478   : > { %5201 = vmatprep.subr.bf16.mxu0 %v2441_v21  ;;  %v2714_v56 = vsel %vm588_vm14, %v2690_v20, %v2692_v10  ;;  %v6807_v20 = vld [vmem:[%s10782_s1 + $0x36] ss:$8 sm:$0x3] }
 0x479   : > { %5202 = vmatpush1.bf16.msra.mxu0 %v2440_v4  ;;  %5776 = vrot.lane.b32.xlu1 %v6807_v20, %s7159_s24  ;;  %s7161_s24 = smov 93  }
 0x47a   : > { %v4293_v8 = vpop.permute.xlu0 %4292 }
 0x47b   : > { %v4308_v38 = vsel %vm11306_vm9, %v4293_v8, %v4295_v27  ;;  %vm11310_vm9 = vcmask 769024  }
 0x47c   : > { %5436 = vmatprep.subr.bf16.mxu1 %v4308_v38 }
 0x47d   : > { %v4422_v36 = vpop.permute.xlu1 %4421 }
 0x47e   : > { %v4291_v53 = vpop.permute.xlu0 %4290 }
 0x47f   : > { %v4307_v44 = vsel %vm11307_vm8, %v4291_v53, %v4293_v8  ;;  %vm11311_vm8 = vmmov %vm11310_vm9 }
 0x480   : > { %5437 = vmatpush1.bf16.msra.mxu1 %v4307_v44 }
 0x481   : > { %v2698_v49 = vpop.permute.xlu1 %2697 }
 0x482   : > { %v2434_v30 = vpop.permute.xlu0 %2433 }
 0x483   : > { %v2443_v31 = vsel %vm546_vm0, %v2432_v37, %v2434_v30 }
 0x484   : > { %5203 = vmatprep.subr.bf16.mxu0 %v2443_v31 }
 0x485   : > { %5204 = vmatpush1.bf16.msra.mxu0 %v2442_v63  ;;  %v2696_v52 = vpop.permute.xlu1 %2695  ;;  %v7102_v63 = vld [vmem:[%s10785_s4 + $0x10] ss:$52 sps:$4 sm:$0xff]  }
 0x486   : > { %v4299_v19 = vpop.permute.xlu0 %4298  ;;  %v2716_v3 = vsel %vm588_vm14, %v2696_v52, %v2698_v49  ;;  %v6828_v52 = vld [vmem:[%s10782_s1 + $0x63] ss:$8 sm:$0x3] }
 0x487   : > { %v4310_v0 = vsel %vm11308_vm12, %v4299_v19, %v4301_v57  ;;  %vm11312_vm12 = vmmov %vm11311_vm8 }
 0x488   : > { %5438 = vmatprep.subr.bf16.mxu1 %v4310_v0 }
 0x489   : > { %v4428_v26 = vpop.permute.xlu1 %4427 }
 0x48a   : > { %v4297_v55 = vpop.permute.xlu0 %4296 }
 0x48b   : > { %v4309_v14 = vsel %vm11305_vm7, %v4297_v55, %v4299_v19  ;;  %vm11313_vm7 = vmmov %vm11311_vm8 }
 0x48c   : > { %5439 = vmatpush1.bf16.msra.mxu1 %v4309_v14 }
 0x48d   : > { %v2704_v17 = vpop.permute.xlu1 %2703 }
 0x48e   : > { %v2555_v12 = vpop.permute.xlu0 %2554 }
 0x48f   : > { %v2576_v22 = vsel %vm567_vm15, %v2553_v9, %v2555_v12  ;;  %5441 = vmatmul.mubr.bf16.vlgmr.msra.gmra.mrb[0].mxu1 %v7082_v41  ;;  %v7108_v41 = vld [vmem:[%s10785_s4 + $0x30] ss:$52 sps:$4 sm:$0xff]   ;;  %v7112_v12 = vld [vmem:[%s10785_s4 + $0x98] ss:$52 sps:$4 sm:$0xff]  }
 0x490   : > { %5205 = vmatprep.subr.bf16.mxu0 %v2576_v22  ;;  %5450 = vmatprep.mubr.bf16.mxu1 %v7088_v11  ;;  %v7109_v11 = vld [vmem:[%s10785_s4 + $0x78] ss:$52 sps:$4 sm:$0xff]   ;;  %v7113_v22 = vld [vmem:[%s10785_s4 + $0xe0] ss:$52 sps:$4 sm:$0xff]  }
 0x491   : > { %5206 = vmatpush1.bf16.msra.mxu0 %v2575_v15  ;;  %v2702_v9 = vpop.permute.xlu1 %2701  ;;  %v7114_v15 = vld [vmem:[%s10785_s4 + $0x14c] ss:$52 sps:$4 sm:$0xff]  }
 0x492   : > { %v2559_v62 = vpop.permute.xlu0 %2558  ;;  %v2718_v21 = vsel %vm588_vm14, %v2702_v9, %v2704_v17  ;;  %v6847_v9 = vld [vmem:[%s10782_s1 + $0x86] ss:$8 sm:$0x3] }
 0x493   : > { %v2578_v16 = vsel %vm567_vm15, %v2559_v62, %v2561_v61 }
 0x494   : > { %5207 = vmatprep.subr.bf16.mxu0 %v2578_v16  ;;  %v7117_v16 = vld [vmem:[%s10785_s4 + $0x148] ss:$52 sps:$4 sm:$0xff]  }
 0x495   : > { %v4434_v43 = vpop.permute.xlu1 %4433 }
 0x496   : > { %v2557_v27 = vpop.permute.xlu0 %2556 }
 0x497   : > { %v2577_v42 = vsel %vm567_vm15, %v2557_v27, %v2559_v62  ;;  %5451 = vmatmul.mubr.bf16.gmra.mrb[4].mxu1 %v7092_v7  ;;  %v7116_v62 = vld [vmem:[%s10785_s4 + $0x100] ss:$52 sps:$4 sm:$0xff]   ;;  %v7118_v7 = vld [vmem:[%s10785_s4 + $0x168] ss:$52 sps:$4 sm:$0xff]  }
 0x498   : > { %5208 = vmatpush1.bf16.msra.mxu0 %v2577_v42  ;;  %5460 = vmatprep.mubr.bf16.mxu1 %v7094_v6  ;;  %v6808_v6 = vld [vmem:[%s10782_s1 + $0x37] ss:$8 sm:$0x3]  ;;  %v6811_v27 = vld [vmem:[%s10782_s1 + $0x42] ss:$8 sm:$0x3] }
 0x499   : > { %v2710_v4 = vpop.permute.xlu1 %2709  ;;  %5795 = vrot.lane.b32.xlu0 %v6808_v6, %s7160_s22  ;;  %v6809_v42 = vld [vmem:[%s10782_s1 + $0x40] ss:$8 sm:$0x3]  ;;  %5852 = vrot.lane.b32.xlu1 %v6811_v27, %s10940_s10  ;;  %s7169_s22 = smov 45  }
 0x49a   : > { %v2567_v45 = vpop.permute.xlu0 %2566 }
 0x49b   : > { %v2580_v18 = vsel %vm567_vm15, %v2565_v50, %v2567_v45  ;;  %v6815_v45 = vld [vmem:[%s10782_s1 + $0x46] ss:$8 sm:$0x3] }
 0x49c   : > { %5209 = vmatprep.subr.bf16.mxu0 %v2580_v18  ;;  %v6813_v18 = vld [vmem:[%s10782_s1 + $0x44] ss:$8 sm:$0x3] }
 0x49d   : > { %5210 = vmatpush1.bf16.msra.mxu0 %v2579_v34  ;;  %v2708_v53 = vpop.permute.xlu1 %2707  ;;  %5814 = vrot.lane.b32.xlu0 %v6809_v42, %s7161_s24  ;;  %v6819_v34 = vld [vmem:[%s10782_s1 + $0x52] ss:$8 sm:$0x3]  ;;  %s7167_s24 = smov 29  }
 0x49e   : > { %v2571_v40 = vpop.permute.xlu0 %2570  ;;  %v2720_v31 = vsel %vm588_vm14, %v2708_v53, %v2710_v4 }
 0x49f   : > { %v2582_v1 = vsel %vm567_vm15, %v2571_v40, %v2573_v5  ;;  %5461 = vmatmul.mubr.bf16.gmra.mrb[8].mxu1 %v7098_v29  ;;  %v6816_v29 = vld [vmem:[%s10782_s1 + $0x47] ss:$8 sm:$0x3] }
 0x4a0   : > { %5211 = vmatprep.subr.bf16.mxu0 %v2582_v1  ;;  %5470 = vmatprep.mubr.bf16.mxu1 %v7100_v51  ;;  %v6817_v51 = vld [vmem:[%s10782_s1 + $0x50] ss:$8 sm:$0x3]  ;;  %v6821_v1 = vld [vmem:[%s10782_s1 + $0x54] ss:$8 sm:$0x3] }
 0x4a1   : > { %v4440_v19 = vpop.permute.xlu1 %4439  ;;  %5925 = vrot.lane.b32.xlu0 %v6815_v45, %s7162_s16  ;;  %s7177_s16 = smov 80   ;;  %v6842_v45 = vld [vmem:[%s10782_s1 + $0x81] ss:$8 sm:$0x3] }
 0x4a2   : > { %v2569_v37 = vpop.permute.xlu0 %2568 }
 0x4a3   : > { %v2581_v48 = vsel %vm567_vm15, %v2569_v37, %v2571_v40  ;;  %v6823_v40 = vld [vmem:[%s10782_s1 + $0x56] ss:$8 sm:$0x3]  ;;  %v6824_v37 = vld [vmem:[%s10782_s1 + $0x57] ss:$8 sm:$0x3] }
 0x4a4   : > { %5212 = vmatpush1.bf16.msra.mxu0 %v2581_v48  ;;  %v6827_v48 = vld [vmem:[%s10782_s1 + $0x62] ss:$8 sm:$0x3] }
 0x4a5   : > { %5944 = vrot.lane.b32.xlu0 %v6816_v29, %s7163_s19  ;;  %s11319_s19 = smov 17  }
 0x4a6   : > { %v2694_v35 = vpop.permute.xlu0 %2693 }
 0x4a7   : > { %v2715_v24 = vsel %vm588_vm14, %v2692_v10, %v2694_v35  ;;  %5471 = vmatmul.mubr.bf16.gmra.mrb[12].mxu1 %v7105_v54  ;;  %v7110_v10 = vld [vmem:[%s10785_s4 + $0xe4] ss:$52 sps:$4 sm:$0xff]   ;;  %v6825_v54 = vld [vmem:[%s10782_s1 + $0x60] ss:$8 sm:$0x3] }
 0x4a8   : > { %5213 = vmatprep.subr.bf16.mxu0 %v2715_v24  ;;  %5513 = vmatprep.mubr.bf16.mxu1 %v11309_v46  ;;  %v6831_v35 = vld [vmem:[%s10782_s1 + $0x66] ss:$8 sm:$0x3]  ;;  %v6829_v24 = vld [vmem:[%s10782_s1 + $0x64] ss:$8 sm:$0x3] }
 0x4a9   : > { %5214 = vmatpush1.bf16.msra.mxu0 %v2714_v56  ;;  %5963 = vrot.lane.b32.xlu0 %v6817_v51, %s10936_s28  ;;  %v6832_v56 = vld [vmem:[%s10782_s1 + $0x67] ss:$8 sm:$0x3]  ;;  %s7178_s28 = smov 13  }
 0x4aa   : > { %v4420_v25 = vpop.permute.xlu0 %4419 }
 0x4ab   : > { %v4443_v33 = vsel %vm11310_vm9, %v4420_v25, %v4422_v36  ;;  %vm11314_vm9 = vmmov %vm11313_vm7  ;;  %v6812_v36 = vld [vmem:[%s10782_s1 + $0x43] ss:$8 sm:$0x3] }
 0x4ac   : > { %5481 = vmatprep.subr.bf16.mxu1 %v4443_v33  ;;  %5870 = vrot.lane.b32.xlu1 %v6812_v36, %s10939_s20  ;;  %v6836_v33 = vld [vmem:[%s10782_s1 + $0x73] ss:$8 sm:$0x3]  ;;  %s7183_s20 = smov 107  }
 0x4ad   : > { %6072 = vrot.lane.b32.xlu0 %v6823_v40, %s7164_s6 }
 0x4ae   : > { %v4418_v58 = vpop.permute.xlu0 %4417 }
 0x4af   : > { %v4442_v57 = vsel %vm11311_vm8, %v4418_v58, %v4420_v25  ;;  %vm11315_vm8 = vmmov %vm11313_vm7  ;;  %v6833_v25 = vld [vmem:[%s10782_s1 + $0x70] ss:$8 sm:$0x3]  ;;  %v6839_v58 = vld [vmem:[%s10782_s1 + $0x76] ss:$8 sm:$0x3] }
 0x4b0   : > { %5482 = vmatpush1.bf16.msra.mxu1 %v4442_v57  ;;  %5888 = vrot.lane.b32.xlu1 %v6813_v18, %s10938_s12  ;;  %s7165_s12 = smov 3   ;;  %v6837_v57 = vld [vmem:[%s10782_s1 + $0x74] ss:$8 sm:$0x3] }
 0x4b1   : > { %6091 = vrot.lane.b32.xlu0 %v6824_v37, %s10931_s26 }
 0x4b2   : > { %v2700_v60 = vpop.permute.xlu0 %2699 }
 0x4b3   : > { %v2717_v32 = vsel %vm588_vm14, %v2698_v49, %v2700_v60  ;;  %v6820_v49 = vld [vmem:[%s10782_s1 + $0x53] ss:$8 sm:$0x3]  ;;  %v6843_v60 = vld [vmem:[%s10782_s1 + $0x82] ss:$8 sm:$0x3] }
 0x4b4   : > { %5215 = vmatprep.subr.bf16.mxu0 %v2717_v32  ;;  %5999 = vrot.lane.b32.xlu1 %v6819_v34, %s10934_s17  ;;  %v6841_v32 = vld [vmem:[%s10782_s1 + $0x80] ss:$8 sm:$0x3]  ;;  %s7170_s17 = smov 48  }
 0x4b5   : > { %5216 = vmatpush1.bf16.msra.mxu0 %v2716_v3  ;;  %6109 = vrot.lane.b32.xlu0 %v6825_v54, %s10930_s25  ;;  %v6844_v3 = vld [vmem:[%s10782_s1 + $0x83] ss:$8 sm:$0x3] }
 0x4b6   : > { %v4426_v47 = vpop.permute.xlu0 %4425 }
 0x4b7   : > { %v4445_v28 = vsel %vm11312_vm12, %v4426_v47, %v4428_v26  ;;  %vm11316_vm12 = vmmov %vm11313_vm7  ;;  %v6835_v26 = vld [vmem:[%s10782_s1 + $0x72] ss:$8 sm:$0x3] }
 0x4b8   : > { %5483 = vmatprep.subr.bf16.mxu1 %v4445_v28  ;;  %6017 = vrot.lane.b32.xlu1 %v6820_v49, %s10933_s13  ;;  %s7166_s13 = smov 19   ;;  %v6848_v28 = vld [vmem:[%s10782_s1 + $0x87] ss:$8 sm:$0x3] }
 0x4b9   : > { %6213 = vrot.lane.b32.xlu0 %v6831_v35, %s11079_s18  ;;  %s7171_s18 = smov 46  }
 0x4ba   : > { %v4424_v2 = vpop.permute.xlu0 %4423 }
 0x4bb   : > { %v4444_v13 = vsel %vm11313_vm7, %v4424_v2, %v4426_v47  ;;  %v6845_v47 = vld [vmem:[%s10782_s1 + $0x84] ss:$8 sm:$0x3]  ;;  %v6849_v2 = vld [vmem:[%s10782_s1 + $0x90] ss:$8 sm:$0x3] }
 0x4bc   : > { %5484 = vmatpush1.bf16.msra.mxu1 %v4444_v13  ;;  %6035 = vrot.lane.b32.xlu1 %v6821_v1, %s10932_s11  ;;  %v6806_v13 = vld [vmem:[%s10782_s1 + $0x35] ss:$8 sm:$0x3]  ;;  %s7175_s11 = smov 78  }
 0x4bd   : > { %6231 = vrot.lane.b32.xlu0 %v6832_v56, %s11075_s0  ;;  %s7173_s0 = smov 50   ;;  %v6846_v56 = vld [vmem:[%s10782_s1 + $0x85] ss:$8 sm:$0x3] }
 0x4be   : > { %v2706_v23 = vpop.permute.xlu0 %2705 }
 0x4bf   : > { %v2719_v39 = vsel %vm588_vm14, %v2704_v17, %v2706_v23  ;;  %v6840_v17 = vld [vmem:[%s10782_s1 + $0x77] ss:$8 sm:$0x3]  ;;  %v6810_v23 = vld [vmem:[%s10782_s1 + $0x41] ss:$8 sm:$0x3] }
 0x4c0   : > { %5217 = vmatprep.subr.bf16.mxu0 %v2719_v39  ;;  %6139 = vrot.lane.b32.xlu1 %v6827_v48, %s11286_s3  ;;  %v6804_v39 = vld [vmem:[%s10782_s1 + $0x33] ss:$8 sm:$0x3]  ;;  %s7176_s3 = smov 79  }
 0x4c1   : > { %5218 = vmatpush1.bf16.msra.mxu0 %v2718_v21  ;;  %6249 = vrot.lane.b32.xlu0 %v6833_v25, %s11050_s14  ;;  %v6805_v21 = vld [vmem:[%s10782_s1 + $0x34] ss:$8 sm:$0x3]  ;;  %s7179_s14 = smov 115  }
 0x4c2   : > { %v4432_v61 = vpop.permute.xlu0 %4431 }
 0x4c3   : > { %v4447_v8 = vsel %vm11314_vm9, %v4432_v61, %v4434_v43  ;;  %vm10913_vm9 = vcmask 523264   ;;  %v6803_v43 = vld [vmem:[%s10782_s1 + $0x32] ss:$8 sm:$0x3] }
 0x4c4   : > { %5485 = vmatprep.subr.bf16.mxu1 %v4447_v8  ;;  %6157 = vrot.lane.b32.xlu1 %v6828_v52, %s11210_s8  ;;  %v6830_v8 = vld [vmem:[%s10782_s1 + $0x65] ss:$8 sm:$0x3]  ;;  %s11317_s8 = smov 98  }
 0x4c5   : > { %6362 = vrot.lane.b32.xlu0 %v6839_v58, %s10952_s15 }
 0x4c6   : > { %v4430_v38 = vpop.permute.xlu0 %4429 }
 0x4c7   : > { %v4446_v50 = vsel %vm11315_vm8, %v4430_v38, %v4432_v61  ;;  %vm5779_vm8 = vcmask 670720  }
 0x4c8   : > { %5486 = vmatpush1.bf16.msra.mxu1 %v4446_v50  ;;  %6175 = vrot.lane.b32.xlu1 %v6829_v24, %s7165_s12  ;;  %s7180_s12 = smov 47  }
 0x4c9   : > { %6380 = vrot.lane.b32.xlu0 %v6840_v17, %s10956_s7  ;;  %s7181_s7 = smov 51  }
 0x4ca   : > { %v2712_v44 = vpop.permute.xlu0 %2711 }
 0x4cb   : > { %v2721_v30 = vsel %vm588_vm14, %v2710_v4, %v2712_v44  ;;  %v6814_v4 = vld [vmem:[%s10782_s1 + $0x45] ss:$8 sm:$0x3]  ;;  %v6818_v44 = vld [vmem:[%s10782_s1 + $0x51] ss:$8 sm:$0x3] }
 0x4cc   : > { %5219 = vmatprep.subr.bf16.mxu0 %v2721_v30  ;;  %6286 = vrot.lane.b32.xlu1 %v6835_v26, %s10942_s21  ;;  %v6834_v30 = vld [vmem:[%s10782_s1 + $0x71] ss:$8 sm:$0x3]  ;;  %s7182_s21 = smov 124  }
 0x4cd   : > { %5220 = vmatpush1.bf16.msra.mxu0 %v2720_v31  ;;  %6398 = vrot.lane.b32.xlu0 %v6841_v32, %s10955_s23  ;;  %v4733_v31 = vpop.permute.xlu1 %4732 }
 0x4ce   : > { %v4438_v0 = vpop.permute.xlu0 %4437 }
 0x4cf   : > { %v4449_v5 = vsel %vm11316_vm12, %v4438_v0, %v4440_v19  ;;  %vm5798_vm12 = vcmask 678912  }
 0x4d0   : > { %5222 = vmatmul.mubr.bf16.vlgmr.msra.gmra.mrb[16].mxu0 %v7102_v63  ;;  %5487 = vmatprep.subr.bf16.mxu1 %v4449_v5  ;;  %v6822_v5 = vld [vmem:[%s10782_s1 + $0x55] ss:$8 sm:$0x3] }
 0x4d1   : > { %5231 = vmatprep.mubr.bf16.mxu0 %v7106_v59  ;;  %6304 = vrot.lane.b32.xlu1 %v6836_v33, %s7166_s13  ;;  %s11318_s13 = smov 111   ;;  %v4743_v18 = vpop.permute.xlu1 %4742 }
 0x4d2   : > { %v4436_v55 = vpop.permute.xlu0 %4435  ;;  %6510 = vrot.lane.b32.xlu0 %v6847_v9, %s7170_s17 }
 0x4d3   : > { %v4448_v14 = vsel %vm11313_vm7, %v4436_v55, %v4438_v0  ;;  %vm5817_vm7 = vcmask 760832  }
 0x4d4   : > { %5488 = vmatpush1.bf16.msra.mxu1 %v4448_v14 }
 0x4d5   : > { %6323 = vrot.lane.b32.xlu1 %v6837_v57, %s7167_s24  ;;  %s7174_s24 = smov 81  }
 0x4d6   : > { %6529 = vrot.lane.b32.xlu0 %v6848_v28, %s7172_s30  ;;  %v6850_v28 = vld [vmem:[%s10782_s1 + $0x91] ss:$8 sm:$0x3] }
 0x4d7   : > { %6790 = vmatmul.mubr.msk.bf16.vlgmr.msra.gmra.mrb[0].mxu1 %vm10913_vm9, %v7108_v41 }
 0x4d8   : > { %5232 = vmatmul.mubr.bf16.gmra.mrb[20].mxu0 %v7109_v11  ;;  %5523 = vmatprep.mubr.bf16.mxu1 %v11309_v46 }
 0x4d9   : > { %5241 = vmatprep.mubr.bf16.mxu0 %v7110_v10  ;;  %6435 = vrot.lane.b32.xlu1 %v6843_v60, %s7168_s5  ;;  %v6838_v10 = vld [vmem:[%s10782_s1 + $0x75] ss:$8 sm:$0x3]  ;;  %s7188_s5 = smov 90  }
 0x4da   : > { %5756 = vrot.lane.b32.xlu0 %v6806_v13, %s7174_s24 }
 0x4dd   : > { %6454 = vrot.lane.b32.xlu1 %v6844_v3, %s7169_s22 }
 0x4de   : > { %5834 = vrot.lane.b32.xlu0 %v6810_v23, %s11288_s29 }
 0x4df   : > { %6791 = vmatmul.mubr.msk.bf16.gmra.mrb[4].mxu1 %vm10913_vm9, %v7112_v12 }
 0x4e0   : > { %5242 = vmatmul.mubr.bf16.gmra.mrb[24].mxu0 %v7113_v22  ;;  %5533 = vmatprep.mubr.bf16.mxu1 %v11309_v46 }
 0x4e1   : > { %5251 = vmatprep.mubr.bf16.mxu0 %v7114_v15  ;;  %6473 = vrot.lane.b32.xlu1 %v6845_v47, %s7171_s18  ;;  %s11322_s18 = sld [smem:[#allocation131_spill]] }
 0x4e2   : > { %5743 = vrot.lane.b32.xlu0 %v6805_v21, %s7177_s16 }
 0x4e3   : > { %v4738_v59 = vpop.permute.xlu0 %4737 }
 0x4e5   : > { %6548 = vrot.lane.b32.xlu1 %v6849_v2, %s7173_s0  ;;  %v4753_v2 = vpop.permute.xlu1 %4752 }
 0x4e6   : > { %6194 = vrot.lane.b32.xlu0 %v6830_v8, %s7178_s28 }
 0x4e7   : > { %6792 = vmatmul.mubr.msk.bf16.gmra.mrb[8].mxu1 %vm10913_vm9, %v7116_v62  ;;  %v4748_v40 = vpop.permute.xlu0 %4747 }
 0x4e8   : > { %5252 = vmatmul.mubr.bf16.gmra.mrb[28].mxu0 %v7117_v16  ;;  %5543 = vmatprep.mubr.bf16.mxu1 %v11309_v46 }
 0x4e9   : > { %5647 = vmatprep.mubr.bf16.mxu0 %v11309_v46  ;;  %5717 = vrot.lane.b32.xlu1 %v6803_v43, %s7175_s11  ;;  %s11320_s11 = smov 30  }
 0x4ea   : > { %6267 = vrot.lane.b32.xlu0 %v6834_v30, %s11319_s19 }
 0x4eb   : > { %v4758_v21 = vpop.permute.xlu0 %4757 }
 0x4ed   : > { %5730 = vrot.lane.b32.xlu1 %v6804_v39, %s7176_s3 }
 0x4ee   : > { %6343 = vrot.lane.b32.xlu0 %v6838_v10, %s11320_s11  ;;  %v4763_v10 = vpop.permute.xlu1 %4762 }
 0x4ef   : > { %6793 = vmatmul.mubr.msk.bf16.gmra.mrb[12].mxu1 %vm10913_vm9, %v7118_v7 }
 0x4f1   : > { %5906 = vrot.lane.b32.xlu1 %v6814_v4, %s11317_s8 }
 0x4f2   : > { %6416 = vrot.lane.b32.xlu0 %v6842_v45, %s11321_s27 }
 0x4f5   : > { %5981 = vrot.lane.b32.xlu1 %v6818_v44, %s11318_s13 }
 0x4f6   : > { %6492 = vrot.lane.b32.xlu0 %v6846_v56, %s7180_s12  ;;  %v7121_v56 = vld [vmem:[%s11322_s18 + $0x10] sm:$0xff]  }
 0x4f9   : > { %6053 = vrot.lane.b32.xlu1 %v6822_v5, %s7179_s14 }
 0x4fa   : > { %6567 = vrot.lane.b32.xlu0 %v6850_v28, %s7181_s7 }
 0x5a3   : > { %v5223_v61 = vpop.f32.mrb[16].mxu0 }
 0x5a4   : > { %v5225_v38 = vpop.f32.mrb[17].mxu0  ;;  %v6863_v63 = vadd.f32 %v5223_v61, %v4733_v31 }
 0x5a5   : > { %v5227_v50 = vpop.f32.mrb[18].mxu0  ;;  %v6865_v19 = vadd.f32 %v5225_v38, %v4733_v31 }
 0x5a6   : > { %v5229_v53 = vpop.f32.mrb[19].mxu0  ;;  %v6867_v55 = vadd.f32 %v5227_v50, %v4738_v59 }
 0x5a7   : > { %v6869_v12 = vadd.f32 %v5229_v53, %v4738_v59 }
 0x5aa   : > { %v5515_v0 = vpop.f32.mrb[0].mxu1 }
 0x5ab   : > { %v6864_v14 = vadd.f32 %v6863_v63, %v5515_v0  ;;  %v5233_v41 = vpop.f32.mrb[20].mxu0  ;;  %v5517_v11 = vpop.f32.mrb[1].mxu1 }
 0x5ac   : > { %v6866_v22 = vadd.f32 %v6865_v19, %v5517_v11  ;;  %v5235_v15 = vpop.f32.mrb[21].mxu0  ;;  %v5519_v62 = vpop.f32.mrb[2].mxu1  ;;  %v6871_v51 = vadd.f32 %v5233_v41, %v4743_v18 }
 0x5ad   : > { %v6868_v16 = vadd.f32 %v6867_v55, %v5519_v62  ;;  %v5237_v7 = vpop.f32.mrb[22].mxu0  ;;  %v5521_v20 = vpop.f32.mrb[3].mxu1  ;;  %v5554_v42 = vmax.f32 %v6864_v14, 0.0  ;;  %v6873_v1 = vadd.f32 %v5235_v15, %v4743_v18 }
 0x5ae   : > { %v6870_v6 = vadd.f32 %v6869_v12, %v5521_v20  ;;  %v5239_v27 = vpop.f32.mrb[23].mxu0  ;;  %v5555_v29 = vmax.f32 %v6866_v22, 0.0  ;;  %v6875_v54 = vadd.f32 %v5237_v7, %v4748_v40 }
 0x5af   : > { %v5556_v36 = vmax.f32 %v6868_v16, 0.0  ;;  %v6877_v26 = vadd.f32 %v5239_v27, %v4748_v40  ;;  %v4768_v16 = vpop.permute.xlu0 %4767 }
 0x5b0   : > { %v5557_v34 = vmax.f32 %v6870_v6, 0.0 }
 0x5b1   : > { %v5577_v49 = vpack.c.bf16 %v5556_v36, %v5554_v42 }
 0x5b2   : > { %v5578_v37 = vpack.c.bf16 %v5557_v34, %v5555_v29  ;;  %v5525_v48 = vpop.f32.mrb[4].mxu1 }
 0x5b3   : > { %v6872_v52 = vadd.f32 %v6871_v51, %v5525_v48  ;;  %v5243_v35 = vpop.f32.mrb[24].mxu0  ;;  %v5527_v24 = vpop.f32.mrb[5].mxu1 }
 0x5b4   : > { %v6874_v25 = vadd.f32 %v6873_v1, %v5527_v24  ;;  %v5245_v33 = vpop.f32.mrb[25].mxu0  ;;  %v5529_v58 = vpop.f32.mrb[6].mxu1  ;;  %5615 = vmatprep.subr.bf16.mxu0 %v5578_v37  ;;  %v6879_v23 = vadd.f32 %v5243_v35, %v4753_v2  ;;  %v7119_v35 = vld [vmem:[%s11322_s18] sm:$0xff]   ;;  %v7120_v24 = vld [vmem:[%s11322_s18 + $0x8] sm:$0xff]  }
 0x5b5   : > { %v6876_v57 = vadd.f32 %v6875_v54, %v5529_v58  ;;  %v5247_v17 = vpop.f32.mrb[26].mxu0  ;;  %v5531_v60 = vpop.f32.mrb[7].mxu1  ;;  %5616 = vmatpush1.bf16.msra.mxu0 %v5577_v49  ;;  %v5558_v9 = vmax.f32 %v6872_v52, 0.0  ;;  %v6881_v4 = vadd.f32 %v5245_v33, %v4753_v2 }
 0x5b6   : > { %v6878_v32 = vadd.f32 %v6877_v26, %v5531_v60  ;;  %v5249_v3 = vpop.f32.mrb[27].mxu0  ;;  %v5559_v13 = vmax.f32 %v6874_v25, 0.0  ;;  %v6883_v38 = vadd.f32 %v5247_v17, %v4758_v21  ;;  %v7122_v26 = vld [vmem:[%s11322_s18 + $0x18] ss:$0 sps:$4 sm:$0x11]   ;;  %v5777_v25 = vpop.permute.xlu1 %5776 }
 0x5b7   : > { %v5560_v47 = vmax.f32 %v6876_v57, 0.0  ;;  %v6885_v30 = vadd.f32 %v5249_v3, %v4758_v21  ;;  %v5796_v33 = vpop.permute.xlu0 %5795 }
 0x5b8   : > { %v5561_v43 = vmax.f32 %v6878_v32, 0.0 }
 0x5b9   : > { %v5579_v39 = vpack.c.bf16 %v5560_v47, %v5558_v9 }
 0x5ba   : > { %v5580_v61 = vpack.c.bf16 %v5561_v43, %v5559_v13  ;;  %v5535_v8 = vpop.f32.mrb[8].mxu1  ;;  %v10442_v58 = vpop.permute.xlu1 %5852 }
 0x5bb   : > { %v6880_v50 = vadd.f32 %v6879_v23, %v5535_v8  ;;  %v5253_v53 = vpop.f32.mrb[28].mxu0  ;;  %v5537_v44 = vpop.f32.mrb[9].mxu1 }
 0x5bc   : > { %v6882_v31 = vadd.f32 %v6881_v4, %v5537_v44  ;;  %v5255_v63 = vpop.f32.mrb[29].mxu0  ;;  %v5539_v59 = vpop.f32.mrb[10].mxu1  ;;  %5617 = vmatprep.subr.bf16.mxu0 %v5580_v61  ;;  %v6887_v15 = vadd.f32 %v5253_v53, %v4763_v10 }
 0x5bd   : > { %v6884_v19 = vadd.f32 %v6883_v38, %v5539_v59  ;;  %v5257_v0 = vpop.f32.mrb[30].mxu0  ;;  %v5541_v5 = vpop.f32.mrb[11].mxu1  ;;  %5618 = vmatpush1.bf16.msra.mxu0 %v5579_v39  ;;  %v5562_v41 = vmax.f32 %v6880_v50, 0.0  ;;  %v6889_v7 = vadd.f32 %v5255_v63, %v4763_v10 }
 0x5be   : > { %v6886_v55 = vadd.f32 %v6885_v30, %v5541_v5  ;;  %v5259_v14 = vpop.f32.mrb[31].mxu0  ;;  %v5563_v12 = vmax.f32 %v6882_v31, 0.0  ;;  %v6891_v27 = vadd.f32 %v5257_v0, %v4768_v16  ;;  %v5815_v57 = vpop.permute.xlu0 %5814  ;;  %v5778_v30 = vrot.slane %v5777_v25, 7 }
 0x5bf   : > { %v5564_v11 = vmax.f32 %v6884_v19, 0.0  ;;  %v6893_v45 = vadd.f32 %v5259_v14, %v4768_v16  ;;  %v5871_v17 = vpop.permute.xlu1 %5870  ;;  %v5797_v31 = vrot.slane %v5796_v33, 7  ;;  %v5816_v0 = vrot.slane %v5815_v57, 7 }
 0x5c0   : > { %v5565_v22 = vmax.f32 %v6886_v55, 0.0  ;;  %v5872_v19 = vrot.slane %v5871_v17, 7  ;;  %v5780_v5 = vsel %vm5779_vm8, %v5778_v30, %v5777_v25  ;;  %vm11324_vm8 = vcmask 777216  }
 0x5c1   : > { %v5581_v62 = vpack.c.bf16 %v5564_v11, %v5562_v41  ;;  %v5799_v55 = vsel %vm5798_vm12, %v5797_v31, %v5796_v33  ;;  %vm6075_vm12 = vcmask 1022976  }
 0x5c2   : > { %v5582_v20 = vpack.c.bf16 %v5565_v22, %v5563_v12  ;;  %v5545_v6 = vpop.f32.mrb[12].mxu1  ;;  %v10444_v60 = vpop.permute.xlu0 %5925 }
 0x5c3   : > { %v6888_v42 = vadd.f32 %v6887_v15, %v5545_v6  ;;  %v5547_v36 = vpop.f32.mrb[13].mxu1  ;;  %v10446_v32 = vpop.permute.xlu1 %5888 }
 0x5c4   : > { %v6890_v18 = vadd.f32 %v6889_v7, %v5547_v36  ;;  %v5549_v29 = vpop.f32.mrb[14].mxu1  ;;  %5619 = vmatprep.subr.bf16.mxu0 %v5582_v20 }
 0x5c5   : > { %v6892_v34 = vadd.f32 %v6891_v27, %v5549_v29  ;;  %v5551_v51 = vpop.f32.mrb[15].mxu1  ;;  %5620 = vmatpush1.bf16.msra.mxu0 %v5581_v62  ;;  %v5566_v40 = vmax.f32 %v6888_v42, 0.0  ;;  %v5854_v27 = vrot.slane %v10442_v58, 7  ;;  %v5818_v42 = vsel %vm5817_vm7, %v5816_v0, %v5815_v57 }
 0x5c6   : > { %v6894_v49 = vadd.f32 %v6893_v45, %v5551_v51  ;;  %v5567_v37 = vmax.f32 %v6890_v18, 0.0  ;;  %v5945_v3 = vpop.permute.xlu0 %5944  ;;  %vm11326_vm7 = vcmask 793600  }
 0x5c7   : > { %v5568_v1 = vmax.f32 %v6892_v34, 0.0  ;;  %v10448_v9 = vpop.permute.xlu1 %5999  ;;  %v5946_v16 = vrot.slane %v5945_v3, 7  ;;  %v5927_v34 = vrot.slane %v10444_v60, 7 }
 0x5c8   : > { %v5569_v48 = vmax.f32 %v6894_v49, 0.0 }
 0x5c9   : > { %v5583_v54 = vpack.c.bf16 %v5568_v1, %v5566_v40  ;;  %v5948_v51 = vsel %vm5947_vm10, %v5946_v16, %v5945_v3  ;;  %vm11325_vm10 = vcmask 900096  }
 0x5ca   : > { %v5584_v52 = vpack.c.bf16 %v5569_v48, %v5567_v37 }
 0x5cb   : > { %v10452_v47 = vpop.permute.xlu1 %6017 }
 0x5cc   : > { %5621 = vmatprep.subr.bf16.mxu0 %v5584_v52 }
 0x5cd   : > { %5622 = vmatpush1.bf16.msra.mxu0 %v5583_v54  ;;  %v5855_v54 = vsel %vm11324_vm8, %v5854_v27, %v10442_v58  ;;  %vm11328_vm8 = vcmask 924672  }
 0x5cf   : > { %v10456_v2 = vpop.permute.xlu1 %6035 }
 0x5d0   : > { %6798 = vmatmul.mubr.msk.bf16.vlgmr.msra.gmra.mrb[32].mxu0 %vm10913_vm9, %v7119_v35 }
 0x5d1   : > { %5657 = vmatprep.mubr.bf16.mxu0 %v11309_v46 }
 0x5d3   : > { %v10460_v43 = vpop.permute.xlu1 %6139 }
 0x5d7   : > { %v10464_v39 = vpop.permute.xlu1 %6157 }
 0x5d8   : > { %6799 = vmatmul.mubr.msk.bf16.gmra.mrb[36].mxu0 %vm10913_vm9, %v7120_v24  ;;  %v5890_v24 = vrot.slane %v10446_v32, 7 }
 0x5d9   : > { %5667 = vmatprep.mubr.bf16.mxu0 %v11309_v46 }
 0x5db   : > { %v10468_v4 = vpop.permute.xlu1 %6175 }
 0x5df   : > { %v10472_v44 = vpop.permute.xlu1 %6286 }
 0x5e0   : > { %6800 = vmatmul.mubr.msk.bf16.gmra.mrb[40].mxu0 %vm10913_vm9, %v7121_v56 }
 0x5e1   : > { %5677 = vmatprep.mubr.bf16.mxu0 %v11309_v46  ;;  %v10450_v46 = vpop.permute.xlu0 %5963 }
 0x5e2   : > { %v5965_v49 = vrot.slane %v10450_v46, 7 }
 0x5e3   : > { %v10476_v14 = vpop.permute.xlu1 %6304 }
 0x5e4   : > { %v5966_v57 = vsel %vm11325_vm10, %v5965_v49, %v10450_v46  ;;  %vm6307_vm10 = vcmask 154624  }
 0x5e5   : > { %v10454_v28 = vpop.permute.xlu0 %6072 }
 0x5e6   : > { %v6074_v56 = vrot.slane %v10454_v28, 7 }
 0x5e7   : > { %v10487_v40 = vpop.permute.xlu1 %6323 }
 0x5e8   : > { %6801 = vmatmul.mubr.msk.bf16.gmra.mrb[44].mxu0 %vm10913_vm9, %v7122_v26  ;;  %vm11323_vm9 = vcmask 785408   ;;  %v6076_v46 = vsel %vm6075_vm12, %v6074_v56, %v10454_v28 }
 0x5e9   : > { %v10458_v13 = vpop.permute.xlu0 %6091  ;;  %v5873_v62 = vsel %vm11323_vm9, %v5872_v19, %v5871_v17  ;;  %vm5928_vm9 = vcmask 809984   ;;  %v6019_v19 = vrot.slane %v10452_v47, 7 }
 0x5ea   : > { %v5929_v33 = vsel %vm5928_vm9, %v5927_v34, %v10444_v60  ;;  %v5891_v60 = vsel %vm11326_vm7, %v5890_v24, %v10446_v32  ;;  %vm11327_vm9 = vcmask 916480   ;;  %vm6551_vm7 = vcmask 408576  }
 0x5eb   : > { %v10502_v58 = vpop.permute.xlu1 %6435 }
 0x5ed   : > { %v10462_v23 = vpop.permute.xlu0 %6109 }
 0x5ee   : > { %v6111_v0 = vrot.slane %v10462_v23, 7 }
 0x5f0   : > { %v6112_v27 = vsel %vm580_vm13, %v6111_v0, %v10462_v23 }
 0x5f1   : > { %v10466_v21 = vpop.permute.xlu0 %6213 }
 0x5f2   : > { %v6215_v34 = vrot.slane %v10466_v21, 7 }
 0x5f5   : > { %v10470_v38 = vpop.permute.xlu0 %6231 }
 0x5f6   : > { %v6233_v24 = vrot.slane %v10470_v38, 7 }
 0x5f9   : > { %v10474_v63 = vpop.permute.xlu0 %6249 }
 0x5fd   : > { %v10479_v7 = vpop.permute.xlu0 %6362 }
 0x601   : > { %v10493_v52 = vpop.permute.xlu0 %6380 }
 0x605   : > { %v10510_v30 = vpop.permute.xlu0 %6398 }
 0x6a3   : > { %v5649_v61 = vpop.f32.mrb[32].mxu0 }
 0x6a4   : > { %5686 = vst [vmem:[#allocation5 + $0x8] sm:$0xff] %v5649_v61  ;;  %v5651_v8 = vpop.f32.mrb[33].mxu0  ;;  %v6001_v61 = vrot.slane %v10448_v9, 7 }
 0x6a5   : > { %5687 = vst [vmem:[#allocation5 + $0x10] sm:$0xff] %v5651_v8  ;;  %v5653_v50 = vpop.f32.mrb[34].mxu0  ;;  %v6037_v8 = vrot.slane %v10456_v2, 7 }
 0x6a6   : > { %5688 = vst [vmem:[#allocation5 + $0x28] sm:$0xff] %v5653_v50  ;;  %v5655_v53 = vpop.f32.mrb[35].mxu0  ;;  %v6002_v32 = vsel %vm11327_vm9, %v6001_v61, %v10448_v9  ;;  %v6020_v9 = vsel %vm11328_vm8, %v6019_v19, %v10452_v47  ;;  %v6159_v47 = vrot.slane %v10464_v39, 7  ;;  %vm11332_vm9 = vcmask 269312  }
 0x6a7   : > { %5689 = vst [vmem:[#allocation5 + $0x30] sm:$0xff] %v5655_v53  ;;  %v6038_v28 = vsel %vm538_vm11, %v6037_v8, %v10456_v2  ;;  %v6141_v2 = vrot.slane %v10460_v43, 7  ;;  %vm11329_vm11 = vcmask 1031168   ;;  %vm6438_vm8 = vcmask 285696  }
 0x6a9   : > { %v6142_v23 = vsel %vm588_vm14, %v6141_v2, %v10460_v43  ;;  %v6160_v43 = vsel %vm567_vm15, %v6159_v47, %v10464_v39  ;;  %vm6178_vm14 = vcmask 23552   ;;  %v6251_v39 = vrot.slane %v10474_v63, 7 }
 0x6aa   : > { %vm6326_vm15 = vcmask 236544   ;;  %v6400_v47 = vrot.slane %v10510_v30, 7 }
 0x6ab   : > { %v5659_v59 = vpop.f32.mrb[36].mxu0 }
 0x6ac   : > { %5690 = vst [vmem:[#allocation5 + $0x48] sm:$0xff] %v5659_v59  ;;  %v5772_v41 = vld [vmem:[#allocation5 + $0x5] ss:$8 sm:$0x7]  ;;  %v5661_v22 = vpop.f32.mrb[37].mxu0 }
 0x6ad   : > { %v5791_v11 = vld [vmem:[#allocation5 + $0x6] ss:$8 sm:$0x7]  ;;  %v5782_v10 = vmul.f32 %v5780_v5, %v5772_v41  ;;  %5691 = vst [vmem:[#allocation5 + $0x50] sm:$0xff] %v5661_v22  ;;  %v5663_v6 = vpop.f32.mrb[38].mxu0  ;;  %v10524_v22 = vpop.permute.xlu0 %6510 }
 0x6ae   : > { %v5801_v12 = vmul.f32 %v5799_v55, %v5791_v11  ;;  %v5866_v15 = vld [vmem:[#allocation5 + $0x22] ss:$8 sm:$0x7]  ;;  %v5810_v20 = vld [vmem:[#allocation5 + $0x7] ss:$8 sm:$0x7]  ;;  %v10520_v11 = vpop.permute.xlu1 %6454 }
 0x6af   : > { %5784 = vrot.lane.b32.xlu0 %v5782_v10, %s7182_s21  ;;  %5692 = vst [vmem:[#allocation5 + $0x68] sm:$0xff] %v5663_v6  ;;  %v5665_v36 = vpop.f32.mrb[39].mxu0  ;;  %v5875_v45 = vmul.f32 %v5873_v62, %v5866_v15  ;;  %v5820_v18 = vmul.f32 %v5818_v42, %v5810_v20  ;;  %v5848_v29 = vld [vmem:[#allocation5 + $0x21] ss:$8 sm:$0x7]  ;;  %v6093_v6 = vrot.slane %v10458_v13, 7 }
 0x6b0   : > { %5803 = vrot.lane.b32.xlu1 %v5801_v12, %s7182_s21  ;;  %5693 = vst [vmem:[#allocation5 + $0x70] sm:$0xff] %v5665_v36  ;;  %v5940_v1 = vld [vmem:[#allocation5 + $0x26] ss:$8 sm:$0x7]  ;;  %v5857_v26 = vmul.f32 %v5855_v54, %v5848_v29 }
 0x6b1   : > { %v5950_v25 = vmul.f32 %v5948_v51, %v5940_v1  ;;  %v5921_v17 = vld [vmem:[#allocation5 + $0x25] ss:$8 sm:$0x7]  ;;  %v5959_v3 = vld [vmem:[#allocation5 + $0x27] ss:$8 sm:$0x7]  ;;  %v6094_v1 = vsel %vm11329_vm11, %v6093_v6, %v10458_v13  ;;  %v6216_v13 = vsel %vm546_vm0, %v6215_v34, %v10466_v21 }
 0x6b2   : > { %v5931_v50 = vmul.f32 %v5929_v33, %v5921_v17  ;;  %v5968_v53 = vmul.f32 %v5966_v57, %v5959_v3  ;;  %v5884_v31 = vld [vmem:[#allocation5 + $0x23] ss:$8 sm:$0x7]  ;;  %v6306_v17 = vrot.slane %v10476_v14, 7  ;;  %vm6476_vm0 = vcmask 375808  }
 0x6b3   : > { %v5669_v37 = vpop.f32.mrb[40].mxu0  ;;  %5822 = vrot.lane.b32.xlu0 %v5820_v18, %s7179_s14  ;;  %v5893_v5 = vmul.f32 %v5891_v60, %v5884_v31  ;;  %v10534_v18 = vpop.permute.xlu1 %6473  ;;  %v6382_v31 = vrot.slane %v10493_v52, 7  ;;  %s7186_s14 = smov 60   ;;  %vm5759_vm11 = vcmask 662528  }
 0x6b4   : > { %5877 = vrot.lane.b32.xlu1 %v5875_v45, %s11318_s13  ;;  %5694 = vst [vmem:[#allocation5 + $0x88] sm:$0xff] %v5669_v37  ;;  %v5671_v48 = vpop.f32.mrb[41].mxu0  ;;  %v6068_v59 = vld [vmem:[#allocation5 + $0x45] ss:$8 sm:$0x7]  ;;  %v10542_v37 = vpop.permute.xlu0 %6529 }
 0x6b5   : > { %5695 = vst [vmem:[#allocation5 + $0x90] sm:$0xff] %v5671_v48  ;;  %v5673_v35 = vpop.f32.mrb[42].mxu0  ;;  %v6078_v55 = vmul.f32 %v6076_v46, %v6068_v59  ;;  %v5995_v10 = vld [vmem:[#allocation5 + $0x41] ss:$8 sm:$0x7]  ;;  %v6308_v46 = vsel %vm6307_vm10, %v6306_v17, %v10476_v14  ;;  %vm11333_vm10 = vcmask 801792  }
 0x6b6   : > { %5696 = vst [vmem:[#allocation5 + $0xa8] sm:$0xff] %v5673_v35  ;;  %v5675_v41 = vpop.f32.mrb[43].mxu0  ;;  %v6031_v12 = vld [vmem:[#allocation5 + $0x43] ss:$8 sm:$0x7]  ;;  %v6004_v15 = vmul.f32 %v6002_v32, %v5995_v10  ;;  %v6177_v35 = vrot.slane %v10468_v4, 7 }
 0x6b7   : > { %5859 = vrot.lane.b32.xlu0 %v5857_v26, %s11318_s13  ;;  %5697 = vst [vmem:[#allocation5 + $0xb0] sm:$0xff] %v5675_v41  ;;  %v6040_v62 = vmul.f32 %v6038_v28, %v6031_v12  ;;  %v6013_v16 = vld [vmem:[#allocation5 + $0x42] ss:$8 sm:$0x7] }
 0x6b8   : > { %5952 = vrot.lane.b32.xlu1 %v5950_v25, %s11317_s8  ;;  %v6105_v42 = vld [vmem:[#allocation5 + $0x47] ss:$8 sm:$0x7]  ;;  %v6022_v51 = vmul.f32 %v6020_v9, %v6013_v16  ;;  %v6087_v48 = vld [vmem:[#allocation5 + $0x46] ss:$8 sm:$0x7]  ;;  %v10552_v25 = vpop.permute.xlu1 %6548  ;;  %v10557_v3 = vpop.permute.xlu0 %5756  ;;  %v6179_v21 = vsel %vm6178_vm14, %v6177_v35, %v10468_v4 }
 0x6b9   : > { %v6114_v49 = vmul.f32 %v6112_v27, %v6105_v42  ;;  %v6135_v54 = vld [vmem:[#allocation5 + $0x69] ss:$8 sm:$0x7]  ;;  %v6096_v56 = vmul.f32 %v6094_v1, %v6087_v48  ;;  %v6153_v33 = vld [vmem:[#allocation5 + $0x6a] ss:$8 sm:$0x7] }
 0x6ba   : > { %v6144_v26 = vmul.f32 %v6142_v23, %v6135_v54  ;;  %v6209_v57 = vld [vmem:[#allocation5 + $0x6d] ss:$8 sm:$0x7]  ;;  %v6162_v61 = vmul.f32 %v6160_v43, %v6153_v33  ;;  %v6227_v60 = vld [vmem:[#allocation5 + $0x6e] ss:$8 sm:$0x7] }
 0x6bb   : > { %5933 = vrot.lane.b32.xlu0 %v5931_v50, %s7183_s20  ;;  %v5679_v20 = vpop.f32.mrb[44].mxu0  ;;  %v6218_v8 = vmul.f32 %v6216_v13, %v6209_v57  ;;  %v6234_v50 = vsel %vm525_vm2, %v6233_v24, %v10470_v38  ;;  %v6288_v4 = vrot.slane %v10472_v44, 7  ;;  %v6252_v38 = vsel %vm504_vm4, %v6251_v39, %v10474_v63  ;;  %v6245_v41 = vld [vmem:[#allocation5 + $0x6f] ss:$8 sm:$0x7] }
 0x6bc   : > { %5970 = vrot.lane.b32.xlu1 %v5968_v53, %s11317_s8  ;;  %5698 = vst [vmem:[#allocation5 + $0xc8] sm:$0x1] %v5679_v20  ;;  %v5681_v36 = vpop.f32.mrb[45].mxu0  ;;  %s7184_s8 = smov 77   ;;  %v10567_v59 = vpop.permute.xlu1 %5717  ;;  %vm11330_vm2 = vcmask 261120   ;;  %v6254_v10 = vmul.f32 %v6252_v38, %v6245_v41  ;;  %v6456_v63 = vrot.slane %v10520_v11, 7 }
 0x6bd   : > { %5699 = vst [vmem:[#allocation5 + $0xd0] sm:$0x1] %v5681_v36  ;;  %v5683_v45 = vpop.f32.mrb[46].mxu0  ;;  %v6171_v53 = vld [vmem:[#allocation5 + $0x6b] ss:$8 sm:$0x7]  ;;  %v6383_v32 = vsel %vm11330_vm2, %v6382_v31, %v10493_v52  ;;  %v6289_v12 = vsel %vm462_vm5, %v6288_v4, %v10472_v44 }
 0x6be   : > { %v5684_v29 = vpop.f32.mrb[47].mxu0  ;;  %v6300_v19 = vld [vmem:[#allocation5 + $0x8a] ss:$8 sm:$0x7]  ;;  %v6181_v0 = vmul.f32 %v6179_v21, %v6171_v53  ;;  %vm6457_vm4 = vcmask 367616   ;;  %v6325_v9 = vrot.slane %v10487_v40, 7 }
 0x6bf   : > { %5895 = vrot.lane.b32.xlu0 %v5893_v5, %s11318_s13  ;;  %v6236_v5 = vmul.f32 %v6234_v50, %v6227_v60  ;;  %v6310_v14 = vmul.f32 %v6308_v46, %v6300_v19  ;;  %v6376_v28 = vld [vmem:[#allocation5 + $0x8e] ss:$8 sm:$0x7]  ;;  %v6282_v16 = vld [vmem:[#allocation5 + $0x89] ss:$8 sm:$0x7]  ;;  %v6458_v27 = vsel %vm6457_vm4, %v6456_v63, %v10520_v11 }
 0x6c0   : > { %6080 = vrot.lane.b32.xlu1 %v6078_v55, %s7174_s24  ;;  %v10572_v55 = vpop.permute.xlu0 %5834  ;;  %v6385_v20 = vmul.f32 %v6383_v32, %v6376_v28  ;;  %v6475_v44 = vrot.slane %v10534_v18, 7  ;;  %v6291_v2 = vmul.f32 %v6289_v12, %v6282_v16  ;;  %vm11331_vm5 = vcmask 252928   ;;  %v6358_v42 = vld [vmem:[#allocation5 + $0x8d] ss:$8 sm:$0x7] }
 0x6c1   : > { %v6450_v36 = vld [vmem:[#allocation5 + $0xaa] ss:$8 sm:$0x7]  ;;  %v6550_v34 = vrot.slane %v10552_v25, 7  ;;  %v6437_v35 = vrot.slane %v10502_v58, 7  ;;  %v5758_v24 = vrot.slane %v10557_v3, 7 }
 0x6c2   : > { %v6477_v11 = vsel %vm6476_vm0, %v6475_v44, %v10534_v18  ;;  %v6319_v23 = vld [vmem:[#allocation5 + $0x8b] ss:$8 sm:$0x7]  ;;  %v6544_v43 = vld [vmem:[#allocation5 + $0xaf] ss:$8 sm:$0x7] }
 0x6c3   : > { %6006 = vrot.lane.b32.xlu0 %v6004_v15, %s11288_s29  ;;  %v6364_v15 = vrot.slane %v10479_v7, 7  ;;  %v6469_v1 = vld [vmem:[#allocation5 + $0xab] ss:$8 sm:$0x7]  ;;  %v6552_v18 = vsel %vm6551_vm7, %v6550_v34, %v10552_v25  ;;  %v6512_v33 = vrot.slane %v10524_v22, 7  ;;  %vm6513_vm14 = vcmask 392192  }
 0x6c4   : > { %6042 = vrot.lane.b32.xlu1 %v6040_v62, %s11288_s29  ;;  %v10582_v62 = vpop.permute.xlu1 %5730  ;;  %v10586_v52 = vpop.permute.xlu0 %5743  ;;  %v6394_v13 = vld [vmem:[#allocation5 + $0x8f] ss:$8 sm:$0x7]  ;;  %v6554_v17 = vmul.f32 %v6552_v18, %v6544_v43  ;;  %v6431_v50 = vld [vmem:[#allocation5 + $0xa9] ss:$8 sm:$0x7] }
 0x6c5   : > { %v6365_v6 = vsel %vm11331_vm5, %v6364_v15, %v10479_v7  ;;  %v6327_v7 = vsel %vm6326_vm15, %v6325_v9, %v10487_v40  ;;  %v6401_v40 = vsel %vm11332_vm9, %v6400_v47, %v10510_v30  ;;  %v5760_v30 = vsel %vm5759_vm11, %v5758_v24, %v10557_v3  ;;  %v6049_v32 = vld [vmem:[#allocation5 + $0x44] ss:$8 sm:$0x7]  ;;  %v6525_v28 = vld [vmem:[#allocation5 + $0xae] ss:$8 sm:$0x7] }
 0x6c6   : > { %v6403_v39 = vmul.f32 %v6401_v40, %v6394_v13  ;;  %v6531_v53 = vrot.slane %v10542_v37, 7  ;;  %v6514_v19 = vsel %vm6513_vm14, %v6512_v33, %v10524_v22  ;;  %vm6532_vm2 = vcmask 400384   ;;  %v6190_v63 = vld [vmem:[#allocation5 + $0x6c] ss:$8 sm:$0x7] }
 0x6c7   : > { %6024 = vrot.lane.b32.xlu0 %v6022_v51, %s11288_s29  ;;  %v6367_v51 = vmul.f32 %v6365_v6, %v6358_v42  ;;  %vm5825_vm4 = vcmask 941056   ;;  %vm6197_vm5 = vcmask 105472   ;;  %v5836_v15 = vrot.slane %v10572_v55, 7  ;;  %v5977_v34 = vld [vmem:[#allocation5 + $0x40] ss:$8 sm:$0x7] }
 0x6c8   : > { %6116 = vrot.lane.b32.xlu1 %v6114_v49, %s7174_s24  ;;  %v5907_v45 = vpop.permute.xlu1 %5906  ;;  %v10595_v29 = vpop.permute.xlu0 %6194  ;;  %v6460_v49 = vmul.f32 %v6458_v27, %v6450_v36  ;;  %v5830_v27 = vld [vmem:[#allocation5 + $0x20] ss:$8 sm:$0x7]  ;;  %vm11334_vm15 = vcmask 769024   ;;  %vm6353_vm0 = vcmask 384000   ;;  %vm11335_vm7 = vcmask 908288  }
 0x6c9   : > { %v5908_v57 = vrot.slane %v5907_v45, 7  ;;  %v6196_v38 = vrot.slane %v10595_v29, 7  ;;  %v5837_v42 = vsel %vm11334_vm15, %v5836_v15, %v10572_v55  ;;  %v6339_v36 = vld [vmem:[#allocation5 + $0x8c] ss:$8 sm:$0x7]  ;;  %vm6334_vm9 = vcmask 416768   ;;  %vm11338_vm15 = vmmov %vm11335_vm7 }
 0x6ca   : > { %v6412_v13 = vld [vmem:[#allocation5 + $0xa8] ss:$8 sm:$0x7]  ;;  %vm5720_vm14 = vcmask 637952  }
 0x6cb   : > { %6098 = vrot.lane.b32.xlu0 %v6096_v56, %s7174_s24  ;;  %s7185_s24 = smov 64   ;;  %v6329_v56 = vmul.f32 %v6327_v7, %v6319_v23  ;;  %v6198_v16 = vsel %vm6197_vm5, %v6196_v38, %v10595_v29  ;;  %v5839_v29 = vmul.f32 %v5837_v42, %v5830_v27  ;;  %vm5733_vm5 = vcmask 646144  }
 0x6cc   : > { %6146 = vrot.lane.b32.xlu1 %v6144_v26, %s7184_s8  ;;  %v10603_v48 = vpop.permute.xlu1 %5981  ;;  %v10605_v54 = vpop.permute.xlu0 %6267  ;;  %v6479_v26 = vmul.f32 %v6477_v11, %v6469_v1  ;;  %v6123_v1 = vld [vmem:[#allocation5 + $0x68] ss:$8 sm:$0x3] }
 0x6cd   : > { %v5983_v44 = vrot.slane %v10603_v48, 7  ;;  %v6269_v11 = vrot.slane %v10605_v54, 7 }
 0x6cf   : > { %6164 = vrot.lane.b32.xlu0 %v6162_v61, %s7184_s8  ;;  %v6439_v61 = vsel %vm6438_vm8, %v6437_v35, %v10502_v58  ;;  %v5902_v58 = vld [vmem:[#allocation5 + $0x24] ss:$8 sm:$0x7]  ;;  %v6826_v35 = vld [vmem:[%s10782_s1 + $0x61] ss:$8 sm:$0x3] }
 0x6d0   : > { %6220 = vrot.lane.b32.xlu1 %v6218_v8, %s7185_s24  ;;  %v5752_v8 = vld [vmem:[#allocation5 + $0x4] ss:$8 sm:$0x7]  ;;  %v6054_v25 = vpop.permute.xlu1 %6053  ;;  %v6344_v21 = vpop.permute.xlu0 %6343  ;;  %v6441_v31 = vmul.f32 %v6439_v61, %v6431_v50  ;;  %vm11336_vm8 = vcmask 277504  }
 0x6d1   : > { %v5762_v60 = vmul.f32 %v5760_v30, %v5752_v8  ;;  %v6055_v46 = vrot.slane %v6054_v25, 7 }
 0x6d3   : > { %6238 = vrot.lane.b32.xlu0 %v6236_v5, %s7185_s24  ;;  %v6506_v5 = vld [vmem:[#allocation5 + $0xad] ss:$8 sm:$0x7]  ;;  %v6056_v22 = vsel %vm5825_vm4, %v6055_v46, %v6054_v25 }
 0x6d4   : > { %6183 = vrot.lane.b32.xlu1 %v6181_v0, %s7184_s8  ;;  %v5909_v0 = vsel %vm11333_vm10, %v5908_v57, %v5907_v45  ;;  %v6417_v3 = vpop.permute.xlu0 %6416  ;;  %v6516_v41 = vmul.f32 %v6514_v19, %v6506_v5  ;;  %v6563_v57 = vld [vmem:[#allocation5 + $0xc8] ss:$8 sm:$0x7]  ;;  %vm11337_vm10 = vmmov %vm11335_vm7 }
 0x6d5   : > { %v5911_v4 = vmul.f32 %v5909_v0, %v5902_v58  ;;  %v6418_v40 = vrot.slane %v6417_v3, 7 }
 0x6d7   : > { %6312 = vrot.lane.b32.xlu0 %v6310_v14, %s7186_s14  ;;  %v6533_v14 = vsel %vm6532_vm2, %v6531_v53, %v10542_v37  ;;  %v6802_v37 = vld [vmem:[%s10782_s1 + $0x31] ss:$8 sm:$0x3]  ;;  %v6419_v33 = vsel %vm11336_vm8, %v6418_v40, %v6417_v3  ;;  %vm5767_vm2 = vcmask 1014784   ;;  %vm11340_vm8 = vcmask 769024  }
 0x6d8   : > { %6256 = vrot.lane.b32.xlu1 %v6254_v10, %s7185_s24  ;;  %v6058_v10 = vmul.f32 %v6056_v22, %v6049_v32  ;;  %v6535_v12 = vmul.f32 %v6533_v14, %v6525_v28  ;;  %v6493_v9 = vpop.permute.xlu0 %6492  ;;  %v5739_v28 = vld [vmem:[#allocation5 + $0x3] ss:$8 sm:$0x7] }
 0x6d9   : > { %v6494_v6 = vrot.slane %v6493_v9, 7 }
 0x6db   : > { %6387 = vrot.lane.b32.xlu0 %v6385_v20, %s7180_s12  ;;  %v6345_v20 = vrot.slane %v6344_v21, 7  ;;  %v6495_v7 = vsel %vm6353_vm0, %v6494_v6, %v6493_v9 }
 0x6dc   : > { %6293 = vrot.lane.b32.xlu1 %v6291_v2, %s7186_s14  ;;  %v6200_v2 = vmul.f32 %v6198_v16, %v6190_v63  ;;  %v6568_v24 = vpop.permute.xlu0 %6567  ;;  %v5719_v16 = vrot.slane %v10567_v59, 7 }
 0x6dd   : > { %v6346_v45 = vsel %vm441_vm6, %v6345_v20, %v6344_v21  ;;  %v6569_v18 = vrot.slane %v6568_v24, 7 }
 0x6de   : > { %v6348_v47 = vmul.f32 %v6346_v45, %v6339_v36  ;;  %v5721_v36 = vsel %vm5720_vm14, %v5719_v16, %v10567_v59  ;;  %v5726_v59 = vld [vmem:[#allocation5 + $0x2] ss:$8 sm:$0x7]  ;;  %vm11341_vm14 = vmmov %vm11337_vm10 }
 0x6df   : > { %6462 = vrot.lane.b32.xlu0 %v6460_v49, %s11321_s27  ;;  %v6488_v49 = vld [vmem:[#allocation5 + $0xac] ss:$8 sm:$0x7] }
 0x6e0   : > { %6369 = vrot.lane.b32.xlu1 %v6367_v51, %s7180_s12  ;;  %v5984_v51 = vsel %vm11335_vm7, %v5983_v44, %v10603_v48  ;;  %v6497_v23 = vmul.f32 %v6495_v7, %v6488_v49  ;;  %v6126_v48 = vmul.f32 %v6826_v35, %v6123_v1  ;;  %vm11339_vm7 = vcmask 801792  }
 0x6e1   : > { %v5986_v55 = vmul.f32 %v5984_v51, %v5977_v34 }
 0x6e3   : > { %6481 = vrot.lane.b32.xlu0 %v6479_v26, %s11321_s27  ;;  %v6270_v26 = vsel %vm483_vm3, %v6269_v11, %v10605_v54  ;;  %v6602_v54 = vld [vmem:[#allocation7] sm:$0x1]  ;;  %vm5746_vm3 = vcmask 654336  }
 0x6e4   : > { %6331 = vrot.lane.b32.xlu1 %v6329_v56, %s7181_s7  ;;  %v6263_v56 = vld [vmem:[#allocation5 + $0x88] ss:$8 sm:$0x7] }
 0x6e5   : > { %v6272_v43 = vmul.f32 %v6270_v26, %v6263_v56 }
 0x6e7   : > { %6556 = vrot.lane.b32.xlu0 %v6554_v17, %s11320_s11  ;;  %v6570_v17 = vsel %vm6334_vm9, %v6569_v18, %v6568_v24 }
 0x6e8   : > { %6405 = vrot.lane.b32.xlu1 %v6403_v39, %s7180_s12  ;;  %v6421_v39 = vmul.f32 %v6419_v33, %v6412_v13  ;;  %v6572_v61 = vmul.f32 %v6570_v17, %v6563_v57 }
 0x6eb   : > { %5764 = vrot.lane.b32.xlu0 %v5762_v60, %s7182_s21 }
 0x6ec   : > { %6443 = vrot.lane.b32.xlu1 %v6441_v31, %s7187_s9 }
 0x6ef   : > { %5913 = vrot.lane.b32.xlu0 %v5911_v4, %s7183_s20 }
 0x6f0   : > { %6518 = vrot.lane.b32.xlu1 %v6516_v41, %s11320_s11  ;;  %v5745_v41 = vrot.slane %v10586_v52, 7 }
 0x6f3   : > { %6060 = vrot.lane.b32.xlu0 %v6058_v10, %s7188_s5  ;;  %v5747_v10 = vsel %vm5746_vm3, %v5745_v41, %v10586_v52  ;;  %v5713_v52 = vld [vmem:[#allocation5 + $0x1] ss:$8 sm:$0x7]  ;;  %vm5707_vm3 = vcmask 629760  }
 0x6f4   : > { %6537 = vrot.lane.b32.xlu1 %v6535_v12, %s11320_s11  ;;  %v5749_v9 = vmul.f32 %v5747_v10, %v5739_v28 }
 0x6f7   : > { %6202 = vrot.lane.b32.xlu0 %v6200_v2, %s7185_s24  ;;  %v5732_v2 = vrot.slane %v10582_v62, 7 }
 0x6f8   : > { %5704 = vrot.lane.b32.xlu1 %v6802_v37, %s7184_s8 }
 0x6f9   : > { %v5734_v11 = vsel %vm5733_vm5, %v5732_v2, %v10582_v62  ;;  %vm6277_vm5 = vcmask 490496  }
 0x6fa   : > { %v5736_v17 = vmul.f32 %v5734_v11, %v5726_v59 }
 0x6fb   : > { %6350 = vrot.lane.b32.xlu0 %v6348_v47, %s7180_s12 }
 0x6fc   : > { %5841 = vrot.lane.b32.xlu1 %v5839_v29, %s11318_s13 }
 0x6ff   : > { %6499 = vrot.lane.b32.xlu0 %v6497_v23, %s11320_s11  ;;  %s11357_s11 = sld [smem:[#allocation132_spill]] }
 0x700   : > { %5988 = vrot.lane.b32.xlu1 %v5986_v55, %s11288_s29  ;;  %s7189_s29 = smov 26   ;;  %v5723_v55 = vmul.f32 %v5721_v36, %v5713_v52 }
 0x704   : > { %6128 = vrot.lane.b32.xlu1 %v6126_v48, %s7184_s8 }
 0x708   : > { %6274 = vrot.lane.b32.xlu1 %v6272_v43, %s7186_s14 }
 0x70c   : > { %6423 = vrot.lane.b32.xlu1 %v6421_v39, %s7187_s9 }
 0x710   : > { %6574 = vrot.lane.b32.xlu1 %v6572_v61, %s7189_s29 }
 0x714   : > { %6605 = vperm.xlu1 %7042, %v6602_v54  }
 0x721   : > { %v5785_v30 = vpop.permute.xlu0 %5784 }
 0x722   : > { %v5804_v8 = vpop.permute.xlu1 %5803  ;;  %v5786_v37 = vrot.slane %v5785_v30, 1 }
 0x723   : > { %v5805_v47 = vrot.slane %v5804_v8, 1 }
 0x724   : > { %v5787_v51 = vsel %vm5767_vm2, %v5785_v30, %v5786_v37 }
 0x725   : > { %v5823_v21 = vpop.permute.xlu0 %5822  ;;  %v5806_v40 = vsel %vm5767_vm2, %v5804_v8, %v5805_v47  ;;  %v5789_v18 = vadd.f32 %v5787_v51, %v5723_v55 }
 0x726   : > { %v10660_v25 = vpop.permute.xlu1 %5877  ;;  %v5824_v22 = vrot.slane %v5823_v21, 1 }
 0x727   : > { %v5879_v23 = vrot.slane %v10660_v25, 1 }
 0x728   : > { %v5826_v20 = vsel %vm5825_vm4, %v5823_v21, %v5824_v22  ;;  %vm5916_vm4 = vcmask 875520  }
 0x729   : > { %v5860_v53 = vpop.permute.xlu0 %5859  ;;  %v5828_v6 = vadd.f32 %v5826_v20, %v5749_v9  ;;  %v5880_v30 = vsel %vm11341_vm14, %v10660_v25, %v5879_v23 }
 0x72a   : > { %v10662_v50 = vpop.permute.xlu1 %5952  ;;  %v5861_v45 = vrot.slane %v5860_v53, 1 }
 0x72b   : > { %v5954_v62 = vrot.slane %v10662_v50, 1 }
 0x72c   : > { %v5862_v48 = vsel %vm11338_vm15, %v5860_v53, %v5861_v45  ;;  %vm11343_vm15 = vmmov %vm11339_vm7 }
 0x72d   : > { %v5934_v46 = vpop.permute.xlu0 %5933  ;;  %v5864_v39 = vadd.f32 %v5862_v48, %v5789_v18  ;;  %v5955_v41 = vsel %vm11343_vm15, %v10662_v50, %v5954_v62  ;;  %vm11348_vm15 = vcmask 277504  }
 0x72e   : > { %v5971_v60 = vpop.permute.xlu1 %5970  ;;  %v5935_v49 = vrot.slane %v5934_v46, 1 }
 0x72f   : > { %v5972_v29 = vrot.slane %v5971_v60, 1 }
 0x730   : > { %v5936_v13 = vsel %vm5916_vm4, %v5934_v46, %v5935_v49 }
 0x731   : > { %v5896_v19 = vpop.permute.xlu0 %5895  ;;  %v5973_v24 = vsel %vm11339_vm7, %v5971_v60, %v5972_v29  ;;  %v5808_v60 = vadd.f32 %v5806_v40, %v5736_v17  ;;  %vm11344_vm7 = vcmask 523264  }
 0x732   : > { %v10664_v31 = vpop.permute.xlu1 %6080  ;;  %v5897_v12 = vrot.slane %v5896_v19, 1 }
 0x733   : > { %v6082_v46 = vrot.slane %v10664_v31, 1  ;;  %v5882_v10 = vadd.f32 %v5880_v30, %v5808_v60 }
 0x734   : > { %v5898_v44 = vsel %vm11337_vm10, %v5896_v19, %v5897_v12  ;;  %vm11342_vm10 = vmmov %vm11340_vm8  ;;  %v5938_v19 = vadd.f32 %v5936_v13, %v5864_v39 }
 0x735   : > { %v6007_v0 = vpop.permute.xlu0 %6006  ;;  %v5900_v34 = vadd.f32 %v5898_v44, %v5828_v6  ;;  %v5957_v50 = vadd.f32 %v5955_v41, %v5882_v10  ;;  %v6083_v2 = vsel %vm5759_vm11, %v10664_v31, %v6082_v46  ;;  %vm11345_vm14 = vmmov %vm11342_vm10 }
 0x736   : > { %v6043_v58 = vpop.permute.xlu1 %6042  ;;  %v6008_v56 = vrot.slane %v6007_v0, 1 }
 0x737   : > { %v6044_v7 = vrot.slane %v6043_v58, 1  ;;  %v5975_v43 = vadd.f32 %v5973_v24, %v5900_v34 }
 0x738   : > { %v6009_v8 = vsel %vm11342_vm10, %v6007_v0, %v6008_v56  ;;  %vm11346_vm10 = vmmov %vm11344_vm7 }
 0x739   : > { %v10666_v3 = vpop.permute.xlu0 %6024  ;;  %v6045_v33 = vsel %vm11340_vm8, %v6043_v58, %v6044_v7  ;;  %v6011_v0 = vadd.f32 %v6009_v8, %v5938_v19  ;;  %vm6426_vm8 = vcmask 351232  }
 0x73a   : > { %v6117_v5 = vpop.permute.xlu1 %6116  ;;  %v6047_v58 = vadd.f32 %v6045_v33, %v5975_v43  ;;  %v6026_v22 = vrot.slane %v10666_v3, 1 }
 0x73b   : > { %v6118_v26 = vrot.slane %v6117_v5, 1 }
 0x73c   : > { %v6027_v52 = vsel %vm11345_vm14, %v10666_v3, %v6026_v22  ;;  %vm11350_vm14 = vcmask 908288  }
 0x73d   : > { %v10670_v38 = vpop.permute.xlu0 %6098  ;;  %v6119_v21 = vsel %vm5759_vm11, %v6117_v5, %v6118_v26 }
 0x73e   : > { %v10668_v4 = vpop.permute.xlu1 %6146  ;;  %v6121_v12 = vadd.f32 %v6119_v21, %v6047_v58  ;;  %v6100_v5 = vrot.slane %v10670_v38, 1 }
 0x73f   : > { %v6148_v28 = vrot.slane %v10668_v4, 7 }
 0x740   : > { %v6101_v47 = vsel %vm5759_vm11, %v10670_v38, %v6100_v5  ;;  %vm11347_vm11 = vmmov %vm11344_vm7 }
 0x741   : > { %v10675_v32 = vpop.permute.xlu0 %6164  ;;  %v6149_v36 = vsel %vm5707_vm3, %v6148_v28, %v10668_v4  ;;  %v6029_v4 = vadd.f32 %v6027_v52, %v5957_v50 }
 0x742   : > { %v10673_v14 = vpop.permute.xlu1 %6220  ;;  %v6166_v6 = vrot.slane %v10675_v32, 7 }
 0x743   : > { %v6222_v9 = vrot.slane %v10673_v14, 7  ;;  %v6103_v40 = vadd.f32 %v6101_v47, %v6029_v4 }
 0x744   : > { %v6167_v59 = vsel %vm5707_vm3, %v6166_v6, %v10675_v32 }
 0x745   : > { %v10678_v63 = vpop.permute.xlu0 %6238  ;;  %v6223_v7 = vsel %vm11346_vm10, %v6222_v9, %v10673_v14  ;;  %v6169_v17 = vadd.f32 %v6167_v59, %v6103_v40  ;;  %vm6063_vm10 = vcmask 736256  }
 0x746   : > { %v6184_v15 = vpop.permute.xlu1 %6183  ;;  %v6240_v34 = vrot.slane %v10678_v63, 7 }
 0x747   : > { %v6185_v57 = vrot.slane %v6184_v15, 7 }
 0x748   : > { %v6241_v14 = vsel %vm11347_vm11, %v6240_v34, %v10678_v63  ;;  %vm11351_vm11 = vcmask 769024  }
 0x749   : > { %v10684_v42 = vpop.permute.xlu0 %6312  ;;  %v6186_v25 = vsel %vm5707_vm3, %v6185_v57, %v6184_v15  ;;  %v6243_v60 = vadd.f32 %v6241_v14, %v6169_v17 }
 0x74a   : > { %v6257_v27 = vpop.permute.xlu1 %6256  ;;  %v6188_v15 = vadd.f32 %v6186_v25, %v6121_v12  ;;  %v6314_v24 = vrot.slane %v10684_v42, 7 }
 0x74b   : > { %v6258_v53 = vrot.slane %v6257_v27, 7 }
 0x74c   : > { %v6315_v8 = vsel %vm6277_vm5, %v6314_v24, %v10684_v42 }
 0x74d   : > { %v10692_v35 = vpop.permute.xlu0 %6387  ;;  %v6259_v37 = vsel %vm11344_vm7, %v6258_v53, %v6257_v27  ;;  %v6085_v27 = vadd.f32 %v6083_v2, %v6011_v0  ;;  %v6317_v22 = vadd.f32 %v6315_v8, %v6243_v60  ;;  %vm11349_vm7 = vmmov %vm11348_vm15 }
 0x74e   : > { %v10690_v1 = vpop.permute.xlu1 %6293  ;;  %v6261_v31 = vadd.f32 %v6259_v37, %v6188_v15  ;;  %v6389_v13 = vrot.slane %v10692_v35, 7 }
 0x74f   : > { %v6295_v45 = vrot.slane %v10690_v1, 7  ;;  %v6151_v23 = vadd.f32 %v6149_v36, %v6085_v27 }
 0x750   : > { %v6390_v58 = vsel %vm6353_vm0, %v6389_v13, %v10692_v35 }
 0x751   : > { %v10700_v54 = vpop.permute.xlu0 %6462  ;;  %v6296_v38 = vsel %vm6277_vm5, %v6295_v45, %v10690_v1  ;;  %v6225_v18 = vadd.f32 %v6223_v7, %v6151_v23  ;;  %v6392_v10 = vadd.f32 %v6390_v58, %v6317_v22 }
 0x752   : > { %v6370_v61 = vpop.permute.xlu1 %6369  ;;  %v6464_v21 = vrot.slane %v10700_v54, 7 }
 0x753   : > { %v6371_v3 = vrot.slane %v6370_v61, 7  ;;  %v6298_v39 = vadd.f32 %v6296_v38, %v6225_v18 }
 0x754   : > { %v6465_v42 = vsel %vm11349_vm7, %v6464_v21, %v10700_v54  ;;  %v5700_v54 = vld [vmem:[#allocation5] ss:$8 sm:$0x7] }
 0x755   : > { %v6482_v20 = vpop.permute.xlu0 %6481  ;;  %v6372_v32 = vsel %vm6353_vm0, %v6371_v3, %v6370_v61 }
 0x756   : > { %v6332_v16 = vpop.permute.xlu1 %6331  ;;  %v6483_v55 = vrot.slane %v6482_v20, 7  ;;  %v6374_v19 = vadd.f32 %v6372_v32, %v6298_v39 }
 0x757   : > { %v6333_v44 = vrot.slane %v6332_v16, 7 }
 0x758   : > { %v6484_v33 = vsel %vm11348_vm15, %v6483_v55, %v6482_v20  ;;  %v6467_v20 = vadd.f32 %v6465_v42, %v6392_v10 }
 0x759   : > { %v6335_v29 = vsel %vm6334_vm9, %v6333_v44, %v6332_v16  ;;  %v6557_v49 = vpop.permute.xlu0 %6556 }
 0x75a   : > { %v6406_v51 = vpop.permute.xlu1 %6405  ;;  %v6337_v48 = vadd.f32 %v6335_v29, %v6261_v31  ;;  %v6558_v26 = vrot.slane %v6557_v49, 7 }
 0x75b   : > { %v6407_v11 = vrot.slane %v6406_v51, 7 }
 0x75c   : > { %v6559_v63 = vsel %vm441_vm6, %v6558_v26, %v6557_v49 }
 0x75d   : > { %v6408_v56 = vsel %vm6353_vm0, %v6407_v11, %v6406_v51  ;;  %v5765_v30 = vpop.permute.xlu0 %5764 }
 0x75e   : > { %v6410_v43 = vadd.f32 %v6408_v56, %v6337_v48  ;;  %v6444_v62 = vpop.permute.xlu1 %6443  ;;  %v5766_v44 = vrot.slane %v5765_v30, 1 }
 0x75f   : > { %v6445_v57 = vrot.slane %v6444_v62, 7 }
 0x760   : > { %v6486_v1 = vadd.f32 %v6484_v33, %v6410_v43  ;;  %v5768_v36 = vsel %vm5767_vm2, %v5765_v30, %v5766_v44  ;;  %vm11352_vm2 = vcmask 523264  }
 0x761   : > { %v6446_v53 = vsel %vm6426_vm8, %v6445_v57, %v6444_v62  ;;  %v5914_v12 = vpop.permute.xlu0 %5913 }
 0x762   : > { %v6561_v46 = vadd.f32 %v6559_v63, %v6486_v1  ;;  %v6519_v61 = vpop.permute.xlu1 %6518  ;;  %v6448_v28 = vadd.f32 %v6446_v53, %v6374_v19  ;;  %v5915_v45 = vrot.slane %v5914_v12, 1 }
 0x763   : > { %v6520_v41 = vrot.slane %v6519_v61, 7 }
 0x764   : > { %6596 = vrot.lane.b32.xlu1 %v6561_v46, %s7164_s6  ;;  %v5917_v49 = vsel %vm5916_vm4, %v5914_v12, %v5915_v45  ;;  %vm6577_vm4 = vcmask 211968  }
 0x765   : > { %v6521_v25 = vsel %vm441_vm6, %v6520_v41, %v6519_v61  ;;  %v6061_v2 = vpop.permute.xlu0 %6060 }
 0x766   : > { %v6523_v0 = vadd.f32 %v6521_v25, %v6448_v28  ;;  %v6538_v5 = vpop.permute.xlu1 %6537  ;;  %v6062_v7 = vrot.slane %v6061_v2, 1 }
 0x767   : > { %v6539_v16 = vrot.slane %v6538_v5, 7 }
 0x768   : > { %6582 = vrot.lane.b32.xlu0 %v6523_v0, %s10930_s25  ;;  %v6064_v59 = vsel %vm6063_vm10, %v6061_v2, %v6062_v7  ;;  %s11353_s25 = sld [smem:[#allocation9_spill]] }
 0x769   : > { %v6540_v35 = vsel %vm441_vm6, %v6539_v16, %v6538_v5  ;;  %v6203_v34 = vpop.permute.xlu0 %6202 }
 0x76a   : > { %v6542_v9 = vadd.f32 %v6540_v35, %v6467_v20  ;;  %v5705_v37 = vpop.permute.xlu1 %5704  ;;  %v6204_v48 = vrot.slane %v6203_v34, 7 }
 0x76b   : > { %v5706_v50 = vrot.slane %v5705_v37, 7 }
 0x76c   : > { %6589 = vrot.lane.b32.xlu0 %v6542_v9, %s10931_s26  ;;  %v6205_v14 = vsel %vm11352_vm2, %v6204_v48, %v6203_v34  ;;  %v11355_v9 = vld [vmem:[#allocation12_spill] sm:$0xff] }
 0x76d   : > { %v5708_v6 = vsel %vm5707_vm3, %v5706_v50, %v5705_v37  ;;  %v6351_v38 = vpop.permute.xlu0 %6350 }
 0x76e   : > { %v5710_v15 = vmul.f32 %v5708_v6, %v5700_v54  ;;  %v5842_v52 = vpop.permute.xlu1 %5841  ;;  %v6352_v43 = vrot.slane %v6351_v38, 7  ;;  %s11356_s26 = sshll.u32 %s11353_s25, 1 }
 0x76f   : > { %v5843_v29 = vrot.slane %v5842_v52, 1  ;;  %s302_s12 = scalar_lea.vmem %s11357_s11, %s11356_s26 }
 0x770   : > { %v5770_v27 = vadd.f32 %v5768_v36, %v5710_v15  ;;  %v6354_v17 = vsel %vm6353_vm0, %v6352_v43, %v6351_v38  ;;  %vm11354_vm0 = vcmask 1031168  }
 0x771   : > { %v5844_v47 = vsel %vm11350_vm14, %v5842_v52, %v5843_v29  ;;  %v6500_v21 = vpop.permute.xlu0 %6499 }
 0x772   : > { %v5846_v31 = vadd.f32 %v5844_v47, %v5770_v27  ;;  %v5989_v51 = vpop.permute.xlu1 %5988  ;;  %v6501_v53 = vrot.slane %v6500_v21, 7 }
 0x773   : > { %v5990_v3 = vrot.slane %v5989_v51, 1 }
 0x774   : > { %v5919_v55 = vadd.f32 %v5917_v49, %v5846_v31  ;;  %v6502_v46 = vsel %vm441_vm6, %v6501_v53, %v6500_v21 }
 0x775   : > { %v5991_v11 = vsel %vm11351_vm11, %v5989_v51, %v5990_v3 }
 0x776   : > { %v5993_v4 = vadd.f32 %v5991_v11, %v5919_v55  ;;  %v6129_v23 = vpop.permute.xlu1 %6128 }
 0x777   : > { %v6130_v24 = vrot.slane %v6129_v23, 7 }
 0x778   : > { %v6066_v56 = vadd.f32 %v6064_v59, %v5993_v4 }
 0x779   : > { %v6131_v26 = vsel %vm5707_vm3, %v6130_v24, %v6129_v23 }
 0x77a   : > { %v6133_v40 = vadd.f32 %v6131_v26, %v6066_v56  ;;  %v6275_v18 = vpop.permute.xlu1 %6274 }
 0x77b   : > { %v6276_v62 = vrot.slane %v6275_v18, 7 }
 0x77c   : > { %v6207_v13 = vadd.f32 %v6205_v14, %v6133_v40 }
 0x77d   : > { %v6278_v32 = vsel %vm6277_vm5, %v6276_v62, %v6275_v18 }
 0x77e   : > { %v6280_v33 = vadd.f32 %v6278_v32, %v6207_v13  ;;  %v6424_v57 = vpop.permute.xlu1 %6423 }
 0x77f   : > { %v6425_v39 = vrot.slane %v6424_v57, 7 }
 0x780   : > { %v6356_v1 = vadd.f32 %v6354_v17, %v6280_v33 }
 0x781   : > { %v6427_v30 = vsel %vm6426_vm8, %v6425_v39, %v6424_v57 }
 0x782   : > { %v6429_v8 = vadd.f32 %v6427_v30, %v6356_v1  ;;  %v6575_v63 = vpop.permute.xlu1 %6574 }
 0x783   : > { %v6576_v60 = vrot.slane %v6575_v63, 7 }
 0x784   : > { %v6504_v61 = vadd.f32 %v6502_v46, %v6429_v8 }
 0x785   : > { %v6578_v41 = vsel %vm6577_vm4, %v6576_v60, %v6575_v63 }
 0x786   : > { %v6580_v25 = vadd.f32 %v6578_v41, %v6504_v61 }
 0x793   : > { %v6606_v19 = vpop.permute.xlu1 %6605 }
 0x794   : > { %v6611_v37 = vrot.slane %v6606_v19, %v11355_v9 }
 0x7d6   : > { %v6597_v28 = vpop.permute.xlu1 %6596 }
 0x7d7   : > { %v6598_v0 = vrot.slane %v6597_v28, 1 }
 0x7d9   : > { %v6599_v35 = vsel %vm6075_vm12, %v6597_v28, %v6598_v0 }
 0x7da   : > { %v6583_v58 = vpop.permute.xlu0 %6582 }
 0x7db   : > { %v6584_v22 = vrot.slane %v6583_v58, 1 }
 0x7dd   : > { %v6585_v42 = vsel %vm580_vm13, %v6583_v58, %v6584_v22 }
 0x7de   : > { %v6590_v10 = vpop.permute.xlu0 %6589  ;;  %v6587_v5 = vadd.f32 %v6585_v42, %v6580_v25 }
 0x7df   : > { %v6591_v12 = vrot.slane %v6590_v10, 1 }
 0x7e1   : > { %v6592_v16 = vsel %vm11354_vm0, %v6590_v10, %v6591_v12 }
 0x7e2   : > { %v6594_v20 = vadd.f32 %v6592_v16, %v6587_v5 }
 0x7e4   : > { %v6601_v44 = vadd.f32 %v6599_v35, %v6594_v20 }
 0x7e6   : > { %v6612_v50 = vadd.f32 %v6611_v37, %v6601_v44 }
 0x7e8   : > { %6614 = vrot.lane.b32.xlu0 %v6612_v50, %s7181_s7 }
 0x85a   : > { %v6615_v2 = vpop.permute.xlu0 %6614 }
 0x85b   : > { %v6616_v54 = vrot.slane %v6615_v2, 1 }
 0x85d   : > { %v6617_v6 = vsel %vm6334_vm9, %v6615_v2, %v6616_v54 }
 0x85e   : > { %6619 = vst.msk [vmem:[%s302_s12] sm:$0x3] %vm7311_vm1, %v6617_v6 }
 0x85f PF: > { %s11359_s16 = sld [smem:[#allocation8_spill]] }
 0x865   : > { %s20_s29 = sadd.s32 1, %s11359_s16  }
 0x866   : > { %p17_p4 = scmp.ge.s32.totalorder %s20_s29, 4  }
 0x868   :  { %19 = sbr.rel (!%p17_p4) target bundleno = 7 (0x7), region = 227 }

</bundles_post_ra>
